<compile_context>
chip_gen: v6e
topology: v6e:2x2x1
jax: 0.10.0
libtpu: 0.0.40
codegen_flags: <defaults>
</compile_context>

<pallas_src>
import jax
import jax.numpy as jnp
from jax.experimental import pallas as pl
from jax.experimental.pallas import tpu as pltpu

EPS = 1e-5
_LANE = 128


def _rup(n, m):
    return ((n + m - 1) // m) * m


# ---------------------------------------------------------------------------
# In-kernel building blocks (everything operates on small VMEM-resident values)
# ---------------------------------------------------------------------------
def _conv_bn_relu(h, w_ref, sb_ref):
    """Conv1d(stride=1, dil=1; padding=2 already baked into h) + folded BN + ReLU.

    h:      (l_out + K - 1, Cin) bf16 value (2 zero rows per side included)
    w_ref:  (K, Cin, Cout) bf16
    sb_ref: (2, Cout) f32; row 0 = folded scale, row 1 = folded shift
    """
    K = w_ref.shape[0]
    l_out = h.shape[0] - K + 1
    acc = jnp.dot(h[0:l_out], w_ref[0], preferred_element_type=jnp.float32)
    for k in range(1, K):
        acc = acc + jnp.dot(h[k:k + l_out], w_ref[k],
                            preferred_element_type=jnp.float32)
    y = acc * sb_ref[0] + sb_ref[1]
    return jnp.maximum(y, 0.0).astype(jnp.bfloat16)


def _pool_pad(p_ref, h):
    """AvgPool1d + 2-row zero padding for the next conv, as ONE MXU matmul with
    a precomputed 0/1 matrix (the 1/pool_k factor is folded into the next BN
    scale so the matrix entries are exactly representable in bf16)."""
    return jnp.dot(p_ref[...], h,
                   preferred_element_type=jnp.float32).astype(jnp.bfloat16)


def _pad2(h):
    z = jnp.zeros((2, h.shape[1]), h.dtype)
    return jnp.concatenate([z, h, z], axis=0)


def _convnet_kernel(x_ref, p0_ref, w1_ref, sb1_ref, w2_ref, sb2_ref, p1_ref,
                    w3_ref, sb3_ref, p2_ref, w4_ref, sb4_ref, p3_ref,
                    w5_ref, sb5_ref, wfc_ref, bfc_ref, o_ref):
    """Entire convnet forward for one batch element; grid=(B,), 'parallel'."""
    x = x_ref[0].astype(jnp.bfloat16)                      # (Cin, L) raw NCL row
    # AvgPool1D0 + conv1's zero padding, fused with the NCL->NLC transpose:
    # h[r, c] = sum_t p0[r, t] * x[c, t]
    h = jax.lax.dot_general(p0_ref[...], x, (((1,), (1,)), ((), ())),
                            preferred_element_type=jnp.float32)
    h = h.astype(jnp.bfloat16)                             # (l0 + 4, Cin)
    h = _conv_bn_relu(h, w1_ref, sb1_ref)                  # conv1      (l1, 8)
    h = _pad2(h)
    h = _conv_bn_relu(h, w2_ref, sb2_ref)                  # incept1    (l2, 36)
    h = _pool_pad(p1_ref, h)                               # pool1+pad  (l2//3+4, 36)
    h = _conv_bn_relu(h, w3_ref, sb3_ref)                  # incept2    (l3, 108)
    h = _pool_pad(p2_ref, h)                               # pool2+pad
    h = _conv_bn_relu(h, w4_ref, sb4_ref)                  # incept3    (l4, 324)
    h = _pool_pad(p3_ref, h)                               # pool3+pad  (l4//3+4, 324)
    h = _conv_bn_relu(h, w5_ref, sb5_ref)                  # conv_out   (l5, 324)
    # fc1 + tanh, consuming the channels-last activation directly (torch's
    # channel-major flatten order is baked into wfc at prepare time).
    acc = bfc_ref[...]                                     # (1, U_pad) f32
    for l in range(wfc_ref.shape[0]):
        acc = acc + jnp.dot(h[l:l + 1], wfc_ref[l],
                            preferred_element_type=jnp.float32)
    o_ref[0] = jnp.tanh(acc)


# ---------------------------------------------------------------------------
# Parameter init (PyTorch-like) and one-time weight folding / packing
# ---------------------------------------------------------------------------
def init_conbr(key, c_in, c_out, k):
    k1, k2 = jax.random.split(key)
    bound = 1.0 / (c_in * k) ** 0.5
    W = jax.random.uniform(k1, (c_out, c_in, k), jnp.float32, -bound, bound)
    b = jax.random.uniform(k2, (c_out,), jnp.float32, -bound, bound)
    gamma = jnp.ones((c_out,), jnp.float32)                 # PyTorch BN defaults
    beta = jnp.zeros((c_out,), jnp.float32)
    rmean = jnp.zeros((c_out,), jnp.float32)
    rvar = jnp.ones((c_out,), jnp.float32)
    return (W, b, gamma, beta, rmean, rvar)


def init_params(key, c_in, c_out, k, linear_unit, fc_in=3564):
    keys = jax.random.split(key, 13)
    params = {}
    params["conv1"] = init_conbr(keys[0], c_in, c_out, k)
    params["incept1"] = [init_conbr(keys[1 + i], c_out, 12, k) for i in range(3)]
    params["incept2"] = [init_conbr(keys[4 + i], 36, 36, k) for i in range(3)]
    params["incept3"] = [init_conbr(keys[7 + i], 108, 108, k) for i in range(3)]
    params["conv_out"] = init_conbr(keys[10], 324, 324, 1)
    bound = 1.0 / fc_in ** 0.5
    Wfc = jax.random.uniform(keys[11], (linear_unit, fc_in), jnp.float32, -bound, bound)
    bfc = jax.random.uniform(keys[12], (linear_unit,), jnp.float32, -bound, bound)
    params["fc1"] = (Wfc, bfc)
    return params


def _fold_conv(branches, pre_pool):
    """Fuse Inception branches along C_out, fold conv bias + eval-mode BN into a
    (scale, shift) pair, fold the preceding AvgPool's 1/k into the scale, and
    pack the weight as (K, Cin, Cout) bf16 with real channel widths."""
    W = jnp.concatenate([p[0] for p in branches], axis=0)       # (Cout, Cin, K)
    b = jnp.concatenate([p[1] for p in branches], axis=0)
    gamma = jnp.concatenate([p[2] for p in branches], axis=0)
    beta = jnp.concatenate([p[3] for p in branches], axis=0)
    rmean = jnp.concatenate([p[4] for p in branches], axis=0)
    rvar = jnp.concatenate([p[5] for p in branches], axis=0)
    s = gamma / jnp.sqrt(rvar + EPS)
    shift = beta + (b - rmean) * s
    wk = jnp.transpose(W, (2, 1, 0)).astype(jnp.bfloat16)       # (K, Cin, Cout)
    sb = jnp.stack([s / pre_pool, shift]).astype(jnp.float32)   # (2, Cout)
    return wk, sb


def _pool_matrix(l_in, pk, pad=2):
    """0/1 matrix implementing AvgPool1d(pk, pk) (sum only) plus `pad` zero rows
    on each side (= the next conv's padding=2)."""
    l_out = l_in // pk
    rows = jnp.arange(pad + l_out + pad)[:, None] - pad
    cols = jnp.arange(l_in)[None, :]
    hit = (rows >= 0) & (rows < l_out) & (cols >= rows * pk) & (cols < (rows + 1) * pk)
    return hit.astype(jnp.bfloat16)


def prepare_params(raw, *, seq_len, fs, kernel_size, stride):
    assert stride == 1, "only stride=1 is implemented (fc1 in_features=3564 implies it)"
    K = kernel_size
    pk0 = fs // 4

    def conv_len(l):                     # Conv1d(stride=1, dilation=1, padding=2)
        return l + 2 * 2 - (K - 1)

    l0 = seq_len // pk0
    l1 = conv_len(l0)                    # conv1
    l2 = conv_len(l1)                    # incept1
    l3 = conv_len(l2 // 3)               # incept2
    l4 = conv_len(l3 // 3)               # incept3
    l5 = (l4 // 3) + 2 * 2               # conv_out (K=1, padding=2)

    p = {}
    p["p0"] = _pool_matrix(seq_len, pk0)
    p["w1"], p["sb1"] = _fold_conv([raw["conv1"]], pre_pool=pk0)
    p["w2"], p["sb2"] = _fold_conv(raw["incept1"], pre_pool=1)
    p["p1"] = _pool_matrix(l2, 3)
    p["w3"], p["sb3"] = _fold_conv(raw["incept2"], pre_pool=3)
    p["p2"] = _pool_matrix(l3, 3)
    p["w4"], p["sb4"] = _fold_conv(raw["incept3"], pre_pool=3)
    p["p3"] = _pool_matrix(l4, 3)
    p["w5"], p["sb5"] = _fold_conv([raw["conv_out"]], pre_pool=3)

    # fc1: torch flattens (B, C, L) channel-major; bake that order into the
    # weight so the kernel consumes the channels-last (L, C) activation
    # without any transpose/reshape:  wfc[l, c, u] = Wfc[u, c*l5 + l].
    w_fc, b_fc = raw["fc1"]
    units, fc_in = w_fc.shape
    c_out = p["w5"].shape[-1]
    assert fc_in == c_out * l5, (fc_in, c_out, l5)
    u_pad = _rup(units, _LANE)
    wfc = jnp.transpose(w_fc.reshape(units, c_out, l5), (2, 1, 0))   # (l5, C, U)
    p["wfc"] = jnp.pad(wfc, ((0, 0), (0, 0), (0, u_pad - units))).astype(jnp.bfloat16)
    p["bfc"] = jnp.pad(b_fc, (0, u_pad - units)).reshape(1, u_pad).astype(jnp.float32)
    p["units"] = units
    return p


_ARG_ORDER = ("p0", "w1", "sb1", "w2", "sb2", "p1", "w3", "sb3", "p2",
              "w4", "sb4", "p3", "w5", "sb5", "wfc", "bfc")


# ---------------------------------------------------------------------------
# Forward pass: ONE pallas_call for the whole network
# ---------------------------------------------------------------------------
def convnet_forward(x_ncl, prep):
    """x_ncl: (B, C_in, L) float32 in the PyTorch NCL layout."""
    B, c_in, L = x_ncl.shape
    consts = [prep[k] for k in _ARG_ORDER]
    u_pad = prep["wfc"].shape[-1]

    def _const_spec(a):
        zeros = (0,) * a.ndim
        return pl.BlockSpec(a.shape, lambda b, _z=zeros: _z)

    out = pl.pallas_call(
        _convnet_kernel,
        out_shape=jax.ShapeDtypeStruct((B, 1, u_pad), jnp.float32),
        grid=(B,),
        in_specs=[pl.BlockSpec((1, c_in, L), lambda b: (b, 0, 0))]
                 + [_const_spec(a) for a in consts],
        out_specs=pl.BlockSpec((1, 1, u_pad), lambda b: (b, 0, 0)),
        compiler_params=pltpu.CompilerParams(
            dimension_semantics=("parallel",)),
    )(x_ncl, *consts)
    out = out[:, 0, :prep["units"]]
    return jnp.squeeze(out), None


# ---------------------------------------------------------------------------
if __name__ == "__main__":
    key = jax.random.PRNGKey(0)
    kx, kp = jax.random.split(key)

    # Self-consistent configuration:
    #   fs=16 (non-'ppg') -> AvgPool1D0(kernel=4, stride=4)
    #   L=756 -> 189 -> 189 -> 189 -> 63 -> 63 -> 21 -> 21 -> 7 -> conv_out(pad=2) -> 11
    #   flatten: 324 * 11 = 3564 == fc1 input features
    B, C_in, L = 2, 4, 756
    C_out = 8
    kernel_size, stride = 5, 1
    fs = 16
    linear_unit = 32

    x = jax.random.normal(kx, (B, C_in, L), jnp.float32)
    raw = init_params(kp, C_in, C_out, kernel_size, linear_unit)
    prep = prepare_params(raw, seq_len=L, fs=fs,
                          kernel_size=kernel_size, stride=stride)

    fwd = jax.jit(lambda inp: convnet_forward(inp, prep))
    out, aux = fwd(x)
    out = jax.block_until_ready(out)
    assert out.shape == (B, linear_unit), out.shape
    assert aux is None
    assert bool(jnp.all(jnp.isfinite(out)))
    print("KERNEL_OK")
</pallas_src>

<mosaic_0001>
module attributes {stable_mosaic.version = 11 : i64} {
  func.func @_convnet_kernel(%arg0: i32, %arg1: memref<1x4x756xf32, #tpu.memory_space<vmem>>, %arg2: memref<193x756xbf16, #tpu.memory_space<vmem>>, %arg3: memref<5x4x8xbf16, #tpu.memory_space<vmem>>, %arg4: memref<2x8xf32, #tpu.memory_space<vmem>>, %arg5: memref<5x8x36xbf16, #tpu.memory_space<vmem>>, %arg6: memref<2x36xf32, #tpu.memory_space<vmem>>, %arg7: memref<67x189xbf16, #tpu.memory_space<vmem>>, %arg8: memref<5x36x108xbf16, #tpu.memory_space<vmem>>, %arg9: memref<2x108xf32, #tpu.memory_space<vmem>>, %arg10: memref<25x63xbf16, #tpu.memory_space<vmem>>, %arg11: memref<5x108x324xbf16, #tpu.memory_space<vmem>>, %arg12: memref<2x324xf32, #tpu.memory_space<vmem>>, %arg13: memref<11x21xbf16, #tpu.memory_space<vmem>>, %arg14: memref<1x324x324xbf16, #tpu.memory_space<vmem>>, %arg15: memref<2x324xf32, #tpu.memory_space<vmem>>, %arg16: memref<11x324x128xbf16, #tpu.memory_space<vmem>>, %arg17: memref<1x128xf32, #tpu.memory_space<vmem>>, %arg18: memref<1x1x128xf32, #tpu.memory_space<vmem>>) attributes {dimension_semantics = [#tpu.dimension_semantics<parallel>], iteration_bounds = array<i64: 2>, scalar_prefetch = 0 : i64, scratch_operands = 0 : i64, tpu.core_type = #tpu.core_type<tc>, window_params = [{transform_indices = @transform_0, window_bounds = array<i64: 1, 4, 756>}, {pipeline_mode = #tpu.pipeline_mode<synchronous>, transform_indices = @transform_1, window_bounds = array<i64: 193, 756>}, {pipeline_mode = #tpu.pipeline_mode<synchronous>, transform_indices = @transform_2, window_bounds = array<i64: 5, 4, 8>}, {pipeline_mode = #tpu.pipeline_mode<synchronous>, transform_indices = @transform_3, window_bounds = array<i64: 2, 8>}, {pipeline_mode = #tpu.pipeline_mode<synchronous>, transform_indices = @transform_4, window_bounds = array<i64: 5, 8, 36>}, {pipeline_mode = #tpu.pipeline_mode<synchronous>, transform_indices = @transform_5, window_bounds = array<i64: 2, 36>}, {pipeline_mode = #tpu.pipeline_mode<synchronous>, transform_indices = @transform_6, window_bounds = array<i64: 67, 189>}, {pipeline_mode = #tpu.pipeline_mode<synchronous>, transform_indices = @transform_7, window_bounds = array<i64: 5, 36, 108>}, {pipeline_mode = #tpu.pipeline_mode<synchronous>, transform_indices = @transform_8, window_bounds = array<i64: 2, 108>}, {pipeline_mode = #tpu.pipeline_mode<synchronous>, transform_indices = @transform_9, window_bounds = array<i64: 25, 63>}, {pipeline_mode = #tpu.pipeline_mode<synchronous>, transform_indices = @transform_10, window_bounds = array<i64: 5, 108, 324>}, {pipeline_mode = #tpu.pipeline_mode<synchronous>, transform_indices = @transform_11, window_bounds = array<i64: 2, 324>}, {pipeline_mode = #tpu.pipeline_mode<synchronous>, transform_indices = @transform_12, window_bounds = array<i64: 11, 21>}, {pipeline_mode = #tpu.pipeline_mode<synchronous>, transform_indices = @transform_13, window_bounds = array<i64: 1, 324, 324>}, {pipeline_mode = #tpu.pipeline_mode<synchronous>, transform_indices = @transform_14, window_bounds = array<i64: 2, 324>}, {pipeline_mode = #tpu.pipeline_mode<synchronous>, transform_indices = @transform_15, window_bounds = array<i64: 11, 324, 128>}, {pipeline_mode = #tpu.pipeline_mode<synchronous>, transform_indices = @transform_16, window_bounds = array<i64: 1, 128>}, {transform_indices = @transform_17, window_bounds = array<i64: 1, 1, 128>}]} {
    %c0 = arith.constant 0 : index
    %c0_0 = arith.constant 0 : index
    %c0_1 = arith.constant 0 : index
    %0 = vector.load %arg1[%c0, %c0_0, %c0_1] : memref<1x4x756xf32, #tpu.memory_space<vmem>>, vector<1x4x756xf32>
    %1 = vector.shape_cast %0 : vector<1x4x756xf32> to vector<4x756xf32>
    %2 = arith.truncf %1 : vector<4x756xf32> to vector<4x756xbf16>
    %c0_2 = arith.constant 0 : index
    %c0_3 = arith.constant 0 : index
    %3 = vector.load %arg2[%c0_2, %c0_3] : memref<193x756xbf16, #tpu.memory_space<vmem>>, vector<193x756xbf16>
    %cst = arith.constant dense<0.000000e+00> : vector<193x4xf32>
    %4 = tpu.matmul %3, %2, %cst {dimension_numbers = #tpu.dot_dimension_numbers<[1], [1], [0], [0], [0, 0, 1, 0], [], []>} : vector<193x756xbf16>, vector<4x756xbf16>, vector<193x4xf32> -> vector<193x4xf32>
    %5 = arith.truncf %4 : vector<193x4xf32> to vector<193x4xbf16>
    %6 = vector.extract_strided_slice %5 {offsets = [0, 0], sizes = [189, 4], strides = [1, 1]} : vector<193x4xbf16> to vector<189x4xbf16>
    %c0_4 = arith.constant 0 : index
    %c0_5 = arith.constant 0 : index
    %c0_6 = arith.constant 0 : index
    %7 = vector.load %arg3[%c0_4, %c0_5, %c0_6] : memref<5x4x8xbf16, #tpu.memory_space<vmem>>, vector<1x4x8xbf16>
    %8 = vector.shape_cast %7 : vector<1x4x8xbf16> to vector<4x8xbf16>
    %cst_7 = arith.constant dense<0.000000e+00> : vector<189x8xf32>
    %9 = tpu.matmul %6, %8, %cst_7 {dimension_numbers = #tpu.dot_dimension_numbers<[1], [0], [0], [1], [0, 0, 1, 1], [], []>} : vector<189x4xbf16>, vector<4x8xbf16>, vector<189x8xf32> -> vector<189x8xf32>
    %10 = vector.extract_strided_slice %5 {offsets = [1, 0], sizes = [189, 4], strides = [1, 1]} : vector<193x4xbf16> to vector<189x4xbf16>
    %c1 = arith.constant 1 : index
    %c0_8 = arith.constant 0 : index
    %c0_9 = arith.constant 0 : index
    %11 = vector.load %arg3[%c1, %c0_8, %c0_9] : memref<5x4x8xbf16, #tpu.memory_space<vmem>>, vector<1x4x8xbf16>
    %12 = vector.shape_cast %11 : vector<1x4x8xbf16> to vector<4x8xbf16>
    %cst_10 = arith.constant dense<0.000000e+00> : vector<189x8xf32>
    %13 = tpu.matmul %10, %12, %cst_10 {dimension_numbers = #tpu.dot_dimension_numbers<[1], [0], [0], [1], [0, 0, 1, 1], [], []>} : vector<189x4xbf16>, vector<4x8xbf16>, vector<189x8xf32> -> vector<189x8xf32>
    %14 = arith.addf %9, %13 : vector<189x8xf32>
    %15 = vector.extract_strided_slice %5 {offsets = [2, 0], sizes = [189, 4], strides = [1, 1]} : vector<193x4xbf16> to vector<189x4xbf16>
    %c2 = arith.constant 2 : index
    %c0_11 = arith.constant 0 : index
    %c0_12 = arith.constant 0 : index
    %16 = vector.load %arg3[%c2, %c0_11, %c0_12] : memref<5x4x8xbf16, #tpu.memory_space<vmem>>, vector<1x4x8xbf16>
    %17 = vector.shape_cast %16 : vector<1x4x8xbf16> to vector<4x8xbf16>
    %cst_13 = arith.constant dense<0.000000e+00> : vector<189x8xf32>
    %18 = tpu.matmul %15, %17, %cst_13 {dimension_numbers = #tpu.dot_dimension_numbers<[1], [0], [0], [1], [0, 0, 1, 1], [], []>} : vector<189x4xbf16>, vector<4x8xbf16>, vector<189x8xf32> -> vector<189x8xf32>
    %19 = arith.addf %14, %18 : vector<189x8xf32>
    %20 = vector.extract_strided_slice %5 {offsets = [3, 0], sizes = [189, 4], strides = [1, 1]} : vector<193x4xbf16> to vector<189x4xbf16>
    %c3 = arith.constant 3 : index
    %c0_14 = arith.constant 0 : index
    %c0_15 = arith.constant 0 : index
    %21 = vector.load %arg3[%c3, %c0_14, %c0_15] : memref<5x4x8xbf16, #tpu.memory_space<vmem>>, vector<1x4x8xbf16>
    %22 = vector.shape_cast %21 : vector<1x4x8xbf16> to vector<4x8xbf16>
    %cst_16 = arith.constant dense<0.000000e+00> : vector<189x8xf32>
    %23 = tpu.matmul %20, %22, %cst_16 {dimension_numbers = #tpu.dot_dimension_numbers<[1], [0], [0], [1], [0, 0, 1, 1], [], []>} : vector<189x4xbf16>, vector<4x8xbf16>, vector<189x8xf32> -> vector<189x8xf32>
    %24 = arith.addf %19, %23 : vector<189x8xf32>
    %25 = vector.extract_strided_slice %5 {offsets = [4, 0], sizes = [189, 4], strides = [1, 1]} : vector<193x4xbf16> to vector<189x4xbf16>
    %c4 = arith.constant 4 : index
    %c0_17 = arith.constant 0 : index
    %c0_18 = arith.constant 0 : index
    %26 = vector.load %arg3[%c4, %c0_17, %c0_18] : memref<5x4x8xbf16, #tpu.memory_space<vmem>>, vector<1x4x8xbf16>
    %27 = vector.shape_cast %26 : vector<1x4x8xbf16> to vector<4x8xbf16>
    %cst_19 = arith.constant dense<0.000000e+00> : vector<189x8xf32>
    %28 = tpu.matmul %25, %27, %cst_19 {dimension_numbers = #tpu.dot_dimension_numbers<[1], [0], [0], [1], [0, 0, 1, 1], [], []>} : vector<189x4xbf16>, vector<4x8xbf16>, vector<189x8xf32> -> vector<189x8xf32>
    %29 = arith.addf %24, %28 : vector<189x8xf32>
    %c0_20 = arith.constant 0 : index
    %c0_21 = arith.constant 0 : index
    %30 = vector.load %arg4[%c0_20, %c0_21] : memref<2x8xf32, #tpu.memory_space<vmem>>, vector<1x8xf32>
    %31 = vector.shape_cast %30 : vector<1x8xf32> to vector<8xf32>
    %32 = vector.shape_cast %31 : vector<8xf32> to vector<1x8xf32>
    %33 = vector.broadcast %32 : vector<1x8xf32> to vector<189x8xf32>
    %34 = arith.mulf %29, %33 : vector<189x8xf32>
    %c1_22 = arith.constant 1 : index
    %c0_23 = arith.constant 0 : index
    %35 = vector.load %arg4[%c1_22, %c0_23] : memref<2x8xf32, #tpu.memory_space<vmem>>, vector<1x8xf32>
    %36 = vector.shape_cast %35 : vector<1x8xf32> to vector<8xf32>
    %37 = vector.shape_cast %36 : vector<8xf32> to vector<1x8xf32>
    %38 = vector.broadcast %37 : vector<1x8xf32> to vector<189x8xf32>
    %39 = arith.addf %34, %38 : vector<189x8xf32>
    %cst_24 = arith.constant 0.000000e+00 : f32
    %40 = vector.broadcast %cst_24 : f32 to vector<189x8xf32>
    %41 = arith.maximumf %39, %40 : vector<189x8xf32>
    %42 = arith.truncf %41 : vector<189x8xf32> to vector<189x8xbf16>
    %cst_25 = arith.constant 0.000000e+00 : bf16
    %43 = vector.broadcast %cst_25 : bf16 to vector<2x8xbf16>
    %44 = tpu.concatenate %43, %42, %43 in 0 : vector<2x8xbf16>, vector<189x8xbf16>, vector<2x8xbf16> -> vector<193x8xbf16>
    %45 = vector.extract_strided_slice %44 {offsets = [0, 0], sizes = [189, 8], strides = [1, 1]} : vector<193x8xbf16> to vector<189x8xbf16>
    %c0_26 = arith.constant 0 : index
    %c0_27 = arith.constant 0 : index
    %c0_28 = arith.constant 0 : index
    %46 = vector.load %arg5[%c0_26, %c0_27, %c0_28] : memref<5x8x36xbf16, #tpu.memory_space<vmem>>, vector<1x8x36xbf16>
    %47 = vector.shape_cast %46 : vector<1x8x36xbf16> to vector<8x36xbf16>
    %cst_29 = arith.constant dense<0.000000e+00> : vector<189x36xf32>
    %48 = tpu.matmul %45, %47, %cst_29 {dimension_numbers = #tpu.dot_dimension_numbers<[1], [0], [0], [1], [0, 0, 1, 1], [], []>} : vector<189x8xbf16>, vector<8x36xbf16>, vector<189x36xf32> -> vector<189x36xf32>
    %49 = vector.extract_strided_slice %44 {offsets = [1, 0], sizes = [189, 8], strides = [1, 1]} : vector<193x8xbf16> to vector<189x8xbf16>
    %c1_30 = arith.constant 1 : index
    %c0_31 = arith.constant 0 : index
    %c0_32 = arith.constant 0 : index
    %50 = vector.load %arg5[%c1_30, %c0_31, %c0_32] : memref<5x8x36xbf16, #tpu.memory_space<vmem>>, vector<1x8x36xbf16>
    %51 = vector.shape_cast %50 : vector<1x8x36xbf16> to vector<8x36xbf16>
    %cst_33 = arith.constant dense<0.000000e+00> : vector<189x36xf32>
    %52 = tpu.matmul %49, %51, %cst_33 {dimension_numbers = #tpu.dot_dimension_numbers<[1], [0], [0], [1], [0, 0, 1, 1], [], []>} : vector<189x8xbf16>, vector<8x36xbf16>, vector<189x36xf32> -> vector<189x36xf32>
    %53 = arith.addf %48, %52 : vector<189x36xf32>
    %54 = vector.extract_strided_slice %44 {offsets = [2, 0], sizes = [189, 8], strides = [1, 1]} : vector<193x8xbf16> to vector<189x8xbf16>
    %c2_34 = arith.constant 2 : index
    %c0_35 = arith.constant 0 : index
    %c0_36 = arith.constant 0 : index
    %55 = vector.load %arg5[%c2_34, %c0_35, %c0_36] : memref<5x8x36xbf16, #tpu.memory_space<vmem>>, vector<1x8x36xbf16>
    %56 = vector.shape_cast %55 : vector<1x8x36xbf16> to vector<8x36xbf16>
    %cst_37 = arith.constant dense<0.000000e+00> : vector<189x36xf32>
    %57 = tpu.matmul %54, %56, %cst_37 {dimension_numbers = #tpu.dot_dimension_numbers<[1], [0], [0], [1], [0, 0, 1, 1], [], []>} : vector<189x8xbf16>, vector<8x36xbf16>, vector<189x36xf32> -> vector<189x36xf32>
    %58 = arith.addf %53, %57 : vector<189x36xf32>
    %59 = vector.extract_strided_slice %44 {offsets = [3, 0], sizes = [189, 8], strides = [1, 1]} : vector<193x8xbf16> to vector<189x8xbf16>
    %c3_38 = arith.constant 3 : index
    %c0_39 = arith.constant 0 : index
    %c0_40 = arith.constant 0 : index
    %60 = vector.load %arg5[%c3_38, %c0_39, %c0_40] : memref<5x8x36xbf16, #tpu.memory_space<vmem>>, vector<1x8x36xbf16>
    %61 = vector.shape_cast %60 : vector<1x8x36xbf16> to vector<8x36xbf16>
    %cst_41 = arith.constant dense<0.000000e+00> : vector<189x36xf32>
    %62 = tpu.matmul %59, %61, %cst_41 {dimension_numbers = #tpu.dot_dimension_numbers<[1], [0], [0], [1], [0, 0, 1, 1], [], []>} : vector<189x8xbf16>, vector<8x36xbf16>, vector<189x36xf32> -> vector<189x36xf32>
    %63 = arith.addf %58, %62 : vector<189x36xf32>
    %64 = vector.extract_strided_slice %44 {offsets = [4, 0], sizes = [189, 8], strides = [1, 1]} : vector<193x8xbf16> to vector<189x8xbf16>
    %c4_42 = arith.constant 4 : index
    %c0_43 = arith.constant 0 : index
    %c0_44 = arith.constant 0 : index
    %65 = vector.load %arg5[%c4_42, %c0_43, %c0_44] : memref<5x8x36xbf16, #tpu.memory_space<vmem>>, vector<1x8x36xbf16>
    %66 = vector.shape_cast %65 : vector<1x8x36xbf16> to vector<8x36xbf16>
    %cst_45 = arith.constant dense<0.000000e+00> : vector<189x36xf32>
    %67 = tpu.matmul %64, %66, %cst_45 {dimension_numbers = #tpu.dot_dimension_numbers<[1], [0], [0], [1], [0, 0, 1, 1], [], []>} : vector<189x8xbf16>, vector<8x36xbf16>, vector<189x36xf32> -> vector<189x36xf32>
    %68 = arith.addf %63, %67 : vector<189x36xf32>
    %c0_46 = arith.constant 0 : index
    %c0_47 = arith.constant 0 : index
    %69 = vector.load %arg6[%c0_46, %c0_47] : memref<2x36xf32, #tpu.memory_space<vmem>>, vector<1x36xf32>
    %70 = vector.shape_cast %69 : vector<1x36xf32> to vector<36xf32>
    %71 = vector.shape_cast %70 : vector<36xf32> to vector<1x36xf32>
    %72 = vector.broadcast %71 : vector<1x36xf32> to vector<189x36xf32>
    %73 = arith.mulf %68, %72 : vector<189x36xf32>
    %c1_48 = arith.constant 1 : index
    %c0_49 = arith.constant 0 : index
    %74 = vector.load %arg6[%c1_48, %c0_49] : memref<2x36xf32, #tpu.memory_space<vmem>>, vector<1x36xf32>
    %75 = vector.shape_cast %74 : vector<1x36xf32> to vector<36xf32>
    %76 = vector.shape_cast %75 : vector<36xf32> to vector<1x36xf32>
    %77 = vector.broadcast %76 : vector<1x36xf32> to vector<189x36xf32>
    %78 = arith.addf %73, %77 : vector<189x36xf32>
    %cst_50 = arith.constant 0.000000e+00 : f32
    %79 = vector.broadcast %cst_50 : f32 to vector<189x36xf32>
    %80 = arith.maximumf %78, %79 : vector<189x36xf32>
    %81 = arith.truncf %80 : vector<189x36xf32> to vector<189x36xbf16>
    %c0_51 = arith.constant 0 : index
    %c0_52 = arith.constant 0 : index
    %82 = vector.load %arg7[%c0_51, %c0_52] : memref<67x189xbf16, #tpu.memory_space<vmem>>, vector<67x189xbf16>
    %cst_53 = arith.constant dense<0.000000e+00> : vector<67x36xf32>
    %83 = tpu.matmul %82, %81, %cst_53 {dimension_numbers = #tpu.dot_dimension_numbers<[1], [0], [0], [1], [0, 0, 1, 1], [], []>} : vector<67x189xbf16>, vector<189x36xbf16>, vector<67x36xf32> -> vector<67x36xf32>
    %84 = arith.truncf %83 : vector<67x36xf32> to vector<67x36xbf16>
    %85 = vector.extract_strided_slice %84 {offsets = [0, 0], sizes = [63, 36], strides = [1, 1]} : vector<67x36xbf16> to vector<63x36xbf16>
    %c0_54 = arith.constant 0 : index
    %c0_55 = arith.constant 0 : index
    %c0_56 = arith.constant 0 : index
    %86 = vector.load %arg8[%c0_54, %c0_55, %c0_56] : memref<5x36x108xbf16, #tpu.memory_space<vmem>>, vector<1x36x108xbf16>
    %87 = vector.shape_cast %86 : vector<1x36x108xbf16> to vector<36x108xbf16>
    %cst_57 = arith.constant dense<0.000000e+00> : vector<63x108xf32>
    %88 = tpu.matmul %85, %87, %cst_57 {dimension_numbers = #tpu.dot_dimension_numbers<[1], [0], [0], [1], [0, 0, 1, 1], [], []>} : vector<63x36xbf16>, vector<36x108xbf16>, vector<63x108xf32> -> vector<63x108xf32>
    %89 = vector.extract_strided_slice %84 {offsets = [1, 0], sizes = [63, 36], strides = [1, 1]} : vector<67x36xbf16> to vector<63x36xbf16>
    %c1_58 = arith.constant 1 : index
    %c0_59 = arith.constant 0 : index
    %c0_60 = arith.constant 0 : index
    %90 = vector.load %arg8[%c1_58, %c0_59, %c0_60] : memref<5x36x108xbf16, #tpu.memory_space<vmem>>, vector<1x36x108xbf16>
    %91 = vector.shape_cast %90 : vector<1x36x108xbf16> to vector<36x108xbf16>
    %cst_61 = arith.constant dense<0.000000e+00> : vector<63x108xf32>
    %92 = tpu.matmul %89, %91, %cst_61 {dimension_numbers = #tpu.dot_dimension_numbers<[1], [0], [0], [1], [0, 0, 1, 1], [], []>} : vector<63x36xbf16>, vector<36x108xbf16>, vector<63x108xf32> -> vector<63x108xf32>
    %93 = arith.addf %88, %92 : vector<63x108xf32>
    %94 = vector.extract_strided_slice %84 {offsets = [2, 0], sizes = [63, 36], strides = [1, 1]} : vector<67x36xbf16> to vector<63x36xbf16>
    %c2_62 = arith.constant 2 : index
    %c0_63 = arith.constant 0 : index
    %c0_64 = arith.constant 0 : index
    %95 = vector.load %arg8[%c2_62, %c0_63, %c0_64] : memref<5x36x108xbf16, #tpu.memory_space<vmem>>, vector<1x36x108xbf16>
    %96 = vector.shape_cast %95 : vector<1x36x108xbf16> to vector<36x108xbf16>
    %cst_65 = arith.constant dense<0.000000e+00> : vector<63x108xf32>
    %97 = tpu.matmul %94, %96, %cst_65 {dimension_numbers = #tpu.dot_dimension_numbers<[1], [0], [0], [1], [0, 0, 1, 1], [], []>} : vector<63x36xbf16>, vector<36x108xbf16>, vector<63x108xf32> -> vector<63x108xf32>
    %98 = arith.addf %93, %97 : vector<63x108xf32>
    %99 = vector.extract_strided_slice %84 {offsets = [3, 0], sizes = [63, 36], strides = [1, 1]} : vector<67x36xbf16> to vector<63x36xbf16>
    %c3_66 = arith.constant 3 : index
    %c0_67 = arith.constant 0 : index
    %c0_68 = arith.constant 0 : index
    %100 = vector.load %arg8[%c3_66, %c0_67, %c0_68] : memref<5x36x108xbf16, #tpu.memory_space<vmem>>, vector<1x36x108xbf16>
    %101 = vector.shape_cast %100 : vector<1x36x108xbf16> to vector<36x108xbf16>
    %cst_69 = arith.constant dense<0.000000e+00> : vector<63x108xf32>
    %102 = tpu.matmul %99, %101, %cst_69 {dimension_numbers = #tpu.dot_dimension_numbers<[1], [0], [0], [1], [0, 0, 1, 1], [], []>} : vector<63x36xbf16>, vector<36x108xbf16>, vector<63x108xf32> -> vector<63x108xf32>
    %103 = arith.addf %98, %102 : vector<63x108xf32>
    %104 = vector.extract_strided_slice %84 {offsets = [4, 0], sizes = [63, 36], strides = [1, 1]} : vector<67x36xbf16> to vector<63x36xbf16>
    %c4_70 = arith.constant 4 : index
    %c0_71 = arith.constant 0 : index
    %c0_72 = arith.constant 0 : index
    %105 = vector.load %arg8[%c4_70, %c0_71, %c0_72] : memref<5x36x108xbf16, #tpu.memory_space<vmem>>, vector<1x36x108xbf16>
    %106 = vector.shape_cast %105 : vector<1x36x108xbf16> to vector<36x108xbf16>
    %cst_73 = arith.constant dense<0.000000e+00> : vector<63x108xf32>
    %107 = tpu.matmul %104, %106, %cst_73 {dimension_numbers = #tpu.dot_dimension_numbers<[1], [0], [0], [1], [0, 0, 1, 1], [], []>} : vector<63x36xbf16>, vector<36x108xbf16>, vector<63x108xf32> -> vector<63x108xf32>
    %108 = arith.addf %103, %107 : vector<63x108xf32>
    %c0_74 = arith.constant 0 : index
    %c0_75 = arith.constant 0 : index
    %109 = vector.load %arg9[%c0_74, %c0_75] : memref<2x108xf32, #tpu.memory_space<vmem>>, vector<1x108xf32>
    %110 = vector.shape_cast %109 : vector<1x108xf32> to vector<108xf32>
    %111 = vector.shape_cast %110 : vector<108xf32> to vector<1x108xf32>
    %112 = vector.broadcast %111 : vector<1x108xf32> to vector<63x108xf32>
    %113 = arith.mulf %108, %112 : vector<63x108xf32>
    %c1_76 = arith.constant 1 : index
    %c0_77 = arith.constant 0 : index
    %114 = vector.load %arg9[%c1_76, %c0_77] : memref<2x108xf32, #tpu.memory_space<vmem>>, vector<1x108xf32>
    %115 = vector.shape_cast %114 : vector<1x108xf32> to vector<108xf32>
    %116 = vector.shape_cast %115 : vector<108xf32> to vector<1x108xf32>
    %117 = vector.broadcast %116 : vector<1x108xf32> to vector<63x108xf32>
    %118 = arith.addf %113, %117 : vector<63x108xf32>
    %cst_78 = arith.constant 0.000000e+00 : f32
    %119 = vector.broadcast %cst_78 : f32 to vector<63x108xf32>
    %120 = arith.maximumf %118, %119 : vector<63x108xf32>
    %121 = arith.truncf %120 : vector<63x108xf32> to vector<63x108xbf16>
    %c0_79 = arith.constant 0 : index
    %c0_80 = arith.constant 0 : index
    %122 = vector.load %arg10[%c0_79, %c0_80] : memref<25x63xbf16, #tpu.memory_space<vmem>>, vector<25x63xbf16>
    %cst_81 = arith.constant dense<0.000000e+00> : vector<25x108xf32>
    %123 = tpu.matmul %122, %121, %cst_81 {dimension_numbers = #tpu.dot_dimension_numbers<[1], [0], [0], [1], [0, 0, 1, 1], [], []>} : vector<25x63xbf16>, vector<63x108xbf16>, vector<25x108xf32> -> vector<25x108xf32>
    %124 = arith.truncf %123 : vector<25x108xf32> to vector<25x108xbf16>
    %125 = vector.extract_strided_slice %124 {offsets = [0, 0], sizes = [21, 108], strides = [1, 1]} : vector<25x108xbf16> to vector<21x108xbf16>
    %c0_82 = arith.constant 0 : index
    %c0_83 = arith.constant 0 : index
    %c0_84 = arith.constant 0 : index
    %126 = vector.load %arg11[%c0_82, %c0_83, %c0_84] : memref<5x108x324xbf16, #tpu.memory_space<vmem>>, vector<1x108x324xbf16>
    %127 = vector.shape_cast %126 : vector<1x108x324xbf16> to vector<108x324xbf16>
    %cst_85 = arith.constant dense<0.000000e+00> : vector<21x324xf32>
    %128 = tpu.matmul %125, %127, %cst_85 {dimension_numbers = #tpu.dot_dimension_numbers<[1], [0], [0], [1], [0, 0, 1, 1], [], []>} : vector<21x108xbf16>, vector<108x324xbf16>, vector<21x324xf32> -> vector<21x324xf32>
    %129 = vector.extract_strided_slice %124 {offsets = [1, 0], sizes = [21, 108], strides = [1, 1]} : vector<25x108xbf16> to vector<21x108xbf16>
    %c1_86 = arith.constant 1 : index
    %c0_87 = arith.constant 0 : index
    %c0_88 = arith.constant 0 : index
    %130 = vector.load %arg11[%c1_86, %c0_87, %c0_88] : memref<5x108x324xbf16, #tpu.memory_space<vmem>>, vector<1x108x324xbf16>
    %131 = vector.shape_cast %130 : vector<1x108x324xbf16> to vector<108x324xbf16>
    %cst_89 = arith.constant dense<0.000000e+00> : vector<21x324xf32>
    %132 = tpu.matmul %129, %131, %cst_89 {dimension_numbers = #tpu.dot_dimension_numbers<[1], [0], [0], [1], [0, 0, 1, 1], [], []>} : vector<21x108xbf16>, vector<108x324xbf16>, vector<21x324xf32> -> vector<21x324xf32>
    %133 = arith.addf %128, %132 : vector<21x324xf32>
    %134 = vector.extract_strided_slice %124 {offsets = [2, 0], sizes = [21, 108], strides = [1, 1]} : vector<25x108xbf16> to vector<21x108xbf16>
    %c2_90 = arith.constant 2 : index
    %c0_91 = arith.constant 0 : index
    %c0_92 = arith.constant 0 : index
    %135 = vector.load %arg11[%c2_90, %c0_91, %c0_92] : memref<5x108x324xbf16, #tpu.memory_space<vmem>>, vector<1x108x324xbf16>
    %136 = vector.shape_cast %135 : vector<1x108x324xbf16> to vector<108x324xbf16>
    %cst_93 = arith.constant dense<0.000000e+00> : vector<21x324xf32>
    %137 = tpu.matmul %134, %136, %cst_93 {dimension_numbers = #tpu.dot_dimension_numbers<[1], [0], [0], [1], [0, 0, 1, 1], [], []>} : vector<21x108xbf16>, vector<108x324xbf16>, vector<21x324xf32> -> vector<21x324xf32>
    %138 = arith.addf %133, %137 : vector<21x324xf32>
    %139 = vector.extract_strided_slice %124 {offsets = [3, 0], sizes = [21, 108], strides = [1, 1]} : vector<25x108xbf16> to vector<21x108xbf16>
    %c3_94 = arith.constant 3 : index
    %c0_95 = arith.constant 0 : index
    %c0_96 = arith.constant 0 : index
    %140 = vector.load %arg11[%c3_94, %c0_95, %c0_96] : memref<5x108x324xbf16, #tpu.memory_space<vmem>>, vector<1x108x324xbf16>
    %141 = vector.shape_cast %140 : vector<1x108x324xbf16> to vector<108x324xbf16>
    %cst_97 = arith.constant dense<0.000000e+00> : vector<21x324xf32>
    %142 = tpu.matmul %139, %141, %cst_97 {dimension_numbers = #tpu.dot_dimension_numbers<[1], [0], [0], [1], [0, 0, 1, 1], [], []>} : vector<21x108xbf16>, vector<108x324xbf16>, vector<21x324xf32> -> vector<21x324xf32>
    %143 = arith.addf %138, %142 : vector<21x324xf32>
    %144 = vector.extract_strided_slice %124 {offsets = [4, 0], sizes = [21, 108], strides = [1, 1]} : vector<25x108xbf16> to vector<21x108xbf16>
    %c4_98 = arith.constant 4 : index
    %c0_99 = arith.constant 0 : index
    %c0_100 = arith.constant 0 : index
    %145 = vector.load %arg11[%c4_98, %c0_99, %c0_100] : memref<5x108x324xbf16, #tpu.memory_space<vmem>>, vector<1x108x324xbf16>
    %146 = vector.shape_cast %145 : vector<1x108x324xbf16> to vector<108x324xbf16>
    %cst_101 = arith.constant dense<0.000000e+00> : vector<21x324xf32>
    %147 = tpu.matmul %144, %146, %cst_101 {dimension_numbers = #tpu.dot_dimension_numbers<[1], [0], [0], [1], [0, 0, 1, 1], [], []>} : vector<21x108xbf16>, vector<108x324xbf16>, vector<21x324xf32> -> vector<21x324xf32>
    %148 = arith.addf %143, %147 : vector<21x324xf32>
    %c0_102 = arith.constant 0 : index
    %c0_103 = arith.constant 0 : index
    %149 = vector.load %arg12[%c0_102, %c0_103] : memref<2x324xf32, #tpu.memory_space<vmem>>, vector<1x324xf32>
    %150 = vector.shape_cast %149 : vector<1x324xf32> to vector<324xf32>
    %151 = vector.shape_cast %150 : vector<324xf32> to vector<1x324xf32>
    %152 = vector.broadcast %151 : vector<1x324xf32> to vector<21x324xf32>
    %153 = arith.mulf %148, %152 : vector<21x324xf32>
    %c1_104 = arith.constant 1 : index
    %c0_105 = arith.constant 0 : index
    %154 = vector.load %arg12[%c1_104, %c0_105] : memref<2x324xf32, #tpu.memory_space<vmem>>, vector<1x324xf32>
    %155 = vector.shape_cast %154 : vector<1x324xf32> to vector<324xf32>
    %156 = vector.shape_cast %155 : vector<324xf32> to vector<1x324xf32>
    %157 = vector.broadcast %156 : vector<1x324xf32> to vector<21x324xf32>
    %158 = arith.addf %153, %157 : vector<21x324xf32>
    %cst_106 = arith.constant 0.000000e+00 : f32
    %159 = vector.broadcast %cst_106 : f32 to vector<21x324xf32>
    %160 = arith.maximumf %158, %159 : vector<21x324xf32>
    %161 = arith.truncf %160 : vector<21x324xf32> to vector<21x324xbf16>
    %c0_107 = arith.constant 0 : index
    %c0_108 = arith.constant 0 : index
    %162 = vector.load %arg13[%c0_107, %c0_108] : memref<11x21xbf16, #tpu.memory_space<vmem>>, vector<11x21xbf16>
    %cst_109 = arith.constant dense<0.000000e+00> : vector<11x324xf32>
    %163 = tpu.matmul %162, %161, %cst_109 {dimension_numbers = #tpu.dot_dimension_numbers<[1], [0], [0], [1], [0, 0, 1, 1], [], []>} : vector<11x21xbf16>, vector<21x324xbf16>, vector<11x324xf32> -> vector<11x324xf32>
    %164 = arith.truncf %163 : vector<11x324xf32> to vector<11x324xbf16>
    %c0_110 = arith.constant 0 : index
    %c0_111 = arith.constant 0 : index
    %c0_112 = arith.constant 0 : index
    %165 = vector.load %arg14[%c0_110, %c0_111, %c0_112] : memref<1x324x324xbf16, #tpu.memory_space<vmem>>, vector<1x324x324xbf16>
    %166 = vector.shape_cast %165 : vector<1x324x324xbf16> to vector<324x324xbf16>
    %cst_113 = arith.constant dense<0.000000e+00> : vector<11x324xf32>
    %167 = tpu.matmul %164, %166, %cst_113 {dimension_numbers = #tpu.dot_dimension_numbers<[1], [0], [0], [1], [0, 0, 1, 1], [], []>} : vector<11x324xbf16>, vector<324x324xbf16>, vector<11x324xf32> -> vector<11x324xf32>
    %c0_114 = arith.constant 0 : index
    %c0_115 = arith.constant 0 : index
    %168 = vector.load %arg15[%c0_114, %c0_115] : memref<2x324xf32, #tpu.memory_space<vmem>>, vector<1x324xf32>
    %169 = vector.shape_cast %168 : vector<1x324xf32> to vector<324xf32>
    %170 = vector.shape_cast %169 : vector<324xf32> to vector<1x324xf32>
    %171 = vector.broadcast %170 : vector<1x324xf32> to vector<11x324xf32>
    %172 = arith.mulf %167, %171 : vector<11x324xf32>
    %c1_116 = arith.constant 1 : index
    %c0_117 = arith.constant 0 : index
    %173 = vector.load %arg15[%c1_116, %c0_117] : memref<2x324xf32, #tpu.memory_space<vmem>>, vector<1x324xf32>
    %174 = vector.shape_cast %173 : vector<1x324xf32> to vector<324xf32>
    %175 = vector.shape_cast %174 : vector<324xf32> to vector<1x324xf32>
    %176 = vector.broadcast %175 : vector<1x324xf32> to vector<11x324xf32>
    %177 = arith.addf %172, %176 : vector<11x324xf32>
    %cst_118 = arith.constant 0.000000e+00 : f32
    %178 = vector.broadcast %cst_118 : f32 to vector<11x324xf32>
    %179 = arith.maximumf %177, %178 : vector<11x324xf32>
    %180 = arith.truncf %179 : vector<11x324xf32> to vector<11x324xbf16>
    %c0_119 = arith.constant 0 : index
    %c0_120 = arith.constant 0 : index
    %181 = vector.load %arg17[%c0_119, %c0_120] : memref<1x128xf32, #tpu.memory_space<vmem>>, vector<1x128xf32>
    %182 = vector.extract_strided_slice %180 {offsets = [0, 0], sizes = [1, 324], strides = [1, 1]} : vector<11x324xbf16> to vector<1x324xbf16>
    %c0_121 = arith.constant 0 : index
    %c0_122 = arith.constant 0 : index
    %c0_123 = arith.constant 0 : index
    %183 = vector.load %arg16[%c0_121, %c0_122, %c0_123] : memref<11x324x128xbf16, #tpu.memory_space<vmem>>, vector<1x324x128xbf16>
    %184 = vector.shape_cast %183 : vector<1x324x128xbf16> to vector<324x128xbf16>
    %cst_124 = arith.constant dense<0.000000e+00> : vector<1x128xf32>
    %185 = tpu.matmul %182, %184, %cst_124 {dimension_numbers = #tpu.dot_dimension_numbers<[1], [0], [0], [1], [0, 0, 1, 1], [], []>} : vector<1x324xbf16>, vector<324x128xbf16>, vector<1x128xf32> -> vector<1x128xf32>
    %186 = arith.addf %181, %185 : vector<1x128xf32>
    %187 = vector.extract_strided_slice %180 {offsets = [1, 0], sizes = [1, 324], strides = [1, 1]} : vector<11x324xbf16> to vector<1x324xbf16>
    %c1_125 = arith.constant 1 : index
    %c0_126 = arith.constant 0 : index
    %c0_127 = arith.constant 0 : index
    %188 = vector.load %arg16[%c1_125, %c0_126, %c0_127] : memref<11x324x128xbf16, #tpu.memory_space<vmem>>, vector<1x324x128xbf16>
    %189 = vector.shape_cast %188 : vector<1x324x128xbf16> to vector<324x128xbf16>
    %cst_128 = arith.constant dense<0.000000e+00> : vector<1x128xf32>
    %190 = tpu.matmul %187, %189, %cst_128 {dimension_numbers = #tpu.dot_dimension_numbers<[1], [0], [0], [1], [0, 0, 1, 1], [], []>} : vector<1x324xbf16>, vector<324x128xbf16>, vector<1x128xf32> -> vector<1x128xf32>
    %191 = arith.addf %186, %190 : vector<1x128xf32>
    %192 = vector.extract_strided_slice %180 {offsets = [2, 0], sizes = [1, 324], strides = [1, 1]} : vector<11x324xbf16> to vector<1x324xbf16>
    %c2_129 = arith.constant 2 : index
    %c0_130 = arith.constant 0 : index
    %c0_131 = arith.constant 0 : index
    %193 = vector.load %arg16[%c2_129, %c0_130, %c0_131] : memref<11x324x128xbf16, #tpu.memory_space<vmem>>, vector<1x324x128xbf16>
    %194 = vector.shape_cast %193 : vector<1x324x128xbf16> to vector<324x128xbf16>
    %cst_132 = arith.constant dense<0.000000e+00> : vector<1x128xf32>
    %195 = tpu.matmul %192, %194, %cst_132 {dimension_numbers = #tpu.dot_dimension_numbers<[1], [0], [0], [1], [0, 0, 1, 1], [], []>} : vector<1x324xbf16>, vector<324x128xbf16>, vector<1x128xf32> -> vector<1x128xf32>
    %196 = arith.addf %191, %195 : vector<1x128xf32>
    %197 = vector.extract_strided_slice %180 {offsets = [3, 0], sizes = [1, 324], strides = [1, 1]} : vector<11x324xbf16> to vector<1x324xbf16>
    %c3_133 = arith.constant 3 : index
    %c0_134 = arith.constant 0 : index
    %c0_135 = arith.constant 0 : index
    %198 = vector.load %arg16[%c3_133, %c0_134, %c0_135] : memref<11x324x128xbf16, #tpu.memory_space<vmem>>, vector<1x324x128xbf16>
    %199 = vector.shape_cast %198 : vector<1x324x128xbf16> to vector<324x128xbf16>
    %cst_136 = arith.constant dense<0.000000e+00> : vector<1x128xf32>
    %200 = tpu.matmul %197, %199, %cst_136 {dimension_numbers = #tpu.dot_dimension_numbers<[1], [0], [0], [1], [0, 0, 1, 1], [], []>} : vector<1x324xbf16>, vector<324x128xbf16>, vector<1x128xf32> -> vector<1x128xf32>
    %201 = arith.addf %196, %200 : vector<1x128xf32>
    %202 = vector.extract_strided_slice %180 {offsets = [4, 0], sizes = [1, 324], strides = [1, 1]} : vector<11x324xbf16> to vector<1x324xbf16>
    %c4_137 = arith.constant 4 : index
    %c0_138 = arith.constant 0 : index
    %c0_139 = arith.constant 0 : index
    %203 = vector.load %arg16[%c4_137, %c0_138, %c0_139] : memref<11x324x128xbf16, #tpu.memory_space<vmem>>, vector<1x324x128xbf16>
    %204 = vector.shape_cast %203 : vector<1x324x128xbf16> to vector<324x128xbf16>
    %cst_140 = arith.constant dense<0.000000e+00> : vector<1x128xf32>
    %205 = tpu.matmul %202, %204, %cst_140 {dimension_numbers = #tpu.dot_dimension_numbers<[1], [0], [0], [1], [0, 0, 1, 1], [], []>} : vector<1x324xbf16>, vector<324x128xbf16>, vector<1x128xf32> -> vector<1x128xf32>
    %206 = arith.addf %201, %205 : vector<1x128xf32>
    %207 = vector.extract_strided_slice %180 {offsets = [5, 0], sizes = [1, 324], strides = [1, 1]} : vector<11x324xbf16> to vector<1x324xbf16>
    %c5 = arith.constant 5 : index
    %c0_141 = arith.constant 0 : index
    %c0_142 = arith.constant 0 : index
    %208 = vector.load %arg16[%c5, %c0_141, %c0_142] : memref<11x324x128xbf16, #tpu.memory_space<vmem>>, vector<1x324x128xbf16>
    %209 = vector.shape_cast %208 : vector<1x324x128xbf16> to vector<324x128xbf16>
    %cst_143 = arith.constant dense<0.000000e+00> : vector<1x128xf32>
    %210 = tpu.matmul %207, %209, %cst_143 {dimension_numbers = #tpu.dot_dimension_numbers<[1], [0], [0], [1], [0, 0, 1, 1], [], []>} : vector<1x324xbf16>, vector<324x128xbf16>, vector<1x128xf32> -> vector<1x128xf32>
    %211 = arith.addf %206, %210 : vector<1x128xf32>
    %212 = vector.extract_strided_slice %180 {offsets = [6, 0], sizes = [1, 324], strides = [1, 1]} : vector<11x324xbf16> to vector<1x324xbf16>
    %c6 = arith.constant 6 : index
    %c0_144 = arith.constant 0 : index
    %c0_145 = arith.constant 0 : index
    %213 = vector.load %arg16[%c6, %c0_144, %c0_145] : memref<11x324x128xbf16, #tpu.memory_space<vmem>>, vector<1x324x128xbf16>
    %214 = vector.shape_cast %213 : vector<1x324x128xbf16> to vector<324x128xbf16>
    %cst_146 = arith.constant dense<0.000000e+00> : vector<1x128xf32>
    %215 = tpu.matmul %212, %214, %cst_146 {dimension_numbers = #tpu.dot_dimension_numbers<[1], [0], [0], [1], [0, 0, 1, 1], [], []>} : vector<1x324xbf16>, vector<324x128xbf16>, vector<1x128xf32> -> vector<1x128xf32>
    %216 = arith.addf %211, %215 : vector<1x128xf32>
    %217 = vector.extract_strided_slice %180 {offsets = [7, 0], sizes = [1, 324], strides = [1, 1]} : vector<11x324xbf16> to vector<1x324xbf16>
    %c7 = arith.constant 7 : index
    %c0_147 = arith.constant 0 : index
    %c0_148 = arith.constant 0 : index
    %218 = vector.load %arg16[%c7, %c0_147, %c0_148] : memref<11x324x128xbf16, #tpu.memory_space<vmem>>, vector<1x324x128xbf16>
    %219 = vector.shape_cast %218 : vector<1x324x128xbf16> to vector<324x128xbf16>
    %cst_149 = arith.constant dense<0.000000e+00> : vector<1x128xf32>
    %220 = tpu.matmul %217, %219, %cst_149 {dimension_numbers = #tpu.dot_dimension_numbers<[1], [0], [0], [1], [0, 0, 1, 1], [], []>} : vector<1x324xbf16>, vector<324x128xbf16>, vector<1x128xf32> -> vector<1x128xf32>
    %221 = arith.addf %216, %220 : vector<1x128xf32>
    %222 = vector.extract_strided_slice %180 {offsets = [8, 0], sizes = [1, 324], strides = [1, 1]} : vector<11x324xbf16> to vector<1x324xbf16>
    %c8 = arith.constant 8 : index
    %c0_150 = arith.constant 0 : index
    %c0_151 = arith.constant 0 : index
    %223 = vector.load %arg16[%c8, %c0_150, %c0_151] : memref<11x324x128xbf16, #tpu.memory_space<vmem>>, vector<1x324x128xbf16>
    %224 = vector.shape_cast %223 : vector<1x324x128xbf16> to vector<324x128xbf16>
    %cst_152 = arith.constant dense<0.000000e+00> : vector<1x128xf32>
    %225 = tpu.matmul %222, %224, %cst_152 {dimension_numbers = #tpu.dot_dimension_numbers<[1], [0], [0], [1], [0, 0, 1, 1], [], []>} : vector<1x324xbf16>, vector<324x128xbf16>, vector<1x128xf32> -> vector<1x128xf32>
    %226 = arith.addf %221, %225 : vector<1x128xf32>
    %227 = vector.extract_strided_slice %180 {offsets = [9, 0], sizes = [1, 324], strides = [1, 1]} : vector<11x324xbf16> to vector<1x324xbf16>
    %c9 = arith.constant 9 : index
    %c0_153 = arith.constant 0 : index
    %c0_154 = arith.constant 0 : index
    %228 = vector.load %arg16[%c9, %c0_153, %c0_154] : memref<11x324x128xbf16, #tpu.memory_space<vmem>>, vector<1x324x128xbf16>
    %229 = vector.shape_cast %228 : vector<1x324x128xbf16> to vector<324x128xbf16>
    %cst_155 = arith.constant dense<0.000000e+00> : vector<1x128xf32>
    %230 = tpu.matmul %227, %229, %cst_155 {dimension_numbers = #tpu.dot_dimension_numbers<[1], [0], [0], [1], [0, 0, 1, 1], [], []>} : vector<1x324xbf16>, vector<324x128xbf16>, vector<1x128xf32> -> vector<1x128xf32>
    %231 = arith.addf %226, %230 : vector<1x128xf32>
    %232 = vector.extract_strided_slice %180 {offsets = [10, 0], sizes = [1, 324], strides = [1, 1]} : vector<11x324xbf16> to vector<1x324xbf16>
    %c10 = arith.constant 10 : index
    %c0_156 = arith.constant 0 : index
    %c0_157 = arith.constant 0 : index
    %233 = vector.load %arg16[%c10, %c0_156, %c0_157] : memref<11x324x128xbf16, #tpu.memory_space<vmem>>, vector<1x324x128xbf16>
    %234 = vector.shape_cast %233 : vector<1x324x128xbf16> to vector<324x128xbf16>
    %cst_158 = arith.constant dense<0.000000e+00> : vector<1x128xf32>
    %235 = tpu.matmul %232, %234, %cst_158 {dimension_numbers = #tpu.dot_dimension_numbers<[1], [0], [0], [1], [0, 0, 1, 1], [], []>} : vector<1x324xbf16>, vector<324x128xbf16>, vector<1x128xf32> -> vector<1x128xf32>
    %236 = arith.addf %231, %235 : vector<1x128xf32>
    %237 = math.tanh %236 : vector<1x128xf32>
    %c0_159 = arith.constant 0 : index
    %c0_160 = arith.constant 0 : index
    %c0_161 = arith.constant 0 : index
    %238 = vector.load %arg18[%c0_159, %c0_160, %c0_161] : memref<1x1x128xf32, #tpu.memory_space<vmem>>, vector<1x1x128xf32>
    %239 = vector.shape_cast %238 : vector<1x1x128xf32> to vector<1x128xf32>
    %240 = vector.shape_cast %237 : vector<1x128xf32> to vector<1x1x128xf32>
    tpu.vector_store %arg18[%c0_159, %c0_160, %c0_161], %240 {strides = array<i32>} : memref<1x1x128xf32, #tpu.memory_space<vmem>>, vector<1x1x128xf32>,
    return
  }
  func.func @transform_0(%arg0: i32) -> (i32, i32, i32) {
    %c0_i32 = arith.constant 0 : i32
    %c0_i32_0 = arith.constant 0 : i32
    %c0_i32_1 = arith.constant 0 : i32
    return %arg0, %c0_i32, %c0_i32_0 : i32, i32, i32
  }
  func.func @transform_1(%arg0: i32) -> (i32, i32) {
    %c0_i32 = arith.constant 0 : i32
    %c0_i32_0 = arith.constant 0 : i32
    %c0_i32_1 = arith.constant 0 : i32
    return %c0_i32, %c0_i32_0 : i32, i32
  }
  func.func @transform_2(%arg0: i32) -> (i32, i32, i32) {
    %c0_i32 = arith.constant 0 : i32
    %c0_i32_0 = arith.constant 0 : i32
    %c0_i32_1 = arith.constant 0 : i32
    %c0_i32_2 = arith.constant 0 : i32
    return %c0_i32, %c0_i32_0, %c0_i32_1 : i32, i32, i32
  }
  func.func @transform_3(%arg0: i32) -> (i32, i32) {
    %c0_i32 = arith.constant 0 : i32
    %c0_i32_0 = arith.constant 0 : i32
    %c0_i32_1 = arith.constant 0 : i32
    return %c0_i32, %c0_i32_0 : i32, i32
  }
  func.func @transform_4(%arg0: i32) -> (i32, i32, i32) {
    %c0_i32 = arith.constant 0 : i32
    %c0_i32_0 = arith.constant 0 : i32
    %c0_i32_1 = arith.constant 0 : i32
    %c0_i32_2 = arith.constant 0 : i32
    return %c0_i32, %c0_i32_0, %c0_i32_1 : i32, i32, i32
  }
  func.func @transform_5(%arg0: i32) -> (i32, i32) {
    %c0_i32 = arith.constant 0 : i32
    %c0_i32_0 = arith.constant 0 : i32
    %c0_i32_1 = arith.constant 0 : i32
    return %c0_i32, %c0_i32_0 : i32, i32
  }
  func.func @transform_6(%arg0: i32) -> (i32, i32) {
    %c0_i32 = arith.constant 0 : i32
    %c0_i32_0 = arith.constant 0 : i32
    %c0_i32_1 = arith.constant 0 : i32
    return %c0_i32, %c0_i32_0 : i32, i32
  }
  func.func @transform_7(%arg0: i32) -> (i32, i32, i32) {
    %c0_i32 = arith.constant 0 : i32
    %c0_i32_0 = arith.constant 0 : i32
    %c0_i32_1 = arith.constant 0 : i32
    %c0_i32_2 = arith.constant 0 : i32
    return %c0_i32, %c0_i32_0, %c0_i32_1 : i32, i32, i32
  }
  func.func @transform_8(%arg0: i32) -> (i32, i32) {
    %c0_i32 = arith.constant 0 : i32
    %c0_i32_0 = arith.constant 0 : i32
    %c0_i32_1 = arith.constant 0 : i32
    return %c0_i32, %c0_i32_0 : i32, i32
  }
  func.func @transform_9(%arg0: i32) -> (i32, i32) {
    %c0_i32 = arith.constant 0 : i32
    %c0_i32_0 = arith.constant 0 : i32
    %c0_i32_1 = arith.constant 0 : i32
    return %c0_i32, %c0_i32_0 : i32, i32
  }
  func.func @transform_10(%arg0: i32) -> (i32, i32, i32) {
    %c0_i32 = arith.constant 0 : i32
    %c0_i32_0 = arith.constant 0 : i32
    %c0_i32_1 = arith.constant 0 : i32
    %c0_i32_2 = arith.constant 0 : i32
    return %c0_i32, %c0_i32_0, %c0_i32_1 : i32, i32, i32
  }
  func.func @transform_11(%arg0: i32) -> (i32, i32) {
    %c0_i32 = arith.constant 0 : i32
    %c0_i32_0 = arith.constant 0 : i32
    %c0_i32_1 = arith.constant 0 : i32
    return %c0_i32, %c0_i32_0 : i32, i32
  }
  func.func @transform_12(%arg0: i32) -> (i32, i32) {
    %c0_i32 = arith.constant 0 : i32
    %c0_i32_0 = arith.constant 0 : i32
    %c0_i32_1 = arith.constant 0 : i32
    return %c0_i32, %c0_i32_0 : i32, i32
  }
  func.func @transform_13(%arg0: i32) -> (i32, i32, i32) {
    %c0_i32 = arith.constant 0 : i32
    %c0_i32_0 = arith.constant 0 : i32
    %c0_i32_1 = arith.constant 0 : i32
    %c0_i32_2 = arith.constant 0 : i32
    return %c0_i32, %c0_i32_0, %c0_i32_1 : i32, i32, i32
  }
  func.func @transform_14(%arg0: i32) -> (i32, i32) {
    %c0_i32 = arith.constant 0 : i32
    %c0_i32_0 = arith.constant 0 : i32
    %c0_i32_1 = arith.constant 0 : i32
    return %c0_i32, %c0_i32_0 : i32, i32
  }
  func.func @transform_15(%arg0: i32) -> (i32, i32, i32) {
    %c0_i32 = arith.constant 0 : i32
    %c0_i32_0 = arith.constant 0 : i32
    %c0_i32_1 = arith.constant 0 : i32
    %c0_i32_2 = arith.constant 0 : i32
    return %c0_i32, %c0_i32_0, %c0_i32_1 : i32, i32, i32
  }
  func.func @transform_16(%arg0: i32) -> (i32, i32) {
    %c0_i32 = arith.constant 0 : i32
    %c0_i32_0 = arith.constant 0 : i32
    %c0_i32_1 = arith.constant 0 : i32
    return %c0_i32, %c0_i32_0 : i32, i32
  }
  func.func @transform_17(%arg0: i32) -> (i32, i32, i32) {
    %c0_i32 = arith.constant 0 : i32
    %c0_i32_0 = arith.constant 0 : i32
    %c0_i32_1 = arith.constant 0 : i32
    return %arg0, %c0_i32, %c0_i32_0 : i32, i32, i32
  }
}

</mosaic_0001>

<bundles_post_ra>
// kernel: _lambda_.1
= control target key start
LH: loop header
LB: loop body
LE: loop exit
PB: predicated region body
PF: predicated region fallthrough
CT: control target
= control target key end

     0   :  { %s15433_s0 = inlined_call_operand.hbm [shape: f32[2,4,756], index: 0, kind: input, shape index: {}]   ;;  %s15434_s1 = inlined_call_operand.hbm [shape: bf16[193,756], index: 1, kind: input, shape index: {}]   ;;  %s15435_s2 = inlined_call_operand.hbm [shape: bf16[5,4,8], index: 2, kind: input, shape index: {}]   ;;  %s15436_s3 = inlined_call_operand.hbm [shape: f32[2,8], index: 3, kind: input, shape index: {}]   ;;  %s15437_s4 = inlined_call_operand.hbm [shape: bf16[5,8,36], index: 4, kind: input, shape index: {}]   ;;  %s15438_s5 = inlined_call_operand.hbm [shape: f32[2,36], index: 5, kind: input, shape index: {}]   ;;  %s15439_s6 = inlined_call_operand.hbm [shape: bf16[67,189], index: 6, kind: input, shape index: {}]   ;;  %s15440_s7 = inlined_call_operand.hbm [shape: bf16[5,36,108], index: 7, kind: input, shape index: {}]   ;;  %s15441_s8 = inlined_call_operand.hbm [shape: f32[2,108], index: 8, kind: input, shape index: {}]   ;;  %s15442_s9 = inlined_call_operand.vmem [shape: bf16[25,63], index: 9, kind: input, shape index: {}]   ;;  %s15443_s10 = inlined_call_operand.hbm [shape: bf16[5,108,324], index: 10, kind: input, shape index: {}]   ;;  %s15444_s11 = inlined_call_operand.hbm [shape: f32[2,324], index: 11, kind: input, shape index: {}]   ;;  %s15445_s12 = inlined_call_operand.hbm [shape: bf16[11,21], index: 12, kind: input, shape index: {}]   ;;  %s15446_s13 = inlined_call_operand.hbm [shape: bf16[1,324,324], index: 13, kind: input, shape index: {}]   ;;  %s15447_s14 = inlined_call_operand.vmem [shape: f32[2,324], index: 14, kind: input, shape index: {}]   ;;  %s15448_s15 = inlined_call_operand.hbm [shape: bf16[11,324,128], index: 15, kind: input, shape index: {}]   ;;  %s15449_s16 = inlined_call_operand.vmem [shape: f32[1,128], index: 16, kind: input, shape index: {}]   ;;  %s15450_s17 = inlined_call_operand.hbm [shape: f32[2,1,128], index: 17, kind: output, shape index: {}]  }
   0x1   :  { %15467 = sst [smem:[#allocation58_spill]] %s15433_s0 }
   0x2   :  { %15468 = sst [smem:[#allocation59_spill]] %s15434_s1 }
   0x3   :  { %15469 = sst [smem:[#allocation60_spill]] %s15435_s2 }
   0x4   :  { %15470 = sst [smem:[#allocation61_spill]] %s15436_s3 }
   0x5   :  { %15471 = sst [smem:[#allocation62_spill]] %s15437_s4 }
   0x6   :  { %15472 = sst [smem:[#allocation63_spill]] %s15438_s5 }
   0x7   :  { %15473 = sst [smem:[#allocation64_spill]] %s15439_s6 }
   0x8   :  { %15474 = sst [smem:[#allocation65_spill]] %s15440_s7 }
   0x9   :  { %15475 = sst [smem:[#allocation66_spill]] %s15441_s8 }
   0xa   :  { %15476 = sst [smem:[#allocation67_spill]] %s15442_s9 }
   0xb   :  { %15477 = sst [smem:[#allocation68_spill]] %s15447_s14 }
   0xc   :  { %15478 = sst [smem:[#allocation69_spill]] %s15449_s16 }
   0xd   :  { %15479 = sst [smem:[#allocation70_spill]] %s15450_s17 }
   0xe   :  { %22 = vsyncpa [#allocation3], 0 }
   0xf   :  { %24 = vsyncpa [#allocation3 + $0x1], 0 }
  0x10   :  { %25 = vsyncpa [#allocation6], 0 }
  0x11   :  { %26 = vsyncpa [#allocation9], 0 }
  0x12   :  { %27 = vsyncpa [#allocation12], 0 }
  0x13   :  { %28 = vsyncpa [#allocation15], 0 }
  0x14   :  { %29 = vsyncpa [#allocation18], 0 }
  0x15   :  { %30 = vsyncpa [#allocation21], 0 }
  0x16   :  { %31 = vsyncpa [#allocation24], 0 }
  0x17   :  { %32 = vsyncpa [#allocation4], 0 }
  0x18   :  { %34 = vsyncpa [#allocation4 + $0x1], 0  ;;  %s13478_s24 = smov 0   ;;  %s13480_s25 = smov 0  }
  0x19   :  { %s13482_s26 = smov 0   ;;  %s13484_s27 = smov 0  }
  0x1a LB: > { %s13359_s28 = smov [#allocation5]   ;;  %s13499_s0 = sadd.s32 4294967295, %s13357_s27   ;;  %s13357_s27 = sphi %s13484_s27, %s15602_s27   ;;  %s13353_s26 = sphi %s13482_s26, %s15601_s26   ;;  %s13349_s25 = sphi %s13480_s25, %s15600_s25   ;;  %s13345_s24 = sphi %s13478_s24, %s15599_s24  }
  0x1b   : > { %s445_s29 = sshll.u32 %s13359_s28, 4  ;;  %p10170_p0 = scmp.ge.s32.totalorder %s13357_s27, 1  ;;  %s446_s29 = int_to_ptr.vmem [resolvable:$true] %s445_s29 }
  0x1c   : > { %p15454_p1 = scmp.eq.s32.totalorder %s13499_s0, 0  ;;  %p433_p2 = scmp.lt.s32.totalorder %s13357_s27, 3 }
  0x1d   : > { %s13360_s18 = smov [#allocation8]   ;;  %s13361_s20 = smov [#allocation11]  }
  0x1e   : > { %p13504_p3 = pnand %p10170_p0, %p433_p2  ;;  %s472_s19 = sshll.u32 %s13360_s18, 4  ;;  %s473_s19 = int_to_ptr.vmem [resolvable:$true] %s472_s19 }
  0x1f   : > { %s496_s21 = sshll.u32 %s13361_s20, 4  ;;  %s12910_s23 = scalar_lea.vmem %s446_s29, 9600  ;;  %s13517_s21 = int_to_ptr.vmem [resolvable:$true] %s496_s21 }
  0x20   : > { %s15480_s30 = scalar_select %p13504_p3, 1, 0 }
  0x21   : > { %p12159_p5 = pneg %p13504_p3  ;;  %p12911_p8 = scmp.ne.s32.totalorder %s446_s29, %s12910_s23 }
  0x22   : > { %p12918_p11 = scmp.lt.s32.totalorder %s446_s29, %s446_s29  ;;  %p12919_p12 = scmp.lt.s32.totalorder %s12910_s23, %s12910_s23 }
  0x23   : > { %p13513_p6 = pnand %p12159_p5, %p15454_p1 }
  0x24   : > { %p12920_p13 = por %p12919_p12, %p12918_p11 }
  0x25   : > { %p13521_p7 = pneg %p13513_p6 }
  0x27   : > { %p12913_p9 = pnand %p12911_p8, %p13521_p7 }
  0x29   : > { %p12914_p10 = pneg %p12913_p9 }
  0x2b   : > { %p12921_p0 = pnand %p12920_p13, %p12914_p10 }
  0x2d   : > { %12924 = shalt.err (!%p12921_p0)
}
  0x2e   : > { %s13362_s28 = smov 384   ;;  %s13363_s18 = smov 24  }
  0x2f   : > { %s15483_s16 = sld [smem:[#allocation59_spill]]  ;;  %s12936_s14 = scalar_lea.vmem %s473_s19, 32 }
  0x30   : > { %p12937_p2 = scmp.ne.s32.totalorder %s473_s19, %s12936_s14  ;;  %p12944_p9 = scmp.lt.s32.totalorder %s473_s19, %s473_s19 }
  0x31   : > { %p12945_p4 = scmp.lt.s32.totalorder %s12936_s14, %s12936_s14 }
  0x32   : > { %p12939_p5 = pnand %p12937_p2, %p13521_p7 }
  0x33   : > { %p12946_p1 = por %p12945_p4, %p12944_p9 }
  0x34   : > { %p12940_p8 = pneg %p12939_p5 }
  0x35   : > { %12162 = dma.hbm_to_vmem [thread:$0]  (!%p13513_p6), %s15483_s16, 9600, %s446_s29, [#allocation6], %s13362_s28, %s13362_s28, %s13363_s18  }
  0x36   : > { %p12947_p11 = pnand %p12946_p1, %p12940_p8 }
  0x38   : > { %12950 = shalt.err (!%p12947_p11)
}
  0x39   : > { %s15484_s3 = sld [smem:[#allocation61_spill]]  ;;  %s12962_s16 = scalar_lea.vmem %s13517_s21, 32 }
  0x3a   : > { %p12963_p10 = scmp.ne.s32.totalorder %s13517_s21, %s12962_s16  ;;  %p12970_p0 = scmp.lt.s32.totalorder %s13517_s21, %s13517_s21 }
  0x3b   : > { %p12971_p4 = scmp.lt.s32.totalorder %s12962_s16, %s12962_s16 }
  0x3c   : > { %p12965_p12 = pnand %p12963_p10, %p13521_p7 }
  0x3d   : > { %p12972_p1 = por %p12971_p4, %p12970_p0 }
  0x3e   : > { %p12966_p13 = pneg %p12965_p12 }
  0x3f   : > { %12168 = dma.hbm_to_vmem [thread:$0]  (!%p13513_p6), %s15484_s3, 32, %s473_s19, [#allocation9]  }
  0x40   : > { %p12973_p2 = pnand %p12972_p1, %p12966_p13 }
  0x42   : > { %12976 = shalt.err (!%p12973_p2)
}
  0x43   : > { %s15485_s5 = sld [smem:[#allocation63_spill]]  ;;  %s13364_s17 = smov [#allocation14]  }
  0x44   : > { %s519_s29 = sshll.u32 %s13364_s17, 4  ;;  %s13365_s19 = smov [#allocation17]   ;;  %s520_s29 = int_to_ptr.vmem [resolvable:$true] %s519_s29 }
  0x45   : > { %s546_s28 = sshll.u32 %s13365_s19, 4  ;;  %s12988_s18 = scalar_lea.vmem %s520_s29, 1600  ;;  %s547_s28 = int_to_ptr.vmem [resolvable:$true] %s546_s28 }
  0x46   : > { %p12989_p5 = scmp.ne.s32.totalorder %s520_s29, %s12988_s18  ;;  %p12996_p11 = scmp.lt.s32.totalorder %s520_s29, %s520_s29 }
  0x47   : > { %p12997_p10 = scmp.lt.s32.totalorder %s12988_s18, %s12988_s18 }
  0x48   : > { %p12991_p8 = pnand %p12989_p5, %p13521_p7 }
  0x49   : > { %12174 = dma.hbm_to_vmem [thread:$0]  (!%p13513_p6), %s15485_s5, 32, %s13517_s21, [#allocation12]  }
  0x4a   : > { %p12992_p9 = pneg %p12991_p8  ;;  %p12998_p12 = por %p12997_p10, %p12996_p11 }
  0x4c   : > { %p12999_p13 = pnand %p12998_p12, %p12992_p9 }
  0x4e   : > { %13002 = shalt.err (!%p12999_p13)
}
  0x4f   : > { %s15456_s20 = smov 64   ;;  %s15460_s23 = smov 4  }
  0x50   : > { %s15486_s7 = sld [smem:[#allocation65_spill]]  ;;  %s13014_s9 = scalar_lea.vmem %s547_s28, 13440 }
  0x51   : > { %p13015_p0 = scmp.ne.s32.totalorder %s547_s28, %s13014_s9  ;;  %p13022_p2 = scmp.lt.s32.totalorder %s547_s28, %s547_s28 }
  0x52   : > { %p13023_p5 = scmp.lt.s32.totalorder %s13014_s9, %s13014_s9 }
  0x53   : > { %p13017_p4 = pnand %p13015_p0, %p13521_p7 }
  0x54   : > { %p13024_p8 = por %p13023_p5, %p13022_p2 }
  0x55   : > { %p13018_p1 = pneg %p13017_p4 }
  0x56   : > { %12180 = dma.hbm_to_vmem [thread:$0]  (!%p13513_p6), %s15486_s7, 1600, %s520_s29, [#allocation15], %s15456_s20, %s15456_s20, %s15460_s23  }
  0x57   : > { %p13025_p9 = pnand %p13024_p8, %p13018_p1 }
  0x59   : > { %13028 = shalt.err (!%p13025_p9)
}
  0x5a   : > { %s15458_s14 = smov 192   ;;  %s15459_s17 = smov 12  }
  0x5b   : > { %12186 = dma.hbm_to_vmem [thread:$0]  (!%p13513_p6), %s15443_s10, 13440, %s547_s28, [#allocation18], %s15458_s14, %s15458_s14, %s15459_s17  }
  0x5c   : > { %s13370_s18 = smov [#allocation20]   ;;  %s13371_s16 = smov [#allocation7]  }
  0x5d   : > { %s570_s21 = sshll.u32 %s13370_s18, 4  ;;  %s458_s9 = sshll.u32 %s13371_s16, 4  ;;  %s571_s21 = int_to_ptr.vmem [resolvable:$true] %s570_s21  ;;  %s459_s9 = int_to_ptr.vmem [resolvable:$true] %s458_s9 }
  0x5e   : > { %s13040_s20 = scalar_lea.vmem %s571_s21, 128  ;;  %p13048_p13 = scmp.lt.s32.totalorder %s571_s21, %s571_s21 }
  0x5f   : > { %p13041_p11 = scmp.ne.s32.totalorder %s571_s21, %s13040_s20  ;;  %p13049_p0 = scmp.lt.s32.totalorder %s13040_s20, %s13040_s20 }
  0x61   : > { %p13043_p10 = pnand %p13041_p11, %p13521_p7  ;;  %p13050_p4 = por %p13049_p0, %p13048_p13 }
  0x63   : > { %p13044_p12 = pneg %p13043_p10 }
  0x65   : > { %p13051_p1 = pnand %p13050_p4, %p13044_p12 }
  0x67   : > { %13054 = shalt.err (!%p13051_p1)
}
  0x68   : > { %s15487_s29 = smov 64   ;;  %s13066_s18 = scalar_lea.vmem %s459_s9, 160 }
  0x69   : > { %12192 = dma.hbm_to_vmem [thread:$0]  (!%p13513_p6), %s15445_s12, 128, %s571_s21, [#allocation21], %s15487_s29, %s15487_s29, %s15460_s23  }
  0x6a   : > { %p13067_p2 = scmp.ne.s32.totalorder %s459_s9, %s13066_s18  ;;  %p13074_p9 = scmp.lt.s32.totalorder %s459_s9, %s459_s9 }
  0x6b   : > { %p13075_p11 = scmp.lt.s32.totalorder %s13066_s18, %s13066_s18 }
  0x6c   : > { %p13069_p5 = pnand %p13067_p2, %p13521_p7 }
  0x6d   : > { %p13076_p10 = por %p13075_p11, %p13074_p9 }
  0x6e   : > { %p13070_p8 = pneg %p13069_p5 }
  0x70   : > { %p13077_p12 = pnand %p13076_p10, %p13070_p8 }
  0x72   : > { %13080 = shalt.err (!%p13077_p12)
}
  0x73   : > { %s13372_s20 = smov 32   ;;  %s13373_s16 = smov 2  }
  0x74   : > { %s15488_s2 = sld [smem:[#allocation60_spill]]  ;;  %s13374_s21 = smov [#allocation10]  }
  0x75   : > { %s482_s19 = sshll.u32 %s13374_s21, 4  ;;  %s13375_s17 = smov [#allocation13]   ;;  %s483_s19 = int_to_ptr.vmem [resolvable:$true] %s482_s19 }
  0x76   : > { %s506_s23 = sshll.u32 %s13375_s17, 4  ;;  %s13092_s3 = scalar_lea.vmem %s483_s19, 320  ;;  %s507_s23 = int_to_ptr.vmem [resolvable:$true] %s506_s23 }
  0x77   : > { %p13093_p13 = scmp.ne.s32.totalorder %s483_s19, %s13092_s3  ;;  %p13100_p1 = scmp.lt.s32.totalorder %s483_s19, %s483_s19 }
  0x78   : > { %p13101_p2 = scmp.lt.s32.totalorder %s13092_s3, %s13092_s3 }
  0x79   : > { %p13095_p0 = pnand %p13093_p13, %p13521_p7 }
  0x7a   : > { %12165 = dma.hbm_to_vmem [thread:$0]  (!%p13513_p6), %s15488_s2, 160, %s459_s9, [#allocation6], %s13372_s20, %s13372_s20, %s13373_s16  }
  0x7b   : > { %p13096_p4 = pneg %p13095_p0  ;;  %p13102_p5 = por %p13101_p2, %p13100_p1 }
  0x7d   : > { %p13103_p8 = pnand %p13102_p5, %p13096_p4 }
  0x7f   : > { %13106 = shalt.err (!%p13103_p8)
}
  0x80   : > { %s15489_s18 = smov 4   ;;  %s15490_s4 = sld [smem:[#allocation62_spill]] }
  0x81   : > { %s13118_s17 = scalar_lea.vmem %s507_s23, 1152  ;;  %p13126_p12 = scmp.lt.s32.totalorder %s507_s23, %s507_s23 }
  0x82   : > { %p13119_p9 = scmp.ne.s32.totalorder %s507_s23, %s13118_s17  ;;  %p13127_p13 = scmp.lt.s32.totalorder %s13118_s17, %s13118_s17 }
  0x84   : > { %p13121_p11 = pnand %p13119_p9, %p13521_p7  ;;  %p13128_p0 = por %p13127_p13, %p13126_p12 }
  0x86   : > { %12171 = dma.hbm_to_vmem [thread:$0]  (!%p13513_p6), %s15490_s4, 320, %s483_s19, [#allocation9], %s15487_s29, %s15487_s29, %s15489_s18  }
  0x87   : > { %p13122_p10 = pneg %p13121_p11 }
  0x89   : > { %p13129_p4 = pnand %p13128_p0, %p13122_p10 }
  0x8b   : > { %13132 = shalt.err (!%p13129_p4)
}
  0x8c   : > { %s13376_s3 = smov 128   ;;  %s13377_s20 = smov 8  }
  0x8d   : > { %s15491_s6 = sld [smem:[#allocation64_spill]]  ;;  %s13378_s21 = smov [#allocation16]  }
  0x8e   : > { %s533_s19 = sshll.u32 %s13378_s21, 4  ;;  %s13379_s14 = smov [#allocation19]   ;;  %s534_s19 = int_to_ptr.vmem [resolvable:$true] %s533_s19 }
  0x8f   : > { %s560_s9 = sshll.u32 %s13379_s14, 4  ;;  %s13144_s2 = scalar_lea.vmem %s534_s19, 32  ;;  %s561_s9 = int_to_ptr.vmem [resolvable:$true] %s560_s9 }
  0x90   : > { %p13145_p1 = scmp.ne.s32.totalorder %s534_s19, %s13144_s2  ;;  %p13152_p8 = scmp.lt.s32.totalorder %s534_s19, %s534_s19 }
  0x91   : > { %p13153_p9 = scmp.lt.s32.totalorder %s13144_s2, %s13144_s2 }
  0x92   : > { %p13147_p2 = pnand %p13145_p1, %p13521_p7 }
  0x93   : > { %12177 = dma.hbm_to_vmem [thread:$0]  (!%p13513_p6), %s15491_s6, 1152, %s507_s23, [#allocation12], %s13376_s3, %s13376_s3, %s13377_s20  }
  0x94   : > { %p13148_p5 = pneg %p13147_p2  ;;  %p13154_p11 = por %p13153_p9, %p13152_p8 }
  0x96   : > { %p13155_p10 = pnand %p13154_p11, %p13148_p5 }
  0x98   : > { %13158 = shalt.err (!%p13155_p10)
}
  0x99   : > { %s15492_s8 = sld [smem:[#allocation66_spill]]  ;;  %s13170_s23 = scalar_lea.vmem %s561_s9, 96 }
  0x9a   : > { %p13171_p12 = scmp.ne.s32.totalorder %s561_s9, %s13170_s23  ;;  %p13178_p4 = scmp.lt.s32.totalorder %s561_s9, %s561_s9 }
  0x9b   : > { %p13179_p1 = scmp.lt.s32.totalorder %s13170_s23, %s13170_s23 }
  0x9c   : > { %p13173_p13 = pnand %p13171_p12, %p13521_p7 }
  0x9d   : > { %p13180_p2 = por %p13179_p1, %p13178_p4 }
  0x9e   : > { %p13174_p0 = pneg %p13173_p13 }
  0x9f   : > { %12183 = dma.hbm_to_vmem [thread:$0]  (!%p13513_p6), %s15492_s8, 32, %s534_s19, [#allocation15]  }
  0xa0   : > { %p13181_p3 = pnand %p13180_p2, %p13174_p0 }
  0xa2   : > { %13184 = shalt.err (!%p13181_p3)
}
  0xa3   : > { %12189 = dma.hbm_to_vmem [thread:$0]  (!%p13513_p6), %s15444_s11, 96, %s561_s9, [#allocation18]  }
  0xa4   : > { %s13380_s20 = smov [#allocation22]   ;;  %s13381_s21 = smov [#allocation23]  }
  0xa5   : > { %s583_s28 = sshll.u32 %s13380_s20, 4  ;;  %s599_s19 = sshll.u32 %s13381_s21, 4  ;;  %s584_s28 = int_to_ptr.vmem [resolvable:$true] %s583_s28  ;;  %s600_s19 = int_to_ptr.vmem [resolvable:$true] %s599_s19 }
  0xa6   : > { %s13196_s14 = scalar_lea.vmem %s584_s28, 7872  ;;  %p13204_p11 = scmp.lt.s32.totalorder %s584_s28, %s584_s28 }
  0xa7   : > { %p13197_p5 = scmp.ne.s32.totalorder %s584_s28, %s13196_s14  ;;  %p13205_p10 = scmp.lt.s32.totalorder %s13196_s14, %s13196_s14 }
  0xa9   : > { %p13199_p8 = pnand %p13197_p5, %p13521_p7  ;;  %p13206_p3 = por %p13205_p10, %p13204_p11 }
  0xab   : > { %p13200_p9 = pneg %p13199_p8 }
  0xad   : > { %p13207_p12 = pnand %p13206_p3, %p13200_p9 }
  0xaf   : > { %13210 = shalt.err (!%p13207_p12)
}
  0xb0   : > { %s15493_s17 = smov 12   ;;  %s15494_s16 = smov 192  }
  0xb1   : > { %12195 = dma.hbm_to_vmem [thread:$0]  (!%p13513_p6), %s15446_s13, 7872, %s584_s28, [#allocation21], %s15494_s16, %s15494_s16, %s15493_s17  }
  0xb2   : > { %s13222_s2 = scalar_lea.vmem %s600_s19, 28864  ;;  %p13230_p1 = scmp.lt.s32.totalorder %s600_s19, %s600_s19 }
  0xb3   : > { %p13223_p13 = scmp.ne.s32.totalorder %s600_s19, %s13222_s2  ;;  %p13231_p2 = scmp.lt.s32.totalorder %s13222_s2, %s13222_s2 }
  0xb5   : > { %p13225_p0 = pnand %p13223_p13, %p13521_p7  ;;  %p13232_p5 = por %p13231_p2, %p13230_p1 }
  0xb7   : > { %p13226_p4 = pneg %p13225_p0 }
  0xb9   : > { %p13233_p8 = pnand %p13232_p5, %p13226_p4 }
  0xbb   : > { %13236 = shalt.err (!%p13233_p8)
}
  0xbc   : > { %12198 = dma.hbm_to_vmem [thread:$0]  (!%p13513_p6), %s15448_s15, 28864, %s600_s19, [#allocation24], %s15487_s29, %s15487_s29, %s15489_s18  }
  0xbd   : > { %s10169_s1 = sadd.s32 4294967294, %s13357_s27   ;;  %s13641_s22 = sadd.s32 1, %s13357_s27  }
  0xbe   : > { %s47_s28 = sadd.s32 1, %s13353_s26  ;;  %s44_s21 = ssub.s32 %s13357_s27, %s13641_s22 }
  0xbf   : > { %p54_p7 = scmp.ne.s32.totalorder %s13353_s26, %s13349_s25  ;;  %p45_p9 = scmp.eq.s32.totalorder %s44_s21, 0 }
  0xc0   : > { %p55_p11 = scmp.eq.s32.totalorder %s13357_s27, 0  ;;  %p60_p10 = scmp.ne.s32.totalorder %s13349_s25, %s13345_s24 }
  0xc1   : > { %p420_p3 = scmp.eq.s32.totalorder %s13499_s0, 1  ;;  %p15495_p13 = scmp.eq.s32.totalorder %s13499_s0, 0 }
  0xc2   : > { %s13653_s14 = scalar_select %p45_p9, %s13353_s26, %s47_s28  }
  0xc3   : > { %p56_p12 = por %p55_p11, %p54_p7  ;;  %p13657_p0 = por %p15495_p13, %p60_p10 }
  0xc4   : > { %p13661_p6 = por %p420_p3, %p54_p7  ;;  %p426_p4 = scmp.eq.s32.totalorder %s10169_s1, 1 }
  0xc5   : > { %s15496_s17 = scalar_select %p13657_p0, 1, 0 }
  0xc6   : > { %s15497_s29 = scalar_select %p13661_p6, 1, 0 }
  0xc7   : > { %p12220_p1 = scmp.lt.s32.totalorder %s13357_s27, 2  ;;  %s616_s18 = sand.u32 1, %s13353_s26  }
  0xc8   : > { %p13667_p2 = por %p426_p4, %p60_p10  ;;  %s12100_s16 = smul.u32 24, %s616_s18 }
  0xc9   : > { %p13671_p5 = pnand %p12220_p1, %p56_p12  ;;  %s12101_s23 = smul.u32 384, %s13357_s27 }
  0xca   : > { %s15498_s19 = scalar_select %p13667_p2, 1, 0 }
  0xcb   : > { %s15500_s20 = sld [smem:[#allocation58_spill]]  ;;  %s620_s1 = scalar_lea.vmem [#allocation2], %s12100_s16 }
  0xcc   : > { %s628_s21 = sshll.u32 %s620_s1, 4  ;;  %s617_s4 = scalar_lea.sflag [#allocation3], %s616_s18  ;;  %s629_s21 = int_to_ptr.vmem [resolvable:$true] %s628_s21 }
  0xcd   : > { %p13239_p7 = pneg %p13671_p5 }
  0xd1   : > { %s13679_s28 = scalar_lea.hbm %s15500_s20, %s12101_s23  ;;  %s13242_s8 = scalar_lea.hbm %s15500_s20, 768 }
  0xd2   : > { %s13237_s5 = scalar_lea.hbm %s13679_s28, 384  ;;  %p13243_p10 = scmp.lt.s32.totalorder %s13679_s28, %s15500_s20 }
  0xd3   : > { %p13238_p8 = scmp.ne.s32.totalorder %s13679_s28, %s13237_s5  ;;  %p13244_p3 = scmp.lt.s32.totalorder %s13242_s8, %s13237_s5 }
  0xd5   : > { %p13240_p9 = pnand %p13239_p7, %p13238_p8  ;;  %p13245_p12 = por %p13244_p3, %p13243_p10 }
  0xd7   : > { %p13241_p11 = pneg %p13240_p9 }
  0xd9   : > { %p13246_p13 = pnand %p13245_p12, %p13241_p11 }
  0xdb   : > { %13249 = shalt.err (!%p13246_p13)
}
  0xdc   : > { %s13250_s16 = scalar_lea.vmem %s629_s21, 384  ;;  %s13382_s18 = smov [#allocation2]  }
  0xdd   : > { %p13251_p4 = scmp.ne.s32.totalorder %s629_s21, %s13250_s16  ;;  %s13255_s3 = sshll.u32 %s13382_s18, 4  ;;  %s13256_s3 = int_to_ptr.vmem [resolvable:$false] %s13255_s3 }
  0xde   : > { %s13257_s1 = scalar_lea.vmem %s13256_s3, 768  ;;  %p13258_p8 = scmp.lt.s32.totalorder %s629_s21, %s13256_s3 }
  0xdf   : > { %p13253_p1 = pnand %p13251_p4, %p13239_p7  ;;  %p13259_p9 = scmp.lt.s32.totalorder %s13257_s1, %s13250_s16 }
  0xe1   : > { %p13254_p2 = pneg %p13253_p1  ;;  %p13260_p6 = por %p13259_p9, %p13258_p8 }
  0xe3   : > { %p13261_p0 = pnand %p13260_p6, %p13254_p2 }
  0xe5   : > { %13264 = shalt.err (!%p13261_p0)
}
  0xe6   : > { %12202 = dma.hbm_to_vmem [thread:$0]  (!%p13671_p5), %s13679_s28, 384, %s629_s21, %s617_s4  }
  0xe7   : > { %p15501_p11 = scmp.ne.s32.totalorder %s15480_s30, 0 }
  0xe9   : > { %637 = sbr.rel (%p15501_p11) target bundleno = 3366 (0xd26), region = 88 }
  0xee   : > { %s13698_s5 = sand.u32 1, %s13349_s25   ;;  %p15502_p7 = scmp.ne.s32.totalorder %s15496_s17, 0 }
  0xef   : > { %s12102_s6 = smul.u32 24, %s13698_s5  ;;  %s640_s7 = scalar_lea.sflag [#allocation3], %s13698_s5 }
  0xf1   : > { %s13702_s8 = scalar_lea.vmem [#allocation2], %s12102_s6 }
  0xf2   : > { %13308 = dma.done.wait (%p15502_p7), %s640_s7, 384  }
  0xf3   : > { %13310 = vsyncadd (%p15502_p7), %s640_s7, 4294966912  ;;  %p15503_p0 = scmp.eq.s32.totalorder %s13499_s0, 0 }
  0xf5   : > { %13312 = dma.done.wait (%p15503_p0), [#allocation6], 9760   ;;  %p15504_p6 = pmov %p15503_p0 }
  0xf6   : > { %p15505_p2 = pmov %p15503_p0 }
  0xf7   : > { %13314 = vsyncadd (%p15504_p6), [#allocation6], 4294957536 }
  0xf8   : > { %13316 = dma.done.wait (%p15505_p2), [#allocation9], 352   ;;  %p15506_p5 = pmov %p15503_p0 }
  0xf9   : > { %p15507_p10 = pmov %p15503_p0 }
  0xfa   : > { %13318 = vsyncadd (%p15506_p5), [#allocation9], 4294966944 }
  0xfb   : > { %13320 = dma.done.wait (%p15507_p10), [#allocation12], 1184   ;;  %p15508_p3 = pmov %p15503_p0 }
  0xfc   : > { %p15509_p12 = pmov %p15503_p0 }
  0xfd   : > { %13322 = vsyncadd (%p15508_p3), [#allocation12], 4294966112 }
  0xfe   : > { %13324 = dma.done.wait (%p15509_p12), [#allocation15], 1632   ;;  %p15510_p13 = pmov %p15503_p0 }
  0xff   : > { %p15511_p4 = pmov %p15503_p0 }
 0x100   : > { %13326 = vsyncadd (%p15510_p13), [#allocation15], 4294965664 }
 0x101   : > { %13328 = dma.done.wait (%p15511_p4), [#allocation18], 13536   ;;  %p15512_p1 = pmov %p15503_p0 }
 0x102   : > { %p15513_p8 = pmov %p15503_p0 }
 0x103   : > { %13330 = vsyncadd (%p15512_p1), [#allocation18], 4294953760 }
 0x104   : > { %13332 = dma.done.wait (%p15513_p8), [#allocation21], 8000   ;;  %p15514_p9 = pmov %p15503_p0 }
 0x105   : > { %p15515_p11 = pmov %p15503_p0 }
 0x106   : > { %13334 = vsyncadd (%p15514_p9), [#allocation21], 4294959296 }
 0x107   : > { %13336 = dma.done.wait (%p15515_p11), [#allocation24], 28864   ;;  %p15516_p7 = pmov %p15503_p0 }
 0x108   : > { %v746_v0 = vld [vmem:[%s13702_s8] sm:$0xff]  ;;  %v747_v1 = vld [vmem:[%s13702_s8 + $0x8] sm:$0xff]  ;;  %v748_v10 = vld [vmem:[%s13702_s8 + $0x10] sm:$0xff]  ;;  %vm1207_vm0 = vcmask 949248   ;;  %vm1807_vm1 = vcmask 1041408   ;;  %vm1770_vm3 = vcmask 31744  }
 0x109   : > { %13338 = vsyncadd (%p15516_p7), [#allocation24], 4294938432  ;;  %v752_v2 = vcombine.high %v746_v0, %v746_v0  ;;  %v753_v3 = vcombine.high %v747_v1, %v747_v1  ;;  %v12298_v4 = vld [vmem:[#allocation5 + $0x4] ss:$24 sps:$4 sm:$0xff]   ;;  %v758_v5 = vpack.c.bf16 %v746_v0, %v746_v0  ;;  %v760_v6 = vpack.c.bf16 %v747_v1, %v747_v1  ;;  %v12296_v12 = vld [vmem:[#allocation5] ss:$24 sps:$4 sm:$0xff]  }
 0x10a   : > { %1282 = vmatprep.mubr.bf16.mxu0 %v12298_v4  ;;  %v12301_v9 = vld [vmem:[#allocation5 + $0xc] ss:$24 sps:$4 sm:$0xff]   ;;  %v754_v11 = vcombine.high %v748_v10, %v748_v10  ;;  %v12299_v13 = vld [vmem:[#allocation5 + $0x8] ss:$24 sps:$4 sm:$0xff]   ;;  %v12304_v16 = vld [vmem:[#allocation5 + $0x3c] ss:$24 sps:$4 sm:$0xff]   ;;  %v762_v17 = vpack.c.bf16 %v748_v10, %v748_v10 }
 0x10b   : > { %v759_v7 = vpack.c.bf16 %v752_v2, %v752_v2  ;;  %v761_v8 = vpack.c.bf16 %v753_v3, %v753_v3  ;;  %1418 = vmatprep.mubr.bf16.mxu1 %v12301_v9  ;;  %v12302_v14 = vld [vmem:[#allocation5 + $0x34] ss:$24 sps:$4 sm:$0xff]   ;;  %v12306_v18 = vld [vmem:[#allocation5 + $0x30] ss:$24 sps:$4 sm:$0xff]   ;;  %v12309_v20 = vld [vmem:[#allocation5 + $0x64] ss:$24 sps:$4 sm:$0xff]  }
 0x10c   : > { %v763_v15 = vpack.c.bf16 %v754_v11, %v754_v11  ;;  %v12307_v19 = vld [vmem:[#allocation5 + $0x38] ss:$24 sps:$4 sm:$0xff]   ;;  %v12311_v21 = vld [vmem:[#allocation5 + $0x6c] ss:$24 sps:$4 sm:$0xff]   ;;  %v12314_v23 = vld [vmem:[#allocation5 + $0x68] ss:$24 sps:$4 sm:$0xff]  }
 0x10d   : > { %1264 = vmatprep.subr.bf16.mxu0 %v759_v7  ;;  %1400 = vmatprep.subr.bf16.mxu1 %v761_v8  ;;  %v12313_v22 = vld [vmem:[#allocation5 + $0x60] ss:$24 sps:$4 sm:$0xff]   ;;  %v12315_v24 = vld [vmem:[#allocation5 + $0x94] ss:$24 sps:$4 sm:$0xff]   ;;  %v12319_v26 = vld [vmem:[#allocation5 + $0x90] ss:$24 sps:$4 sm:$0xff]  }
 0x10e   : > { %1265 = vmatpush1.bf16.xpose.msra.mxu0 %v758_v5  ;;  %1401 = vmatpush1.bf16.xpose.msra.mxu1 %v760_v6  ;;  %v12317_v25 = vld [vmem:[#allocation5 + $0x9c] ss:$24 sps:$4 sm:$0xff]   ;;  %v12320_v27 = vld [vmem:[#allocation5 + $0x98] ss:$24 sps:$4 sm:$0xff]   ;;  %v12323_v29 = vld [vmem:[#allocation5 + $0xcc] ss:$24 sps:$4 sm:$0xff]  }
 0x10f   : > { %10278 = vmatprep.subr.msk.bf16.mxu0 %vm1207_vm0, %v763_v15  ;;  %v12321_v28 = vld [vmem:[#allocation5 + $0xc4] ss:$24 sps:$4 sm:$0xff]   ;;  %v12325_v30 = vld [vmem:[#allocation5 + $0xc0] ss:$24 sps:$4 sm:$0xff]   ;;  %v12327_v32 = vld [vmem:[#allocation5 + $0xf4] ss:$24 sps:$4 sm:$0xff]  }
 0x110   : > { %v12326_v31 = vld [vmem:[#allocation5 + $0xc8] ss:$24 sps:$4 sm:$0xff]   ;;  %v12329_v33 = vld [vmem:[#allocation5 + $0xfc] ss:$24 sps:$4 sm:$0xff]   ;;  %v12332_v35 = vld [vmem:[#allocation5 + $0xf8] ss:$24 sps:$4 sm:$0xff]  }
 0x111   : > { %v12331_v34 = vld [vmem:[#allocation5 + $0xf0] ss:$24 sps:$4 sm:$0xff]   ;;  %v12333_v36 = vld [vmem:[#allocation5 + $0x124] ss:$24 sps:$4 sm:$0xff]   ;;  %v12337_v38 = vld [vmem:[#allocation5 + $0x120] ss:$24 sps:$4 sm:$0xff]  }
 0x112   : > { %v12335_v37 = vld [vmem:[#allocation5 + $0x12c] ss:$24 sps:$4 sm:$0xff]   ;;  %v12338_v39 = vld [vmem:[#allocation5 + $0x128] ss:$24 sps:$4 sm:$0xff]   ;;  %v12341_v41 = vld [vmem:[#allocation5 + $0x15c] ss:$24 sps:$4 sm:$0xff]  }
 0x113   : > { %v12339_v40 = vld [vmem:[#allocation5 + $0x154] ss:$24 sps:$4 sm:$0xff]   ;;  %v12343_v42 = vld [vmem:[#allocation5 + $0x150] ss:$24 sps:$4 sm:$0xff]   ;;  %v12345_v44 = vld [vmem:[#allocation5 + $0x184] ss:$24 sps:$4 sm:$0xff]  }
 0x114   : > { %v12344_v43 = vld [vmem:[#allocation5 + $0x158] ss:$24 sps:$4 sm:$0xff]   ;;  %v12347_v45 = vld [vmem:[#allocation5 + $0x18c] ss:$24 sps:$4 sm:$0xff]   ;;  %v12350_v47 = vld [vmem:[#allocation5 + $0x188] ss:$24 sps:$4 sm:$0xff]  }
 0x115   : > { %1283 = vmatmul.mubr.bf16.vlgmr.msra.gmra.mxu0 %v12296_v12  ;;  %1419 = vmatmul.mubr.bf16.vlgmr.msra.gmra.mxu1 %v12299_v13  ;;  %v12349_v46 = vld [vmem:[#allocation5 + $0x180] ss:$24 sps:$4 sm:$0xff]   ;;  %v12351_v48 = vld [vmem:[#allocation5 + $0x1b4] ss:$24 sps:$4 sm:$0xff]   ;;  %v12355_v50 = vld [vmem:[#allocation5 + $0x1b0] ss:$24 sps:$4 sm:$0xff]  }
 0x116   : > { %1290 = vmatprep.mubr.bf16.mxu0 %v12302_v14  ;;  %1426 = vmatprep.mubr.bf16.mxu1 %v12304_v16  ;;  %v12353_v49 = vld [vmem:[#allocation5 + $0x1bc] ss:$24 sps:$4 sm:$0xff]   ;;  %v12356_v51 = vld [vmem:[#allocation5 + $0x1b8] ss:$24 sps:$4 sm:$0xff]   ;;  %v12359_v53 = vld [vmem:[#allocation5 + $0x1ec] ss:$24 sps:$4 sm:$0xff]  }
 0x117   : > { %1537 = vmatpush1.bf16.xpose.msra.mxu0 %v762_v17  ;;  %v12357_v52 = vld [vmem:[#allocation5 + $0x1e4] ss:$24 sps:$4 sm:$0xff]   ;;  %v12361_v54 = vld [vmem:[#allocation5 + $0x1e0] ss:$24 sps:$4 sm:$0xff]   ;;  %v12363_v56 = vld [vmem:[#allocation5 + $0x214] ss:$24 sps:$4 sm:$0xff]  }
 0x118   : > { %v12362_v55 = vld [vmem:[#allocation5 + $0x1e8] ss:$24 sps:$4 sm:$0xff]   ;;  %v12365_v57 = vld [vmem:[#allocation5 + $0x21c] ss:$24 sps:$4 sm:$0xff]   ;;  %v12368_v61 = vld [vmem:[#allocation5 + $0x218] ss:$24 sps:$4 sm:$0xff]  }
 0x119   : > { %v836_v58 = vld [vmem:[#allocation5 + $0x240] sm:$0x11]  ;;  %v837_v59 = vld [vmem:[#allocation5 + $0x248] sm:$0x11]  ;;  %v1673_v13 = vld [vmem:[#allocation7 + $0x2] sm:$0x3] }
 0x11a   : > { %v12367_v60 = vld [vmem:[#allocation5 + $0x210] ss:$24 sps:$4 sm:$0xff]   ;;  %v10273_v62 = vcombine.high %v836_v58, %v836_v58  ;;  %v10275_v63 = vcombine.high %v837_v59, %v837_v59  ;;  %v12375_v0 = vld [vmem:[#allocation5 + $0x14] ss:$24 sps:$4 sm:$0xff]   ;;  %v10272_v1 = vcombine.low %v836_v58, %v836_v58  ;;  %v10274_v2 = vcombine.low %v837_v59, %v837_v59  ;;  %v12376_v4 = vld [vmem:[#allocation5 + $0x44] ss:$24 sps:$4 sm:$0xff]   ;;  %12080 = vmatprep.subr.msk.bf16.mxu1 %vm1807_vm1, %v1673_v13 }
 0x11b   : > { %v12373_v3 = vld [vmem:[#allocation5 + $0x10] ss:$24 sps:$4 sm:$0xff]   ;;  %v12378_v5 = vld [vmem:[#allocation5 + $0x40] ss:$24 sps:$4 sm:$0xff]   ;;  %v12379_v6 = vld [vmem:[#allocation5 + $0x74] ss:$24 sps:$4 sm:$0xff]  }
 0x11c   : > { %v12381_v7 = vld [vmem:[#allocation5 + $0x70] ss:$24 sps:$4 sm:$0xff]   ;;  %v12382_v8 = vld [vmem:[#allocation5 + $0xa4] ss:$24 sps:$4 sm:$0xff]   ;;  %v12384_v9 = vld [vmem:[#allocation5 + $0xa0] ss:$24 sps:$4 sm:$0xff]  }
 0x11d   : > { %1291 = vmatmul.mubr.bf16.gmra.mxu0 %v12306_v18  ;;  %1427 = vmatmul.mubr.bf16.gmra.mxu1 %v12307_v19  ;;  %v12385_v10 = vld [vmem:[#allocation5 + $0xd4] ss:$24 sps:$4 sm:$0xff]   ;;  %v12387_v11 = vld [vmem:[#allocation5 + $0xd0] ss:$24 sps:$4 sm:$0xff]   ;;  %v12388_v12 = vld [vmem:[#allocation5 + $0x104] ss:$24 sps:$4 sm:$0xff]  }
 0x11e   : > { %1298 = vmatprep.mubr.bf16.mxu0 %v12309_v20  ;;  %1434 = vmatprep.mubr.bf16.mxu1 %v12311_v21  ;;  %v1809_v14 = vsel %vm1807_vm1, %v1673_v13, 0  ;;  %v12390_v15 = vld [vmem:[#allocation5 + $0x100] ss:$24 sps:$4 sm:$0xff]   ;;  %v12391_v16 = vld [vmem:[#allocation5 + $0x134] ss:$24 sps:$4 sm:$0xff]   ;;  %vm2110_vm5 = vcmask 1046528  }
 0x11f   : > { %11473 = vmatpush3.bf16.msra.mxu1 %v1809_v14  ;;  %v12393_v17 = vld [vmem:[#allocation5 + $0x130] ss:$24 sps:$4 sm:$0xff]   ;;  %v12394_v18 = vld [vmem:[#allocation5 + $0x164] ss:$24 sps:$4 sm:$0xff]   ;;  %v12396_v19 = vld [vmem:[#allocation5 + $0x160] ss:$24 sps:$4 sm:$0xff]  }
 0x120   : > { %v12397_v20 = vld [vmem:[#allocation5 + $0x194] ss:$24 sps:$4 sm:$0xff]   ;;  %v12399_v21 = vld [vmem:[#allocation5 + $0x190] ss:$24 sps:$4 sm:$0xff]   ;;  %vm1674_vm2 = vsmask.f32 7424 }
 0x121   : > { %vm2328_vm4 = vsmask.f32 6400  ;;  %vm2571_vm6 = vcmask 1045504   ;;  %vm3061_vm7 = vcmask 1043456   ;;  %vm2895_vm8 = vcmask 1040384   ;;  %s15592_s17 = sld [smem:[#allocation67_spill]] }
 0x122   : > { %vm3024_vm9 = vcmask 64512   ;;  %vm2924_vm10 = vcmask 1047552   ;;  %vm4175_vm12 = vcmask 498688   ;;  %vm4332_vm13 = vcmask 293888   ;;  %s15593_s23 = sld [smem:[#allocation68_spill]]  ;;  %s10914_s7 = sshll.u32 %s13499_s0, 4 }
 0x123   : > { %vm2925_vm11 = vmand %vm2924_vm10, %vm1674_vm2  ;;  %vm4930_vm14 = vcmask 515072   ;;  %vm5175_vm15 = vcmask 883712   ;;  %s15594_s6 = sld [smem:[#allocation69_spill]]  ;;  %s744_s8 = scalar_lea.vmem [#allocation25], %s13698_s5 }
 0x124   : > { %s9979_s4 = sshll.u32 %s744_s8, 4  ;;  %s15595_s28 = sld [smem:[#allocation70_spill]]  ;;  %s9980_s4 = int_to_ptr.vmem [resolvable:$true] %s9979_s4 }
 0x125   : > { %1299 = vmatmul.mubr.bf16.gmra.mxu0 %v12313_v22  ;;  %1435 = vmatmul.mubr.bf16.gmra.mxu1 %v12314_v23  ;;  %v12400_v22 = vld [vmem:[#allocation5 + $0x1c4] ss:$24 sps:$4 sm:$0xff]   ;;  %v12402_v23 = vld [vmem:[#allocation5 + $0x1c0] ss:$24 sps:$4 sm:$0xff]   ;;  %s9967_s2 = scalar_lea.sflag [#allocation4], %s13698_s5  ;;  %s13265_s16 = scalar_lea.vmem %s9980_s4, 16 }
 0x126   : > { %1306 = vmatprep.mubr.bf16.mxu0 %v12315_v24  ;;  %1442 = vmatprep.mubr.bf16.mxu1 %v12317_v25  ;;  %v12403_v24 = vld [vmem:[#allocation5 + $0x1f4] ss:$24 sps:$4 sm:$0xff]   ;;  %v12405_v25 = vld [vmem:[#allocation5 + $0x1f0] ss:$24 sps:$4 sm:$0xff]   ;;  %p13266_p0 = scmp.ne.s32.totalorder %s9980_s4, %s13265_s16  ;;  %p15596_p6 = scmp.ne.s32.totalorder %s15497_s29, 0 }
 0x127   : > { %s13387_s18 = smov [#allocation25]  }
 0x128   : > { %p13267_p2 = pnand %p13266_p0, %p15596_p6  ;;  %s13269_s3 = sshll.u32 %s13387_s18, 4  ;;  %s13270_s3 = int_to_ptr.vmem [resolvable:$false] %s13269_s3 }
 0x129   : > { %s13271_s0 = scalar_lea.vmem %s13270_s3, 32  ;;  %p13272_p10 = scmp.lt.s32.totalorder %s9980_s4, %s13270_s3 }
 0x12a   : > { %s15396_s21 = scalar_lea.hbm %s15595_s28, %s10914_s7  ;;  %p13268_p5 = pneg %p13267_p2 }
 0x12b   : > { %p13273_p3 = scmp.lt.s32.totalorder %s13271_s0, %s13265_s16 }
 0x12d   : > { %1307 = vmatmul.mubr.bf16.gmra.mxu0 %v12319_v26  ;;  %1443 = vmatmul.mubr.bf16.gmra.mxu1 %v12320_v27  ;;  %v12406_v26 = vld [vmem:[#allocation5 + $0x224] ss:$24 sps:$4 sm:$0xff]   ;;  %v838_v27 = vld [vmem:[#allocation5 + $0x250] sm:$0x11]  ;;  %p13274_p12 = por %p13273_p3, %p13272_p10 }
 0x12e   : > { %1314 = vmatprep.mubr.bf16.mxu0 %v12321_v28  ;;  %1450 = vmatprep.mubr.bf16.mxu1 %v12323_v29  ;;  %v12408_v28 = vld [vmem:[#allocation5 + $0x220] ss:$24 sps:$4 sm:$0xff]   ;;  %v10277_v29 = vcombine.high %v838_v27, %v838_v27 }
 0x12f   : > { %p13275_p13 = pnand %p13274_p12, %p13268_p5 }
 0x135   : > { %1315 = vmatmul.mubr.bf16.gmra.mxu0 %v12325_v30  ;;  %1451 = vmatmul.mubr.bf16.gmra.mxu1 %v12326_v31 }
 0x136   : > { %1322 = vmatprep.mubr.bf16.mxu0 %v12327_v32  ;;  %1458 = vmatprep.mubr.bf16.mxu1 %v12329_v33 }
 0x13d   : > { %1323 = vmatmul.mubr.bf16.gmra.mxu0 %v12331_v34  ;;  %1459 = vmatmul.mubr.bf16.gmra.mxu1 %v12332_v35  ;;  %v2327_v35 = vld [vmem:[#allocation7 + $0x6] sm:$0x3] }
 0x13e   : > { %1330 = vmatprep.mubr.bf16.mxu0 %v12333_v36  ;;  %1466 = vmatprep.mubr.bf16.mxu1 %v12335_v37 }
 0x13f   : > { %12083 = vmatprep.subr.msk.bf16.mxu0 %vm1807_vm1, %v2327_v35 }
 0x145   : > { %1331 = vmatmul.mubr.bf16.gmra.mxu0 %v12337_v38  ;;  %1467 = vmatmul.mubr.bf16.gmra.mxu1 %v12338_v39  ;;  %v10276_v38 = vcombine.low %v838_v27, %v838_v27  ;;  %v2413_v39 = vsel %vm1807_vm1, %v2327_v35, 0 }
 0x146   : > { %1338 = vmatprep.mubr.bf16.mxu0 %v12339_v40  ;;  %1474 = vmatprep.mubr.bf16.mxu1 %v12341_v41 }
 0x14d   : > { %1339 = vmatmul.mubr.bf16.gmra.mxu0 %v12343_v42  ;;  %1475 = vmatmul.mubr.bf16.gmra.mxu1 %v12344_v43 }
 0x14e   : > { %1346 = vmatprep.mubr.bf16.mxu0 %v12345_v44  ;;  %1482 = vmatprep.mubr.bf16.mxu1 %v12347_v45 }
 0x155   : > { %1347 = vmatmul.mubr.bf16.gmra.mxu0 %v12349_v46  ;;  %1483 = vmatmul.mubr.bf16.gmra.mxu1 %v12350_v47 }
 0x156   : > { %1354 = vmatprep.mubr.bf16.mxu0 %v12351_v48  ;;  %1490 = vmatprep.mubr.bf16.mxu1 %v12353_v49 }
 0x15d   : > { %1355 = vmatmul.mubr.bf16.gmra.mxu0 %v12355_v50  ;;  %1491 = vmatmul.mubr.bf16.gmra.mxu1 %v12356_v51 }
 0x15e   : > { %1362 = vmatprep.mubr.bf16.mxu0 %v12357_v52  ;;  %1498 = vmatprep.mubr.bf16.mxu1 %v12359_v53 }
 0x165   : > { %1363 = vmatmul.mubr.bf16.gmra.mxu0 %v12361_v54  ;;  %1499 = vmatmul.mubr.bf16.gmra.mxu1 %v12362_v55 }
 0x166   : > { %1370 = vmatprep.mubr.bf16.mxu0 %v12363_v56  ;;  %1506 = vmatprep.mubr.bf16.mxu1 %v12365_v57 }
 0x16d   : > { %1371 = vmatmul.mubr.bf16.gmra.mxu0 %v12367_v60  ;;  %1507 = vmatmul.mubr.bf16.gmra.mxu1 %v12368_v61 }
 0x16e   : > { %1378 = vmatprep.mubr.bf16.mxu0 %v10273_v62  ;;  %1514 = vmatprep.mubr.bf16.mxu1 %v10275_v63 }
 0x175   : > { %1379 = vmatmul.mubr.bf16.gmra.mxu0 %v10272_v1  ;;  %1515 = vmatmul.mubr.bf16.gmra.mxu1 %v10274_v2 }
 0x176   : > { %10279 = vmatprep.mubr.msk.bf16.mxu0 %vm1207_vm0, %v12375_v0 }
 0x17d   : > { %1555 = vmatmul.mubr.bf16.vlgmr.msra.gmra.mxu0 %v12373_v3 }
 0x17e   : > { %10280 = vmatprep.mubr.msk.bf16.mxu0 %vm1207_vm0, %v12376_v4  ;;  %11551 = vmatpush3.bf16.msra.mxu0 %v2413_v39 }
 0x185   : > { %1563 = vmatmul.mubr.bf16.gmra.mxu0 %v12378_v5 }
 0x186   : > { %10281 = vmatprep.mubr.msk.bf16.mxu0 %vm1207_vm0, %v12379_v6 }
 0x18d   : > { %1571 = vmatmul.mubr.bf16.gmra.mxu0 %v12381_v7 }
 0x18e   : > { %10282 = vmatprep.mubr.msk.bf16.mxu0 %vm1207_vm0, %v12382_v8 }
 0x195   : > { %1579 = vmatmul.mubr.bf16.gmra.mxu0 %v12384_v9 }
 0x196   : > { %10283 = vmatprep.mubr.msk.bf16.mxu0 %vm1207_vm0, %v12385_v10 }
 0x19d   : > { %1587 = vmatmul.mubr.bf16.gmra.mxu0 %v12387_v11 }
 0x19e   : > { %10284 = vmatprep.mubr.msk.bf16.mxu0 %vm1207_vm0, %v12388_v12 }
 0x1a5   : > { %1595 = vmatmul.mubr.bf16.gmra.mxu0 %v12390_v15 }
 0x1a6   : > { %10285 = vmatprep.mubr.msk.bf16.mxu0 %vm1207_vm0, %v12391_v16 }
 0x1ad   : > { %1603 = vmatmul.mubr.bf16.gmra.mxu0 %v12393_v17 }
 0x1ae   : > { %10286 = vmatprep.mubr.msk.bf16.mxu0 %vm1207_vm0, %v12394_v18 }
 0x1b5   : > { %1611 = vmatmul.mubr.bf16.gmra.mxu0 %v12396_v19 }
 0x1b6   : > { %10287 = vmatprep.mubr.msk.bf16.mxu0 %vm1207_vm0, %v12397_v20 }
 0x1bd   : > { %1619 = vmatmul.mubr.bf16.gmra.mxu0 %v12399_v21 }
 0x1be   : > { %10288 = vmatprep.mubr.msk.bf16.mxu0 %vm1207_vm0, %v12400_v22 }
 0x1c5   : > { %1627 = vmatmul.mubr.bf16.gmra.mxu0 %v12402_v23 }
 0x1c6   : > { %10289 = vmatprep.mubr.msk.bf16.mxu0 %vm1207_vm0, %v12403_v24 }
 0x1cd   : > { %1635 = vmatmul.mubr.bf16.gmra.mxu0 %v12405_v25 }
 0x1ce   : > { %10290 = vmatprep.mubr.msk.bf16.mxu0 %vm1207_vm0, %v12406_v26 }
 0x1d5   : > { %v1284_v30 = vpop.f32.mrf.mxu0  ;;  %v1420_v31 = vpop.f32.mrf.mxu1  ;;  %1643 = vmatmul.mubr.bf16.gmra.mxu0 %v12408_v28 }
 0x1d6   : > { %v13754_v32 = vadd.f32 %v1420_v31, %v1284_v30  ;;  %10291 = vmatprep.mubr.msk.bf16.mxu0 %vm1207_vm0, %v10277_v29  ;;  %v13781_v29 = vld [vmem:[#allocation7] sm:$0x3]  ;;  %vm13386_vm0 = vmmov 0  }
 0x1d7   : > { %v1286_v33 = vpop.f32.mrf.mxu0  ;;  %v1422_v34 = vpop.f32.mrf.mxu1  ;;  %12081 = vmatprep.subr.msk.bf16.mxu1 %vm1807_vm1, %v13781_v29 }
 0x1d9   : > { %v1287_v36 = vpop.f32.mrf.mxu0  ;;  %v1423_v37 = vpop.f32.mrf.mxu1 }
 0x1da   : > { %v13759_v40 = vadd.f32 %v1423_v37, %v1287_v36 }
 0x1db   : > { %v1289_v41 = vpop.f32.mrf.mxu0  ;;  %v1425_v42 = vpop.f32.mrf.mxu1 }
 0x1dd   : > { %v1292_v43 = vpop.f32.mrf.mxu0  ;;  %v1428_v44 = vpop.f32.mrf.mxu1  ;;  %1651 = vmatmul.mubr.bf16.gmra.mxu0 %v10276_v38 }
 0x1de   : > { %v13761_v45 = vadd.f32 %v1428_v44, %v1292_v43 }
 0x1df   : > { %v1294_v46 = vpop.f32.mrf.mxu0  ;;  %v1430_v47 = vpop.f32.mrf.mxu1 }
 0x1e1   : > { %v1295_v48 = vpop.f32.mrf.mxu0  ;;  %v1431_v49 = vpop.f32.mrf.mxu1 }
 0x1e2   : > { %v13763_v50 = vadd.f32 %v1431_v49, %v1295_v48 }
 0x1e3   : > { %v1297_v51 = vpop.f32.mrf.mxu0  ;;  %v1433_v52 = vpop.f32.mrf.mxu1 }
 0x1e5   : > { %v1300_v53 = vpop.f32.mrf.mxu0  ;;  %v1436_v54 = vpop.f32.mrf.mxu1 }
 0x1e6   : > { %v13765_v55 = vadd.f32 %v1436_v54, %v1300_v53 }
 0x1e7   : > { %v1302_v56 = vpop.f32.mrf.mxu0  ;;  %v1438_v57 = vpop.f32.mrf.mxu1 }
 0x1e9   : > { %v1303_v58 = vpop.f32.mrf.mxu0  ;;  %v1439_v59 = vpop.f32.mrf.mxu1 }
 0x1ea   : > { %v13767_v60 = vadd.f32 %v1439_v59, %v1303_v58 }
 0x1eb   : > { %v1305_v61 = vpop.f32.mrf.mxu0  ;;  %v1441_v62 = vpop.f32.mrf.mxu1 }
 0x1ed   : > { %v1308_v63 = vpop.f32.mrf.mxu0  ;;  %v1444_v0 = vpop.f32.mrf.mxu1 }
 0x1ee   : > { %v13769_v1 = vadd.f32 %v1444_v0, %v1308_v63 }
 0x1ef   : > { %v1310_v2 = vpop.f32.mrf.mxu0  ;;  %v1446_v3 = vpop.f32.mrf.mxu1 }
 0x1f1   : > { %v1311_v4 = vpop.f32.mrf.mxu0  ;;  %v1447_v5 = vpop.f32.mrf.mxu1 }
 0x1f2   : > { %v13771_v6 = vadd.f32 %v1447_v5, %v1311_v4 }
 0x1f3   : > { %v1313_v7 = vpop.f32.mrf.mxu0  ;;  %v1449_v8 = vpop.f32.mrf.mxu1 }
 0x1f5   : > { %v1316_v9 = vpop.f32.mrf.mxu0  ;;  %v1452_v10 = vpop.f32.mrf.mxu1 }
 0x1f6   : > { %v13773_v11 = vadd.f32 %v1452_v10, %v1316_v9 }
 0x1f7   : > { %v1318_v12 = vpop.f32.mrf.mxu0  ;;  %v1454_v13 = vpop.f32.mrf.mxu1 }
 0x1f9   : > { %v1319_v14 = vpop.f32.mrf.mxu0  ;;  %v1455_v15 = vpop.f32.mrf.mxu1 }
 0x1fa   : > { %v13775_v16 = vadd.f32 %v1455_v15, %v1319_v14 }
 0x1fb   : > { %v1321_v17 = vpop.f32.mrf.mxu0  ;;  %v1457_v18 = vpop.f32.mrf.mxu1 }
 0x1fd   : > { %v1324_v19 = vpop.f32.mrf.mxu0  ;;  %v1460_v20 = vpop.f32.mrf.mxu1 }
 0x1fe   : > { %v13777_v21 = vadd.f32 %v1460_v20, %v1324_v19 }
 0x1ff   : > { %v1326_v22 = vpop.f32.mrf.mxu0  ;;  %v1462_v23 = vpop.f32.mrf.mxu1 }
 0x201   : > { %v1327_v24 = vpop.f32.mrf.mxu0  ;;  %v1463_v25 = vpop.f32.mrf.mxu1 }
 0x202   : > { %v13779_v26 = vadd.f32 %v1463_v25, %v1327_v24 }
 0x203   : > { %v1329_v27 = vpop.f32.mrf.mxu0  ;;  %v1465_v28 = vpop.f32.mrf.mxu1 }
 0x205   : > { %v1332_v30 = vpop.f32.mrf.mxu0  ;;  %v1468_v31 = vpop.f32.mrf.mxu1 }
 0x206   : > { %v13785_v33 = vadd.f32 %v1468_v31, %v1332_v30 }
 0x207   : > { %v1334_v34 = vpop.f32.mrf.mxu0  ;;  %v1470_v35 = vpop.f32.mrf.mxu1 }
 0x209   : > { %v1335_v36 = vpop.f32.mrf.mxu0  ;;  %v1471_v37 = vpop.f32.mrf.mxu1 }
 0x20a   : > { %v13787_v38 = vadd.f32 %v1471_v37, %v1335_v36 }
 0x20b   : > { %v1337_v39 = vpop.f32.mrf.mxu0  ;;  %v1473_v41 = vpop.f32.mrf.mxu1 }
 0x20d   : > { %v1340_v42 = vpop.f32.mrf.mxu0  ;;  %v1476_v43 = vpop.f32.mrf.mxu1 }
 0x20e   : > { %v13789_v44 = vadd.f32 %v1476_v43, %v1340_v42 }
 0x20f   : > { %v1342_v46 = vpop.f32.mrf.mxu0  ;;  %v1478_v47 = vpop.f32.mrf.mxu1 }
 0x211   : > { %v1343_v48 = vpop.f32.mrf.mxu0  ;;  %v1479_v49 = vpop.f32.mrf.mxu1 }
 0x212   : > { %v13791_v51 = vadd.f32 %v1479_v49, %v1343_v48 }
 0x213   : > { %v1345_v52 = vpop.f32.mrf.mxu0  ;;  %v1481_v53 = vpop.f32.mrf.mxu1 }
 0x215   : > { %v1348_v54 = vpop.f32.mrf.mxu0  ;;  %v1484_v56 = vpop.f32.mrf.mxu1 }
 0x216   : > { %v13793_v57 = vadd.f32 %v1484_v56, %v1348_v54 }
 0x217   : > { %v1350_v58 = vpop.f32.mrf.mxu0  ;;  %v1486_v59 = vpop.f32.mrf.mxu1 }
 0x219   : > { %v1351_v61 = vpop.f32.mrf.mxu0  ;;  %v1487_v62 = vpop.f32.mrf.mxu1 }
 0x21a   : > { %v13795_v63 = vadd.f32 %v1487_v62, %v1351_v61 }
 0x21b   : > { %v1353_v0 = vpop.f32.mrf.mxu0  ;;  %v1489_v2 = vpop.f32.mrf.mxu1 }
 0x21d   : > { %v1356_v3 = vpop.f32.mrf.mxu0  ;;  %v1492_v4 = vpop.f32.mrf.mxu1 }
 0x21e   : > { %v13797_v5 = vadd.f32 %v1492_v4, %v1356_v3 }
 0x21f   : > { %v1358_v7 = vpop.f32.mrf.mxu0  ;;  %v1494_v8 = vpop.f32.mrf.mxu1 }
 0x221   : > { %v1359_v9 = vpop.f32.mrf.mxu0  ;;  %v1495_v10 = vpop.f32.mrf.mxu1 }
 0x222   : > { %v13799_v12 = vadd.f32 %v1495_v10, %v1359_v9 }
 0x223   : > { %v1361_v13 = vpop.f32.mrf.mxu0  ;;  %v1497_v14 = vpop.f32.mrf.mxu1 }
 0x225   : > { %v1364_v15 = vpop.f32.mrf.mxu0  ;;  %v1500_v17 = vpop.f32.mrf.mxu1 }
 0x226   : > { %v13801_v18 = vadd.f32 %v1500_v17, %v1364_v15 }
 0x227   : > { %v1366_v19 = vpop.f32.mrf.mxu0  ;;  %v1502_v20 = vpop.f32.mrf.mxu1 }
 0x229   : > { %v1367_v22 = vpop.f32.mrf.mxu0  ;;  %v1503_v23 = vpop.f32.mrf.mxu1 }
 0x22a   : > { %v13803_v24 = vadd.f32 %v1503_v23, %v1367_v22 }
 0x22b   : > { %v1369_v25 = vpop.f32.mrf.mxu0  ;;  %v1505_v27 = vpop.f32.mrf.mxu1 }
 0x22d   : > { %v1372_v28 = vpop.f32.mrf.mxu0  ;;  %v1508_v30 = vpop.f32.mrf.mxu1 }
 0x22e   : > { %v13805_v31 = vadd.f32 %v1508_v30, %v1372_v28 }
 0x22f   : > { %v1374_v34 = vpop.f32.mrf.mxu0  ;;  %v1510_v35 = vpop.f32.mrf.mxu1 }
 0x231   : > { %v1375_v36 = vpop.f32.mrf.mxu0  ;;  %v1511_v37 = vpop.f32.mrf.mxu1 }
 0x232   : > { %v13807_v39 = vadd.f32 %v1511_v37, %v1375_v36 }
 0x233   : > { %v1377_v41 = vpop.f32.mrf.mxu0  ;;  %v1513_v42 = vpop.f32.mrf.mxu1 }
 0x235   : > { %v1380_v43 = vpop.f32.mrf.mxu0  ;;  %v1516_v46 = vpop.f32.mrf.mxu1 }
 0x236   : > { %v13809_v47 = vadd.f32 %v1516_v46, %v1380_v43 }
 0x237   : > { %v1382_v48 = vpop.f32.mrf.mxu0  ;;  %v1518_v49 = vpop.f32.mrf.mxu1 }
 0x239   : > { %v1383_v52 = vpop.f32.mrf.mxu0  ;;  %v1519_v53 = vpop.f32.mrf.mxu1 }
 0x23b   : > { %v1384_v54 = vpop.f32.mrf.mxu0  ;;  %v1520_v56 = vpop.f32.mrf.mxu1 }
 0x23d   : > { %v1556_v58 = vpop.f32.mrf.mxu0 }
 0x23e   : > { %v1557_v62 = vadd.f32 %v1556_v58, %v13754_v32 }
 0x23f   : > { %v1558_v59 = vpop.f32.mrf.mxu0 }
 0x240   : > { %v1965_v59 = vsel %vm1807_vm1, %v13781_v29, 0 }
 0x241   : > { %v1559_v61 = vpop.f32.mrf.mxu0 }
 0x242   : > { %v1560_v0 = vadd.f32 %v1559_v61, %v13759_v40 }
 0x243   : > { %v1561_v2 = vpop.f32.mrf.mxu0 }
 0x244   : > { %v13813_v3 = vpack.c.bf16 %v1560_v0, %v1557_v62 }
 0x245   : > { %v1564_v4 = vpop.f32.mrf.mxu0 }
 0x246   : > { %v1678_v8 = vshll.u32 %v13813_v3, 16  ;;  %v1676_v10 = vshrl.u32 %v13813_v3, 16  ;;  %v1565_v13 = vadd.f32 %v1564_v4, %v13761_v45  ;;  %v13838_v4 = vld [vmem:[#allocation7 + $0x4] sm:$0x3] }
 0x247   : > { %v1566_v7 = vpop.f32.mrf.mxu0 }
 0x248   : > { %v1680_v32 = vrot.slane %v1678_v8, 1  ;;  %v2329_v40 = vrot.slane %v1676_v10, 1  ;;  %v2330_v20 = vrot.slane %v1678_v8, 2 }
 0x249   : > { %v1567_v9 = vpop.f32.mrf.mxu0 }
 0x24a   : > { %v1568_v14 = vadd.f32 %v1567_v9, %v13763_v50  ;;  %v1681_v27 = vor.u32 %v1680_v32, %v1676_v10  ;;  %v2331_v50 = vor.u32 %v2330_v20, %v2329_v40 }
 0x24b   : > { %v1569_v15 = vpop.f32.mrf.mxu0 }
 0x24c   : > { %v13819_v17 = vpack.c.bf16 %v1568_v14, %v1565_v13 }
 0x24d   : > { %v1572_v19 = vpop.f32.mrf.mxu0 }
 0x24e   : > { %v1683_v22 = vshll.u32 %v13819_v17, 16  ;;  %v1687_v23 = vshrl.u32 %v13819_v17, 16  ;;  %v1573_v35 = vadd.f32 %v1572_v19, %v13765_v55 }
 0x24f   : > { %v1574_v25 = vpop.f32.mrf.mxu0 }
 0x250   : > { %v1685_v28 = vrot.slane %v1683_v22, 1  ;;  %v2332_v30 = vrot.slane %v1687_v23, 1  ;;  %v2333_v45 = vrot.slane %v1683_v22, 2 }
 0x251   : > { %v1575_v34 = vpop.f32.mrf.mxu0 }
 0x252   : > { %v1576_v36 = vadd.f32 %v1575_v34, %v13767_v60  ;;  %v1686_v37 = vsel %vm1674_vm2, %v1681_v27, %v1685_v28  ;;  %v2334_v41 = vor.u32 %v2333_v45, %v2332_v30  ;;  %v1689_v53 = vor.u32 %v1687_v23, %v1685_v28 }
 0x253   : > { %v1577_v42 = vpop.f32.mrf.mxu0  ;;  %11474 = vmatprep.mubr.msk.bf16.mxu1 %vm1770_vm3, %v1686_v37 }
 0x254   : > { %v13827_v43 = vpack.c.bf16 %v1576_v36, %v1573_v35  ;;  %v2335_v46 = vsel %vm2328_vm4, %v2331_v50, %v2334_v41 }
 0x255   : > { %v1580_v48 = vpop.f32.mrf.mxu0  ;;  %11552 = vmatprep.mubr.msk.bf16.mxu0 %vm1770_vm3, %v2335_v46 }
 0x256   : > { %v1695_v49 = vshrl.u32 %v13827_v43, 16  ;;  %v1691_v52 = vshll.u32 %v13827_v43, 16  ;;  %v1581_v61 = vadd.f32 %v1580_v48, %v13769_v1 }
 0x257   : > { %v1582_v55 = vpop.f32.mrf.mxu0 }
 0x258   : > { %v1693_v60 = vrot.slane %v1691_v52, 1  ;;  %v2336_v54 = vrot.slane %v1695_v49, 1  ;;  %v2337_v56 = vrot.slane %v1691_v52, 2 }
 0x259   : > { %v1583_v58 = vpop.f32.mrf.mxu0 }
 0x25a   : > { %v1584_v62 = vadd.f32 %v1583_v58, %v13771_v6  ;;  %v1694_v0 = vsel %vm1674_vm2, %v1689_v53, %v1693_v60  ;;  %v2338_v2 = vor.u32 %v2337_v56, %v2336_v54  ;;  %v1697_v13 = vor.u32 %v1695_v49, %v1693_v60 }
 0x25b   : > { %v1585_v7 = vpop.f32.mrf.mxu0  ;;  %11475 = vmatmul.mubr.msk.bf16.vlgmr.msra.gmra.mxu1 %vm1770_vm3, %v1694_v0 }
 0x25c   : > { %v13841_v8 = vpack.c.bf16 %v1584_v62, %v1581_v61  ;;  %v2339_v9 = vsel %vm2328_vm4, %v2334_v41, %v2338_v2  ;;  %11499 = vmatpush3.bf16.msra.mxu1 %v1965_v59 }
 0x25d   : > { %v1588_v10 = vpop.f32.mrf.mxu0  ;;  %11553 = vmatmul.mubr.msk.bf16.vlgmr.msra.gmra.mxu0 %vm1770_vm3, %v2339_v9  ;;  %12082 = vmatprep.subr.msk.bf16.mxu1 %vm1807_vm1, %v13838_v4 }
 0x25e   : > { %v1699_v1 = vshll.u32 %v13841_v8, 16  ;;  %v1703_v6 = vshrl.u32 %v13841_v8, 16  ;;  %v1589_v40 = vadd.f32 %v1588_v10, %v13773_v11 }
 0x25f   : > { %v1590_v29 = vpop.f32.mrf.mxu0 }
 0x260   : > { %v1701_v14 = vrot.slane %v1699_v1, 1  ;;  %v2340_v15 = vrot.slane %v1703_v6, 1  ;;  %v2341_v32 = vrot.slane %v1699_v1, 2 }
 0x261   : > { %v1591_v19 = vpop.f32.mrf.mxu0 }
 0x262   : > { %v1592_v20 = vadd.f32 %v1591_v19, %v13775_v16  ;;  %v1702_v22 = vsel %vm1674_vm2, %v1697_v13, %v1701_v14  ;;  %v2342_v23 = vor.u32 %v2341_v32, %v2340_v15  ;;  %v1705_v50 = vor.u32 %v1703_v6, %v1701_v14 }
 0x263   : > { %v1593_v25 = vpop.f32.mrf.mxu0  ;;  %11478 = vmatprep.mubr.msk.bf16.mxu1 %vm1770_vm3, %v1702_v22 }
 0x264   : > { %v13853_v27 = vpack.c.bf16 %v1592_v20, %v1589_v40  ;;  %v2343_v28 = vsel %vm2328_vm4, %v2338_v2, %v2342_v23 }
 0x265   : > { %v1596_v30 = vpop.f32.mrf.mxu0  ;;  %11556 = vmatprep.mubr.msk.bf16.mxu0 %vm1770_vm3, %v2343_v28 }
 0x266   : > { %v1707_v45 = vshll.u32 %v13853_v27, 16  ;;  %v1711_v34 = vshrl.u32 %v13853_v27, 16  ;;  %v1597_v41 = vadd.f32 %v1596_v30, %v13777_v21 }
 0x267   : > { %v1598_v11 = vpop.f32.mrf.mxu0 }
 0x268   : > { %v1709_v16 = vrot.slane %v1707_v45, 1  ;;  %v2344_v35 = vrot.slane %v1711_v34, 1  ;;  %v2345_v36 = vrot.slane %v1707_v45, 2 }
 0x269   : > { %v1599_v37 = vpop.f32.mrf.mxu0 }
 0x26a   : > { %v1600_v42 = vadd.f32 %v1599_v37, %v13779_v26  ;;  %v1710_v46 = vsel %vm1674_vm2, %v1705_v50, %v1709_v16  ;;  %v2346_v48 = vor.u32 %v2345_v36, %v2344_v35  ;;  %v1713_v56 = vor.u32 %v1711_v34, %v1709_v16 }
 0x26b   : > { %v1601_v49 = vpop.f32.mrf.mxu0  ;;  %11479 = vmatmul.mubr.msk.bf16.gmra.mxu1 %vm1770_vm3, %v1710_v46 }
 0x26c   : > { %v13863_v52 = vpack.c.bf16 %v1600_v42, %v1597_v41  ;;  %v2347_v55 = vsel %vm2328_vm4, %v2342_v23, %v2346_v48 }
 0x26d   : > { %v1604_v53 = vpop.f32.mrf.mxu0  ;;  %11557 = vmatmul.mubr.msk.bf16.gmra.mxu0 %vm1770_vm3, %v2347_v55 }
 0x26e   : > { %v1715_v60 = vshll.u32 %v13863_v52, 16  ;;  %v1719_v54 = vshrl.u32 %v13863_v52, 16  ;;  %v1605_v62 = vadd.f32 %v1604_v53, %v13785_v33 }
 0x26f   : > { %v1606_v21 = vpop.f32.mrf.mxu0 }
 0x270   : > { %v1717_v26 = vrot.slane %v1715_v60, 1  ;;  %v2348_v58 = vrot.slane %v1719_v54, 1  ;;  %v2349_v59 = vrot.slane %v1715_v60, 2 }
 0x271   : > { %v1607_v61 = vpop.f32.mrf.mxu0 }
 0x272   : > { %v1608_v0 = vadd.f32 %v1607_v61, %v13787_v38  ;;  %v1718_v2 = vsel %vm1674_vm2, %v1713_v56, %v1717_v26  ;;  %v2350_v7 = vor.u32 %v2349_v59, %v2348_v58  ;;  %v1721_v14 = vor.u32 %v1719_v54, %v1717_v26 }
 0x273   : > { %v1609_v9 = vpop.f32.mrf.mxu0  ;;  %11482 = vmatprep.mubr.msk.bf16.mxu1 %vm1770_vm3, %v1718_v2 }
 0x274   : > { %v13873_v10 = vpack.c.bf16 %v1608_v0, %v1605_v62  ;;  %v2351_v1 = vsel %vm2328_vm4, %v2346_v48, %v2350_v7 }
 0x275   : > { %v1612_v6 = vpop.f32.mrf.mxu0  ;;  %11560 = vmatprep.mubr.msk.bf16.mxu0 %vm1770_vm3, %v2351_v1 }
 0x276   : > { %v1723_v29 = vshll.u32 %v13873_v10, 16  ;;  %v1727_v13 = vshrl.u32 %v13873_v10, 16  ;;  %v1613_v40 = vadd.f32 %v1612_v6, %v13789_v44 }
 0x277   : > { %v1614_v33 = vpop.f32.mrf.mxu0 }
 0x278   : > { %v1725_v38 = vrot.slane %v1723_v29, 1  ;;  %v2353_v15 = vrot.slane %v1723_v29, 2  ;;  %v2352_v32 = vrot.slane %v1727_v13, 1 }
 0x279   : > { %v1615_v19 = vpop.f32.mrf.mxu0 }
 0x27a   : > { %v1616_v20 = vadd.f32 %v1615_v19, %v13791_v51  ;;  %v1726_v22 = vsel %vm1674_vm2, %v1721_v14, %v1725_v38  ;;  %v2354_v23 = vor.u32 %v2353_v15, %v2352_v32  ;;  %v1729_v50 = vor.u32 %v1727_v13, %v1725_v38 }
 0x27b   : > { %v1617_v25 = vpop.f32.mrf.mxu0  ;;  %11483 = vmatmul.mubr.msk.bf16.gmra.mxu1 %vm1770_vm3, %v1726_v22 }
 0x27c   : > { %v13883_v28 = vpack.c.bf16 %v1616_v20, %v1613_v40  ;;  %v2355_v30 = vsel %vm2328_vm4, %v2350_v7, %v2354_v23 }
 0x27d   : > { %v1620_v45 = vpop.f32.mrf.mxu0  ;;  %11561 = vmatmul.mubr.msk.bf16.gmra.mxu0 %vm1770_vm3, %v2355_v30 }
 0x27e   : > { %v1731_v34 = vshll.u32 %v13883_v28, 16  ;;  %v1735_v11 = vshrl.u32 %v13883_v28, 16  ;;  %v1621_v37 = vadd.f32 %v1620_v45, %v13793_v57 }
 0x27f   : > { %v1622_v44 = vpop.f32.mrf.mxu0 }
 0x280   : > { %v1733_v51 = vrot.slane %v1731_v34, 1  ;;  %v2356_v16 = vrot.slane %v1735_v11, 1  ;;  %v2357_v35 = vrot.slane %v1731_v34, 2 }
 0x281   : > { %v1623_v36 = vpop.f32.mrf.mxu0 }
 0x282   : > { %v1624_v41 = vadd.f32 %v1623_v36, %v13795_v63  ;;  %v1734_v42 = vsel %vm1674_vm2, %v1729_v50, %v1733_v51  ;;  %v2358_v46 = vor.u32 %v2357_v35, %v2356_v16  ;;  %v1737_v21 = vor.u32 %v1735_v11, %v1733_v51 }
 0x283   : > { %v1625_v48 = vpop.f32.mrf.mxu0  ;;  %11486 = vmatprep.mubr.msk.bf16.mxu1 %vm1770_vm3, %v1734_v42 }
 0x284   : > { %v13893_v49 = vpack.c.bf16 %v1624_v41, %v1621_v37  ;;  %v2359_v55 = vsel %vm2328_vm4, %v2354_v23, %v2358_v46 }
 0x285   : > { %v1628_v53 = vpop.f32.mrf.mxu0  ;;  %11564 = vmatprep.mubr.msk.bf16.mxu0 %vm1770_vm3, %v2359_v55 }
 0x286   : > { %v1739_v60 = vshll.u32 %v13893_v49, 16  ;;  %v1743_v54 = vshrl.u32 %v13893_v49, 16  ;;  %v1629_v59 = vadd.f32 %v1628_v53, %v13797_v5  ;;  %v2587_v14 = vrot.slane %v13893_v49, 2 }
 0x287   : > { %v1630_v57 = vpop.f32.mrf.mxu0 }
 0x288   : > { %v1741_v63 = vrot.slane %v1739_v60, 1  ;;  %v2361_v56 = vrot.slane %v1739_v60, 2  ;;  %v2360_v26 = vrot.slane %v1743_v54, 1 }
 0x289   : > { %v1631_v58 = vpop.f32.mrf.mxu0 }
 0x28a   : > { %v1632_v61 = vadd.f32 %v1631_v58, %v13799_v12  ;;  %v1742_v62 = vsel %vm1674_vm2, %v1737_v21, %v1741_v63  ;;  %v2362_v0 = vor.u32 %v2361_v56, %v2360_v26  ;;  %v2126_v12 = vrot.slane %v13893_v49, 1 }
 0x28b   : > { %v1633_v2 = vpop.f32.mrf.mxu0  ;;  %11487 = vmatmul.mubr.msk.bf16.gmra.mxu1 %vm1770_vm3, %v1742_v62  ;;  %v1745_v33 = vor.u32 %v1743_v54, %v1741_v63 }
 0x28c   : > { %v13903_v7 = vpack.c.bf16 %v1632_v61, %v1629_v59  ;;  %v2363_v9 = vsel %vm2328_vm4, %v2358_v46, %v2362_v0 }
 0x28d   : > { %v1636_v1 = vpop.f32.mrf.mxu0  ;;  %11565 = vmatmul.mubr.msk.bf16.gmra.mxu0 %vm1770_vm3, %v2363_v9 }
 0x28e   : > { %v1747_v6 = vshll.u32 %v13903_v7, 16  ;;  %v1751_v5 = vshrl.u32 %v13903_v7, 16  ;;  %v2128_v29 = vrot.slane %v13903_v7, 1  ;;  %v2589_v38 = vrot.slane %v13903_v7, 2 }
 0x28f   : > { %v1638_v13 = vpop.f32.mrf.mxu0  ;;  %v1637_v23 = vadd.f32 %v1636_v1, %v13801_v18 }
 0x290   : > { %v1749_v15 = vrot.slane %v1747_v6, 1  ;;  %v2364_v32 = vrot.slane %v1751_v5, 1  ;;  %v2365_v19 = vrot.slane %v1747_v6, 2  ;;  %v13916_v40 = vsel %vm2110_vm5, %v2126_v12, %v2128_v29 }
 0x291   : > { %v1639_v20 = vpop.f32.mrf.mxu0  ;;  %v13921_v22 = vsel %vm2571_vm6, %v2587_v14, %v2589_v38 }
 0x292   : > { %v1640_v25 = vadd.f32 %v1639_v20, %v13803_v24  ;;  %v1750_v30 = vsel %vm1674_vm2, %v1745_v33, %v1749_v15  ;;  %v2366_v45 = vor.u32 %v2365_v19, %v2364_v32  ;;  %v1753_v35 = vor.u32 %v1751_v5, %v1749_v15 }
 0x293   : > { %v1641_v34 = vpop.f32.mrf.mxu0  ;;  %11490 = vmatprep.mubr.msk.bf16.mxu1 %vm1770_vm3, %v1750_v30  ;;  %v2111_v30 = vrot.slane %v13813_v3, 1 }
 0x294   : > { %v13927_v11 = vpack.c.bf16 %v1640_v25, %v1637_v23  ;;  %v2367_v44 = vsel %vm2328_vm4, %v2362_v0, %v2366_v45  ;;  %v2171_v23 = vsel %vm1807_vm1, %v13838_v4, 0  ;;  %v2569_v25 = vld [vmem:[#allocation7 + $0x8] sm:$0x3]  ;;  %v2112_v4 = vrot.slane %v13819_v17, 1 }
 0x295   : > { %v1644_v50 = vpop.f32.mrf.mxu0  ;;  %11568 = vmatprep.mubr.msk.bf16.mxu0 %vm1770_vm3, %v2367_v44  ;;  %v2114_v34 = vrot.slane %v13827_v43, 1  ;;  %v2116_v44 = vrot.slane %v13841_v8, 1 }
 0x296   : > { %v1755_v51 = vshll.u32 %v13927_v11, 16  ;;  %v1759_v16 = vshrl.u32 %v13927_v11, 16  ;;  %v2130_v18 = vrot.slane %v13927_v11, 1  ;;  %v2591_v36 = vrot.slane %v13927_v11, 2 }
 0x297   : > { %v1646_v24 = vpop.f32.mrf.mxu0  ;;  %v1645_v53 = vadd.f32 %v1644_v50, %v13805_v31  ;;  %v2115_v50 = vsel %vm2110_vm5, %v2112_v4, %v2114_v34 }
 0x298   : > { %v1757_v37 = vrot.slane %v1755_v51, 1  ;;  %v2369_v41 = vrot.slane %v1755_v51, 2  ;;  %v2368_v42 = vrot.slane %v1759_v16, 1  ;;  %v13936_v46 = vsel %vm2110_vm5, %v2128_v29, %v2130_v18 }
 0x299   : > { %v1647_v48 = vpop.f32.mrf.mxu0  ;;  %v13939_v55 = vsel %vm2571_vm6, %v2589_v38, %v2591_v36  ;;  %v2118_v51 = vrot.slane %v13853_v27, 1 }
 0x29a   : > { %v1648_v60 = vadd.f32 %v1647_v48, %v13807_v39  ;;  %v1758_v54 = vsel %vm1674_vm2, %v1753_v35, %v1757_v37  ;;  %v2370_v57 = vor.u32 %v2369_v41, %v2368_v42  ;;  %v1761_v61 = vor.u32 %v1759_v16, %v1757_v37 }
 0x29b   : > { %v1649_v21 = vpop.f32.mrf.mxu0  ;;  %11491 = vmatmul.mubr.msk.bf16.gmra.mxu1 %vm1770_vm3, %v1758_v54  ;;  %v2120_v16 = vrot.slane %v13863_v52, 1  ;;  %v2122_v35 = vrot.slane %v13873_v10, 1  ;;  %v2573_v48 = vrot.slane %v13819_v17, 2  ;;  %v2581_v54 = vrot.slane %v13863_v52, 2 }
 0x29c   : > { %v13945_v63 = vpack.c.bf16 %v1648_v60, %v1645_v53  ;;  %v2371_v56 = vsel %vm2328_vm4, %v2366_v45, %v2370_v57  ;;  %v2113_v45 = vsel %vm2110_vm5, %v2111_v30, %v2112_v4  ;;  %v2572_v53 = vrot.slane %v13813_v3, 2 }
 0x29d   : > { %v1652_v26 = vpop.f32.mrf.mxu0  ;;  %11569 = vmatmul.mubr.msk.bf16.gmra.mxu0 %vm1770_vm3, %v2371_v56  ;;  %v2121_v24 = vsel %vm2110_vm5, %v2118_v51, %v2120_v16  ;;  %v2123_v37 = vsel %vm2110_vm5, %v2120_v16, %v2122_v35  ;;  %v2575_v60 = vrot.slane %v13827_v43, 2  ;;  %v2585_v21 = vrot.slane %v13883_v28, 2 }
 0x29e   : > { %v1653_v58 = vadd.f32 %v1652_v26, %v13809_v47  ;;  %v1763_v59 = vshll.u32 %v13945_v63, 16  ;;  %v1767_v31 = vshrl.u32 %v13945_v63, 16  ;;  %v2132_v39 = vrot.slane %v13945_v63, 1 }
 0x29f   : > { %v1654_v62 = vpop.f32.mrf.mxu0  ;;  %v2593_v0 = vrot.slane %v13945_v63, 2  ;;  %v2588_v56 = vsel %vm2571_vm6, %v2585_v21, %v2587_v14 }
 0x2a0   : > { %v1670_v2 = vpack.c.bf16 %v1653_v58, %v1653_v58  ;;  %v1765_v9 = vrot.slane %v1763_v59, 1  ;;  %v2372_v1 = vrot.slane %v1767_v31, 1  ;;  %v2373_v6 = vrot.slane %v1763_v59, 2 }
 0x2a1   : > { %v2133_v5 = vsel %vm2110_vm5, %v2130_v18, %v2132_v39  ;;  %v1655_v29 = vpop.f32.mrf.mxu0  ;;  %v13958_v47 = vsel %vm2571_vm6, %v2591_v36, %v2593_v0  ;;  %v2119_v18 = vsel %vm2110_vm5, %v2116_v44, %v2118_v51  ;;  %v2124_v36 = vrot.slane %v13883_v28, 1  ;;  %v14111_v51 = vld [vmem:[#allocation10 + $0x8] sm:$0xf] }
 0x2a2   : > { %v2595_v13 = vrot.slane %v1670_v2, 2  ;;  %v1766_v33 = vsel %vm1674_vm2, %v1761_v61, %v1765_v9  ;;  %v1769_v38 = vor.u32 %v1767_v31, %v1765_v9  ;;  %v2374_v15 = vor.u32 %v2373_v6, %v2372_v1  ;;  %v2927_v29 = vld [vmem:[#allocation10] sm:$0xf] }
 0x2a3   : > { %11494 = vmatprep.mubr.msk.bf16.mxu1 %vm1770_vm3, %v1766_v33  ;;  %v1656_v32 = vpop.f32.mrf.mxu0  ;;  %v2125_v41 = vsel %vm2110_vm5, %v2122_v35, %v2124_v36  ;;  %v2127_v42 = vsel %vm2110_vm5, %v2124_v36, %v2126_v12  ;;  %v2574_v12 = vsel %vm2571_vm6, %v2572_v53, %v2573_v48 }
 0x2a4   : > { %11495 = vmatmul.mubr.msk.bf16.gmra.mxu1 %vm1770_vm3, %v1769_v38  ;;  %v2375_v19 = vsel %vm2328_vm4, %v2370_v57, %v2374_v15  ;;  %v13965_v20 = vsel %vm2571_vm6, %v2593_v0, %v2595_v13 }
 0x2a5   : > { %11500 = vmatprep.mubr.msk.bf16.mxu1 %vm1770_vm3, %v13813_v3  ;;  %11572 = vmatprep.mubr.msk.bf16.mxu0 %vm1770_vm3, %v2375_v19  ;;  %v2579_v3 = vrot.slane %v13853_v27, 2 }
 0x2a6   : > { %11573 = vmatmul.mubr.msk.bf16.gmra.mxu0 %vm1770_vm3, %v2374_v15 }
 0x2ac   : > { %11501 = vmatmul.mubr.msk.bf16.vlgmr.msra.gmra.mxu1 %vm1770_vm3, %v13819_v17 }
 0x2ad   : > { %11504 = vmatprep.mubr.msk.bf16.mxu1 %vm1770_vm3, %v13827_v43  ;;  %11525 = vmatpush3.bf16.msra.mxu1 %v2171_v23  ;;  %v2582_v43 = vsel %vm2571_vm6, %v2579_v3, %v2581_v54 }
 0x2ae   : > { %12084 = vmatprep.subr.msk.bf16.mxu1 %vm1807_vm1, %v2569_v25 }
 0x2b4   : > { %11505 = vmatmul.mubr.msk.bf16.gmra.mxu1 %vm1770_vm3, %v13841_v8 }
 0x2b5   : > { %11508 = vmatprep.mubr.msk.bf16.mxu1 %vm1770_vm3, %v13853_v27 }
 0x2bc   : > { %11509 = vmatmul.mubr.msk.bf16.gmra.mxu1 %vm1770_vm3, %v13863_v52 }
 0x2bd   : > { %11512 = vmatprep.mubr.msk.bf16.mxu1 %vm1770_vm3, %v13873_v10 }
 0x2c4   : > { %11513 = vmatmul.mubr.msk.bf16.gmra.mxu1 %vm1770_vm3, %v13883_v28 }
 0x2c5   : > { %11516 = vmatprep.mubr.msk.bf16.mxu1 %vm1770_vm3, %v13893_v49 }
 0x2cc   : > { %11517 = vmatmul.mubr.msk.bf16.gmra.mxu1 %vm1770_vm3, %v13903_v7  ;;  %v2634_v7 = vsel %vm1807_vm1, %v2569_v25, 0 }
 0x2cd   : > { %11520 = vmatprep.mubr.msk.bf16.mxu1 %vm1770_vm3, %v13927_v11  ;;  %v2117_v11 = vsel %vm2110_vm5, %v2114_v34, %v2116_v44 }
 0x2d4   : > { %11521 = vmatmul.mubr.msk.bf16.gmra.mxu1 %vm1770_vm3, %v13945_v63 }
 0x2d5   : > { %11526 = vmatprep.mubr.msk.bf16.mxu1 %vm1770_vm3, %v2113_v45 }
 0x2dc   : > { %11527 = vmatmul.mubr.msk.bf16.vlgmr.msra.gmra.mxu1 %vm1770_vm3, %v2115_v50 }
 0x2dd   : > { %11530 = vmatprep.mubr.msk.bf16.mxu1 %vm1770_vm3, %v2117_v11  ;;  %11577 = vmatpush3.bf16.msra.mxu1 %v2634_v7 }
 0x2de   : > { %12086 = vmatprep.subr.msk.bf16.mxu1 %vm3061_vm7, %v2927_v29 }
 0x2e4   : > { %11531 = vmatmul.mubr.msk.bf16.gmra.mxu1 %vm1770_vm3, %v2119_v18 }
 0x2e5   : > { %11534 = vmatprep.mubr.msk.bf16.mxu1 %vm1770_vm3, %v2121_v24 }
 0x2ec   : > { %11535 = vmatmul.mubr.msk.bf16.gmra.mxu1 %vm1770_vm3, %v2123_v37 }
 0x2ed   : > { %11538 = vmatprep.mubr.msk.bf16.mxu1 %vm1770_vm3, %v2125_v41 }
 0x2f4   : > { %11539 = vmatmul.mubr.msk.bf16.gmra.mxu1 %vm1770_vm3, %v2127_v42 }
 0x2f5   : > { %11542 = vmatprep.mubr.msk.bf16.mxu1 %vm1770_vm3, %v13916_v40  ;;  %v2577_v40 = vrot.slane %v13841_v8, 2  ;;  %v2583_v8 = vrot.slane %v13873_v10, 2 }
 0x2f7   : > { %v2578_v17 = vsel %vm2571_vm6, %v2575_v60, %v2577_v40  ;;  %v2580_v57 = vsel %vm2571_vm6, %v2577_v40, %v2579_v3  ;;  %v2584_v63 = vsel %vm2571_vm6, %v2581_v54, %v2583_v8  ;;  %v2586_v27 = vsel %vm2571_vm6, %v2583_v8, %v2585_v21 }
 0x2fc   : > { %11543 = vmatmul.mubr.msk.bf16.gmra.mxu1 %vm1770_vm3, %v13936_v46  ;;  %v2576_v46 = vsel %vm2571_vm6, %v2573_v48, %v2575_v60 }
 0x2fd   : > { %11546 = vmatprep.mubr.msk.bf16.mxu1 %vm1770_vm3, %v2133_v5 }
 0x304   : > { %11547 = vmatmul.mubr.msk.bf16.gmra.mxu1 %vm1770_vm3, %v2132_v39  ;;  %v2929_v39 = vld [vmem:[#allocation10 + $0x4] sm:$0xf] }
 0x305   : > { %11578 = vmatprep.mubr.msk.bf16.mxu1 %vm1770_vm3, %v2574_v12  ;;  %12085 = vmatprep.subr.msk.bf16.mxu0 %vm3061_vm7, %v2929_v39  ;;  %v3063_v61 = vsel %vm3061_vm7, %v2929_v39, 0 }
 0x306   : > { %11603 = vmatpush3.bf16.msra.mxu0 %v3063_v61 }
 0x307   : > { %12087 = vmatprep.subr.msk.bf16.mxu0 %vm3061_vm7, %v14111_v51 }
 0x30c   : > { %11579 = vmatmul.mubr.msk.bf16.vlgmr.msra.gmra.mxu1 %vm1770_vm3, %v2576_v46 }
 0x30d   : > { %11582 = vmatprep.mubr.msk.bf16.mxu1 %vm1770_vm3, %v2578_v17 }
 0x314   : > { %11583 = vmatmul.mubr.msk.bf16.gmra.mxu1 %vm1770_vm3, %v2580_v57 }
 0x315   : > { %11586 = vmatprep.mubr.msk.bf16.mxu1 %vm1770_vm3, %v2582_v43 }
 0x31b   : > { %v14053_v52 = vpop.f32.mrf.mxu1 }
 0x31c   : > { %11587 = vmatmul.mubr.msk.bf16.gmra.mxu1 %vm1770_vm3, %v2584_v63  ;;  %v14143_v63 = vld [vmem:[#allocation10 + $0xc] sm:$0xf] }
 0x31d   : > { %11590 = vmatprep.mubr.msk.bf16.mxu1 %vm1770_vm3, %v2586_v27  ;;  %v14061_v10 = vpop.f32.mrf.mxu1  ;;  %v14125_v53 = vpop.f32.mrf.mxu0 }
 0x31f   : > { %v14063_v28 = vpop.f32.mrf.mxu1  ;;  %v14131_v46 = vpop.f32.mrf.mxu0 }
 0x321   : > { %v14069_v26 = vpop.f32.mrf.mxu1  ;;  %v14137_v43 = vpop.f32.mrf.mxu0 }
 0x324   : > { %11591 = vmatmul.mubr.msk.bf16.gmra.mxu1 %vm1770_vm3, %v2588_v56  ;;  %v14147_v56 = vpop.f32.mrf.mxu0 }
 0x325   : > { %11594 = vmatprep.mubr.msk.bf16.mxu1 %vm1770_vm3, %v13921_v22 }
 0x32b   : > { %v14071_v49 = vpop.f32.mrf.mxu1 }
 0x32c   : > { %11595 = vmatmul.mubr.msk.bf16.gmra.mxu1 %vm1770_vm3, %v13939_v55 }
 0x32d   : > { %11598 = vmatprep.mubr.msk.bf16.mxu1 %vm1770_vm3, %v13958_v47  ;;  %v14075_v14 = vpop.f32.mrf.mxu1  ;;  %v3219_v47 = vsel %vm3061_vm7, %v2927_v29, 0  ;;  %v14151_v39 = vpop.f32.mrf.mxu0 }
 0x32e   : > { %11629 = vmatpush3.bf16.msra.mxu1 %v3219_v47 }
 0x32f   : > { %v14077_v22 = vpop.f32.mrf.mxu1  ;;  %12088 = vmatprep.subr.msk.bf16.mxu1 %vm3061_vm7, %v14143_v63 }
 0x331   : > { %v14079_v58 = vpop.f32.mrf.mxu1 }
 0x334   : > { %11599 = vmatmul.mubr.msk.bf16.gmra.mxu1 %vm1770_vm3, %v13965_v20  ;;  %vm6384_vm3 = vcmask 171008  }
 0x33b   : > { %v11484_v59 = vpop.f32.mrf.mxu1 }
 0x33d   : > { %v1877_v31 = vpop.f32.mrf.mxu1 }
 0x33f   : > { %v11485_v55 = vpop.f32.mrf.mxu1 }
 0x341   : > { %v14083_v62 = vpop.f32.mrf.mxu1 }
 0x34b   : > { %v11488_v0 = vpop.f32.mrf.mxu1 }
 0x34d   : > { %v1893_v2 = vpop.f32.mrf.mxu1 }
 0x34f   : > { %v11489_v9 = vpop.f32.mrf.mxu1 }
 0x351   : > { %v14085_v1 = vpop.f32.mrf.mxu1 }
 0x35b   : > { %v11492_v6 = vpop.f32.mrf.mxu1 }
 0x35d   : > { %v1909_v5 = vpop.f32.mrf.mxu1 }
 0x35f   : > { %v11493_v13 = vpop.f32.mrf.mxu1 }
 0x361   : > { %v14089_v33 = vpop.f32.mrf.mxu1 }
 0x364   : > { %v11496_v38 = vpop.f32.mrf.mxu1 }
 0x366   : > { %v1925_v15 = vpop.f32.mrf.mxu1 }
 0x368   : > { %v11497_v32 = vpop.f32.mrf.mxu1 }
 0x36a   : > { %v14091_v19 = vpop.f32.mrf.mxu1 }
 0x36c   : > { %v14093_v20 = vpop.f32.mrf.mxu1 }
 0x36e   : > { %v14095_v23 = vpop.f32.mrf.mxu1 }
 0x370   : > { %v14097_v25 = vpop.f32.mrf.mxu1 }
 0x372   : > { %v14099_v4 = vpop.f32.mrf.mxu1 }
 0x374   : > { %v14101_v30 = vpop.f32.mrf.mxu1 }
 0x376   : > { %v14103_v45 = vpop.f32.mrf.mxu1 }
 0x378   : > { %v14105_v34 = vpop.f32.mrf.mxu1 }
 0x37a   : > { %v14107_v44 = vpop.f32.mrf.mxu1 }
 0x37c   : > { %v11510_v7 = vpop.f32.mrf.mxu1 }
 0x37d   : > { %v14109_v50 = vadd.f32 %v11510_v7, %v11484_v59 }
 0x37e   : > { %v2033_v11 = vpop.f32.mrf.mxu1 }
 0x37f   : > { %v14113_v16 = vadd.f32 %v2033_v11, %v1877_v31 }
 0x380   : > { %v11511_v18 = vpop.f32.mrf.mxu1 }
 0x381   : > { %v14117_v24 = vadd.f32 %v11511_v18, %v11485_v55 }
 0x382   : > { %v14119_v35 = vpop.f32.mrf.mxu1 }
 0x384   : > { %v11514_v36 = vpop.f32.mrf.mxu1 }
 0x385   : > { %v14121_v37 = vadd.f32 %v11514_v36, %v11488_v0 }
 0x386   : > { %v2049_v41 = vpop.f32.mrf.mxu1 }
 0x387   : > { %v14123_v42 = vadd.f32 %v2049_v41, %v1893_v2 }
 0x388   : > { %v11515_v48 = vpop.f32.mrf.mxu1 }
 0x389   : > { %v14127_v12 = vadd.f32 %v11515_v48, %v11489_v9  ;;  %v14157_v9 = vpop.f32.mrf.mxu0 }
 0x38a   : > { %v14129_v60 = vpop.f32.mrf.mxu1 }
 0x38b   : > { %v14159_v29 = vpop.f32.mrf.mxu0 }
 0x38c   : > { %v11518_v40 = vpop.f32.mrf.mxu1  ;;  %15523 = vst [vmem:[#allocation41_spill] sm:$0xff] %v14159_v29 }
 0x38d   : > { %v14133_v17 = vadd.f32 %v11518_v40, %v11492_v6  ;;  %v14161_v7 = vpop.f32.mrf.mxu0 }
 0x38e   : > { %v2065_v3 = vpop.f32.mrf.mxu1  ;;  %15524 = vst [vmem:[#allocation42_spill] sm:$0xff] %v14161_v7 }
 0x38f   : > { %15517 = vst [vmem:[#allocation35_spill] sm:$0xff] %v14133_v17  ;;  %v14135_v54 = vadd.f32 %v2065_v3, %v1909_v5  ;;  %v14163_v11 = vpop.f32.mrf.mxu0 }
 0x390   : > { %v11519_v57 = vpop.f32.mrf.mxu1  ;;  %15525 = vst [vmem:[#allocation43_spill] sm:$0xff] %v14163_v11 }
 0x391   : > { %15518 = vst [vmem:[#allocation36_spill] sm:$0xff] %v14135_v54  ;;  %v14139_v8 = vadd.f32 %v11519_v57, %v11493_v13  ;;  %v14165_v36 = vpop.f32.mrf.mxu0 }
 0x392   : > { %v14141_v21 = vpop.f32.mrf.mxu1  ;;  %15526 = vst [vmem:[#allocation44_spill] sm:$0xff] %v14165_v36 }
 0x393   : > { %15519 = vst [vmem:[#allocation37_spill] sm:$0xff] %v14139_v8  ;;  %v14167_v48 = vpop.f32.mrf.mxu0 }
 0x394   : > { %v11522_v27 = vpop.f32.mrf.mxu1  ;;  %15527 = vst [vmem:[#allocation45_spill] sm:$0xff] %v14167_v48 }
 0x395   : > { %v14149_v59 = vadd.f32 %v11522_v27, %v11496_v38  ;;  %v14169_v57 = vpop.f32.mrf.mxu0 }
 0x396   : > { %v2081_v31 = vpop.f32.mrf.mxu1  ;;  %15528 = vst [vmem:[#allocation46_spill] sm:$0xff] %v14169_v57 }
 0x397   : > { %15520 = vst [vmem:[#allocation38_spill] sm:$0xff] %v14149_v59  ;;  %v14153_v55 = vadd.f32 %v2081_v31, %v1925_v15  ;;  %v14171_v31 = vpop.f32.mrf.mxu0 }
 0x398   : > { %v11523_v61 = vpop.f32.mrf.mxu1  ;;  %15529 = vst [vmem:[#allocation47_spill] sm:$0xff] %v14171_v31 }
 0x399   : > { %15521 = vst [vmem:[#allocation39_spill] sm:$0xff] %v14153_v55  ;;  %v14155_v0 = vadd.f32 %v11523_v61, %v11497_v32  ;;  %v14173_v55 = vpop.f32.mrf.mxu0 }
 0x39a   : > { %v2084_v2 = vpop.f32.mrf.mxu1  ;;  %15530 = vst [vmem:[#allocation48_spill] sm:$0xff] %v14173_v55  ;;  %v2010_v55 = vadd.f32 %v14093_v20, %v14053_v52  ;;  %v2021_v20 = vadd.f32 %v14107_v44, %v14079_v58  ;;  %v14230_v58 = vsel %vm3061_vm7, %v14143_v63, 0  ;;  %v14235_v44 = vld [vmem:[#allocation8] ss:$0 sm:$0xff] }
 0x39b   : > { %15522 = vst [vmem:[#allocation40_spill] sm:$0xff] %v14155_v0  ;;  %v14175_v54 = vpop.f32.mrf.mxu0 }
 0x39c   : > { %v11528_v6 = vpop.f32.mrf.mxu1  ;;  %15531 = vst [vmem:[#allocation49_spill] sm:$0xff] %v14175_v54  ;;  %v2002_v54 = vadd.f32 %v14095_v23, %v14061_v10  ;;  %v2018_v10 = vadd.f32 %v14103_v45, %v14075_v14  ;;  %v2053_v14 = vadd.f32 %v14129_v60, %v14085_v1 }
 0x39d   : > { %v14181_v48 = vpop.f32.mrf.mxu0 }
 0x39e   : > { %v2207_v5 = vpop.f32.mrf.mxu1  ;;  %15534 = vst [vmem:[#allocation52_spill] sm:$0xff] %v14181_v48 }
 0x39f   : > { %v14185_v57 = vpop.f32.mrf.mxu0 }
 0x3a0   : > { %v11529_v47 = vpop.f32.mrf.mxu1  ;;  %15536 = vst [vmem:[#allocation54_spill] sm:$0xff] %v14185_v57  ;;  %v2005_v57 = vadd.f32 %v14099_v4, %v14069_v26  ;;  %v2037_v26 = vadd.f32 %v14119_v35, %v14083_v62  ;;  %v14221_v4 = vsel %vm3061_vm7, %v14111_v51, 0  ;;  %v14233_v62 = vadd.f32 %v2084_v2, %v14091_v19 }
 0x3a1   : > { %v14191_v29 = vpop.f32.mrf.mxu0 }
 0x3a2   : > { %v2210_v13 = vpop.f32.mrf.mxu1  ;;  %15539 = vst [vmem:[#allocation57_spill] sm:$0xff] %v14191_v29 }
 0x3a3   : > { %v14207_v52 = vpop.f32.mrf.mxu0  ;;  %v2303_v23 = vadd.f32 %v2210_v13, %v2005_v57  ;;  %v15546_v57 = vld [vmem:[#allocation47_spill] sm:$0xff] }
 0x3a4   : > { %v11532_v38 = vpop.f32.mrf.mxu1 }
 0x3a5   : > { %v14239_v35 = vpop.f32.mrf.mxu0 }
 0x3a6   : > { %v2223_v18 = vpop.f32.mrf.mxu1 }
 0x3a7   : > { %v2306_v45 = vadd.f32 %v2223_v18, %v2018_v10 }
 0x3a8   : > { %v11533_v15 = vpop.f32.mrf.mxu1 }
 0x3aa   : > { %v2226_v32 = vpop.f32.mrf.mxu1 }
 0x3ab   : > { %v2307_v60 = vadd.f32 %v2226_v32, %v2021_v20  ;;  %v15549_v20 = vld [vmem:[#allocation48_spill] sm:$0xff] }
 0x3ac   : > { %v11536_v41 = vpop.f32.mrf.mxu1 }
 0x3ae   : > { %v2239_v40 = vpop.f32.mrf.mxu1 }
 0x3b0   : > { %v11537_v3 = vpop.f32.mrf.mxu1 }
 0x3b1   : > { %v2313_v19 = vadd.f32 %v11537_v3, %v14117_v24  ;;  %v2548_v24 = vadd.f32 %v14157_v9, %v2306_v45 }
 0x3b2   : > { %v2242_v27 = vpop.f32.mrf.mxu1 }
 0x3b4   : > { %v11540_v61 = vpop.f32.mrf.mxu1 }
 0x3b6   : > { %v2255_v0 = vpop.f32.mrf.mxu1 }
 0x3b8   : > { %v11541_v59 = vpop.f32.mrf.mxu1 }
 0x3ba   : > { %v2258_v8 = vpop.f32.mrf.mxu1 }
 0x3bc   : > { %v14177_v17 = vpop.f32.mrf.mxu1 }
 0x3bd   : > { %15532 = vst [vmem:[#allocation50_spill] sm:$0xff] %v14177_v17 }
 0x3be   : > { %v14179_v36 = vpop.f32.mrf.mxu1 }
 0x3bf   : > { %15533 = vst [vmem:[#allocation51_spill] sm:$0xff] %v14179_v36  ;;  %v2013_v36 = vadd.f32 %v14097_v25, %v14063_v28  ;;  %v2029_v28 = vadd.f32 %v14105_v34, %v14077_v22  ;;  %v2069_v22 = vadd.f32 %v14141_v21, %v14089_v33  ;;  %v2310_v21 = vadd.f32 %v2239_v40, %v14113_v16  ;;  %v15545_v40 = vld [vmem:[#allocation46_spill] sm:$0xff] }
 0x3c0   : > { %v14183_v11 = vpop.f32.mrf.mxu1  ;;  %v2315_v16 = vadd.f32 %v2258_v8, %v2053_v14  ;;  %v15551_v14 = vld [vmem:[#allocation52_spill] sm:$0xff] }
 0x3c1   : > { %15535 = vst [vmem:[#allocation53_spill] sm:$0xff] %v14183_v11  ;;  %v2304_v11 = vadd.f32 %v11528_v6, %v2010_v55  ;;  %v2305_v29 = vadd.f32 %v11529_v47, %v2013_v36  ;;  %v2309_v33 = vadd.f32 %v11533_v15, %v2029_v28  ;;  %v2545_v55 = vadd.f32 %v14147_v56, %v2303_v23  ;;  %v15550_v23 = vld [vmem:[#allocation49_spill] sm:$0xff] }
 0x3c2   : > { %v14187_v7 = vpop.f32.mrf.mxu1  ;;  %v2311_v6 = vadd.f32 %v2242_v27, %v2037_v26  ;;  %v2317_v47 = vadd.f32 %v11541_v59, %v14127_v12  ;;  %v15544_v12 = vld [vmem:[#allocation45_spill] sm:$0xff] }
 0x3c3   : > { %15537 = vst [vmem:[#allocation55_spill] sm:$0xff] %v14187_v7  ;;  %v2302_v7 = vadd.f32 %v2207_v5, %v2002_v54  ;;  %v2547_v1 = vadd.f32 %v14137_v43, %v2305_v29  ;;  %v14248_v5 = vld [vmem:[#allocation8 + $0x1] ss:$0 sm:$0xff]  ;;  %v14262_v8 = vadd.f32 %v15544_v12, %v2313_v19 }
 0x3c4   : > { %v14189_v31 = vpop.f32.mrf.mxu1  ;;  %v14266_v3 = vadd.f32 %v15545_v40, %v2311_v6 }
 0x3c5   : > { %15538 = vst [vmem:[#allocation56_spill] sm:$0xff] %v14189_v31  ;;  %v2026_v31 = vadd.f32 %v14101_v30, %v14071_v49  ;;  %v2546_v30 = vadd.f32 %v14125_v53, %v2304_v11  ;;  %v2544_v51 = vadd.f32 %v14131_v46, %v2302_v7  ;;  %v2312_v53 = vadd.f32 %v11536_v41, %v14109_v50  ;;  %v11574_v7 = vpop.f32.mrf.mxu0  ;;  %v15541_v11 = vld [vmem:[#allocation42_spill] sm:$0xff] }
 0x3c6   : > { %v14199_v48 = vpop.f32.mrf.mxu1  ;;  %v2316_v46 = vadd.f32 %v11540_v61, %v14121_v37  ;;  %v2314_v50 = vadd.f32 %v2255_v0, %v14123_v42  ;;  %v2549_v18 = vadd.f32 %v15541_v11, %v2307_v60  ;;  %v15542_v37 = vld [vmem:[#allocation43_spill] sm:$0xff]  ;;  %v15543_v42 = vld [vmem:[#allocation44_spill] sm:$0xff]  ;;  %v15548_v61 = vld [vmem:[#allocation50_spill] sm:$0xff] }
 0x3c7   : > { %v2308_v49 = vadd.f32 %v11532_v38, %v2026_v31  ;;  %v15540_v38 = vld [vmem:[#allocation41_spill] sm:$0xff]  ;;  %v2554_v15 = vadd.f32 %v15542_v37, %v2312_v53  ;;  %v14259_v0 = vadd.f32 %v15543_v42, %v2310_v21  ;;  %v15547_v31 = vld [vmem:[#allocation35_spill] sm:$0xff]  ;;  %v2529_v45 = vpop.f32.mrf.mxu0 }
 0x3c8   : > { %v14205_v17 = vpop.f32.mrf.mxu1  ;;  %v14269_v27 = vadd.f32 %v15546_v57, %v2316_v46  ;;  %v2320_v10 = vadd.f32 %v15548_v61, %v15547_v31  ;;  %v14274_v26 = vadd.f32 %v15549_v20, %v2314_v50  ;;  %v15555_v21 = vld [vmem:[#allocation53_spill] sm:$0xff] }
 0x3c9   : > { %v2550_v2 = vadd.f32 %v14151_v39, %v2308_v49  ;;  %v2551_v39 = vadd.f32 %v15540_v38, %v2309_v33  ;;  %v14277_v49 = vadd.f32 %v15550_v23, %v2317_v47  ;;  %v15559_v38 = vld [vmem:[#allocation39_spill] sm:$0xff] }
 0x3ca   : > { %v14217_v25 = vpop.f32.mrf.mxu1  ;;  %v2322_v11 = vadd.f32 %v14199_v48, %v15559_v38  ;;  %v15562_v48 = vld [vmem:[#allocation57_spill] sm:$0xff] }
 0x3cc   : > { %v11580_v34 = vpop.f32.mrf.mxu1 }
 0x3cd   : > { %v2767_v54 = vadd.f32 %v11580_v34, %v2546_v30  ;;  %v14280_v30 = vadd.f32 %v15551_v14, %v2315_v16  ;;  %v15552_v34 = vld [vmem:[#allocation36_spill] sm:$0xff] }
 0x3ce   : > { %v2670_v63 = vpop.f32.mrf.mxu1 }
 0x3cf   : > { %v2796_v43 = vmul.f32 %v14235_v44, %v2767_v54  ;;  %v2765_v29 = vadd.f32 %v2670_v63, %v2544_v51  ;;  %v15553_v51 = vld [vmem:[#allocation51_spill] sm:$0xff]  ;;  %v15554_v54 = vld [vmem:[#allocation37_spill] sm:$0xff] }
 0x3d0   : > { %v11581_v13 = vpop.f32.mrf.mxu1  ;;  %v2321_v19 = vadd.f32 %v15555_v21, %v15554_v54  ;;  %v15556_v63 = vld [vmem:[#allocation55_spill] sm:$0xff] }
 0x3d1   : > { %v2768_v56 = vadd.f32 %v11581_v13, %v2547_v1  ;;  %v2825_v36 = vadd.f32 %v14248_v5, %v2796_v43  ;;  %v2794_v32 = vmul.f32 %v14235_v44, %v2765_v29  ;;  %v2318_v1 = vadd.f32 %v15553_v51, %v15552_v34  ;;  %v15557_v13 = vld [vmem:[#allocation38_spill] sm:$0xff] }
 0x3d2   : > { %v2673_v41 = vpop.f32.mrf.mxu1  ;;  %v14311_v20 = vadd.f32 %v14207_v52, %v2321_v19 }
 0x3d3   : > { %v2797_v59 = vmul.f32 %v14235_v44, %v2768_v56  ;;  %v2766_v9 = vadd.f32 %v2673_v41, %v2545_v55  ;;  %v2319_v55 = vadd.f32 %v15556_v63, %v2069_v22  ;;  %v2849_v6 = vmax.f32 %v2825_v36, 0.0  ;;  %v15558_v56 = vld [vmem:[#allocation56_spill] sm:$0xff]  ;;  %v15560_v41 = vld [vmem:[#allocation54_spill] sm:$0xff]  ;;  %v11575_v36 = vpop.f32.mrf.mxu0 }
 0x3d4   : > { %v11584_v28 = vpop.f32.mrf.mxu1  ;;  %v2823_v46 = vadd.f32 %v14248_v5, %v2794_v32  ;;  %v14297_v22 = vadd.f32 %v15560_v41, %v2320_v10  ;;  %v15561_v32 = vld [vmem:[#allocation40_spill] sm:$0xff]  ;;  %v14307_v61 = vadd.f32 %v15562_v48, %v2318_v1 }
 0x3d5   : > { %v2826_v33 = vadd.f32 %v14248_v5, %v2797_v59  ;;  %v2795_v60 = vmul.f32 %v14235_v44, %v2766_v9  ;;  %v2771_v53 = vadd.f32 %v11584_v28, %v2550_v2  ;;  %v2324_v2 = vadd.f32 %v15558_v56, %v15557_v13  ;;  %v2532_v34 = vpop.f32.mrf.mxu0 }
 0x3d6   : > { %v2686_v43 = vpop.f32.mrf.mxu1  ;;  %v2325_v42 = vadd.f32 %v14205_v17, %v15561_v32  ;;  %v2847_v40 = vmax.f32 %v2823_v46, 0.0  ;;  %v14314_v17 = vadd.f32 %v14239_v35, %v2319_v55 }
 0x3d7   : > { %v2850_v29 = vmax.f32 %v2826_v33, 0.0  ;;  %v2824_v50 = vadd.f32 %v14248_v5, %v2795_v60  ;;  %v2800_v47 = vmul.f32 %v14235_v44, %v2771_v53  ;;  %v2769_v16 = vadd.f32 %v2686_v43, %v2548_v24 }
 0x3d8   : > { %v11585_v37 = vpop.f32.mrf.mxu1  ;;  %v2323_v24 = vadd.f32 %v14217_v25, %v14233_v62  ;;  %v14321_v33 = vadd.f32 %v2529_v45, %v2322_v11 }
 0x3d9   : > { %v14301_v12 = vpack.c.bf16 %v2850_v29, %v2849_v6  ;;  %v2848_v59 = vmax.f32 %v2824_v50, 0.0  ;;  %v2798_v9 = vmul.f32 %v14235_v44, %v2769_v16  ;;  %v2772_v57 = vadd.f32 %v11585_v37, %v2551_v39 }
 0x3da   : > { %v2689_v31 = vpop.f32.mrf.mxu1  ;;  %v2829_v10 = vadd.f32 %v14248_v5, %v2800_v47  ;;  %v14318_v39 = vadd.f32 %v11574_v7, %v2324_v2  ;;  %v14327_v54 = vadd.f32 %v2532_v34, %v2323_v24 }
 0x3db   : > { %v2770_v28 = vadd.f32 %v2689_v31, %v2549_v18  ;;  %v2827_v23 = vadd.f32 %v14248_v5, %v2798_v9  ;;  %v2801_v14 = vmul.f32 %v14235_v44, %v2772_v57  ;;  %v2871_v62 = vpack.c.bf16 %v2848_v59, %v2847_v40 }
 0x3dc   : > { %v11588_v25 = vpop.f32.mrf.mxu1  ;;  %v14323_v18 = vadd.f32 %v11575_v36, %v2325_v42  ;;  %v2897_v52 = vrot.slane %v14301_v12, 7  ;;  %v2853_v21 = vmax.f32 %v2829_v10, 0.0  ;;  %v15465_v59 = vmov 0  }
 0x3dd   : > { %v2799_v51 = vmul.f32 %v14235_v44, %v2770_v28  ;;  %v2775_v1 = vadd.f32 %v11588_v25, %v2554_v15  ;;  %v2830_v35 = vadd.f32 %v14248_v5, %v2801_v14  ;;  %v2896_v53 = vrot.slane %v2871_v62, 7 }
 0x3de   : > { %v2702_v60 = vpop.f32.mrf.mxu1  ;;  %v2851_v15 = vmax.f32 %v2827_v23, 0.0 }
 0x3df   : > { %v2828_v7 = vadd.f32 %v14248_v5, %v2799_v51  ;;  %v2804_v19 = vmul.f32 %v14235_v44, %v2775_v1  ;;  %v2773_v63 = vadd.f32 %v2702_v60, %v14259_v0  ;;  %v2854_v45 = vmax.f32 %v2830_v35, 0.0 }
 0x3e0   : > { %v11589_v55 = vpop.f32.mrf.mxu1  ;;  %v14333_v6 = vsel %vm2895_vm8, 0, %v2896_v53  ;;  %v14336_v46 = vsel %vm2895_vm8, %v2896_v53, %v2897_v52 }
 0x3e1   : > { %v2852_v43 = vmax.f32 %v2828_v7, 0.0  ;;  %v2833_v29 = vadd.f32 %v14248_v5, %v2804_v19  ;;  %v2802_v50 = vmul.f32 %v14235_v44, %v2773_v63  ;;  %v2776_v47 = vadd.f32 %v11589_v55, %v14262_v8  ;;  %11630 = vmatprep.mubr.msk.bf16.mxu1 %vm3024_vm9, %v14333_v6 }
 0x3e2   : > { %v14343_v0 = vpack.c.bf16 %v2854_v45, %v2853_v21  ;;  %11631 = vmatmul.mubr.msk.bf16.vlgmr.msra.gmra.mxu1 %vm3024_vm9, %v14336_v46  ;;  %v2705_v16 = vpop.f32.mrf.mxu1  ;;  %v2930_v13 = vshrl.u32 %v14333_v6, 16  ;;  %v2932_v56 = vshll.u32 %v14333_v6, 16  ;;  %v2937_v2 = vshll.u32 %v14336_v46, 16 }
 0x3e3   : > { %v2873_v38 = vpack.c.bf16 %v2852_v43, %v2851_v15  ;;  %v2857_v11 = vmax.f32 %v2833_v29, 0.0  ;;  %v2831_v37 = vadd.f32 %v14248_v5, %v2802_v50  ;;  %v2805_v8 = vmul.f32 %v14235_v44, %v2776_v47  ;;  %11681 = vmatpush3.bf16.msra.mxu1 %v14230_v58 }
 0x3e4   : > { %v2901_v41 = vrot.slane %v14343_v0, 7  ;;  %v2774_v36 = vadd.f32 %v2705_v16, %v14266_v3  ;;  %v11592_v32 = vpop.f32.mrf.mxu1  ;;  %v2934_v42 = vrot.slane %v2932_v56, 1  ;;  %v2939_v12 = vrot.slane %v2937_v2, 1  ;;  %4198 = vmatprep.subr.bf16.mxu1 %v15465_v59 }
 0x3e5   : > { %v2899_v9 = vrot.slane %v2873_v38, 7  ;;  %v2855_v24 = vmax.f32 %v2831_v37, 0.0  ;;  %v2834_v40 = vadd.f32 %v14248_v5, %v2805_v8  ;;  %v2779_v58 = vadd.f32 %v11592_v32, %v14269_v27  ;;  %v14400_v8 = vld [vmem:[#allocation10 + $0x10] sm:$0xf] }
 0x3e6   : > { %v2803_v57 = vmul.f32 %v14235_v44, %v2774_v36  ;;  %v2718_v31 = vpop.f32.mrf.mxu1  ;;  %v2935_v3 = vor.u32 %v2934_v42, %v2930_v13  ;;  %v2941_v48 = vshrl.u32 %v14336_v46, 16  ;;  %v14364_v10 = vrot.slane %v2930_v13, 1 }
 0x3e7   : > { %v2858_v28 = vmax.f32 %v2834_v40, 0.0  ;;  %v2808_v23 = vmul.f32 %v14235_v44, %v2779_v58  ;;  %v2777_v14 = vadd.f32 %v2718_v31, %v14274_v26  ;;  %v14369_v25 = vsel %vm2895_vm8, %v2897_v52, %v2899_v9 }
 0x3e8   : > { %v2832_v62 = vadd.f32 %v14248_v5, %v2803_v57  ;;  %v2940_v27 = vsel %vm1674_vm2, %v2935_v3, %v2939_v12  ;;  %v2943_v34 = vor.u32 %v2941_v48, %v2939_v12  ;;  %v11593_v51 = vpop.f32.mrf.mxu1  ;;  %v2945_v1 = vshll.u32 %v14369_v25, 16  ;;  %11634 = vmatprep.mubr.msk.bf16.mxu1 %vm3024_vm9, %v14369_v25 }
 0x3e9   : > { %v14378_v35 = vpack.c.bf16 %v2858_v28, %v2857_v11  ;;  %v2837_v26 = vadd.f32 %v14248_v5, %v2808_v23  ;;  %v2806_v52 = vmul.f32 %v14235_v44, %v2777_v14  ;;  %11604 = vmatprep.mubr.msk.bf16.mxu0 %vm3024_vm9, %v2940_v27  ;;  %v2780_v60 = vadd.f32 %v11593_v51, %v14277_v49 }
 0x3ea   : > { %v2856_v53 = vmax.f32 %v2832_v62, 0.0  ;;  %v2947_v21 = vrot.slane %v2945_v1, 1  ;;  %v3357_v7 = vrot.slane %v14369_v25, 1  ;;  %v3579_v19 = vrot.slane %v2945_v1, 2  ;;  %v2721_v63 = vpop.f32.mrf.mxu1 }
 0x3eb   : > { %v2905_v15 = vrot.slane %v14378_v35, 7  ;;  %v2861_v45 = vmax.f32 %v2837_v26, 0.0  ;;  %v2835_v55 = vadd.f32 %v14248_v5, %v2806_v52  ;;  %v2809_v43 = vmul.f32 %v14235_v44, %v2780_v60 }
 0x3ec   : > { %v2875_v29 = vpack.c.bf16 %v2856_v53, %v2855_v24  ;;  %v3816_v50 = vrot.slane %v14369_v25, 2  ;;  %v14392_v49 = vsel %vm2895_vm8, %v2899_v9, %v2901_v41  ;;  %v2778_v47 = vadd.f32 %v2721_v63, %v14280_v30  ;;  %v11596_v16 = vpop.f32.mrf.mxu1 }
 0x3ed   : > { %v2859_v13 = vmax.f32 %v2835_v55, 0.0  ;;  %v2838_v38 = vadd.f32 %v14248_v5, %v2809_v43  ;;  %11635 = vmatmul.mubr.msk.bf16.gmra.mxu1 %vm3024_vm9, %v14392_v49  ;;  %v2783_v11 = vadd.f32 %v11596_v16, %v14297_v22  ;;  %v2948_v37 = vsel %vm1674_vm2, %v2943_v34, %v2947_v21 }
 0x3ee   : > { %v2903_v36 = vrot.slane %v2875_v29, 7  ;;  %v2807_v32 = vmul.f32 %v14235_v44, %v2778_v47  ;;  %11605 = vmatmul.mubr.msk.bf16.vlgmr.msra.gmra.mxu0 %vm3024_vm9, %v2948_v37  ;;  %v2734_v42 = vpop.f32.mrf.mxu1  ;;  %v2949_v30 = vshrl.u32 %v14369_v25, 16  ;;  %v2953_v12 = vshll.u32 %v14392_v49, 16 }
 0x3ef   : > { %v2862_v9 = vmax.f32 %v2838_v38, 0.0  ;;  %v2812_v24 = vmul.f32 %v14235_v44, %v2783_v11  ;;  %v2781_v40 = vadd.f32 %v2734_v42, %v14307_v61  ;;  %v2957_v22 = vshrl.u32 %v14392_v49, 16  ;;  %11655 = vmatpush3.bf16.msra.mxu0 %v14221_v4 }
 0x3f0   : > { %v2836_v58 = vadd.f32 %v14248_v5, %v2807_v32  ;;  %v2951_v57 = vor.u32 %v2949_v30, %v2947_v21  ;;  %v2955_v31 = vrot.slane %v2953_v12, 1  ;;  %v3578_v3 = vrot.slane %v2949_v30, 1  ;;  %v11597_v28 = vpop.f32.mrf.mxu1  ;;  %12089 = vmatprep.subr.msk.bf16.mxu0 %vm3061_vm7, %v14400_v8 }
 0x3f1   : > { %v14415_v23 = vpack.c.bf16 %v2862_v9, %v2861_v45  ;;  %v2841_v14 = vadd.f32 %v14248_v5, %v2812_v24  ;;  %v2810_v61 = vmul.f32 %v14235_v44, %v2781_v40  ;;  %v2784_v62 = vadd.f32 %v11597_v28, %v14311_v20 }
 0x3f2   : > { %v2860_v4 = vmax.f32 %v2836_v58, 0.0  ;;  %v2956_v27 = vsel %vm1674_vm2, %v2951_v57, %v2955_v31  ;;  %v2959_v34 = vor.u32 %v2957_v22, %v2955_v31  ;;  %v14423_v51 = vor.u32 %v3579_v19, %v3578_v3  ;;  %v2737_v1 = vpop.f32.mrf.mxu1 }
 0x3f3   : > { %v2909_v26 = vrot.slane %v14415_v23, 7  ;;  %v2865_v52 = vmax.f32 %v2841_v14, 0.0  ;;  %v2839_v60 = vadd.f32 %v14248_v5, %v2810_v61  ;;  %11608 = vmatprep.mubr.msk.bf16.mxu0 %vm3024_vm9, %v2956_v27  ;;  %v2813_v53 = vmul.f32 %v14235_v44, %v2784_v62 }
 0x3f4   : > { %v2877_v21 = vpack.c.bf16 %v2860_v4, %v2859_v13  ;;  %v14432_v20 = vsel %vm2895_vm8, %v2901_v41, %v2903_v36  ;;  %v14437_v19 = vsel %vm2895_vm8, %v2903_v36, %v2905_v15  ;;  %v2782_v63 = vadd.f32 %v2737_v1, %v14314_v17  ;;  %v11600_v45 = vpop.f32.mrf.mxu1 }
 0x3f5   : > { %v2863_v55 = vmax.f32 %v2839_v60, 0.0  ;;  %v2842_v43 = vadd.f32 %v14248_v5, %v2813_v53  ;;  %v2961_v29 = vshll.u32 %v14432_v20, 16  ;;  %11638 = vmatprep.mubr.msk.bf16.mxu1 %vm3024_vm9, %v14432_v20  ;;  %v2787_v0 = vadd.f32 %v11600_v45, %v14318_v39 }
 0x3f6   : > { %v2907_v41 = vrot.slane %v2877_v21, 7  ;;  %11639 = vmatmul.mubr.msk.bf16.gmra.mxu1 %vm3024_vm9, %v14437_v19  ;;  %v2811_v47 = vmul.f32 %v14235_v44, %v2782_v63  ;;  %v2750_v16 = vpop.f32.mrf.mxu1  ;;  %v2965_v17 = vshrl.u32 %v14432_v20, 16  ;;  %v2969_v13 = vshll.u32 %v14437_v19, 16 }
 0x3f7   : > { %v2866_v38 = vmax.f32 %v2842_v43, 0.0  ;;  %v2816_v11 = vmul.f32 %v14235_v44, %v2787_v0  ;;  %v2963_v37 = vrot.slane %v2961_v29, 1  ;;  %v2785_v36 = vadd.f32 %v2750_v16, %v14321_v33 }
 0x3f8   : > { %v2840_v39 = vadd.f32 %v14248_v5, %v2811_v47  ;;  %v2971_v32 = vrot.slane %v2969_v13, 1  ;;  %v2973_v42 = vshrl.u32 %v14437_v19, 16  ;;  %v14458_v30 = vrot.slane %v2965_v17, 1  ;;  %v11601_v9 = vpop.f32.mrf.mxu1 }
 0x3f9   : > { %v14460_v24 = vpack.c.bf16 %v2866_v38, %v2865_v52  ;;  %v2845_v40 = vadd.f32 %v14248_v5, %v2816_v11  ;;  %v2964_v58 = vsel %vm1674_vm2, %v2959_v34, %v2963_v37  ;;  %v2814_v57 = vmul.f32 %v14235_v44, %v2785_v36 }
 0x3fa   : > { %v2864_v31 = vmax.f32 %v2840_v39, 0.0  ;;  %11609 = vmatmul.mubr.msk.bf16.gmra.mxu0 %vm3024_vm9, %v2964_v58  ;;  %v2967_v33 = vor.u32 %v2965_v17, %v2963_v37  ;;  %v2975_v3 = vor.u32 %v2973_v42, %v2971_v32  ;;  %v2788_v28 = vadd.f32 %v11601_v9, %v14323_v18  ;;  %v2753_v14 = vpop.f32.mrf.mxu1 }
 0x3fb   : > { %v2913_v61 = vrot.slane %v14460_v24, 7  ;;  %v2869_v62 = vmax.f32 %v2845_v40, 0.0  ;;  %v2843_v4 = vadd.f32 %v14248_v5, %v2814_v57  ;;  %v14474_v27 = vsel %vm2895_vm8, %v2905_v15, %v2907_v41 }
 0x3fc   : > { %v2879_v34 = vpack.c.bf16 %v2864_v31, %v2863_v55  ;;  %v2972_v1 = vsel %vm1674_vm2, %v2967_v33, %v2971_v32  ;;  %v2817_v52 = vmul.f32 %v14235_v44, %v2788_v28  ;;  %v2977_v60 = vshll.u32 %v14474_v27, 16  ;;  %11642 = vmatprep.mubr.msk.bf16.mxu1 %vm3024_vm9, %v14474_v27 }
 0x3fd   : > { %v2867_v18 = vmax.f32 %v2843_v4, 0.0  ;;  %11612 = vmatprep.mubr.msk.bf16.mxu0 %vm3024_vm9, %v2972_v1  ;;  %v14485_v35 = vsel %vm2895_vm8, %v2907_v41, %v2909_v26  ;;  %v2786_v15 = vadd.f32 %v2753_v14, %v14327_v54  ;;  %v2981_v53 = vshrl.u32 %v14474_v27, 16 }
 0x3fe   : > { %v2911_v21 = vrot.slane %v2879_v34, 7  ;;  %v2846_v63 = vadd.f32 %v14248_v5, %v2817_v52  ;;  %11643 = vmatmul.mubr.msk.bf16.gmra.mxu1 %vm3024_vm9, %v14485_v35  ;;  %v2979_v45 = vrot.slane %v2977_v60, 1  ;;  %v2985_v55 = vshll.u32 %v14485_v35, 16 }
 0x3ff   : > { %v2815_v43 = vmul.f32 %v14235_v44, %v2786_v15  ;;  %v2989_v0 = vshrl.u32 %v14485_v35, 16  ;;  %v14497_v41 = vrot.slane %v2981_v53, 1  ;;  %v3572_v54 = vrot.slane %v2932_v56, 2 }
 0x400   : > { %v2870_v47 = vmax.f32 %v2846_v63, 0.0  ;;  %v2980_v16 = vsel %vm1674_vm2, %v2975_v3, %v2979_v45  ;;  %v2983_v17 = vor.u32 %v2981_v53, %v2979_v45  ;;  %v2987_v38 = vrot.slane %v2985_v55, 1 }
 0x401   : > { %v2844_v11 = vadd.f32 %v14248_v5, %v2815_v43  ;;  %v14508_v44 = vsel %vm2895_vm8, %v2909_v26, %v2911_v21  ;;  %v14513_v37 = vsel %vm2895_vm8, %v2911_v21, %v2913_v61  ;;  %v3573_v56 = vor.u32 %v3572_v54, %v14364_v10 }
 0x402   : > { %v2882_v36 = vpack.c.bf16 %v2870_v47, %v2869_v62  ;;  %11613 = vmatmul.mubr.msk.bf16.gmra.mxu0 %vm3024_vm9, %v2980_v16  ;;  %v2988_v39 = vsel %vm1674_vm2, %v2983_v17, %v2987_v38  ;;  %v2991_v5 = vor.u32 %v2989_v0, %v2987_v38  ;;  %v2993_v23 = vshll.u32 %v14508_v44, 16  ;;  %11646 = vmatprep.mubr.msk.bf16.mxu1 %vm3024_vm9, %v14508_v44 }
 0x403   : > { %v2868_v26 = vmax.f32 %v2844_v11, 0.0  ;;  %11616 = vmatprep.mubr.msk.bf16.mxu0 %vm3024_vm9, %v2988_v39  ;;  %v2997_v32 = vshrl.u32 %v14508_v44, 16  ;;  %v3001_v10 = vshll.u32 %v14513_v37, 16  ;;  %v3005_v9 = vshrl.u32 %v14513_v37, 16 }
 0x404   : > { %v2917_v40 = vrot.slane %v2882_v36, 7  ;;  %v2995_v58 = vrot.slane %v2993_v23, 1  ;;  %v3574_v57 = vrot.slane %v2941_v48, 1  ;;  %v3575_v31 = vrot.slane %v2937_v2, 2 }
 0x405   : > { %v2881_v33 = vpack.c.bf16 %v2868_v26, %v2867_v18  ;;  %v3003_v3 = vrot.slane %v3001_v10, 1  ;;  %v14535_v28 = vrot.slane %v2997_v32, 1  ;;  %v3582_v14 = vrot.slane %v2957_v22, 1 }
 0x406   : > { %11647 = vmatmul.mubr.msk.bf16.gmra.mxu1 %vm3024_vm9, %v14513_v37  ;;  %v2996_v62 = vsel %vm1674_vm2, %v2991_v5, %v2995_v58  ;;  %v2999_v4 = vor.u32 %v2997_v32, %v2995_v58  ;;  %v3576_v34 = vor.u32 %v3575_v31, %v3574_v57  ;;  %v3583_v48 = vrot.slane %v2953_v12, 2 }
 0x407   : > { %v2915_v2 = vrot.slane %v2881_v33, 7  ;;  %v3007_v1 = vor.u32 %v3005_v9, %v3003_v3  ;;  %v3354_v52 = vrot.slane %v14333_v6, 1  ;;  %v3355_v18 = vrot.slane %v14336_v46, 1 }
 0x408   : > { %v3004_v22 = vsel %vm1674_vm2, %v2999_v4, %v3003_v3  ;;  %v3577_v15 = vsel %vm2328_vm4, %v3573_v56, %v3576_v34  ;;  %v3581_v53 = vsel %vm2328_vm4, %v3576_v34, %v14423_v51  ;;  %v3584_v21 = vor.u32 %v3583_v48, %v3582_v14 }
 0x409   : > { %v14555_v12 = vsel %vm2895_vm8, %v2913_v61, %v2915_v2  ;;  %v2918_v63 = vsel %vm2895_vm8, %v2915_v2, %v2917_v40  ;;  %v14559_v45 = vsel %vm2110_vm5, %v3354_v52, %v3355_v18  ;;  %v3587_v43 = vrot.slane %v2961_v29, 2 }
 0x40a   : > { %11617 = vmatmul.mubr.msk.bf16.gmra.mxu0 %vm3024_vm9, %v2996_v62  ;;  %v3009_v54 = vshll.u32 %v14555_v12, 16  ;;  %11650 = vmatprep.mubr.msk.bf16.mxu1 %vm3024_vm9, %v14555_v12  ;;  %v14567_v47 = vsel %vm2925_vm11, %v2918_v63, 0  ;;  %v3013_v24 = vshrl.u32 %v14555_v12, 16  ;;  %v3585_v61 = vsel %vm2328_vm4, %v14423_v51, %v3584_v21 }
 0x40b   : > { %11620 = vmatprep.mubr.msk.bf16.mxu0 %vm3024_vm9, %v3004_v22  ;;  %v3017_v16 = vshll.u32 %v14567_v47, 16  ;;  %v3021_v29 = vshrl.u32 %v14567_v47, 16  ;;  %v3588_v17 = vor.u32 %v3587_v43, %v14458_v30  ;;  %v3590_v38 = vrot.slane %v2973_v42, 1 }
 0x40c   : > { %v3011_v11 = vrot.slane %v3009_v54, 1  ;;  %v3610_v56 = vrot.slane %v3013_v24, 1  ;;  %v3591_v36 = vrot.slane %v2969_v13, 2  ;;  %v14583_v51 = vsel %vm2110_vm5, %v3355_v18, %v3357_v7 }
 0x40d   : > { %v3019_v39 = vrot.slane %v3017_v16, 1  ;;  %v14586_v5 = vsel %vm2328_vm4, %v3584_v21, %v3588_v17  ;;  %v3359_v26 = vrot.slane %v14392_v49, 1  ;;  %v3595_v30 = vrot.slane %v2977_v60, 2 }
 0x40e   : > { %11651 = vmatmul.mubr.msk.bf16.gmra.mxu1 %vm3024_vm9, %v14567_v47  ;;  %v3012_v42 = vsel %vm1674_vm2, %v3007_v1, %v3011_v11  ;;  %v3015_v13 = vor.u32 %v3013_v24, %v3011_v11  ;;  %v3592_v32 = vor.u32 %v3591_v36, %v3590_v38  ;;  %v3598_v40 = vrot.slane %v2989_v0, 1 }
 0x40f   : > { %11682 = vmatprep.mubr.msk.bf16.mxu1 %vm3024_vm9, %v3577_v15  ;;  %v3023_v58 = vor.u32 %v3021_v29, %v3019_v39  ;;  %v14600_v57 = vsel %vm2110_vm5, %v3357_v7, %v3359_v26  ;;  %v3596_v60 = vor.u32 %v3595_v30, %v14497_v41  ;;  %v3599_v31 = vrot.slane %v2985_v55, 2 }
 0x410   : > { %v3020_v33 = vsel %vm1674_vm2, %v3015_v13, %v3019_v39  ;;  %v14607_v3 = vsel %vm2328_vm4, %v3588_v17, %v3592_v32  ;;  %v3361_v0 = vrot.slane %v14432_v20, 1  ;;  %v3363_v14 = vrot.slane %v14437_v19, 1 }
 0x411   : > { %v14612_v62 = vsel %vm2328_vm4, %v3592_v32, %v3596_v60  ;;  %v3600_v4 = vor.u32 %v3599_v31, %v3598_v40  ;;  %v3603_v7 = vrot.slane %v2993_v23, 2  ;;  %v3606_v41 = vrot.slane %v3005_v9, 1 }
 0x412   : > { %11621 = vmatmul.mubr.msk.bf16.gmra.mxu0 %vm3024_vm9, %v3012_v42  ;;  %v3362_v55 = vsel %vm2110_vm5, %v3359_v26, %v3361_v0  ;;  %v3364_v34 = vsel %vm2110_vm5, %v3361_v0, %v3363_v14  ;;  %v3607_v48 = vrot.slane %v3001_v10, 2  ;;  %v3365_v2 = vrot.slane %v14474_v27, 1 }
 0x413   : > { %11624 = vmatprep.mubr.msk.bf16.mxu0 %vm3024_vm9, %v3020_v33  ;;  %v3601_v1 = vsel %vm2328_vm4, %v3596_v60, %v3600_v4  ;;  %v3604_v52 = vor.u32 %v3603_v7, %v14535_v28  ;;  %v3367_v23 = vrot.slane %v14485_v35, 1  ;;  %v3611_v9 = vrot.slane %v3009_v54, 2 }
 0x414   : > { %v3608_v18 = vor.u32 %v3607_v48, %v3606_v41  ;;  %v3366_v22 = vsel %vm2110_vm5, %v3363_v14, %v3365_v2  ;;  %v3614_v15 = vrot.slane %v3021_v29, 1  ;;  %v3615_v21 = vrot.slane %v3017_v16, 2 }
 0x415   : > { %v3605_v63 = vsel %vm2328_vm4, %v3600_v4, %v3604_v52  ;;  %v3368_v10 = vsel %vm2110_vm5, %v3365_v2, %v3367_v23  ;;  %v3612_v43 = vor.u32 %v3611_v9, %v3610_v56  ;;  %v3369_v24 = vrot.slane %v14508_v44, 1 }
 0x416   : > { %11683 = vmatmul.mubr.msk.bf16.vlgmr.msra.gmra.mxu1 %vm3024_vm9, %v3581_v53  ;;  %v3609_v17 = vsel %vm2328_vm4, %v3604_v52, %v3608_v18  ;;  %v3616_v28 = vor.u32 %v3615_v21, %v3614_v15  ;;  %v3371_v38 = vrot.slane %v14513_v37, 1  ;;  %v3373_v54 = vrot.slane %v14555_v12, 1 }
 0x417   : > { %11686 = vmatprep.mubr.msk.bf16.mxu1 %vm3024_vm9, %v3585_v61  ;;  %v3613_v16 = vsel %vm2328_vm4, %v3608_v18, %v3612_v43  ;;  %v3370_v29 = vsel %vm2110_vm5, %v3367_v23, %v3369_v24  ;;  %v3375_v11 = vrot.slane %v14567_v47, 1  ;;  %v3813_v56 = vrot.slane %v14333_v6, 2 }
 0x418   : > { %v3617_v36 = vsel %vm2328_vm4, %v3612_v43, %v3616_v28  ;;  %v3372_v53 = vsel %vm2110_vm5, %v3369_v24, %v3371_v38  ;;  %v3374_v39 = vsel %vm2110_vm5, %v3371_v38, %v3373_v54  ;;  %v3814_v26 = vrot.slane %v14336_v46, 2 }
 0x419   : > { %v3376_v30 = vsel %vm2110_vm5, %v3373_v54, %v3375_v11  ;;  %v3818_v61 = vrot.slane %v14392_v49, 2  ;;  %v3820_v42 = vrot.slane %v14432_v20, 2  ;;  %v3822_v13 = vrot.slane %v14437_v19, 2 }
 0x41a   : > { %11625 = vmatmul.mubr.msk.bf16.gmra.mxu0 %vm3024_vm9, %v3023_v58  ;;  %v3815_v6 = vsel %vm2571_vm6, %v3813_v56, %v3814_v26  ;;  %v3817_v32 = vsel %vm2571_vm6, %v3814_v26, %v3816_v50  ;;  %v3824_v40 = vrot.slane %v14474_v27, 2  ;;  %v3826_v46 = vrot.slane %v14485_v35, 2 }
 0x41b   : > { %11656 = vmatprep.mubr.msk.bf16.mxu0 %vm3024_vm9, %v14559_v45  ;;  %v3819_v49 = vsel %vm2571_vm6, %v3816_v50, %v3818_v61  ;;  %v3821_v20 = vsel %vm2571_vm6, %v3818_v61, %v3820_v42  ;;  %v3823_v19 = vsel %vm2571_vm6, %v3820_v42, %v3822_v13  ;;  %v3828_v58 = vrot.slane %v14508_v44, 2 }
 0x41c   : > { %v3825_v60 = vsel %vm2571_vm6, %v3822_v13, %v3824_v40  ;;  %v3827_v31 = vsel %vm2571_vm6, %v3824_v40, %v3826_v46  ;;  %v3830_v27 = vrot.slane %v14513_v37, 2  ;;  %v3832_v35 = vrot.slane %v14555_v12, 2 }
 0x41d   : > { %v3829_v45 = vsel %vm2571_vm6, %v3826_v46, %v3828_v58  ;;  %v3834_v25 = vrot.slane %v14567_v47, 2  ;;  %v3875_v37 = vsel %vm3061_vm7, %v14400_v8, 0  ;;  %v3836_v8 = vrot.slane %v15465_v59, 2 }
 0x41e   : > { %11687 = vmatmul.mubr.msk.bf16.gmra.mxu1 %vm3024_vm9, %v14586_v5  ;;  %v3831_v50 = vsel %vm2571_vm6, %v3828_v58, %v3830_v27  ;;  %v3833_v33 = vsel %vm2571_vm6, %v3830_v27, %v3832_v35 }
 0x41f   : > { %11690 = vmatprep.mubr.msk.bf16.mxu1 %vm3024_vm9, %v14607_v3  ;;  %v3835_v44 = vsel %vm2571_vm6, %v3832_v35, %v3834_v25  ;;  %v3837_v12 = vsel %vm2571_vm6, %v3834_v25, %v3836_v8 }
 0x422   : > { %11657 = vmatmul.mubr.msk.bf16.vlgmr.msra.gmra.mxu0 %vm3024_vm9, %v14583_v51 }
 0x423   : > { %11660 = vmatprep.mubr.msk.bf16.mxu0 %vm3024_vm9, %v14600_v57  ;;  %11707 = vmatpush3.bf16.msra.mxu0 %v3875_v37 }
 0x426   : > { %11691 = vmatmul.mubr.msk.bf16.gmra.mxu1 %vm3024_vm9, %v14612_v62 }
 0x427   : > { %11694 = vmatprep.mubr.msk.bf16.mxu1 %vm3024_vm9, %v3601_v1 }
 0x42a   : > { %11661 = vmatmul.mubr.msk.bf16.gmra.mxu0 %vm3024_vm9, %v3362_v55 }
 0x42b   : > { %11664 = vmatprep.mubr.msk.bf16.mxu0 %vm3024_vm9, %v3364_v34 }
 0x42e   : > { %11695 = vmatmul.mubr.msk.bf16.gmra.mxu1 %vm3024_vm9, %v3605_v63 }
 0x42f   : > { %11698 = vmatprep.mubr.msk.bf16.mxu1 %vm3024_vm9, %v3609_v17 }
 0x432   : > { %11665 = vmatmul.mubr.msk.bf16.gmra.mxu0 %vm3024_vm9, %v3366_v22 }
 0x433   : > { %11668 = vmatprep.mubr.msk.bf16.mxu0 %vm3024_vm9, %v3368_v10 }
 0x436   : > { %11699 = vmatmul.mubr.msk.bf16.gmra.mxu1 %vm3024_vm9, %v3613_v16 }
 0x437   : > { %11702 = vmatprep.mubr.msk.bf16.mxu1 %vm3024_vm9, %v3617_v36 }
 0x43a   : > { %11669 = vmatmul.mubr.msk.bf16.gmra.mxu0 %vm3024_vm9, %v3370_v29 }
 0x43b   : > { %11672 = vmatprep.mubr.msk.bf16.mxu0 %vm3024_vm9, %v3372_v53 }
 0x43e   : > { %11703 = vmatmul.mubr.msk.bf16.gmra.mxu1 %vm3024_vm9, %v3616_v28 }
 0x442   : > { %11673 = vmatmul.mubr.msk.bf16.gmra.mxu0 %vm3024_vm9, %v3374_v39 }
 0x443   : > { %11676 = vmatprep.mubr.msk.bf16.mxu0 %vm3024_vm9, %v3376_v30 }
 0x44a   : > { %11677 = vmatmul.mubr.msk.bf16.gmra.mxu0 %vm3024_vm9, %v3375_v11 }
 0x44b   : > { %11708 = vmatprep.mubr.msk.bf16.mxu0 %vm3024_vm9, %v3815_v6 }
 0x452   : > { %11709 = vmatmul.mubr.msk.bf16.vlgmr.msra.gmra.mxu0 %vm3024_vm9, %v3817_v32 }
 0x453   : > { %11712 = vmatprep.mubr.msk.bf16.mxu0 %vm3024_vm9, %v3819_v49 }
 0x45a   : > { %11713 = vmatmul.mubr.msk.bf16.gmra.mxu0 %vm3024_vm9, %v3821_v20 }
 0x45b   : > { %11716 = vmatprep.mubr.msk.bf16.mxu0 %vm3024_vm9, %v3823_v19 }
 0x462   : > { %11717 = vmatmul.mubr.msk.bf16.gmra.mxu0 %vm3024_vm9, %v3825_v60 }
 0x463   : > { %11720 = vmatprep.mubr.msk.bf16.mxu0 %vm3024_vm9, %v3827_v31 }
 0x46a   : > { %11721 = vmatmul.mubr.msk.bf16.gmra.mxu0 %vm3024_vm9, %v3829_v45 }
 0x46b   : > { %11724 = vmatprep.mubr.msk.bf16.mxu0 %vm3024_vm9, %v3831_v50 }
 0x472   : > { %11725 = vmatmul.mubr.msk.bf16.gmra.mxu0 %vm3024_vm9, %v3833_v33 }
 0x473   : > { %11728 = vmatprep.mubr.msk.bf16.mxu0 %vm3024_vm9, %v3835_v44 }
 0x47a   : > { %11729 = vmatmul.mubr.msk.bf16.gmra.mxu0 %vm3024_vm9, %v3837_v12 }
 0x4a2   : > { %v11632_v47 = vpop.f32.mrf.mxu1 }
 0x4a4   : > { %v3255_v51 = vpop.f32.mrf.mxu1 }
 0x4a6   : > { %v11633_v5 = vpop.f32.mrf.mxu1 }
 0x4a8   : > { %v14712_v57 = vpop.f32.mrf.mxu1 }
 0x4ad   : > { %v11636_v3 = vpop.f32.mrf.mxu1 }
 0x4ae   : > { %v11606_v0 = vpop.f32.mrf.mxu0 }
 0x4af   : > { %v3271_v14 = vpop.f32.mrf.mxu1  ;;  %v3264_v62 = vadd.f32 %v11632_v47, %v11606_v0 }
 0x4b0   : > { %v3099_v4 = vpop.f32.mrf.mxu0 }
 0x4b1   : > { %v11637_v7 = vpop.f32.mrf.mxu1  ;;  %v3256_v41 = vadd.f32 %v3255_v51, %v3099_v4 }
 0x4b2   : > { %v11607_v55 = vpop.f32.mrf.mxu0 }
 0x4b3   : > { %v14714_v34 = vpop.f32.mrf.mxu1  ;;  %v3267_v48 = vadd.f32 %v11633_v5, %v11607_v55 }
 0x4b4   : > { %v14716_v1 = vpop.f32.mrf.mxu0 }
 0x4b6   : > { %v11640_v2 = vpop.f32.mrf.mxu1 }
 0x4b8   : > { %v3287_v52 = vpop.f32.mrf.mxu1 }
 0x4ba   : > { %v11610_v23 = vpop.f32.mrf.mxu0  ;;  %v14718_v9 = vpop.f32.mrf.mxu1 }
 0x4bb   : > { %v3280_v18 = vadd.f32 %v11636_v3, %v11610_v23  ;;  %v12413_v3 = vld [vmem:[#allocation13 + $0x4] ss:$8 sps:$4 sm:$0xff]  }
 0x4bc   : > { %v3115_v22 = vpop.f32.mrf.mxu0  ;;  %v14720_v15 = vpop.f32.mrf.mxu1  ;;  %10426 = vmatprep.mubr.msk.bf16.mxu1 %vm4175_vm12, %v12413_v3 }
 0x4bd   : > { %v3272_v21 = vadd.f32 %v3271_v14, %v3115_v22 }
 0x4be   : > { %v11611_v63 = vpop.f32.mrf.mxu0  ;;  %v14722_v10 = vpop.f32.mrf.mxu1 }
 0x4bf   : > { %v3283_v43 = vadd.f32 %v11637_v7, %v11611_v63 }
 0x4c0   : > { %v14724_v24 = vpop.f32.mrf.mxu0  ;;  %v14726_v17 = vpop.f32.mrf.mxu1 }
 0x4c2   : > { %v11614_v28 = vpop.f32.mrf.mxu0  ;;  %v14728_v38 = vpop.f32.mrf.mxu1 }
 0x4c3   : > { %v3296_v54 = vadd.f32 %v11640_v2, %v11614_v28 }
 0x4c4   : > { %v3131_v16 = vpop.f32.mrf.mxu0  ;;  %v14730_v29 = vpop.f32.mrf.mxu1 }
 0x4c5   : > { %v3288_v11 = vadd.f32 %v3287_v52, %v3131_v16 }
 0x4c6   : > { %v14732_v56 = vpop.f32.mrf.mxu0  ;;  %v11648_v36 = vpop.f32.mrf.mxu1 }
 0x4c8   : > { %v14734_v53 = vpop.f32.mrf.mxu0  ;;  %v3319_v39 = vpop.f32.mrf.mxu1 }
 0x4ca   : > { %v14736_v26 = vpop.f32.mrf.mxu0  ;;  %v11649_v61 = vpop.f32.mrf.mxu1 }
 0x4cc   : > { %v14738_v30 = vpop.f32.mrf.mxu0  ;;  %v14744_v6 = vpop.f32.mrf.mxu1 }
 0x4cd   : > { %15563 = vst [vmem:[#allocation41_spill] sm:$0xff] %v14744_v6 }
 0x4ce   : > { %v14740_v42 = vpop.f32.mrf.mxu0  ;;  %v14746_v49 = vpop.f32.mrf.mxu1 }
 0x4d0   : > { %v14742_v13 = vpop.f32.mrf.mxu0  ;;  %v3335_v31 = vpop.f32.mrf.mxu1 }
 0x4d2   : > { %v11622_v32 = vpop.f32.mrf.mxu0  ;;  %v14752_v45 = vpop.f32.mrf.mxu1 }
 0x4d3   : > { %v3328_v40 = vadd.f32 %v11648_v36, %v11622_v32 }
 0x4d4   : > { %v3163_v46 = vpop.f32.mrf.mxu0  ;;  %v14758_v44 = vpop.f32.mrf.mxu1 }
 0x4d5   : > { %v3320_v20 = vadd.f32 %v3319_v39, %v3163_v46  ;;  %15566 = vst [vmem:[#allocation44_spill] sm:$0xff] %v14758_v44  ;;  %v14818_v44 = vld [vmem:[#allocation11 + $0x1] ss:$0 sm:$0xff] }
 0x4d6   : > { %v11623_v19 = vpop.f32.mrf.mxu0  ;;  %v11684_v47 = vpop.f32.mrf.mxu1 }
 0x4d7   : > { %v3331_v58 = vadd.f32 %v11649_v61, %v11623_v19 }
 0x4d8   : > { %v14748_v60 = vpop.f32.mrf.mxu0  ;;  %v14765_v4 = vpop.f32.mrf.mxu1 }
 0x4d9   : > { %15564 = vst [vmem:[#allocation42_spill] sm:$0xff] %v14748_v60  ;;  %15569 = vst [vmem:[#allocation47_spill] sm:$0xff] %v14765_v4 }
 0x4da   : > { %v14750_v27 = vpop.f32.mrf.mxu0  ;;  %v11685_v52 = vpop.f32.mrf.mxu1 }
 0x4dc   : > { %v3179_v35 = vpop.f32.mrf.mxu0  ;;  %v14771_v63 = vpop.f32.mrf.mxu1 }
 0x4dd   : > { %v3336_v25 = vadd.f32 %v3335_v31, %v3179_v35  ;;  %15570 = vst [vmem:[#allocation35_spill] sm:$0xff] %v14771_v63 }
 0x4de   : > { %v14754_v50 = vpop.f32.mrf.mxu0  ;;  %v11688_v36 = vpop.f32.mrf.mxu1 }
 0x4e0   : > { %v14756_v33 = vpop.f32.mrf.mxu0 }
 0x4e1   : > { %15565 = vst [vmem:[#allocation43_spill] sm:$0xff] %v14756_v33 }
 0x4e2   : > { %v11658_v37 = vpop.f32.mrf.mxu0 }
 0x4e3   : > { %v3547_v8 = vadd.f32 %v11658_v37, %v3264_v62 }
 0x4e4   : > { %v3450_v12 = vpop.f32.mrf.mxu0 }
 0x4e5   : > { %v14760_v51 = vadd.f32 %v3450_v12, %v3256_v41 }
 0x4e6   : > { %v11659_v5 = vpop.f32.mrf.mxu0 }
 0x4e7   : > { %15567 = vst [vmem:[#allocation45_spill] sm:$0xff] %v14760_v51  ;;  %v3548_v0 = vadd.f32 %v11659_v5, %v3267_v48 }
 0x4e8   : > { %v14762_v14 = vpop.f32.mrf.mxu0 }
 0x4e9   : > { %15568 = vst [vmem:[#allocation46_spill] sm:$0xff] %v14762_v14 }
 0x4ea   : > { %v11662_v7 = vpop.f32.mrf.mxu0 }
 0x4eb   : > { %v3551_v55 = vadd.f32 %v11662_v7, %v3280_v18  ;;  %v14779_v18 = vpop.f32.mrf.mxu1 }
 0x4ec   : > { %v3466_v2 = vpop.f32.mrf.mxu0 }
 0x4ed   : > { %v14767_v23 = vadd.f32 %v3466_v2, %v3272_v21 }
 0x4ee   : > { %v11663_v62 = vpop.f32.mrf.mxu0 }
 0x4ef   : > { %v3552_v22 = vadd.f32 %v11663_v62, %v3283_v43  ;;  %v11689_v43 = vpop.f32.mrf.mxu1 }
 0x4f0   : > { %v14769_v41 = vpop.f32.mrf.mxu0 }
 0x4f2   : > { %v11666_v28 = vpop.f32.mrf.mxu0 }
 0x4f3   : > { %v14773_v48 = vadd.f32 %v11666_v28, %v3296_v54  ;;  %v14789_v54 = vpop.f32.mrf.mxu1  ;;  %v12425_v28 = vld [vmem:[#allocation14 + $0x24] ss:$0 sps:$4 sm:$0x33]  }
 0x4f4   : > { %v3482_v16 = vpop.f32.mrf.mxu0  ;;  %12090 = vmatprep.subr.msk.bf16.mxu0 %vm1807_vm1, %v12425_v28  ;;  %v4346_v59 = vsel %vm1807_vm1, %v12425_v28, 0 }
 0x4f5   : > { %v14775_v39 = vadd.f32 %v3482_v16, %v3288_v11  ;;  %v11692_v12 = vpop.f32.mrf.mxu1  ;;  %11733 = vmatpush3.bf16.msra.mxu0 %v4346_v59  ;;  %v3789_v59 = vadd.f32 %v11685_v52, %v3548_v0 }
 0x4f6   : > { %v11667_v61 = vpop.f32.mrf.mxu0 }
 0x4f7   : > { %v14799_v62 = vpop.f32.mrf.mxu1 }
 0x4f8   : > { %v14777_v32 = vpop.f32.mrf.mxu0 }
 0x4fa   : > { %v14781_v21 = vpop.f32.mrf.mxu0 }
 0x4fc   : > { %v14783_v46 = vpop.f32.mrf.mxu0 }
 0x4fe   : > { %v14785_v19 = vpop.f32.mrf.mxu0 }
 0x500   : > { %v14787_v31 = vpop.f32.mrf.mxu0 }
 0x502   : > { %v11674_v35 = vpop.f32.mrf.mxu0 }
 0x503   : > { %v14791_v37 = vadd.f32 %v11674_v35, %v3328_v40  ;;  %v11693_v35 = vpop.f32.mrf.mxu1 }
 0x504   : > { %v3514_v11 = vpop.f32.mrf.mxu0 }
 0x505   : > { %v14793_v5 = vadd.f32 %v3514_v11, %v3320_v20  ;;  %v14811_v11 = vpop.f32.mrf.mxu1 }
 0x506   : > { %v11675_v3 = vpop.f32.mrf.mxu0 }
 0x507   : > { %15571 = vst [vmem:[#allocation50_spill] sm:$0xff] %v14793_v5  ;;  %v14795_v7 = vadd.f32 %v11675_v3, %v3331_v58  ;;  %v3788_v3 = vadd.f32 %v11684_v47, %v3547_v8  ;;  %v11696_v51 = vpop.f32.mrf.mxu1  ;;  %v3792_v47 = vadd.f32 %v11688_v36, %v3551_v55 }
 0x508   : > { %v14797_v2 = vpop.f32.mrf.mxu0 }
 0x509   : > { %15572 = vst [vmem:[#allocation48_spill] sm:$0xff] %v14797_v2  ;;  %v14813_v2 = vld [vmem:[#allocation11] ss:$0 sm:$0xff] }
 0x50a   : > { %v14801_v16 = vpop.f32.mrf.mxu0 }
 0x50c   : > { %v3530_v40 = vpop.f32.mrf.mxu0 }
 0x50d   : > { %v14805_v6 = vadd.f32 %v3530_v40, %v3336_v25 }
 0x50e   : > { %v14807_v20 = vpop.f32.mrf.mxu0 }
 0x50f   : > { %15573 = vst [vmem:[#allocation49_spill] sm:$0xff] %v14805_v6 }
 0x510   : > { %v14809_v58 = vpop.f32.mrf.mxu0 }
 0x511   : > { %15574 = vst [vmem:[#allocation52_spill] sm:$0xff] %v14809_v58  ;;  %v3739_v58 = vpop.f32.mrf.mxu1 }
 0x512   : > { %v11710_v5 = vpop.f32.mrf.mxu0 }
 0x513   : > { %v4008_v60 = vadd.f32 %v11710_v5, %v3788_v3 }
 0x514   : > { %v14815_v4 = vpop.f32.mrf.mxu0 }
 0x515   : > { %15575 = vst [vmem:[#allocation36_spill] sm:$0xff] %v14815_v4  ;;  %v4037_v28 = vmul.f32 %v14813_v2, %v4008_v60  ;;  %v11697_v60 = vpop.f32.mrf.mxu1 }
 0x516   : > { %v11711_v25 = vpop.f32.mrf.mxu0 }
 0x517   : > { %v4009_v40 = vadd.f32 %v11711_v25, %v3789_v59  ;;  %v4066_v33 = vadd.f32 %v14818_v44, %v4037_v28  ;;  %v3793_v59 = vadd.f32 %v11689_v43, %v3552_v22  ;;  %v3742_v36 = vpop.f32.mrf.mxu1  ;;  %v3312_v22 = vadd.f32 %v14722_v10, %v14736_v26 }
 0x518   : > { %v14820_v6 = vpop.f32.mrf.mxu0  ;;  %v3315_v10 = vadd.f32 %v14728_v38, %v14740_v42 }
 0x519   : > { %15576 = vst [vmem:[#allocation51_spill] sm:$0xff] %v14820_v6  ;;  %v4038_v8 = vmul.f32 %v14813_v2, %v4009_v40  ;;  %v4090_v0 = vmax.f32 %v4066_v33, 0.0  ;;  %v3299_v6 = vadd.f32 %v14718_v9, %v14732_v56 }
 0x51a   : > { %v11714_v63 = vpop.f32.mrf.mxu0 }
 0x51b   : > { %v4067_v5 = vadd.f32 %v14818_v44, %v4038_v8  ;;  %v4012_v3 = vadd.f32 %v11714_v63, %v3792_v47  ;;  %v3556_v8 = vadd.f32 %v11667_v61, %v3299_v6  ;;  %v3796_v63 = vadd.f32 %v11692_v12, %v14773_v48 }
 0x51c   : > { %v14825_v4 = vpop.f32.mrf.mxu0  ;;  %v3304_v48 = vadd.f32 %v14726_v17, %v14738_v30 }
 0x51d   : > { %v4091_v52 = vmax.f32 %v4067_v5, 0.0  ;;  %v4041_v14 = vmul.f32 %v14813_v2, %v4012_v3  ;;  %v11700_v3 = vpop.f32.mrf.mxu1  ;;  %v3797_v6 = vadd.f32 %v11693_v35, %v3556_v8  ;;  %v3560_v8 = vadd.f32 %v14785_v19, %v3315_v10 }
 0x51e   : > { %v11715_v25 = vpop.f32.mrf.mxu0  ;;  %v3557_v26 = vadd.f32 %v14783_v46, %v3304_v48 }
 0x51f   : > { %v14830_v28 = vpack.c.bf16 %v4091_v52, %v4090_v0  ;;  %v4013_v40 = vadd.f32 %v11715_v25, %v3793_v59  ;;  %v4070_v47 = vadd.f32 %v14818_v44, %v4041_v14  ;;  %v3559_v0 = vadd.f32 %v14781_v21, %v3312_v22 }
 0x520   : > { %v14832_v55 = vpop.f32.mrf.mxu0  ;;  %v3307_v21 = vadd.f32 %v14730_v29, %v14742_v13  ;;  %v3801_v19 = vadd.f32 %v11697_v60, %v3560_v8 }
 0x521   : > { %v4042_v33 = vmul.f32 %v14813_v2, %v4013_v40  ;;  %v4094_v14 = vmax.f32 %v4070_v47, 0.0  ;;  %v3800_v30 = vadd.f32 %v11696_v51, %v3559_v0 }
 0x522   : > { %v11718_v5 = vpop.f32.mrf.mxu0  ;;  %v3558_v38 = vadd.f32 %v14787_v31, %v3307_v21 }
 0x523   : > { %v4016_v43 = vadd.f32 %v11718_v5, %v3796_v63  ;;  %v4071_v9 = vadd.f32 %v14818_v44, %v4042_v33  ;;  %v14851_v63 = vpop.f32.mrf.mxu1  ;;  %v3291_v33 = vadd.f32 %v14720_v15, %v14734_v53  ;;  %v3798_v5 = vadd.f32 %v3739_v58, %v3557_v26 }
 0x524   : > { %v3943_v56 = vpop.f32.mrf.mxu0  ;;  %v3799_v31 = vadd.f32 %v3742_v36, %v3558_v38  ;;  %v3275_v15 = vadd.f32 %v14714_v34, %v14724_v24  ;;  %v3344_v36 = vadd.f32 %v14746_v49, %v14750_v27 }
 0x525   : > { %v4045_v52 = vmul.f32 %v14813_v2, %v4016_v43  ;;  %v4095_v61 = vmax.f32 %v4071_v9, 0.0  ;;  %v11701_v13 = vpop.f32.mrf.mxu1  ;;  %v3554_v9 = vadd.f32 %v14777_v32, %v3291_v33 }
 0x526   : > { %v11719_v12 = vpop.f32.mrf.mxu0  ;;  %v3550_v24 = vadd.f32 %v14769_v41, %v3275_v15  ;;  %v3805_v27 = vadd.f32 %v11701_v13, %v14795_v7 }
 0x527   : > { %v4017_v59 = vadd.f32 %v11719_v12, %v3797_v6  ;;  %v14847_v25 = vpack.c.bf16 %v4095_v61, %v4094_v14  ;;  %v4074_v35 = vadd.f32 %v14818_v44, %v4045_v52  ;;  %v14866_v53 = vpop.f32.mrf.mxu1  ;;  %v3804_v61 = vadd.f32 %v11700_v3, %v14791_v37 }
 0x528   : > { %v3946_v40 = vpop.f32.mrf.mxu0  ;;  %v3795_v32 = vadd.f32 %v14811_v11, %v3554_v9  ;;  %v3794_v37 = vadd.f32 %v14799_v62, %v14775_v39  ;;  %v3259_v9 = vadd.f32 %v14712_v57, %v14716_v1 }
 0x529   : > { %v4046_v17 = vmul.f32 %v14813_v2, %v4017_v59  ;;  %v4098_v22 = vmax.f32 %v4074_v35, 0.0  ;;  %v11704_v35 = vpop.f32.mrf.mxu1 }
 0x52a   : > { %v11722_v47 = vpop.f32.mrf.mxu0  ;;  %v4015_v3 = vadd.f32 %v3946_v40, %v3795_v32  ;;  %v4014_v8 = vadd.f32 %v3943_v56, %v3794_v37  ;;  %v3347_v40 = vadd.f32 %v14752_v45, %v14754_v50 }
 0x52b   : > { %v4075_v42 = vadd.f32 %v14818_v44, %v4046_v17  ;;  %v4020_v46 = vadd.f32 %v11722_v47, %v3800_v30  ;;  %v3567_v17 = vadd.f32 %v14801_v16, %v3344_v36  ;;  %v15579_v36 = vld [vmem:[#allocation35_spill] sm:$0xff] }
 0x52c   : > { %v3959_v29 = vpop.f32.mrf.mxu0  ;;  %v3568_v13 = vadd.f32 %v14807_v20, %v3347_v40  ;;  %v15586_v40 = vld [vmem:[#allocation36_spill] sm:$0xff] }
 0x52d   : > { %v4099_v43 = vmax.f32 %v4075_v42, 0.0  ;;  %v4049_v51 = vmul.f32 %v14813_v2, %v4020_v46  ;;  %v4018_v0 = vadd.f32 %v3959_v29, %v3798_v5  ;;  %v4044_v42 = vmul.f32 %v14813_v2, %v4015_v3  ;;  %v14892_v5 = vpop.f32.mrf.mxu1  ;;  %v15580_v3 = vld [vmem:[#allocation43_spill] sm:$0xff] }
 0x52e   : > { %v11723_v52 = vpop.f32.mrf.mxu0  ;;  %v3808_v29 = vadd.f32 %v11704_v35, %v3567_v17  ;;  %v15582_v17 = vld [vmem:[#allocation45_spill] sm:$0xff] }
 0x52f   : > { %v14862_v6 = vpack.c.bf16 %v4099_v43, %v4098_v22  ;;  %v4021_v48 = vadd.f32 %v11723_v52, %v3801_v19  ;;  %v4078_v12 = vadd.f32 %v14818_v44, %v4049_v51  ;;  %v4047_v60 = vmul.f32 %v14813_v2, %v4018_v0 }
 0x530   : > { %v3962_v14 = vpop.f32.mrf.mxu0  ;;  %v3791_v22 = vadd.f32 %v14789_v54, %v3550_v24  ;;  %v4043_v43 = vmul.f32 %v14813_v2, %v4014_v8  ;;  %v15577_v19 = vmov 0   ;;  %v3790_v52 = vadd.f32 %v14779_v18, %v14767_v23 }
 0x531   : > { %v4019_v58 = vadd.f32 %v3962_v14, %v3799_v31  ;;  %v4050_v59 = vmul.f32 %v14813_v2, %v4021_v48  ;;  %v4102_v47 = vmax.f32 %v4078_v12, 0.0  ;;  %v4076_v41 = vadd.f32 %v14818_v44, %v4047_v60  ;;  %v15578_v14 = vld [vmem:[#allocation46_spill] sm:$0xff] }
 0x532   : > { %v11726_v10 = vpop.f32.mrf.mxu0  ;;  %v4011_v20 = vadd.f32 %v14832_v55, %v3791_v22  ;;  %v4073_v54 = vadd.f32 %v14818_v44, %v4044_v42  ;;  %v3546_v15 = vadd.f32 %v15578_v14, %v3259_v9  ;;  %v4010_v57 = vadd.f32 %v14825_v4, %v3790_v52  ;;  %v15587_v9 = vld [vmem:[#allocation42_spill] sm:$0xff] }
 0x533   : > { %v4048_v26 = vmul.f32 %v14813_v2, %v4019_v58  ;;  %v4024_v34 = vadd.f32 %v11726_v10, %v3804_v61  ;;  %v4079_v11 = vadd.f32 %v14818_v44, %v4050_v59  ;;  %v4100_v45 = vmax.f32 %v4076_v41, 0.0  ;;  %v11705_v58 = vpop.f32.mrf.mxu1 }
 0x534   : > { %v14880_v21 = vpop.f32.mrf.mxu0  ;;  %v4072_v1 = vadd.f32 %v14818_v44, %v4043_v43  ;;  %v3809_v60 = vadd.f32 %v11705_v58, %v3568_v13  ;;  %v4040_v55 = vmul.f32 %v14813_v2, %v4011_v20  ;;  %v4097_v59 = vmax.f32 %v4073_v54, 0.0  ;;  %v15589_v20 = vld [vmem:[#allocation49_spill] sm:$0xff] }
 0x535   : > { %v4077_v30 = vadd.f32 %v14818_v44, %v4048_v26  ;;  %v4053_v49 = vmul.f32 %v14813_v2, %v4024_v34  ;;  %v4103_v38 = vmax.f32 %v4079_v11, 0.0  ;;  %v3787_v26 = vadd.f32 %v15579_v36, %v3546_v15  ;;  %v15581_v11 = vld [vmem:[#allocation44_spill] sm:$0xff]  ;;  %v3774_v13 = vpop.f32.mrf.mxu1 }
 0x536   : > { %v11727_v39 = vpop.f32.mrf.mxu0  ;;  %v4039_v34 = vmul.f32 %v14813_v2, %v4010_v57  ;;  %v4096_v4 = vmax.f32 %v4072_v1, 0.0  ;;  %v3339_v35 = vadd.f32 %v15581_v11, %v15580_v3  ;;  %v3806_v54 = vadd.f32 %v14892_v5, %v15589_v20  ;;  %v15590_v15 = vld [vmem:[#allocation48_spill] sm:$0xff] }
 0x537   : > { %v4025_v62 = vadd.f32 %v11727_v39, %v3805_v27  ;;  %v4119_v46 = vpack.c.bf16 %v4103_v38, %v4102_v47  ;;  %v4101_v16 = vmax.f32 %v4077_v30, 0.0  ;;  %v4082_v7 = vadd.f32 %v14818_v44, %v4053_v49  ;;  %v15583_v30 = vld [vmem:[#allocation47_spill] sm:$0xff]  ;;  %v15585_v39 = vld [vmem:[#allocation52_spill] sm:$0xff] }
 0x538   : > { %v14890_v33 = vpop.f32.mrf.mxu0  ;;  %v3786_v49 = vadd.f32 %v15583_v30, %v15582_v17  ;;  %v15584_v27 = vld [vmem:[#allocation51_spill] sm:$0xff]  ;;  %v4069_v47 = vadd.f32 %v14818_v44, %v4040_v55  ;;  %v4116_v38 = vpack.c.bf16 %v4097_v59, %v4096_v4  ;;  %v13384_v5 = vmov 65535  }
 0x539   : > { %v4054_v56 = vmul.f32 %v14813_v2, %v4025_v62  ;;  %4199 = vmatpush1.bf16.msra.mxu1 %v4119_v46  ;;  %v4118_v48 = vpack.c.bf16 %v4101_v16, %v4100_v45  ;;  %v4106_v61 = vmax.f32 %v4082_v7, 0.0  ;;  %v4007_v8 = vadd.f32 %v15584_v27, %v3787_v26  ;;  %v12414_v30 = vld [vmem:[#allocation13 + $0x14] ss:$8 sps:$4 sm:$0xff]   ;;  %v12417_v27 = vld [vmem:[#allocation13 + $0x24] ss:$8 sps:$4 sm:$0xff]  }
 0x53a   : > { %v11730_v50 = vpop.f32.mrf.mxu0  ;;  %4200 = vmatprep.subr.bf16.mxu1 %v15577_v19  ;;  %v3566_v62 = vadd.f32 %v15585_v39, %v3339_v35  ;;  %v4006_v42 = vadd.f32 %v15586_v40, %v3786_v49  ;;  %v12416_v49 = vld [vmem:[#allocation13 + $0x10] ss:$8 sps:$4 sm:$0xff]   ;;  %v12426_v39 = vld [vmem:[#allocation14 + $0x1c] sm:$0xff]  }
 0x53b   : > { %v4083_v51 = vadd.f32 %v14818_v44, %v4054_v56  ;;  %v4028_v0 = vadd.f32 %v11730_v50, %v3808_v29  ;;  %v4036_v7 = vmul.f32 %v14813_v2, %v4007_v8  ;;  %v4093_v56 = vmax.f32 %v4069_v47, 0.0  ;;  %v12420_v8 = vld [vmem:[#allocation13 + $0x34] ss:$8 sps:$4 sm:$0xff]   ;;  %v12422_v47 = vld [vmem:[#allocation13 + $0x30] ss:$8 sps:$4 sm:$0xff]   ;;  %11734 = vmatprep.subr.bf16.mxu0 %v12426_v39 }
 0x53c   : > { %v3991_v31 = vpop.f32.mrf.mxu0  ;;  %v4035_v43 = vmul.f32 %v14813_v2, %v4006_v42  ;;  %v3807_v50 = vadd.f32 %v3774_v13, %v3566_v62  ;;  %11735 = vmatpush3.bf16.msra.mxu0 %v12426_v39  ;;  %v12427_v62 = vld [vmem:[#allocation14 + $0x4c] ss:$0 sps:$4 sm:$0x33]   ;;  %v12428_v42 = vld [vmem:[#allocation14 + $0x14] sm:$0xff]  }
 0x53d   : > { %v4107_v32 = vmax.f32 %v4083_v51, 0.0  ;;  %v4057_v12 = vmul.f32 %v14813_v2, %v4028_v0  ;;  %4201 = vmatpush1.bf16.msra.mxu1 %v4118_v48  ;;  %v15588_v51 = vld [vmem:[#allocation41_spill] sm:$0xff]  ;;  %v4065_v52 = vadd.f32 %v14818_v44, %v4036_v7  ;;  %v4685_v40 = vsel %vm1807_vm1, %v12427_v62, 0  ;;  %11736 = vmatprep.subr.bf16.mxu0 %v12428_v42  ;;  %v12434_v39 = vld [vmem:[#allocation14 + $0x38] ss:$0 sps:$4 sm:$0x33]  }
 0x53e   : > { %v11731_v23 = vpop.f32.mrf.mxu0  ;;  %4202 = vmatprep.subr.bf16.mxu1 %v15577_v19  ;;  %v3323_v0 = vadd.f32 %v15588_v51, %v15587_v9 }
 0x53f   : > { %v14911_v18 = vpack.c.bf16 %v4107_v32, %v4106_v61  ;;  %v4029_v10 = vadd.f32 %v11731_v23, %v3809_v60  ;;  %v4086_v24 = vadd.f32 %v14818_v44, %v4057_v12  ;;  %v4064_v61 = vadd.f32 %v14818_v44, %v4035_v43 }
 0x540   : > { %v3994_v22 = vpop.f32.mrf.mxu0  ;;  %v3562_v58 = vadd.f32 %v15590_v15, %v3323_v0  ;;  %v4026_v32 = vadd.f32 %v3991_v31, %v3806_v54  ;;  %v4193_v23 = vsel %vm2571_vm6, 4294967295, %v13384_v5  ;;  %v15591_v31 = vld [vmem:[#allocation50_spill] sm:$0xff]  ;;  %11737 = vmatpush3.bf16.msra.mxu0 %v12428_v42 }
 0x541   : > { %v4058_v37 = vmul.f32 %v14813_v2, %v4029_v10  ;;  %4203 = vmatpush1.bf16.msra.mxu1 %v14862_v6  ;;  %v4068_v6 = vadd.f32 %v14818_v44, %v4039_v34  ;;  %v4110_v46 = vmax.f32 %v4086_v24, 0.0  ;;  %v4027_v48 = vadd.f32 %v3994_v22, %v3807_v50 }
 0x542   : > { %4204 = vmatprep.subr.bf16.mxu1 %v15577_v19  ;;  %v4088_v1 = vmax.f32 %v4064_v61, 0.0  ;;  %v3803_v12 = vadd.f32 %v14866_v53, %v3562_v58  ;;  %v4055_v60 = vmul.f32 %v14813_v2, %v4026_v32  ;;  %v3802_v55 = vadd.f32 %v14851_v63, %v15591_v31 }
 0x543   : > { %v4087_v41 = vadd.f32 %v14818_v44, %v4058_v37  ;;  %v4092_v45 = vmax.f32 %v4068_v6, 0.0  ;;  %v4056_v57 = vmul.f32 %v14813_v2, %v4027_v48  ;;  %v4194_v53 = vsel %vm2110_vm5, %v4193_v23, 0  ;;  %v12429_v6 = vld [vmem:[#allocation14 + $0x44] sm:$0xff]  }
 0x544   : > { %v4023_v59 = vadd.f32 %v14890_v33, %v3803_v12  ;;  %v4022_v26 = vadd.f32 %v14880_v21, %v3802_v55 }
 0x545   : > { %v4111_v16 = vmax.f32 %v4087_v41, 0.0  ;;  %4205 = vmatpush1.bf16.msra.mxu1 %v4116_v38  ;;  %v4114_v14 = vpack.c.bf16 %v4093_v56, %v4092_v45  ;;  %v4085_v10 = vadd.f32 %v14818_v44, %v4056_v57 }
 0x546   : > { %4206 = vmatprep.subr.bf16.mxu1 %v15577_v19  ;;  %v4052_v34 = vmul.f32 %v14813_v2, %v4023_v59  ;;  %v4051_v63 = vmul.f32 %v14813_v2, %v4022_v26  ;;  %v12411_v2 = vld [vmem:[#allocation13] ss:$8 sps:$4 sm:$0xff]  }
 0x547   : > { %v4123_v29 = vpack.c.bf16 %v4111_v16, %v4110_v46  ;;  %v4109_v4 = vmax.f32 %v4085_v10, 0.0  ;;  %v12430_v46 = vld [vmem:[#allocation14 + $0x3c] sm:$0xff]   ;;  %v12431_v16 = vld [vmem:[#allocation14 + $0x10] ss:$0 sps:$4 sm:$0x33]  }
 0x548   : > { %v4081_v33 = vadd.f32 %v14818_v44, %v4052_v34  ;;  %v4080_v21 = vadd.f32 %v14818_v44, %v4051_v63  ;;  %12091 = vmatprep.subr.msk.bf16.mxu0 %vm1807_vm1, %v12431_v16 }
 0x549   : > { %4207 = vmatpush1.bf16.msra.mxu1 %v14847_v25  ;;  %v4089_v25 = vmax.f32 %v4065_v52, 0.0  ;;  %v4196_v24 = vand.u32 %v4194_v53, %v4123_v29 }
 0x54a   : > { %4208 = vmatprep.subr.bf16.mxu1 %v15577_v19  ;;  %v4105_v11 = vmax.f32 %v4081_v33, 0.0  ;;  %v4104_v35 = vmax.f32 %v4080_v21, 0.0  ;;  %v12432_v33 = vld [vmem:[#allocation14 + $0x8] sm:$0xff]  }
 0x54b   : > { %v4112_v36 = vpack.c.bf16 %v4089_v25, %v4088_v1 }
 0x54c   : > { %v4120_v17 = vpack.c.bf16 %v4105_v11, %v4104_v35 }
 0x54d   : > { %4209 = vmatpush1.bf16.msra.mxu1 %v4114_v14 }
 0x54e   : > { %4210 = vmatprep.subr.bf16.mxu1 %v15577_v19 }
 0x551   : > { %4211 = vmatpush1.bf16.msra.mxu1 %v14830_v28  ;;  %v4084_v28 = vadd.f32 %v14818_v44, %v4055_v60  ;;  %v12419_v44 = vld [vmem:[#allocation13 + $0x20] ss:$8 sps:$4 sm:$0xff]  }
 0x552   : > { %4212 = vmatprep.subr.bf16.mxu1 %v15577_v19 }
 0x553   : > { %v4108_v37 = vmax.f32 %v4084_v28, 0.0 }
 0x555   : > { %4213 = vmatpush1.bf16.msra.mxu1 %v4112_v36  ;;  %v4122_v3 = vpack.c.bf16 %v4109_v4, %v4108_v37  ;;  %v4437_v37 = vsel %vm1807_vm1, %v12431_v16, 0 }
 0x556   : > { %4222 = vmatprep.subr.bf16.mxu1 %v15577_v19 }
 0x559   : > { %4223 = vmatpush2.bf16.msra.mxu1 %v4196_v24 }
 0x55a   : > { %4224 = vmatprep.subr.bf16.mxu1 %v15577_v19 }
 0x55d   : > { %4225 = vmatpush2.bf16.msra.mxu1 %v4122_v3 }
 0x55e   : > { %4226 = vmatprep.subr.bf16.mxu1 %v15577_v19 }
 0x561   : > { %4227 = vmatpush2.bf16.msra.mxu1 %v14911_v18  ;;  %v4132_v18 = vld [vmem:[#allocation13 + $0x40] sm:$0x33] }
 0x562   : > { %4228 = vmatprep.subr.bf16.mxu1 %v15577_v19  ;;  %v10425_v41 = vcombine.high %v4132_v18, %v4132_v18  ;;  %v10424_v38 = vcombine.low %v4132_v18, %v4132_v18 }
 0x565   : > { %4229 = vmatpush2.bf16.msra.mxu1 %v4120_v17 }
 0x566   : > { %12093 = vmatprep.subr.msk.bf16.mxu1 %vm1807_vm1, %v12427_v62 }
 0x568   : > { %4231 = vmatmul.mubr.bf16.vlgmr.msra.gmra.mxu1 %v12411_v2 }
 0x569   : > { %10427 = vmatprep.mubr.msk.bf16.mxu1 %vm4175_vm12, %v12414_v30  ;;  %11775 = vmatpush3.bf16.msra.mxu1 %v4685_v40  ;;  %v12433_v30 = vld [vmem:[#allocation14] sm:$0xff]  }
 0x56a   : > { %11776 = vmatprep.subr.bf16.mxu1 %v12429_v6 }
 0x56d   : > { %11777 = vmatpush3.bf16.msra.mxu1 %v12429_v6 }
 0x56e   : > { %11778 = vmatprep.subr.bf16.mxu1 %v12430_v46 }
 0x570   : > { %4239 = vmatmul.mubr.bf16.gmra.mxu1 %v12416_v49 }
 0x571   : > { %10428 = vmatprep.mubr.msk.bf16.mxu1 %vm4175_vm12, %v12417_v27  ;;  %11779 = vmatpush3.bf16.msra.mxu1 %v12430_v46 }
 0x578   : > { %4247 = vmatmul.mubr.bf16.gmra.mxu1 %v12419_v44 }
 0x579   : > { %10429 = vmatprep.mubr.msk.bf16.mxu1 %vm4175_vm12, %v12420_v8 }
 0x580   : > { %4255 = vmatmul.mubr.bf16.gmra.mxu1 %v12422_v47 }
 0x581   : > { %10430 = vmatprep.mubr.msk.bf16.mxu1 %vm4175_vm12, %v10425_v41 }
 0x588   : > { %4263 = vmatmul.mubr.bf16.gmra.mxu1 %v10424_v38 }
 0x628   : > { %v4232_v7 = vpop.f32.mrf.mxu1 }
 0x62a   : > { %v4234_v56 = vpop.f32.mrf.mxu1 }
 0x62c   : > { %v4235_v29 = vpop.f32.mrf.mxu1 }
 0x62d   : > { %v14974_v13 = vpack.c.bf16 %v4235_v29, %v4232_v7 }
 0x62e   : > { %v4237_v22 = vpop.f32.mrf.mxu1 }
 0x62f   : > { %v4289_v45 = vshll.u32 %v14974_v13, 16  ;;  %v4287_v9 = vshrl.u32 %v14974_v13, 16 }
 0x630   : > { %v4240_v43 = vpop.f32.mrf.mxu1 }
 0x631   : > { %v4291_v52 = vrot.slane %v4289_v45, 1  ;;  %v4633_v14 = vrot.slane %v4287_v9, 1  ;;  %v4634_v15 = vrot.slane %v4289_v45, 2 }
 0x632   : > { %v4242_v50 = vpop.f32.mrf.mxu1 }
 0x633   : > { %v4292_v61 = vor.u32 %v4291_v52, %v4287_v9  ;;  %v4635_v60 = vor.u32 %v4634_v15, %v4633_v14  ;;  %v4552_v9 = vsel %vm1807_vm1, %v12434_v39, 0  ;;  %v12436_v52 = vld [vmem:[#allocation14 + $0x28] sm:$0xff]  }
 0x634   : > { %v4243_v51 = vpop.f32.mrf.mxu1 }
 0x635   : > { %v14978_v0 = vpack.c.bf16 %v4243_v51, %v4240_v43  ;;  %v12435_v51 = vld [vmem:[#allocation14 + $0x30] sm:$0xff]  }
 0x636   : > { %v4245_v20 = vpop.f32.mrf.mxu1 }
 0x637   : > { %v4294_v54 = vshll.u32 %v14978_v0, 16  ;;  %v4298_v48 = vshrl.u32 %v14978_v0, 16  ;;  %v4516_v20 = vrot.slane %v14978_v0, 1 }
 0x638   : > { %v4248_v58 = vpop.f32.mrf.mxu1 }
 0x639   : > { %v4296_v32 = vrot.slane %v4294_v54, 1  ;;  %v4636_v25 = vrot.slane %v4298_v48, 1  ;;  %v4637_v57 = vrot.slane %v4294_v54, 2  ;;  %v4515_v54 = vrot.slane %v14974_v13, 1 }
 0x63a   : > { %v4250_v1 = vpop.f32.mrf.mxu1 }
 0x63b   : > { %v4297_v12 = vsel %vm1674_vm2, %v4292_v61, %v4296_v32  ;;  %v4638_v23 = vor.u32 %v4637_v57, %v4636_v25  ;;  %v4300_v24 = vor.u32 %v4298_v48, %v4296_v32  ;;  %v12437_v48 = vld [vmem:[#allocation14 + $0x60] ss:$0 sps:$4 sm:$0x33]   ;;  %v4517_v14 = vsel %vm2110_vm5, %v4515_v54, %v4516_v20  ;;  %v12438_v32 = vld [vmem:[#allocation14 + $0x58] sm:$0xff]   ;;  %v12439_v1 = vld [vmem:[#allocation14 + $0x50] sm:$0xff]  }
 0x63c   : > { %v4251_v31 = vpop.f32.mrf.mxu1  ;;  %11738 = vmatprep.mubr.msk.bf16.mxu0 %vm4332_vm13, %v4297_v12  ;;  %v4803_v61 = vsel %vm1807_vm1, %v12437_v48, 0 }
 0x63d   : > { %v14984_v55 = vpack.c.bf16 %v4251_v31, %v4248_v58  ;;  %v4639_v59 = vsel %vm2328_vm4, %v4635_v60, %v4638_v23  ;;  %v4767_v60 = vrot.slane %v14978_v0, 2 }
 0x63e   : > { %v4253_v10 = vpop.f32.mrf.mxu1  ;;  %11780 = vmatprep.mubr.msk.bf16.mxu1 %vm4332_vm13, %v4639_v59 }
 0x63f   : > { %v4302_v36 = vshll.u32 %v14984_v55, 16  ;;  %v4306_v53 = vshrl.u32 %v14984_v55, 16  ;;  %v4518_v15 = vrot.slane %v14984_v55, 1  ;;  %v4769_v10 = vrot.slane %v14984_v55, 2 }
 0x640   : > { %v4256_v26 = vpop.f32.mrf.mxu1 }
 0x641   : > { %v4304_v28 = vrot.slane %v4302_v36, 1  ;;  %v4640_v34 = vrot.slane %v4306_v53, 1  ;;  %v4641_v4 = vrot.slane %v4302_v36, 2  ;;  %v4519_v25 = vsel %vm2110_vm5, %v4516_v20, %v4518_v15 }
 0x642   : > { %v4258_v63 = vpop.f32.mrf.mxu1 }
 0x643   : > { %v4305_v3 = vsel %vm1674_vm2, %v4300_v24, %v4304_v28  ;;  %v4642_v21 = vor.u32 %v4641_v4, %v4640_v34  ;;  %v4308_v38 = vor.u32 %v4306_v53, %v4304_v28  ;;  %v4770_v53 = vsel %vm2571_vm6, %v4767_v60, %v4769_v10  ;;  %v12442_v28 = vld [vmem:[#allocation17 + $0x13c] ss:$12 sps:$4 sm:$0x3f]   ;;  %v12444_v34 = vld [vmem:[#allocation17 + $0x138] ss:$12 sps:$4 sm:$0x3f]  }
 0x644   : > { %v4259_v11 = vpop.f32.mrf.mxu1  ;;  %11739 = vmatmul.mubr.msk.bf16.vlgmr.msra.gmra.mxu0 %vm4332_vm13, %v4305_v3  ;;  %v5183_v4 = vsel %vm2571_vm6, %v12444_v34, 0  ;;  %v12448_v24 = vld [vmem:[#allocation17 + $0x124] ss:$12 sps:$4 sm:$0xff]   ;;  %v12446_v63 = vld [vmem:[#allocation17 + $0x120] ss:$12 sps:$4 sm:$0xff]  }
 0x645   : > { %v14993_v35 = vpack.c.bf16 %v4259_v11, %v4256_v26  ;;  %v4643_v17 = vsel %vm2328_vm4, %v4638_v23, %v4642_v21  ;;  %11747 = vmatpush3.bf16.msra.mxu0 %v4437_v37  ;;  %v4766_v23 = vrot.slane %v14974_v13, 2  ;;  %v12452_v37 = vld [vmem:[#allocation17 + $0x10c] ss:$12 sps:$4 sm:$0xff]   ;;  %v12456_v3 = vld [vmem:[#allocation17 + $0xf4] ss:$12 sps:$4 sm:$0xff]  }
 0x646   : > { %v4261_v2 = vpop.f32.mrf.mxu1  ;;  %11781 = vmatmul.mubr.msk.bf16.vlgmr.msra.gmra.mxu1 %vm4332_vm13, %v4643_v17  ;;  %11748 = vmatprep.subr.bf16.mxu0 %v12432_v33  ;;  %v10466_v34 = vld [vmem:[#allocation16] ss:$0 sm:$0xff] }
 0x647   : > { %v4310_v49 = vshll.u32 %v14993_v35, 16  ;;  %v4314_v27 = vshrl.u32 %v14993_v35, 16  ;;  %v4520_v58 = vrot.slane %v14993_v35, 1  ;;  %v4768_v59 = vsel %vm2571_vm6, %v4766_v23, %v4767_v60 }
 0x648   : > { %v4264_v44 = vpop.f32.mrf.mxu1  ;;  %v4771_v36 = vrot.slane %v14993_v35, 2 }
 0x649   : > { %v14999_v8 = vpack.c.bf16 %v4264_v44, %v4264_v44  ;;  %v4312_v18 = vrot.slane %v4310_v49, 1  ;;  %11749 = vmatpush3.bf16.msra.mxu0 %v12432_v33  ;;  %v4644_v47 = vrot.slane %v4314_v27, 1  ;;  %v4645_v41 = vrot.slane %v4310_v49, 2  ;;  %v12450_v33 = vld [vmem:[#allocation17 + $0x108] ss:$12 sps:$4 sm:$0xff]  }
 0x64a   : > { %11750 = vmatprep.subr.bf16.mxu0 %v12433_v30  ;;  %v4266_v62 = vpop.f32.mrf.mxu1  ;;  %v4521_v57 = vsel %vm2110_vm5, %v4518_v15, %v4520_v58 }
 0x64b   : > { %v4649_v40 = vshrl.u32 %v14999_v8, 16  ;;  %v4652_v42 = vshll.u32 %v14999_v8, 16  ;;  %v4313_v6 = vsel %vm1674_vm2, %v4308_v38, %v4312_v18  ;;  %v4316_v46 = vor.u32 %v4314_v27, %v4312_v18 }
 0x64c   : > { %v4646_v16 = vor.u32 %v4645_v41, %v4644_v47  ;;  %v4267_v7 = vpop.f32.mrf.mxu1  ;;  %11742 = vmatprep.mubr.msk.bf16.mxu0 %vm4332_vm13, %v4313_v6  ;;  %v4522_v12 = vrot.slane %v14999_v8, 1 }
 0x64d   : > { %v4651_v56 = vrot.slane %v4649_v40, 1  ;;  %v4654_v29 = vrot.slane %v4652_v42, 2  ;;  %11751 = vmatpush3.bf16.msra.mxu0 %v12433_v30 }
 0x64e   : > { %11743 = vmatmul.mubr.msk.bf16.gmra.mxu0 %vm4332_vm13, %v4316_v46  ;;  %v4647_v22 = vsel %vm2328_vm4, %v4642_v21, %v4646_v16  ;;  %12092 = vmatprep.subr.msk.bf16.mxu0 %vm1807_vm1, %v12434_v39  ;;  %v4268_v43 = vpop.f32.mrf.mxu1  ;;  %v4523_v31 = vsel %vm2110_vm5, %v4520_v58, %v4522_v12  ;;  %v12454_v21 = vld [vmem:[#allocation17 + $0xf0] ss:$12 sps:$4 sm:$0xff]  }
 0x64f   : > { %11752 = vmatprep.mubr.msk.bf16.mxu0 %vm4332_vm13, %v14974_v13  ;;  %11784 = vmatprep.mubr.msk.bf16.mxu1 %vm4332_vm13, %v4647_v22  ;;  %v4655_v45 = vor.u32 %v4654_v29, %v4651_v56  ;;  %v4772_v13 = vsel %vm2571_vm6, %v4769_v10, %v4771_v36 }
 0x651   : > { %v4656_v50 = vsel %vm2328_vm4, %v4646_v16, %v4655_v45 }
 0x652   : > { %11785 = vmatmul.mubr.msk.bf16.gmra.mxu1 %vm4332_vm13, %v4656_v50 }
 0x656   : > { %11753 = vmatmul.mubr.msk.bf16.vlgmr.msra.gmra.mxu0 %vm4332_vm13, %v14978_v0  ;;  %v4773_v0 = vrot.slane %v14999_v8, 2 }
 0x657   : > { %11756 = vmatprep.mubr.msk.bf16.mxu0 %vm4332_vm13, %v14984_v55  ;;  %11761 = vmatpush3.bf16.msra.mxu0 %v4552_v9  ;;  %v12440_v55 = vld [vmem:[%s15592_s17] sm:$0xff]  }
 0x658   : > { %11762 = vmatprep.subr.bf16.mxu0 %v12435_v51  ;;  %v4774_v26 = vsel %vm2571_vm6, %v4771_v36, %v4773_v0  ;;  %11810 = vmatprep.mubr.msk.bf16.mxu1 %vm4930_vm14, %v12440_v55 }
 0x65b   : > { %11763 = vmatpush3.bf16.msra.mxu0 %v12435_v51 }
 0x65c   : > { %11764 = vmatprep.subr.bf16.mxu0 %v12436_v52 }
 0x65e   : > { %11757 = vmatmul.mubr.msk.bf16.gmra.mxu0 %vm4332_vm13, %v14993_v35 }
 0x65f   : > { %11766 = vmatprep.mubr.msk.bf16.mxu0 %vm4332_vm13, %v4517_v14  ;;  %11765 = vmatpush3.bf16.msra.mxu0 %v12436_v52 }
 0x660   : > { %12094 = vmatprep.subr.msk.bf16.mxu0 %vm1807_vm1, %v12437_v48 }
 0x666   : > { %11767 = vmatmul.mubr.msk.bf16.vlgmr.msra.gmra.mxu0 %vm4332_vm13, %v4519_v25 }
 0x667   : > { %11770 = vmatprep.mubr.msk.bf16.mxu0 %vm4332_vm13, %v4521_v57  ;;  %11789 = vmatpush3.bf16.msra.mxu0 %v4803_v61 }
 0x668   : > { %11790 = vmatprep.subr.bf16.mxu0 %v12438_v32 }
 0x66b   : > { %11791 = vmatpush3.bf16.msra.mxu0 %v12438_v32 }
 0x66c   : > { %11792 = vmatprep.subr.bf16.mxu0 %v12439_v1 }
 0x66e   : > { %11771 = vmatmul.mubr.msk.bf16.gmra.mxu0 %vm4332_vm13, %v4523_v31 }
 0x66f   : > { %11794 = vmatprep.mubr.msk.bf16.mxu0 %vm4332_vm13, %v4768_v59  ;;  %11793 = vmatpush3.bf16.msra.mxu0 %v12439_v1 }
 0x670   : > { %10493 = vmatprep.subr.msk.bf16.mxu0 %vm2571_vm6, %v12442_v28 }
 0x676   : > { %11795 = vmatmul.mubr.msk.bf16.vlgmr.msra.gmra.mxu0 %vm4332_vm13, %v4770_v53 }
 0x677   : > { %11798 = vmatprep.mubr.msk.bf16.mxu0 %vm4332_vm13, %v4772_v13  ;;  %5194 = vmatpush1.bf16.msra.mxu0 %v5183_v4 }
 0x678   : > { %5195 = vmatprep.subr.bf16.mxu0 %v12448_v24 }
 0x67b   : > { %5196 = vmatpush1.bf16.msra.mxu0 %v12446_v63 }
 0x67c   : > { %5197 = vmatprep.subr.bf16.mxu0 %v12452_v37 }
 0x67e   : > { %11799 = vmatmul.mubr.msk.bf16.gmra.mxu0 %vm4332_vm13, %v4774_v26 }
 0x67f   : > { %5223 = vmatprep.mubr.bf16.mxu0 %v15577_v19  ;;  %5198 = vmatpush1.bf16.msra.mxu0 %v12450_v33 }
 0x680   : > { %5199 = vmatprep.subr.bf16.mxu0 %v12456_v3 }
 0x683   : > { %5200 = vmatpush1.bf16.msra.mxu0 %v12454_v21 }
 0x704   : > { %v11740_v11 = vpop.f32.mrf.mxu0 }
 0x706   : > { %v4382_v35 = vpop.f32.mrf.mxu0  ;;  %v11782_v6 = vpop.f32.mrf.mxu1 }
 0x708   : > { %v11741_v17 = vpop.f32.mrf.mxu0  ;;  %v4721_v7 = vpop.f32.mrf.mxu1 }
 0x70a   : > { %v4385_v2 = vpop.f32.mrf.mxu0  ;;  %v11783_v22 = vpop.f32.mrf.mxu1 }
 0x70c   : > { %v4724_v50 = vpop.f32.mrf.mxu1 }
 0x70e   : > { %v11744_v30 = vpop.f32.mrf.mxu0 }
 0x710   : > { %v4398_v49 = vpop.f32.mrf.mxu0 }
 0x712   : > { %v11745_v27 = vpop.f32.mrf.mxu0  ;;  %v11786_v51 = vpop.f32.mrf.mxu1 }
 0x714   : > { %v4401_v44 = vpop.f32.mrf.mxu0  ;;  %v4737_v15 = vpop.f32.mrf.mxu1 }
 0x716   : > { %v11754_v8 = vpop.f32.mrf.mxu0  ;;  %v11787_v59 = vpop.f32.mrf.mxu1 }
 0x717   : > { %v4482_v57 = vadd.f32 %v11754_v8, %v11740_v11 }
 0x718   : > { %v4473_v18 = vpop.f32.mrf.mxu0  ;;  %v4740_v3 = vpop.f32.mrf.mxu1 }
 0x719   : > { %v4474_v55 = vadd.f32 %v4473_v18, %v4382_v35 }
 0x71a   : > { %v11755_v47 = vpop.f32.mrf.mxu0 }
 0x71b   : > { %v4485_v61 = vadd.f32 %v11755_v47, %v11741_v17 }
 0x71c   : > { %v4476_v41 = vpop.f32.mrf.mxu0 }
 0x71d   : > { %v4477_v10 = vadd.f32 %v4476_v41, %v4385_v2 }
 0x71e   : > { %v11758_v38 = vpop.f32.mrf.mxu0 }
 0x71f   : > { %v4498_v20 = vadd.f32 %v11758_v38, %v11744_v30 }
 0x720   : > { %v4489_v39 = vpop.f32.mrf.mxu0 }
 0x721   : > { %v4490_v48 = vadd.f32 %v4489_v39, %v4398_v49 }
 0x722   : > { %v11759_v62 = vpop.f32.mrf.mxu0 }
 0x723   : > { %v4501_v32 = vadd.f32 %v11759_v62, %v11745_v27  ;;  %v4938_v62 = vsel %vm2110_vm5, 4294967295, %v13384_v5 }
 0x724   : > { %v4492_v40 = vpop.f32.mrf.mxu0 }
 0x725   : > { %v4493_v12 = vadd.f32 %v4492_v40, %v4401_v44  ;;  %v10467_v44 = vld [vmem:[#allocation16 + $0x1] ss:$0 sm:$0xff] }
 0x726   : > { %v11768_v42 = vpop.f32.mrf.mxu0 }
 0x727   : > { %v4621_v36 = vadd.f32 %v11768_v42, %v4482_v57 }
 0x728   : > { %v4588_v46 = vpop.f32.mrf.mxu0 }
 0x729   : > { %v4619_v21 = vadd.f32 %v4588_v46, %v4474_v55  ;;  %v4754_v11 = vadd.f32 %v11782_v6, %v4621_v36  ;;  %v12453_v36 = vld [vmem:[#allocation17 + $0x110] ss:$12 sps:$4 sm:$0xff]   ;;  %v12462_v55 = vld [vmem:[#allocation17 + $0xc0] ss:$12 sps:$4 sm:$0xff]  }
 0x72a   : > { %v11769_v16 = vpop.f32.mrf.mxu0 }
 0x72b   : > { %v4622_v60 = vadd.f32 %v11769_v16, %v4485_v61  ;;  %v4752_v39 = vadd.f32 %v4721_v7, %v4619_v21 }
 0x72c   : > { %v4591_v56 = vpop.f32.mrf.mxu0 }
 0x72d   : > { %v4620_v28 = vadd.f32 %v4591_v56, %v4477_v10  ;;  %v4755_v24 = vadd.f32 %v11783_v22, %v4622_v60  ;;  %v12449_v10 = vld [vmem:[#allocation17 + $0x128] ss:$12 sps:$4 sm:$0xff]  }
 0x72e   : > { %v11772_v29 = vpop.f32.mrf.mxu0 }
 0x72f   : > { %v4625_v14 = vadd.f32 %v11772_v29, %v4498_v20  ;;  %v4753_v8 = vadd.f32 %v4724_v50, %v4620_v28  ;;  %v4939_v50 = vsel %vm2924_vm10, %v4938_v62, 0  ;;  %v12464_v28 = vld [vmem:[#allocation17 + $0xc4] ss:$12 sps:$4 sm:$0xff]  }
 0x730   : > { %v4604_v43 = vpop.f32.mrf.mxu0 }
 0x731   : > { %v4623_v25 = vadd.f32 %v4604_v43, %v4490_v48  ;;  %v4758_v31 = vadd.f32 %v11786_v51, %v4625_v14 }
 0x732   : > { %v11773_v45 = vpop.f32.mrf.mxu0 }
 0x733   : > { %v4626_v23 = vadd.f32 %v11773_v45, %v4501_v32  ;;  %v4756_v26 = vadd.f32 %v4737_v15, %v4623_v25 }
 0x734   : > { %v4607_v9 = vpop.f32.mrf.mxu0 }
 0x735   : > { %v4624_v13 = vadd.f32 %v4607_v9, %v4493_v12  ;;  %v4759_v33 = vadd.f32 %v11787_v59, %v4626_v23  ;;  %v12445_v23 = vld [vmem:[#allocation17 + $0x140] ss:$12 sps:$4 sm:$0x3f]  }
 0x736   : > { %v11796_v52 = vpop.f32.mrf.mxu0  ;;  %v5189_v59 = vsel %vm2571_vm6, %v12445_v23, 0 }
 0x737   : > { %v4757_v2 = vadd.f32 %v4740_v3, %v4624_v13  ;;  %v4872_v27 = vadd.f32 %v11796_v52, %v4754_v11  ;;  %v12458_v13 = vld [vmem:[#allocation17 + $0xd8] ss:$12 sps:$4 sm:$0xff]  }
 0x738   : > { %v4839_v54 = vpop.f32.mrf.mxu0 }
 0x739   : > { %v4885_v16 = vmul.f32 %v10466_v34, %v4872_v27  ;;  %v4870_v56 = vadd.f32 %v4839_v54, %v4752_v39 }
 0x73a   : > { %v11797_v58 = vpop.f32.mrf.mxu0 }
 0x73b   : > { %v4873_v30 = vadd.f32 %v11797_v58, %v4755_v24  ;;  %v4898_v7 = vadd.f32 %v10467_v44, %v4885_v16  ;;  %v4883_v48 = vmul.f32 %v10466_v34, %v4870_v56  ;;  %v12469_v24 = vld [vmem:[#allocation17 + $0xb0] ss:$12 sps:$4 sm:$0xff]   ;;  %v12477_v56 = vld [vmem:[#allocation17 + $0x80] ss:$12 sps:$4 sm:$0xff]  }
 0x73c   : > { %v4842_v1 = vpop.f32.mrf.mxu0  ;;  %v12476_v16 = vld [vmem:[#allocation17 + $0x7c] ss:$12 sps:$4 sm:$0xff]  }
 0x73d   : > { %v4886_v40 = vmul.f32 %v10466_v34, %v4873_v30  ;;  %v4871_v42 = vadd.f32 %v4842_v1, %v4753_v8  ;;  %v4906_v54 = vmax.f32 %v4898_v7, 0.0  ;;  %v4896_v25 = vadd.f32 %v10467_v44, %v4883_v48  ;;  %v12486_v7 = vld [vmem:[#allocation17 + $0x30] ss:$12 sps:$4 sm:$0xff]  }
 0x73e   : > { %v11800_v53 = vpop.f32.mrf.mxu0  ;;  %v12492_v48 = vld [vmem:[#allocation17 + $0x1c] ss:$12 sps:$4 sm:$0xff]  }
 0x73f   : > { %v4876_v0 = vadd.f32 %v11800_v53, %v4758_v31  ;;  %v4899_v9 = vadd.f32 %v10467_v44, %v4886_v40  ;;  %v4884_v51 = vmul.f32 %v10466_v34, %v4871_v42  ;;  %v4904_v12 = vmax.f32 %v4896_v25, 0.0  ;;  %v12441_v31 = vld [vmem:[%s15592_s17 + $0x8] sm:$0x1f]   ;;  %v12457_v53 = vld [vmem:[#allocation17 + $0xf8] ss:$12 sps:$4 sm:$0xff]  }
 0x740   : > { %v4855_v4 = vpop.f32.mrf.mxu0  ;;  %v12500_v25 = vld [vmem:[#allocation17 + $0x1e0] ss:$12 sps:$4 sm:$0x3f]  }
 0x741   : > { %v4889_v63 = vmul.f32 %v10466_v34, %v4876_v0  ;;  %v4874_v37 = vadd.f32 %v4855_v4, %v4756_v26  ;;  %v4907_v58 = vmax.f32 %v4899_v9, 0.0  ;;  %v4897_v61 = vadd.f32 %v10467_v44, %v4884_v51  ;;  %v12460_v0 = vld [vmem:[#allocation17 + $0xdc] ss:$12 sps:$4 sm:$0xff]   ;;  %v12461_v26 = vld [vmem:[#allocation17 + $0xe0] ss:$12 sps:$4 sm:$0xff]  }
 0x742   : > { %v11801_v17 = vpop.f32.mrf.mxu0  ;;  %5201 = vmatprep.subr.bf16.mxu0 %v12460_v0  ;;  %v12468_v4 = vld [vmem:[#allocation17 + $0xac] ss:$12 sps:$4 sm:$0xff]   ;;  %v12485_v9 = vld [vmem:[#allocation17 + $0x50] ss:$12 sps:$4 sm:$0xff]   ;;  %v12482_v51 = vld [vmem:[#allocation17 + $0x48] ss:$12 sps:$4 sm:$0xff]  }
 0x743   : > { %v4877_v49 = vadd.f32 %v11801_v17, %v4759_v33  ;;  %v4902_v41 = vadd.f32 %v10467_v44, %v4889_v63  ;;  %v4887_v35 = vmul.f32 %v10466_v34, %v4874_v37  ;;  %v4905_v57 = vmax.f32 %v4897_v61, 0.0  ;;  %5202 = vmatpush1.bf16.msra.mxu0 %v12458_v13  ;;  %v12466_v63 = vld [vmem:[#allocation17 + $0xa8] ss:$12 sps:$4 sm:$0xff]   ;;  %v12473_v33 = vld [vmem:[#allocation17 + $0x98] ss:$12 sps:$4 sm:$0x3f]  }
 0x744   : > { %v4858_v47 = vpop.f32.mrf.mxu0  ;;  %v4913_v1 = vpack.c.bf16 %v4907_v58, %v4906_v54  ;;  %5203 = vmatprep.subr.bf16.mxu0 %v12464_v28  ;;  %v12470_v37 = vld [vmem:[#allocation17 + $0x94] ss:$12 sps:$4 sm:$0x3f]   ;;  %v12496_v58 = vld [vmem:[#allocation17 + $0x4] ss:$12 sps:$4 sm:$0xff]  }
 0x745   : > { %v4890_v18 = vmul.f32 %v10466_v34, %v4877_v49  ;;  %v4875_v38 = vadd.f32 %v4858_v47, %v4757_v2  ;;  %v4910_v29 = vmax.f32 %v4902_v41, 0.0  ;;  %v4900_v22 = vadd.f32 %v10467_v44, %v4887_v35  ;;  %v12497_v61 = vld [vmem:[#allocation17 + $0x8] ss:$12 sps:$4 sm:$0xff]   ;;  %v12498_v54 = vld [vmem:[#allocation17 + $0x1e4] ss:$12 sps:$4 sm:$0x3f]  }
 0x746   : > { %v4912_v60 = vpack.c.bf16 %v4905_v57, %v4904_v12  ;;  %v12501_v57 = vld [vmem:[#allocation17 + $0x1e8] ss:$12 sps:$4 sm:$0x3f]   ;;  %v5661_v12 = vsel %vm2571_vm6, %v12500_v25, 0  ;;  %v12509_v13 = vld [vmem:[#allocation17 + $0x1b8] ss:$12 sps:$4 sm:$0xff]  }
 0x747   : > { %v4903_v46 = vadd.f32 %v10467_v44, %v4890_v18  ;;  %v4888_v6 = vmul.f32 %v10466_v34, %v4875_v38  ;;  %v4908_v14 = vmax.f32 %v4900_v22, 0.0  ;;  %v12465_v34 = vld [vmem:[#allocation17 + $0xc8] ss:$12 sps:$4 sm:$0xff]   ;;  %5204 = vmatpush1.bf16.msra.mxu0 %v12462_v55  ;;  %v12480_v22 = vld [vmem:[#allocation17 + $0x64] ss:$12 sps:$4 sm:$0xff]  }
 0x748   : > { %5205 = vmatprep.subr.bf16.mxu0 %v12468_v4  ;;  %v12506_v0 = vld [vmem:[#allocation17 + $0x1b0] ss:$12 sps:$4 sm:$0xff]   ;;  %v12513_v55 = vld [vmem:[#allocation17 + $0x1a0] ss:$12 sps:$4 sm:$0xff]   ;;  %v12510_v28 = vld [vmem:[#allocation17 + $0x198] ss:$12 sps:$4 sm:$0xff]  }
 0x749   : > { %v4911_v43 = vmax.f32 %v4903_v46, 0.0  ;;  %v4901_v45 = vadd.f32 %v10467_v44, %v4888_v6  ;;  %v12472_v44 = vld [vmem:[#allocation17 + $0x90] ss:$12 sps:$4 sm:$0x3f]   ;;  %v5410_v6 = vsel %vm2571_vm6, %v12473_v33, 0 }
 0x74a   : > { %v5404_v40 = vsel %vm2571_vm6, %v12472_v44, 0  ;;  %v12517_v4 = vld [vmem:[#allocation17 + $0x188] ss:$12 sps:$4 sm:$0xff]  }
 0x74b   : > { %v4909_v52 = vmax.f32 %v4901_v45, 0.0  ;;  %v4915_v20 = vpack.c.bf16 %v4911_v43, %v4910_v29  ;;  %5206 = vmatpush1.bf16.msra.mxu0 %v12466_v63  ;;  %v12474_v29 = vld [vmem:[#allocation17 + $0x78] ss:$12 sps:$4 sm:$0xff]   ;;  %v12481_v43 = vld [vmem:[#allocation17 + $0x68] ss:$12 sps:$4 sm:$0xff]  }
 0x74c   : > { %10519 = vmatprep.subr.msk.bf16.mxu0 %vm2571_vm6, %v12470_v37  ;;  %v12478_v45 = vld [vmem:[#allocation17 + $0x60] ss:$12 sps:$4 sm:$0xff]   ;;  %v12521_v37 = vld [vmem:[#allocation17 + $0x170] ss:$12 sps:$4 sm:$0xff]  }
 0x74d   : > { %v4941_v15 = vand.u32 %v4939_v50, %v4915_v20  ;;  %v4914_v32 = vpack.c.bf16 %v4909_v52, %v4908_v14  ;;  %v12484_v50 = vld [vmem:[#allocation17 + $0x4c] ss:$12 sps:$4 sm:$0xff]   ;;  %v12488_v52 = vld [vmem:[#allocation17 + $0x34] ss:$12 sps:$4 sm:$0xff]   ;;  %v12560_v25 = vld [vmem:[#allocation17 + $0x31c] ss:$12 sps:$4 sm:$0xff]  }
 0x74e   : > { %v12489_v20 = vld [vmem:[#allocation17 + $0x38] ss:$12 sps:$4 sm:$0xff]   ;;  %v12493_v14 = vld [vmem:[#allocation17 + $0x20] ss:$12 sps:$4 sm:$0xff]  }
 0x74f   : > { %11802 = vmatprep.subr.bf16.mxu1 %v4941_v15  ;;  %v12520_v63 = vld [vmem:[#allocation17 + $0x16c] ss:$12 sps:$4 sm:$0xff]  }
 0x750   : > { %11803 = vmatpush3.bf16.msra.mxu1 %v4941_v15  ;;  %v12490_v15 = vld [vmem:[#allocation17 + $0x18] ss:$12 sps:$4 sm:$0xff]  }
 0x751   : > { %11804 = vmatprep.subr.bf16.mxu1 %v4914_v32 }
 0x754   : > { %11805 = vmatpush3.bf16.msra.mxu1 %v4914_v32  ;;  %v12494_v32 = vld [vmem:[#allocation17] ss:$12 sps:$4 sm:$0xff]  }
 0x755   : > { %11806 = vmatprep.subr.bf16.mxu1 %v4913_v1 }
 0x758   : > { %11807 = vmatpush3.bf16.msra.mxu1 %v4913_v1 }
 0x759   : > { %11808 = vmatprep.subr.bf16.mxu1 %v4912_v60 }
 0x75c   : > { %11809 = vmatpush3.bf16.msra.mxu1 %v4912_v60  ;;  %v5667_v60 = vsel %vm2571_vm6, %v12501_v57, 0 }
 0x75d   : > { %12095 = vmatprep.subr.msk.bf16.mxu1 %vm2571_vm6, %v12445_v23 }
 0x75f   : > { %11811 = vmatmul.mubr.msk.bf16.vlgmr.msra.gmra.mxu1 %vm4930_vm14, %v12441_v31  ;;  %v12504_v31 = vld [vmem:[#allocation17 + $0x1cc] ss:$12 sps:$4 sm:$0xff]  }
 0x760   : > { %11815 = vmatpush3.bf16.msra.mxu1 %v5189_v59  ;;  %v12505_v59 = vld [vmem:[#allocation17 + $0x1d0] ss:$12 sps:$4 sm:$0xff]  }
 0x761   : > { %11816 = vmatprep.subr.bf16.mxu1 %v12449_v10 }
 0x764   : > { %11817 = vmatpush3.bf16.msra.mxu1 %v12449_v10 }
 0x765   : > { %11818 = vmatprep.subr.bf16.mxu1 %v12453_v36 }
 0x768   : > { %11819 = vmatpush3.bf16.msra.mxu1 %v12453_v36  ;;  %v12502_v36 = vld [vmem:[#allocation17 + $0x1c8] ss:$12 sps:$4 sm:$0xff]  }
 0x769   : > { %11820 = vmatprep.subr.bf16.mxu1 %v12457_v53 }
 0x76c   : > { %11821 = vmatpush3.bf16.msra.mxu1 %v12457_v53  ;;  %v12508_v53 = vld [vmem:[#allocation17 + $0x1b4] ss:$12 sps:$4 sm:$0xff]  }
 0x76d   : > { %11822 = vmatprep.subr.bf16.mxu1 %v12461_v26 }
 0x770   : > { %11823 = vmatpush3.bf16.msra.mxu1 %v12461_v26  ;;  %v12512_v26 = vld [vmem:[#allocation17 + $0x19c] ss:$12 sps:$4 sm:$0xff]  }
 0x771   : > { %11824 = vmatprep.subr.bf16.mxu1 %v12465_v34 }
 0x774   : > { %11825 = vmatpush3.bf16.msra.mxu1 %v12465_v34  ;;  %v12516_v34 = vld [vmem:[#allocation17 + $0x184] ss:$12 sps:$4 sm:$0xff]  }
 0x775   : > { %11826 = vmatprep.subr.bf16.mxu1 %v12469_v24 }
 0x778   : > { %11827 = vmatpush3.bf16.msra.mxu1 %v12469_v24  ;;  %v12514_v24 = vld [vmem:[#allocation17 + $0x180] ss:$12 sps:$4 sm:$0xff]  }
 0x779   : > { %12096 = vmatprep.subr.msk.bf16.mxu1 %vm2571_vm6, %v12473_v33  ;;  %v12518_v33 = vld [vmem:[#allocation17 + $0x168] ss:$12 sps:$4 sm:$0xff]  }
 0x81f   : > { %v11812_v3 = vpop.f32.mrf.mxu1 }
 0x821   : > { %v4977_v21 = vpop.f32.mrf.mxu1 }
 0x823   : > { %v11813_v11 = vpop.f32.mrf.mxu1 }
 0x824   : > { %v15066_v17 = vpack.c.bf16 %v11813_v11, %v11812_v3  ;;  %v12524_v3 = vld [vmem:[#allocation17 + $0x154] ss:$12 sps:$4 sm:$0xff]   ;;  %v12522_v11 = vld [vmem:[#allocation17 + $0x150] ss:$12 sps:$4 sm:$0xff]  }
 0x825   : > { %v4980_v30 = vpop.f32.mrf.mxu1 }
 0x826   : > { %v15068_v49 = vpack.c.bf16 %v4980_v30, %v4977_v21  ;;  %v5059_v2 = vshll.u32 %v15066_v17, 16  ;;  %v15074_v47 = vrot.slane %v15066_v17, 2  ;;  %v5063_v39 = vshrl.u32 %v15066_v17, 16  ;;  %v12525_v21 = vld [vmem:[#allocation17 + $0x158] ss:$12 sps:$4 sm:$0xff]  }
 0x827   : > { %v15107_v23 = vrot.slane %v15066_v17, 1 }
 0x828   : > { %v5054_v27 = vshll.u32 %v15068_v49, 16  ;;  %v6074_v8 = vrot.slane %v15068_v49, 2  ;;  %v5052_v41 = vshrl.u32 %v15068_v49, 16  ;;  %v5061_v18 = vrot.slane %v5059_v2, 1 }
 0x829   : > { %v5542_v1 = vrot.slane %v15068_v49, 1 }
 0x82a   : > { %v5056_v35 = vrot.slane %v5054_v27, 1  ;;  %v15083_v38 = vsel %vm2571_vm6, %v6074_v8, %v15074_v47  ;;  %v5065_v46 = vor.u32 %v5063_v39, %v5061_v18  ;;  %v5806_v30 = vrot.slane %v5052_v41, 1  ;;  %v12526_v8 = vld [vmem:[#allocation17 + $0x28c] ss:$12 sps:$4 sm:$0x3f]  }
 0x82b   : > { %v5544_v10 = vsel %vm2110_vm5, %v5542_v1, %v15107_v23  ;;  %v5807_v44 = vrot.slane %v5054_v27, 2  ;;  %v12558_v1 = vld [vmem:[#allocation17 + $0x318] ss:$12 sps:$4 sm:$0xff]  }
 0x82c   : > { %v5057_v62 = vor.u32 %v5056_v35, %v5052_v41  ;;  %v12528_v35 = vld [vmem:[#allocation17 + $0x288] ss:$12 sps:$4 sm:$0x3f]  }
 0x82e   : > { %v5062_v42 = vsel %vm1674_vm2, %v5057_v62, %v5061_v18  ;;  %v12529_v18 = vld [vmem:[#allocation17 + $0x290] ss:$12 sps:$4 sm:$0x3f]   ;;  %v5809_v62 = vrot.slane %v5063_v39, 1  ;;  %vm6388_vm2 = vcmask 1042432  }
 0x82f   : > { %10494 = vmatmul.mubr.msk.bf16.vlgmr.msra.gmra.mxu0 %vm5175_vm15, %v5062_v42  ;;  %11828 = vmatprep.mubr.msk.bf16.mxu1 %vm5175_vm15, %v5062_v42  ;;  %v5808_v42 = vor.u32 %v5807_v44, %v5806_v30  ;;  %v5935_v27 = vsel %vm2571_vm6, %v12529_v18, 0  ;;  %v12536_v39 = vld [vmem:[#allocation17 + $0x25c] ss:$12 sps:$4 sm:$0xff]  }
 0x830   : > { %5415 = vmatpush1.bf16.msra.mxu0 %v5404_v40  ;;  %11829 = vmatmul.mubr.msk.bf16.vlgmr.msra.gmra.mxu1 %vm5175_vm15, %v5065_v46  ;;  %v5810_v40 = vrot.slane %v5059_v2, 2  ;;  %v12530_v2 = vld [vmem:[#allocation17 + $0x270] ss:$12 sps:$4 sm:$0xff]  }
 0x831   : > { %11833 = vmatpush3.bf16.msra.mxu1 %v5410_v6  ;;  %11846 = vmatprep.mubr.msk.bf16.mxu1 %vm5175_vm15, %v15068_v49  ;;  %v12533_v6 = vld [vmem:[#allocation17 + $0x278] ss:$12 sps:$4 sm:$0xff]  }
 0x832   : > { %5416 = vmatprep.subr.bf16.mxu0 %v12476_v16  ;;  %11834 = vmatprep.subr.bf16.mxu1 %v12477_v56  ;;  %v15132_v41 = vor.u32 %v5810_v40, %v5809_v62  ;;  %v12537_v16 = vld [vmem:[#allocation17 + $0x260] ss:$12 sps:$4 sm:$0xff]  }
 0x833   : > { %5233 = vmatprep.mubr.bf16.mxu0 %v15577_v19 }
 0x834   : > { %5417 = vmatpush1.bf16.msra.mxu0 %v12474_v29  ;;  %v12540_v29 = vld [vmem:[#allocation17 + $0x244] ss:$12 sps:$4 sm:$0xff]  }
 0x835   : > { %11835 = vmatpush3.bf16.msra.mxu1 %v12477_v56  ;;  %5418 = vmatprep.subr.bf16.mxu0 %v12480_v22  ;;  %v12534_v56 = vld [vmem:[#allocation17 + $0x258] ss:$12 sps:$4 sm:$0xff]   ;;  %v12541_v22 = vld [vmem:[#allocation17 + $0x248] ss:$12 sps:$4 sm:$0xff]  }
 0x836   : > { %11836 = vmatprep.subr.bf16.mxu1 %v12481_v43 }
 0x837   : > { %10495 = vmatmul.mubr.msk.bf16.gmra.mxu0 %vm5175_vm15, %v5065_v46  ;;  %v12532_v46 = vld [vmem:[#allocation17 + $0x274] ss:$12 sps:$4 sm:$0xff]  }
 0x838   : > { %5419 = vmatpush1.bf16.msra.mxu0 %v12478_v45  ;;  %5444 = vmatprep.mubr.bf16.mxu0 %v15577_v19  ;;  %v12544_v45 = vld [vmem:[#allocation17 + $0x22c] ss:$12 sps:$4 sm:$0xff]  }
 0x839   : > { %11837 = vmatpush3.bf16.msra.mxu1 %v12481_v43  ;;  %5420 = vmatprep.subr.bf16.mxu0 %v12484_v50  ;;  %v12538_v43 = vld [vmem:[#allocation17 + $0x240] ss:$12 sps:$4 sm:$0xff]   ;;  %v12545_v50 = vld [vmem:[#allocation17 + $0x230] ss:$12 sps:$4 sm:$0xff]  }
 0x83a   : > { %11838 = vmatprep.subr.bf16.mxu1 %v12485_v9 }
 0x83c   : > { %5421 = vmatpush1.bf16.msra.mxu0 %v12482_v51  ;;  %v12548_v51 = vld [vmem:[#allocation17 + $0x214] ss:$12 sps:$4 sm:$0xff]  }
 0x83d   : > { %11839 = vmatpush3.bf16.msra.mxu1 %v12485_v9  ;;  %5422 = vmatprep.subr.bf16.mxu0 %v12488_v52  ;;  %v12542_v9 = vld [vmem:[#allocation17 + $0x228] ss:$12 sps:$4 sm:$0xff]   ;;  %v12549_v52 = vld [vmem:[#allocation17 + $0x218] ss:$12 sps:$4 sm:$0xff]  }
 0x83e   : > { %11840 = vmatprep.subr.bf16.mxu1 %v12489_v20 }
 0x840   : > { %5423 = vmatpush1.bf16.msra.mxu0 %v12486_v7  ;;  %v12552_v7 = vld [vmem:[#allocation17 + $0x1fc] ss:$12 sps:$4 sm:$0xff]  }
 0x841   : > { %11841 = vmatpush3.bf16.msra.mxu1 %v12489_v20  ;;  %5424 = vmatprep.subr.bf16.mxu0 %v12492_v48  ;;  %v12546_v20 = vld [vmem:[#allocation17 + $0x210] ss:$12 sps:$4 sm:$0xff]   ;;  %v12553_v48 = vld [vmem:[#allocation17 + $0x200] ss:$12 sps:$4 sm:$0xff]  }
 0x842   : > { %11842 = vmatprep.subr.bf16.mxu1 %v12493_v14 }
 0x844   : > { %5425 = vmatpush1.bf16.msra.mxu0 %v12490_v15  ;;  %v12554_v15 = vld [vmem:[#allocation17 + $0x334] ss:$12 sps:$4 sm:$0x3f]  }
 0x845   : > { %11843 = vmatpush3.bf16.msra.mxu1 %v12493_v14  ;;  %5426 = vmatprep.subr.bf16.mxu0 %v12496_v58  ;;  %v12550_v14 = vld [vmem:[#allocation17 + $0x1f8] ss:$12 sps:$4 sm:$0xff]   ;;  %v12556_v58 = vld [vmem:[#allocation17 + $0x330] ss:$12 sps:$4 sm:$0x3f]  }
 0x846   : > { %11844 = vmatprep.subr.bf16.mxu1 %v12497_v61 }
 0x848   : > { %5427 = vmatpush1.bf16.msra.mxu0 %v12494_v32  ;;  %v6193_v32 = vsel %vm2571_vm6, %v12556_v58, 0 }
 0x849   : > { %11845 = vmatpush3.bf16.msra.mxu1 %v12497_v61  ;;  %10545 = vmatprep.subr.msk.bf16.mxu0 %vm2571_vm6, %v12498_v54  ;;  %v12557_v61 = vld [vmem:[#allocation17 + $0x338] ss:$12 sps:$4 sm:$0x3f]  }
 0x84a   : > { %12097 = vmatprep.subr.msk.bf16.mxu1 %vm2571_vm6, %v12501_v57  ;;  %v6199_v54 = vsel %vm2571_vm6, %v12557_v61, 0  ;;  %v12561_v57 = vld [vmem:[#allocation17 + $0x320] ss:$12 sps:$4 sm:$0xff]  }
 0x84b   : > { %10520 = vmatmul.mubr.msk.bf16.vlgmr.msra.gmra.mxu0 %vm5175_vm15, %v15068_v49  ;;  %v5929_v49 = vsel %vm2571_vm6, %v12528_v35, 0 }
 0x84c   : > { %11847 = vmatmul.mubr.msk.bf16.vlgmr.msra.gmra.mxu1 %vm5175_vm15, %v15066_v17  ;;  %5672 = vmatpush1.bf16.msra.mxu0 %v5661_v12  ;;  %v12564_v12 = vld [vmem:[#allocation17 + $0x304] ss:$12 sps:$4 sm:$0xff]  }
 0x84d   : > { %11851 = vmatpush3.bf16.msra.mxu1 %v5667_v60  ;;  %11864 = vmatprep.mubr.msk.bf16.mxu1 %vm5175_vm15, %v5544_v10  ;;  %v12565_v60 = vld [vmem:[#allocation17 + $0x308] ss:$12 sps:$4 sm:$0xff]  }
 0x84e   : > { %5673 = vmatprep.subr.bf16.mxu0 %v12504_v31  ;;  %11852 = vmatprep.subr.bf16.mxu1 %v12505_v59  ;;  %v12568_v31 = vld [vmem:[#allocation17 + $0x2ec] ss:$12 sps:$4 sm:$0xff]  }
 0x84f   : > { %5454 = vmatprep.mubr.bf16.mxu0 %v15577_v19 }
 0x850   : > { %5674 = vmatpush1.bf16.msra.mxu0 %v12502_v36  ;;  %v12572_v36 = vld [vmem:[#allocation17 + $0x2d4] ss:$12 sps:$4 sm:$0xff]  }
 0x851   : > { %11853 = vmatpush3.bf16.msra.mxu1 %v12505_v59  ;;  %5675 = vmatprep.subr.bf16.mxu0 %v12508_v53  ;;  %v12569_v59 = vld [vmem:[#allocation17 + $0x2f0] ss:$12 sps:$4 sm:$0xff]   ;;  %v12573_v53 = vld [vmem:[#allocation17 + $0x2d8] ss:$12 sps:$4 sm:$0xff]  }
 0x852   : > { %11854 = vmatprep.subr.bf16.mxu1 %v12509_v13 }
 0x853   : > { %10521 = vmatmul.mubr.msk.bf16.gmra.mxu0 %vm5175_vm15, %v15066_v17  ;;  %v5812_v17 = vsel %vm2328_vm4, %v5808_v42, %v15132_v41  ;;  %vm6897_vm4 = vcmask 556032  }
 0x854   : > { %5676 = vmatpush1.bf16.msra.mxu0 %v12506_v0  ;;  %5701 = vmatprep.mubr.bf16.mxu0 %v15577_v19  ;;  %v12576_v0 = vld [vmem:[#allocation17 + $0x2bc] ss:$12 sps:$4 sm:$0xff]  }
 0x855   : > { %11855 = vmatpush3.bf16.msra.mxu1 %v12509_v13  ;;  %5677 = vmatprep.subr.bf16.mxu0 %v12512_v26  ;;  %v12570_v13 = vld [vmem:[#allocation17 + $0x2d0] ss:$12 sps:$4 sm:$0xff]   ;;  %v12577_v26 = vld [vmem:[#allocation17 + $0x2c0] ss:$12 sps:$4 sm:$0xff]  }
 0x856   : > { %11856 = vmatprep.subr.bf16.mxu1 %v12513_v55 }
 0x858   : > { %5678 = vmatpush1.bf16.msra.mxu0 %v12510_v28  ;;  %v12580_v28 = vld [vmem:[#allocation17 + $0x2a4] ss:$12 sps:$4 sm:$0xff]  }
 0x859   : > { %11857 = vmatpush3.bf16.msra.mxu1 %v12513_v55  ;;  %5679 = vmatprep.subr.bf16.mxu0 %v12516_v34  ;;  %v12574_v55 = vld [vmem:[#allocation17 + $0x2b8] ss:$12 sps:$4 sm:$0xff]   ;;  %v12581_v34 = vld [vmem:[#allocation17 + $0x2a8] ss:$12 sps:$4 sm:$0xff]  }
 0x85a   : > { %11858 = vmatprep.subr.bf16.mxu1 %v12517_v4 }
 0x85c   : > { %5680 = vmatpush1.bf16.msra.mxu0 %v12514_v24 }
 0x85d   : > { %11859 = vmatpush3.bf16.msra.mxu1 %v12517_v4  ;;  %5681 = vmatprep.subr.bf16.mxu0 %v12520_v63  ;;  %v12578_v4 = vld [vmem:[#allocation17 + $0x2a0] ss:$12 sps:$4 sm:$0xff]  }
 0x85e   : > { %11860 = vmatprep.subr.bf16.mxu1 %v12521_v37 }
 0x860   : > { %5682 = vmatpush1.bf16.msra.mxu0 %v12518_v33 }
 0x861   : > { %11861 = vmatpush3.bf16.msra.mxu1 %v12521_v37  ;;  %5683 = vmatprep.subr.bf16.mxu0 %v12524_v3 }
 0x862   : > { %11862 = vmatprep.subr.bf16.mxu1 %v12525_v21 }
 0x864   : > { %5684 = vmatpush1.bf16.msra.mxu0 %v12522_v11 }
 0x865   : > { %11863 = vmatpush3.bf16.msra.mxu1 %v12525_v21  ;;  %10571 = vmatprep.subr.msk.bf16.mxu0 %vm2571_vm6, %v12526_v8  ;;  %v13385_v21 = vmov 0.0  }
 0x866   : > { %12098 = vmatprep.subr.msk.bf16.mxu1 %vm2571_vm6, %v12529_v18 }
 0x867   : > { %10546 = vmatmul.mubr.msk.bf16.vlgmr.msra.gmra.mxu0 %vm5175_vm15, %v5544_v10  ;;  %v12566_v10 = vld [vmem:[#allocation17 + $0x2e8] ss:$12 sps:$4 sm:$0xff]  }
 0x868   : > { %11865 = vmatmul.mubr.msk.bf16.vlgmr.msra.gmra.mxu1 %vm5175_vm15, %v15107_v23  ;;  %5940 = vmatpush1.bf16.msra.mxu0 %v5929_v49 }
 0x869   : > { %11869 = vmatpush3.bf16.msra.mxu1 %v5935_v27  ;;  %11882 = vmatprep.mubr.msk.bf16.mxu1 %vm5175_vm15, %v5812_v17 }
 0x86a   : > { %5941 = vmatprep.subr.bf16.mxu0 %v12532_v46  ;;  %11870 = vmatprep.subr.bf16.mxu1 %v12533_v6 }
 0x86b   : > { %5711 = vmatprep.mubr.bf16.mxu0 %v15577_v19 }
 0x86c   : > { %5942 = vmatpush1.bf16.msra.mxu0 %v12530_v2 }
 0x86d   : > { %11871 = vmatpush3.bf16.msra.mxu1 %v12533_v6  ;;  %5943 = vmatprep.subr.bf16.mxu0 %v12536_v39 }
 0x86e   : > { %11872 = vmatprep.subr.bf16.mxu1 %v12537_v16 }
 0x86f   : > { %10547 = vmatmul.mubr.msk.bf16.gmra.mxu0 %vm5175_vm15, %v15107_v23  ;;  %v12562_v23 = vld [vmem:[#allocation17 + $0x300] ss:$12 sps:$4 sm:$0xff]  }
 0x870   : > { %5944 = vmatpush1.bf16.msra.mxu0 %v12534_v56  ;;  %5969 = vmatprep.mubr.bf16.mxu0 %v15577_v19 }
 0x871   : > { %11873 = vmatpush3.bf16.msra.mxu1 %v12537_v16  ;;  %5945 = vmatprep.subr.bf16.mxu0 %v12540_v29 }
 0x872   : > { %11874 = vmatprep.subr.bf16.mxu1 %v12541_v22 }
 0x874   : > { %5946 = vmatpush1.bf16.msra.mxu0 %v12538_v43 }
 0x875   : > { %11875 = vmatpush3.bf16.msra.mxu1 %v12541_v22  ;;  %5947 = vmatprep.subr.bf16.mxu0 %v12544_v45 }
 0x876   : > { %11876 = vmatprep.subr.bf16.mxu1 %v12545_v50 }
 0x878   : > { %5948 = vmatpush1.bf16.msra.mxu0 %v12542_v9 }
 0x879   : > { %11877 = vmatpush3.bf16.msra.mxu1 %v12545_v50  ;;  %5949 = vmatprep.subr.bf16.mxu0 %v12548_v51 }
 0x87a   : > { %11878 = vmatprep.subr.bf16.mxu1 %v12549_v52 }
 0x87c   : > { %5950 = vmatpush1.bf16.msra.mxu0 %v12546_v20 }
 0x87d   : > { %11879 = vmatpush3.bf16.msra.mxu1 %v12549_v52  ;;  %5951 = vmatprep.subr.bf16.mxu0 %v12552_v7 }
 0x87e   : > { %11880 = vmatprep.subr.bf16.mxu1 %v12553_v48 }
 0x880   : > { %5952 = vmatpush1.bf16.msra.mxu0 %v12550_v14 }
 0x881   : > { %11881 = vmatpush3.bf16.msra.mxu1 %v12553_v48  ;;  %10597 = vmatprep.subr.msk.bf16.mxu0 %vm2571_vm6, %v12554_v15 }
 0x882   : > { %12099 = vmatprep.subr.msk.bf16.mxu1 %vm2571_vm6, %v12557_v61 }
 0x883   : > { %10572 = vmatmul.mubr.msk.bf16.vlgmr.msra.gmra.mxu0 %vm5175_vm15, %v5812_v17 }
 0x884   : > { %11883 = vmatmul.mubr.msk.bf16.vlgmr.msra.gmra.mxu1 %vm5175_vm15, %v15132_v41  ;;  %6204 = vmatpush1.bf16.msra.mxu0 %v6193_v32 }
 0x885   : > { %11887 = vmatpush3.bf16.msra.mxu1 %v6199_v54  ;;  %11900 = vmatprep.mubr.msk.bf16.mxu1 %vm5175_vm15, %v15083_v38 }
 0x886   : > { %6205 = vmatprep.subr.bf16.mxu0 %v12560_v25  ;;  %11888 = vmatprep.subr.bf16.mxu1 %v12561_v57 }
 0x887   : > { %5979 = vmatprep.mubr.bf16.mxu0 %v15577_v19 }
 0x888   : > { %6206 = vmatpush1.bf16.msra.mxu0 %v12558_v1 }
 0x889   : > { %11889 = vmatpush3.bf16.msra.mxu1 %v12561_v57  ;;  %6207 = vmatprep.subr.bf16.mxu0 %v12564_v12 }
 0x88a   : > { %11890 = vmatprep.subr.bf16.mxu1 %v12565_v60 }
 0x88b   : > { %10573 = vmatmul.mubr.msk.bf16.gmra.mxu0 %vm5175_vm15, %v15132_v41 }
 0x88c   : > { %6208 = vmatpush1.bf16.msra.mxu0 %v12562_v23  ;;  %6233 = vmatprep.mubr.bf16.mxu0 %v15577_v19 }
 0x88d   : > { %11891 = vmatpush3.bf16.msra.mxu1 %v12565_v60  ;;  %6209 = vmatprep.subr.bf16.mxu0 %v12568_v31 }
 0x88e   : > { %11892 = vmatprep.subr.bf16.mxu1 %v12569_v59 }
 0x890   : > { %6210 = vmatpush1.bf16.msra.mxu0 %v12566_v10 }
 0x891   : > { %11893 = vmatpush3.bf16.msra.mxu1 %v12569_v59  ;;  %6211 = vmatprep.subr.bf16.mxu0 %v12572_v36 }
 0x892   : > { %11894 = vmatprep.subr.bf16.mxu1 %v12573_v53 }
 0x894   : > { %6212 = vmatpush1.bf16.msra.mxu0 %v12570_v13 }
 0x895   : > { %11895 = vmatpush3.bf16.msra.mxu1 %v12573_v53  ;;  %6213 = vmatprep.subr.bf16.mxu0 %v12576_v0 }
 0x896   : > { %11896 = vmatprep.subr.bf16.mxu1 %v12577_v26 }
 0x898   : > { %6214 = vmatpush1.bf16.msra.mxu0 %v12574_v55 }
 0x899   : > { %11897 = vmatpush3.bf16.msra.mxu1 %v12577_v26  ;;  %6215 = vmatprep.subr.bf16.mxu0 %v12580_v28  ;;  %v6311_v28 = vlaneseq }
 0x89a   : > { %11898 = vmatprep.subr.bf16.mxu1 %v12581_v34 }
 0x89c   : > { %6216 = vmatpush1.bf16.msra.mxu0 %v12578_v4  ;;  %v6309_v4 = vld [vmem:[#allocation19] ss:$2 sm:$0x7] }
 0x89d   : > { %11899 = vmatpush3.bf16.msra.mxu1 %v12581_v34  ;;  %11904 = vmatprep.subr.bf16.mxu0 %v13385_v21  ;;  %v6312_v34 = vshrl.u32 %v6311_v28, 7 }
 0x89f   : > { %10598 = vmatmul.mubr.msk.bf16.vlgmr.msra.gmra.mxu0 %vm5175_vm15, %v15083_v38 }
 0x8a0   : > { %11901 = vmatmul.mubr.msk.bf16.vlgmr.msra.gmra.mxu1 %vm5175_vm15, %v15074_v47  ;;  %6243 = vmatprep.mubr.bf16.mxu0 %v15577_v19 }
 0x8a1   : > { %6432 = vmatprep.mubr.bf16.mxu1 %v15577_v19 }
 0x8a7   : > { %10599 = vmatmul.mubr.msk.bf16.gmra.mxu0 %vm5175_vm15, %v15074_v47 }
 0x8a8   : > { %11908 = vmatprep.mubr.msk.bf16.mxu0 %vm13386_vm0, %v13385_v21 }
 0x8ef   : > { %v5225_v24 = vpop.f32.mrf.mxu0 }
 0x8f0   : > { %v11830_v63 = vpop.f32.mrf.mxu1 }
 0x8f1   : > { %v5227_v37 = vpop.f32.mrf.mxu0 }
 0x8f2   : > { %v5276_v33 = vpop.f32.mrf.mxu1 }
 0x8f3   : > { %v5229_v3 = vpop.f32.mrf.mxu0 }
 0x8f4   : > { %v11831_v38 = vpop.f32.mrf.mxu1 }
 0x8f5   : > { %v5231_v11 = vpop.f32.mrf.mxu0 }
 0x8f6   : > { %v15168_v18 = vpop.f32.mrf.mxu1 }
 0x8f7   : > { %v5235_v30 = vpop.f32.mrf.mxu0 }
 0x8f9   : > { %v5237_v44 = vpop.f32.mrf.mxu0 }
 0x8fb   : > { %v5239_v8 = vpop.f32.mrf.mxu0 }
 0x8fd   : > { %v5240_v35 = vpop.f32.mrf.mxu0 }
 0x90b   : > { %v5446_v47 = vpop.f32.mrf.mxu0 }
 0x90c   : > { %v5447_v62 = vadd.f32 %v5446_v47, %v5225_v24  ;;  %v11848_v40 = vpop.f32.mrf.mxu1  ;;  %v15174_v24 = vsub.s32 0, %v6312_v34 }
 0x90d   : > { %v5506_v42 = vadd.f32 %v11848_v40, %v11830_v63  ;;  %v5448_v49 = vpop.f32.mrf.mxu0  ;;  %v6336_v63 = vld [vmem:[#allocation19 + $0x1] ss:$2 sm:$0x7] }
 0x90e   : > { %v5449_v27 = vadd.f32 %v5448_v49, %v5227_v37  ;;  %v5497_v41 = vpop.f32.mrf.mxu1  ;;  %v15176_v37 = vsub.s32 2, %v6312_v34 }
 0x90f   : > { %v5498_v46 = vadd.f32 %v5497_v41, %v5276_v33  ;;  %v5450_v6 = vpop.f32.mrf.mxu0  ;;  %v15178_v33 = vsub.s32 1, %v6312_v34 }
 0x910   : > { %v5451_v17 = vadd.f32 %v5450_v6, %v5229_v3  ;;  %v11849_v2 = vpop.f32.mrf.mxu1  ;;  %v6349_v40 = vrot.slane %v6336_v63, %v15176_v37 }
 0x911   : > { %v5452_v39 = vpop.f32.mrf.mxu0  ;;  %v6318_v6 = vrot.slane %v6309_v4, %v15178_v33 }
 0x912   : > { %v5453_v16 = vadd.f32 %v5452_v39, %v5231_v11  ;;  %v5500_v9 = vpop.f32.mrf.mxu1 }
 0x913   : > { %v5456_v56 = vpop.f32.mrf.mxu0 }
 0x914   : > { %v15170_v29 = vadd.f32 %v5456_v56, %v5235_v30  ;;  %v6314_v30 = vrot.slane %v6309_v4, %v15174_v24 }
 0x915   : > { %v5458_v22 = vpop.f32.mrf.mxu0 }
 0x916   : > { %v15172_v43 = vadd.f32 %v5458_v22, %v5237_v44  ;;  %v15182_v44 = vrot.slane %v6336_v63, %v15174_v24 }
 0x917   : > { %v5460_v45 = vpop.f32.mrf.mxu0 }
 0x919   : > { %v5461_v50 = vpop.f32.mrf.mxu0 }
 0x927   : > { %v5703_v51 = vpop.f32.mrf.mxu0 }
 0x928   : > { %v5768_v52 = vadd.f32 %v5703_v51, %v5447_v62  ;;  %v11866_v20 = vpop.f32.mrf.mxu1  ;;  %v6322_v62 = vrot.slane %v6309_v4, %v15176_v37 }
 0x929   : > { %v5705_v7 = vpop.f32.mrf.mxu0  ;;  %v5776_v3 = vadd.f32 %v11866_v20, %v5506_v42  ;;  %v15188_v42 = vrot.slane %v6336_v63, %v15178_v33 }
 0x92a   : > { %v5769_v48 = vadd.f32 %v5705_v7, %v5449_v27  ;;  %v5754_v14 = vpop.f32.mrf.mxu1 }
 0x92b   : > { %v5707_v15 = vpop.f32.mrf.mxu0  ;;  %v5770_v8 = vadd.f32 %v5754_v14, %v5498_v46  ;;  %v6389_v14 = vsel %vm1807_vm1, 4294967295, %v13384_v5 }
 0x92c   : > { %v5771_v58 = vadd.f32 %v5707_v15, %v5451_v17  ;;  %v11867_v61 = vpop.f32.mrf.mxu1  ;;  %v5501_v17 = vadd.f32 %v5500_v9, %v15168_v18 }
 0x92d   : > { %v5709_v32 = vpop.f32.mrf.mxu0 }
 0x92e   : > { %v5757_v12 = vpop.f32.mrf.mxu1  ;;  %v5772_v46 = vadd.f32 %v5709_v32, %v5453_v16 }
 0x92f   : > { %v5713_v54 = vpop.f32.mrf.mxu0 }
 0x930   : > { %v5774_v15 = vadd.f32 %v5713_v54, %v15170_v29 }
 0x931   : > { %v5715_v25 = vpop.f32.mrf.mxu0 }
 0x933   : > { %v5717_v57 = vpop.f32.mrf.mxu0 }
 0x935   : > { %v5718_v1 = vpop.f32.mrf.mxu0 }
 0x943   : > { %v5971_v60 = vpop.f32.mrf.mxu0 }
 0x944   : > { %v11884_v23 = vpop.f32.mrf.mxu1  ;;  %v6036_v38 = vadd.f32 %v5971_v60, %v5768_v52  ;;  %v5773_v52 = vadd.f32 %v5757_v12, %v5501_v17  ;;  %v5775_v12 = vadd.f32 %v5715_v25, %v15172_v43 }
 0x945   : > { %v5973_v31 = vpop.f32.mrf.mxu0  ;;  %v6044_v35 = vadd.f32 %v11884_v23, %v5776_v3 }
 0x946   : > { %v6022_v59 = vpop.f32.mrf.mxu1  ;;  %v6037_v49 = vadd.f32 %v5973_v31, %v5769_v48 }
 0x947   : > { %v5975_v10 = vpop.f32.mrf.mxu0  ;;  %v6038_v2 = vadd.f32 %v6022_v59, %v5770_v8 }
 0x948   : > { %v11885_v36 = vpop.f32.mrf.mxu1  ;;  %v6039_v22 = vadd.f32 %v5975_v10, %v5771_v58 }
 0x949   : > { %v5977_v53 = vpop.f32.mrf.mxu0 }
 0x94a   : > { %v6025_v11 = vpop.f32.mrf.mxu1  ;;  %v6040_v61 = vadd.f32 %v5977_v53, %v5772_v46  ;;  %v6390_v53 = vsel %vm6388_vm2, %v6389_v14, 0 }
 0x94b   : > { %v5981_v13 = vpop.f32.mrf.mxu0  ;;  %v6041_v1 = vadd.f32 %v6025_v11, %v5773_v52 }
 0x94c   : > { %v6042_v23 = vadd.f32 %v5981_v13, %v5774_v15  ;;  %v12612_v15 = vld [vmem:[#allocation22 + $0x1c8] ss:$12 sps:$4 sm:$0xff]  }
 0x94d   : > { %v5983_v0 = vpop.f32.mrf.mxu0 }
 0x94f   : > { %v5985_v26 = vpop.f32.mrf.mxu0 }
 0x950   : > { %v6043_v26 = vadd.f32 %v5983_v0, %v5775_v12  ;;  %v12594_v12 = vld [vmem:[#allocation22 + $0x64] ss:$12 sps:$4 sm:$0xff]  }
 0x951   : > { %v5986_v55 = vpop.f32.mrf.mxu0 }
 0x95f   : > { %v6235_v47 = vpop.f32.mrf.mxu0 }
 0x960   : > { %v6300_v27 = vadd.f32 %v6235_v47, %v6036_v38  ;;  %v11902_v41 = vpop.f32.mrf.mxu1 }
 0x961   : > { %v6308_v39 = vadd.f32 %v11902_v41, %v6044_v35  ;;  %v6237_v56 = vpop.f32.mrf.mxu0  ;;  %v6567_v35 = vld [vmem:[#allocation22 + $0x1e0] sm:$0x33] }
 0x962   : > { %v6326_v45 = vmul.f32 %v6314_v30, %v6300_v27  ;;  %v6301_v50 = vadd.f32 %v6237_v56, %v6037_v49  ;;  %v6286_v51 = vpop.f32.mrf.mxu1 }
 0x963   : > { %v6334_v20 = vmul.f32 %v6322_v62, %v6308_v39  ;;  %v6302_v7 = vadd.f32 %v6286_v51, %v6038_v2  ;;  %v6239_v48 = vpop.f32.mrf.mxu0  ;;  %v10665_v51 = vcombine.low %v6567_v35, %v6567_v35 }
 0x964   : > { %v6327_v18 = vmul.f32 %v6318_v6, %v6301_v50  ;;  %v6303_v9 = vadd.f32 %v6239_v48, %v6039_v22  ;;  %v11903_v57 = vpop.f32.mrf.mxu1  ;;  %v6353_v16 = vadd.f32 %v15182_v44, %v6326_v45  ;;  %v12614_v48 = vld [vmem:[#allocation22 + $0x1cc] ss:$12 sps:$4 sm:$0xff]  }
 0x965   : > { %v6361_v58 = vadd.f32 %v6349_v40, %v6334_v20  ;;  %v6328_v32 = vmul.f32 %v6322_v62, %v6302_v7  ;;  %v6241_v60 = vpop.f32.mrf.mxu0  ;;  %v12582_v20 = vld [vmem:[#allocation20] sm:$0x3f]  }
 0x966   : > { %v6329_v31 = vmul.f32 %v6314_v30, %v6303_v9  ;;  %v6304_v59 = vadd.f32 %v6241_v60, %v6040_v61  ;;  %v6289_v10 = vpop.f32.mrf.mxu1  ;;  %v6354_v5 = vadd.f32 %v15188_v42, %v6327_v18  ;;  %v6362_v4 = vmax.f32 %v6353_v16, 0.0  ;;  %v12620_v61 = vld [vmem:[#allocation22 + $0x1b4] ss:$12 sps:$4 sm:$0xff]   ;;  %v12585_v18 = vld [vmem:[#allocation22 + $0xac] ss:$12 sps:$4 sm:$0xff]  }
 0x967   : > { %v6370_v36 = vmax.f32 %v6361_v58, 0.0  ;;  %v6305_v29 = vadd.f32 %v6289_v10, %v6041_v1  ;;  %v6245_v54 = vpop.f32.mrf.mxu0  ;;  %v6355_v3 = vadd.f32 %v6349_v40, %v6328_v32  ;;  %v12618_v9 = vld [vmem:[#allocation22 + $0x1b0] ss:$12 sps:$4 sm:$0xff]   ;;  %v12583_v1 = vld [vmem:[#allocation22 + $0xa8] ss:$12 sps:$4 sm:$0xff]  }
 0x968   : > { %v6356_v55 = vadd.f32 %v15182_v44, %v6329_v31  ;;  %v6330_v28 = vmul.f32 %v6318_v6, %v6304_v59  ;;  %v6306_v34 = vadd.f32 %v6245_v54, %v6042_v23  ;;  %v6363_v47 = vmax.f32 %v6354_v5, 0.0  ;;  %v12626_v57 = vld [vmem:[#allocation22 + $0x19c] ss:$12 sps:$4 sm:$0xff]   ;;  %v12588_v16 = vld [vmem:[#allocation22 + $0x94] ss:$12 sps:$4 sm:$0xff]  }
 0x969   : > { %v6376_v63 = vpack.c.bf16 %v6370_v36, %v6370_v36  ;;  %v6331_v43 = vmul.f32 %v6322_v62, %v6305_v29  ;;  %v6247_v25 = vpop.f32.mrf.mxu0  ;;  %v6364_v56 = vmax.f32 %v6355_v3, 0.0  ;;  %v10666_v62 = vcombine.high %v6567_v35, %v6567_v35  ;;  %v12624_v58 = vld [vmem:[#allocation22 + $0x198] ss:$12 sps:$4 sm:$0xff]   ;;  %v12591_v32 = vld [vmem:[#allocation22 + $0x7c] ss:$12 sps:$4 sm:$0xff]  }
 0x96a   : > { %v6365_v13 = vmax.f32 %v6356_v55, 0.0  ;;  %v6357_v38 = vadd.f32 %v15188_v42, %v6330_v28  ;;  %v6332_v11 = vmul.f32 %v6314_v30, %v6306_v34  ;;  %v6307_v8 = vadd.f32 %v6247_v25, %v6043_v26  ;;  %v12589_v60 = vld [vmem:[#allocation22 + $0x78] ss:$12 sps:$4 sm:$0xff]   ;;  %v12592_v23 = vld [vmem:[#allocation22 + $0x60] ss:$12 sps:$4 sm:$0xff]  }
 0x96b   : > { %v6358_v49 = vadd.f32 %v6349_v40, %v6331_v43  ;;  %v6249_v27 = vpop.f32.mrf.mxu0  ;;  %v6398_v41 = vand.u32 %v6390_v53, %v6376_v63  ;;  %v12597_v31 = vld [vmem:[#allocation22 + $0x4c] ss:$12 sps:$4 sm:$0xff]   ;;  %v12595_v59 = vld [vmem:[#allocation22 + $0x48] ss:$12 sps:$4 sm:$0xff]   ;;  %v12598_v36 = vld [vmem:[#allocation22 + $0x30] ss:$12 sps:$4 sm:$0xff]  }
 0x96c   : > { %v6371_v0 = vpack.c.bf16 %v6365_v13, %v6362_v4  ;;  %v6366_v17 = vmax.f32 %v6357_v38, 0.0  ;;  %v6359_v2 = vadd.f32 %v15182_v44, %v6332_v11  ;;  %v6333_v39 = vmul.f32 %v6318_v6, %v6307_v8  ;;  %v12600_v10 = vld [vmem:[#allocation22 + $0x34] ss:$12 sps:$4 sm:$0xff]   ;;  %v12603_v5 = vld [vmem:[#allocation22 + $0x1c] ss:$12 sps:$4 sm:$0xff]  }
 0x96d   : > { %v6367_v46 = vmax.f32 %v6358_v49, 0.0  ;;  %v6250_v22 = vpop.f32.mrf.mxu0  ;;  %11905 = vmatpush3.bf16.msra.mxu0 %v6398_v41  ;;  %v6902_v6 = vsel %vm1807_vm1, %v10665_v51, 0  ;;  %v12601_v29 = vld [vmem:[#allocation22 + $0x18] ss:$12 sps:$4 sm:$0xff]   ;;  %v12609_v55 = vld [vmem:[#allocation22 + $0x168] ss:$12 sps:$4 sm:$0xff]  }
 0x96e   : > { %v6368_v45 = vmax.f32 %v6359_v2, 0.0  ;;  %v6360_v50 = vadd.f32 %v15188_v42, %v6333_v39  ;;  %11906 = vmatprep.subr.bf16.mxu0 %v13385_v21  ;;  %v6372_v30 = vpack.c.bf16 %v6366_v17, %v6363_v47  ;;  %v12606_v54 = vld [vmem:[#allocation22 + $0x4] ss:$12 sps:$4 sm:$0xff]   ;;  %v12611_v26 = vld [vmem:[#allocation22 + $0x16c] ss:$12 sps:$4 sm:$0xff]  }
 0x96f   : > { %v6373_v40 = vpack.c.bf16 %v6367_v46, %v6364_v56  ;;  %v12617_v28 = vld [vmem:[#allocation22 + $0x154] ss:$12 sps:$4 sm:$0xff]   ;;  %v12615_v34 = vld [vmem:[#allocation22 + $0x150] ss:$12 sps:$4 sm:$0xff]   ;;  %v12621_v63 = vld [vmem:[#allocation22 + $0x138] ss:$12 sps:$4 sm:$0xff]  }
 0x970   : > { %v6369_v52 = vmax.f32 %v6360_v50, 0.0  ;;  %v6374_v7 = vpack.c.bf16 %v6368_v45, %v6368_v45  ;;  %v12623_v4 = vld [vmem:[#allocation22 + $0x13c] ss:$12 sps:$4 sm:$0xff]   ;;  %v12627_v3 = vld [vmem:[#allocation22 + $0x120] ss:$12 sps:$4 sm:$0xff]  }
 0x971   : > { %11907 = vmatpush3.bf16.msra.mxu0 %v6373_v40  ;;  %v12629_v43 = vld [vmem:[#allocation22 + $0x124] ss:$12 sps:$4 sm:$0xff]   ;;  %v12630_v25 = vld [vmem:[#allocation22 + $0x180] ss:$12 sps:$4 sm:$0xff]   ;;  %v12633_v38 = vld [vmem:[#allocation22 + $0x108] ss:$12 sps:$4 sm:$0xff]  }
 0x972   : > { %v6375_v44 = vpack.c.bf16 %v6369_v52, %v6369_v52  ;;  %10668 = vmatprep.subr.msk.bf16.mxu0 %vm1807_vm1, %v10666_v62  ;;  %v6392_v42 = vand.u32 %v6390_v53, %v6374_v7  ;;  %v12632_v13 = vld [vmem:[#allocation22 + $0x184] ss:$12 sps:$4 sm:$0xff]   ;;  %v12635_v11 = vld [vmem:[#allocation22 + $0x10c] ss:$12 sps:$4 sm:$0xff]   ;;  %v12640_v47 = vld [vmem:[#allocation22 + $0xf4] ss:$12 sps:$4 sm:$0xff]  }
 0x973   : > { %v12636_v8 = vld [vmem:[#allocation22 + $0x170] ss:$12 sps:$4 sm:$0xff]   ;;  %v12643_v49 = vld [vmem:[#allocation22 + $0xd8] ss:$12 sps:$4 sm:$0xff]   ;;  %v12648_v41 = vld [vmem:[#allocation22 + $0xc0] ss:$12 sps:$4 sm:$0xff]  }
 0x974   : > { %11909 = vmatmul.mubr.msk.bf16.vlgmr.msra.gmra.mxu0 %vm6384_vm3, %v12582_v20  ;;  %v6395_v14 = vand.u32 %v6390_v53, %v6375_v44  ;;  %v12604_v53 = vld [vmem:[#allocation22] ss:$12 sps:$4 sm:$0xff]   ;;  %v12638_v35 = vld [vmem:[#allocation22 + $0xf0] ss:$12 sps:$4 sm:$0xff]   ;;  %v12666_v17 = vld [vmem:[#allocation23 + $0x78] sm:$0xff]  }
 0x975   : > { %6960 = vmatpush1.bf16.msra.mxu0 %v6902_v6  ;;  %6985 = vmatprep.mubr.bf16.mxu0 %v15577_v19  ;;  %v12586_v19 = vld [vmem:[#allocation22 + $0x90] ss:$12 sps:$4 sm:$0xff]   ;;  %v12641_v62 = vld [vmem:[#allocation22 + $0x158] ss:$12 sps:$4 sm:$0xff]   ;;  %v12647_v52 = vld [vmem:[#allocation22 + $0x80] ss:$12 sps:$4 sm:$0xff]  }
 0x976   : > { %6412 = vmatprep.subr.bf16.mxu1 %v6395_v14  ;;  %6961 = vmatprep.subr.bf16.mxu0 %v12614_v48  ;;  %v12645_v27 = vld [vmem:[#allocation22 + $0xdc] ss:$12 sps:$4 sm:$0xff]   ;;  %v12642_v50 = vld [vmem:[#allocation22 + $0x98] ss:$12 sps:$4 sm:$0xff]  }
 0x977   : > { %6413 = vmatpush1.bf16.msra.mxu1 %v6392_v42  ;;  %v12637_v46 = vld [vmem:[#allocation22 + $0xb0] ss:$12 sps:$4 sm:$0xff]   ;;  %v12652_v48 = vld [vmem:[#allocation22 + $0x68] ss:$12 sps:$4 sm:$0xff]  }
 0x978   : > { %6414 = vmatprep.subr.bf16.mxu1 %v6372_v30  ;;  %v12646_v30 = vld [vmem:[#allocation22 + $0x140] ss:$12 sps:$4 sm:$0xff]   ;;  %v12653_v42 = vld [vmem:[#allocation22 + $0x110] ss:$12 sps:$4 sm:$0xff]  }
 0x979   : > { %6962 = vmatpush1.bf16.msra.mxu0 %v12612_v15  ;;  %v12667_v15 = vld [vmem:[#allocation23 + $0x38] sm:$0xff]  }
 0x97a   : > { %6963 = vmatprep.subr.bf16.mxu0 %v12620_v61  ;;  %v12654_v61 = vld [vmem:[#allocation22 + $0x50] ss:$12 sps:$4 sm:$0xff]  }
 0x97b   : > { %6415 = vmatpush1.bf16.msra.mxu1 %v6371_v0  ;;  %v12650_v0 = vld [vmem:[#allocation22 + $0xc4] ss:$12 sps:$4 sm:$0xff]  }
 0x97c   : > { %6910 = vmatprep.subr.bf16.mxu1 %v12585_v18  ;;  %v12655_v18 = vld [vmem:[#allocation22 + $0xf8] ss:$12 sps:$4 sm:$0xff]  }
 0x97d   : > { %6964 = vmatpush1.bf16.msra.mxu0 %v12618_v9  ;;  %v12656_v9 = vld [vmem:[#allocation22 + $0x38] ss:$12 sps:$4 sm:$0xff]  }
 0x97e   : > { %10603 = vmatmul.mubr.msk.bf16.vlgmr.msra.gmra.mxu1 %vm6384_vm3, %v12582_v20  ;;  %6965 = vmatprep.subr.bf16.mxu0 %v12626_v57  ;;  %v12651_v20 = vld [vmem:[#allocation22 + $0x128] ss:$12 sps:$4 sm:$0xff]   ;;  %v12657_v57 = vld [vmem:[#allocation22 + $0xe0] ss:$12 sps:$4 sm:$0xff]  }
 0x97f   : > { %6911 = vmatpush1.bf16.msra.mxu1 %v12583_v1  ;;  %v12658_v1 = vld [vmem:[#allocation22 + $0x20] ss:$12 sps:$4 sm:$0xff]  }
 0x980   : > { %6912 = vmatprep.subr.bf16.mxu1 %v12588_v16  ;;  %v12659_v16 = vld [vmem:[#allocation22 + $0xc8] ss:$12 sps:$4 sm:$0xff]  }
 0x981   : > { %6966 = vmatpush1.bf16.msra.mxu0 %v12624_v58  ;;  %v12660_v58 = vld [vmem:[#allocation22 + $0x8] ss:$12 sps:$4 sm:$0xff]  }
 0x982   : > { %6967 = vmatprep.subr.bf16.mxu0 %v12632_v13 }
 0x983   : > { %6913 = vmatpush1.bf16.msra.mxu1 %v12586_v19  ;;  %v12661_v19 = vld [vmem:[#allocation22 + $0x1e8] ss:$0 sps:$4 sm:$0x33]  }
 0x984   : > { %6914 = vmatprep.subr.bf16.mxu1 %v12591_v32  ;;  %v6908_v32 = vsel %vm1807_vm1, %v12661_v19, 0  ;;  %v12685_v19 = vld [vmem:[#allocation23 + $0xd4] sm:$0xff]  }
 0x985   : > { %6968 = vmatpush1.bf16.msra.mxu0 %v12630_v25  ;;  %v12690_v25 = vld [vmem:[#allocation23 + $0xa0] ss:$0 sps:$4 sm:$0x33]  }
 0x986   : > { %11136 = vmatprep.subr.bf16.mxu0 %v12636_v8  ;;  %v7303_v13 = vsel %vm1807_vm1, %v12690_v25, 0  ;;  %v12699_v8 = vld [vmem:[#allocation23 + $0x88] sm:$0xff]  }
 0x987   : > { %6915 = vmatpush1.bf16.msra.mxu1 %v12589_v60  ;;  %v12662_v60 = vld [vmem:[#allocation22 + $0x1d0] ss:$12 sps:$4 sm:$0xff]  }
 0x988   : > { %6916 = vmatprep.subr.bf16.mxu1 %v12594_v12  ;;  %v12663_v12 = vld [vmem:[#allocation22 + $0x1b8] ss:$12 sps:$4 sm:$0xff]  }
 0x98b   : > { %6917 = vmatpush1.bf16.msra.mxu1 %v12592_v23  ;;  %v12664_v23 = vld [vmem:[#allocation22 + $0x1a0] ss:$12 sps:$4 sm:$0xff]  }
 0x98c   : > { %6918 = vmatprep.subr.bf16.mxu1 %v12597_v31  ;;  %v12665_v31 = vld [vmem:[#allocation22 + $0x188] ss:$12 sps:$4 sm:$0xff]  }
 0x98f   : > { %6919 = vmatpush1.bf16.msra.mxu1 %v12595_v59  ;;  %v12668_v59 = vld [vmem:[#allocation23 + $0x70] sm:$0xff]  }
 0x990   : > { %6920 = vmatprep.subr.bf16.mxu1 %v12600_v10  ;;  %v12669_v10 = vld [vmem:[#allocation23 + $0x30] sm:$0xff]  }
 0x993   : > { %6921 = vmatpush1.bf16.msra.mxu1 %v12598_v36  ;;  %v12670_v36 = vld [vmem:[#allocation23 + $0x68] sm:$0xff]  }
 0x994   : > { %6922 = vmatprep.subr.bf16.mxu1 %v12603_v5  ;;  %v12671_v5 = vld [vmem:[#allocation23 + $0x28] sm:$0xff]  }
 0x997   : > { %6923 = vmatpush1.bf16.msra.mxu1 %v12601_v29  ;;  %v12672_v29 = vld [vmem:[#allocation23 + $0x60] sm:$0xff]  }
 0x998   : > { %6924 = vmatprep.subr.bf16.mxu1 %v12606_v54  ;;  %v12673_v54 = vld [vmem:[#allocation23 + $0x20] sm:$0xff]  }
 0x99b   : > { %6925 = vmatpush1.bf16.msra.mxu1 %v12604_v53  ;;  %v12674_v53 = vld [vmem:[#allocation23 + $0x58] sm:$0xff]  }
 0x99c   : > { %6926 = vmatprep.subr.bf16.mxu1 %v12611_v26  ;;  %v12675_v26 = vld [vmem:[#allocation23 + $0x18] sm:$0xff]  }
 0x99f   : > { %6927 = vmatpush2.bf16.msra.mxu1 %v12609_v55  ;;  %v12676_v55 = vld [vmem:[#allocation23 + $0x50] sm:$0xff]  }
 0x9a0   : > { %6928 = vmatprep.subr.bf16.mxu1 %v12617_v28  ;;  %v12677_v28 = vld [vmem:[#allocation23 + $0x10] sm:$0xff]  }
 0x9a3   : > { %6929 = vmatpush2.bf16.msra.mxu1 %v12615_v34  ;;  %v12678_v34 = vld [vmem:[#allocation23 + $0x48] sm:$0xff]  }
 0x9a4   : > { %6930 = vmatprep.subr.bf16.mxu1 %v12623_v4  ;;  %v12679_v4 = vld [vmem:[#allocation23 + $0x8] sm:$0xff]  }
 0x9a7   : > { %6931 = vmatpush2.bf16.msra.mxu1 %v12621_v63  ;;  %v12680_v63 = vld [vmem:[#allocation23 + $0x40] sm:$0xff]  }
 0x9a8   : > { %6932 = vmatprep.subr.bf16.mxu1 %v12629_v43  ;;  %v12682_v43 = vld [vmem:[#allocation23 + $0x11c] sm:$0xff]  }
 0x9ab   : > { %6933 = vmatpush2.bf16.msra.mxu1 %v12627_v3  ;;  %v12681_v3 = vld [vmem:[#allocation23] sm:$0xff]  }
 0x9ac   : > { %6934 = vmatprep.subr.bf16.mxu1 %v12635_v11  ;;  %v12696_v11 = vld [vmem:[#allocation23 + $0x90] sm:$0xff]  }
 0x9af   : > { %6935 = vmatpush2.bf16.msra.mxu1 %v12633_v38  ;;  %v12693_v38 = vld [vmem:[#allocation23 + $0x98] sm:$0xff]  }
 0x9b0   : > { %6936 = vmatprep.subr.bf16.mxu1 %v12640_v47 }
 0x9b3   : > { %6937 = vmatpush2.bf16.msra.mxu1 %v12638_v35  ;;  %v12702_v35 = vld [vmem:[#allocation23 + $0x80] sm:$0xff]  }
 0x9b4   : > { %6938 = vmatprep.subr.bf16.mxu1 %v12645_v27  ;;  %v7078_v27 = vld [vmem:[%s15593_s23] ss:$2 sm:$0x7] }
 0x9b7   : > { %6939 = vmatpush2.bf16.msra.mxu1 %v12643_v49 }
 0x9b8   : > { %6940 = vmatprep.subr.bf16.mxu1 %v12650_v0  ;;  %v7087_v0 = vrot.slane %v7078_v27, %v15178_v33 }
 0x9bb   : > { %6941 = vmatpush2.bf16.msra.mxu1 %v12648_v41 }
 0x9bc   : > { %11164 = vmatprep.subr.bf16.mxu1 %v12666_v17 }
 0xa34   : > { %v6477_v2 = vpop.f32.mrf.mxu0 }
 0xa36   : > { %v11910_v39 = vpop.f32.mrf.mxu0 }
 0xa37   : > { %v7083_v39 = vrot.slane %v7078_v27, %v15174_v24 }
 0xa38   : > { %v6480_v56 = vpop.f32.mrf.mxu0 }
 0xa39   : > { %v6486_v22 = vpack.c.bf16 %v6480_v56, %v6477_v2 }
 0xa3a   : > { %v11911_v45 = vpop.f32.mrf.mxu0 }
 0xa3b   : > { %10669 = vmatmul.mubr.msk.bf16.vlgmr.msra.gmra.mxu0 %vm6897_vm4, %v6486_v22 }
 0xa3c   : > { %11137 = vmatpush3.bf16.msra.mxu0 %v12637_v46  ;;  %v15235_v46 = vld [vmem:[%s15593_s23 + $0x1] ss:$2 sm:$0x7] }
 0xa3d   : > { %11138 = vmatprep.subr.bf16.mxu0 %v12641_v62 }
 0xa3e   : > { %v6434_v51 = vpop.f32.mrf.mxu1 }
 0xa40   : > { %11139 = vmatpush3.bf16.msra.mxu0 %v12642_v50  ;;  %v6436_v40 = vpop.f32.mrf.mxu1  ;;  %v7111_v50 = vrot.slane %v15235_v46, %v15178_v33  ;;  %v12683_v33 = vld [vmem:[#allocation23 + $0xdc] sm:$0xff]  }
 0xa41   : > { %11140 = vmatprep.subr.bf16.mxu0 %v12646_v30 }
 0xa42   : > { %v6438_v7 = vpop.f32.mrf.mxu1 }
 0xa43   : > { %v6484_v44 = vpack.c.bf16 %v6438_v7, %v6434_v51 }
 0xa44   : > { %11141 = vmatpush3.bf16.msra.mxu0 %v12647_v52  ;;  %v6440_v6 = vpop.f32.mrf.mxu1  ;;  %v7107_v52 = vrot.slane %v15235_v46, %v15174_v24 }
 0xa45   : > { %v6485_v14 = vpack.c.bf16 %v6440_v6, %v6436_v40  ;;  %11142 = vmatprep.subr.bf16.mxu0 %v12651_v20 }
 0xa47   : > { %6942 = vmatprep.mubr.bf16.mxu1 %v6485_v14  ;;  %7028 = vmatprep.mubr.bf16.mxu0 %v6485_v14 }
 0xa48   : > { %11143 = vmatpush3.bf16.msra.mxu0 %v12652_v48  ;;  %6943 = vmatmul.mubr.bf16.vlgmr.msra.gmra.mxu1 %v6484_v44 }
 0xa49   : > { %11144 = vmatprep.subr.bf16.mxu0 %v12653_v42  ;;  %11165 = vmatpush3.bf16.msra.mxu1 %v12667_v15 }
 0xa4a   : > { %11166 = vmatprep.subr.bf16.mxu1 %v12668_v59  ;;  %v12691_v59 = vld [vmem:[#allocation23 + $0xfc] sm:$0xff]  }
 0xa4c   : > { %11145 = vmatpush3.bf16.msra.mxu0 %v12654_v61 }
 0xa4d   : > { %11146 = vmatprep.subr.bf16.mxu0 %v12655_v18  ;;  %11167 = vmatpush3.bf16.msra.mxu1 %v12669_v10 }
 0xa4e   : > { %11168 = vmatprep.subr.bf16.mxu1 %v12670_v36  ;;  %v12692_v36 = vld [vmem:[#allocation23 + $0xbc] sm:$0xff]  }
 0xa50   : > { %11147 = vmatpush3.bf16.msra.mxu0 %v12656_v9 }
 0xa51   : > { %11148 = vmatprep.subr.bf16.mxu0 %v12657_v57  ;;  %11169 = vmatpush3.bf16.msra.mxu1 %v12671_v5  ;;  %v12694_v5 = vld [vmem:[#allocation23 + $0xf4] sm:$0xff]  }
 0xa52   : > { %11170 = vmatprep.subr.bf16.mxu1 %v12672_v29 }
 0xa54   : > { %11149 = vmatpush3.bf16.msra.mxu0 %v12658_v1 }
 0xa55   : > { %11150 = vmatprep.subr.bf16.mxu0 %v12659_v16  ;;  %11171 = vmatpush3.bf16.msra.mxu1 %v12673_v54  ;;  %v12695_v54 = vld [vmem:[#allocation23 + $0xb4] sm:$0xff]  }
 0xa56   : > { %11172 = vmatprep.subr.bf16.mxu1 %v12674_v53  ;;  %v12697_v53 = vld [vmem:[#allocation23 + $0xec] sm:$0xff]  }
 0xa58   : > { %11151 = vmatpush3.bf16.msra.mxu0 %v12660_v58  ;;  %v12684_v58 = vld [vmem:[#allocation23 + $0x114] sm:$0xff]  }
 0xa59   : > { %11912 = vmatprep.subr.bf16.mxu0 %v13385_v21  ;;  %11173 = vmatpush3.bf16.msra.mxu1 %v12675_v26 }
 0xa5a   : > { %11174 = vmatprep.subr.bf16.mxu1 %v12676_v55 }
 0xa5b   : > { %7029 = vmatmul.mubr.bf16.vlgmr.msra.gmra.mxu0 %v6484_v44 }
 0xa5c   : > { %11913 = vmatpush3.bf16.msra.mxu0 %v6908_v32  ;;  %11922 = vmatprep.mubr.msk.bf16.mxu0 %vm13386_vm0, %v13385_v21  ;;  %v12686_v32 = vld [vmem:[#allocation23 + $0x10c] sm:$0xff]  }
 0xa5d   : > { %11914 = vmatprep.subr.bf16.mxu0 %v13385_v21  ;;  %11175 = vmatpush3.bf16.msra.mxu1 %v12677_v28  ;;  %v7091_v28 = vrot.slane %v7078_v27, %v15176_v37 }
 0xa5e   : > { %11176 = vmatprep.subr.bf16.mxu1 %v12678_v34 }
 0xa60   : > { %11915 = vmatpush3.bf16.msra.mxu0 %v12662_v60  ;;  %v12687_v60 = vld [vmem:[#allocation23 + $0xcc] sm:$0xff]  }
 0xa61   : > { %11916 = vmatprep.subr.bf16.mxu0 %v13385_v21  ;;  %11177 = vmatpush3.bf16.msra.mxu1 %v12679_v4  ;;  %v12698_v4 = vld [vmem:[#allocation23 + $0xac] sm:$0xff]  }
 0xa62   : > { %11178 = vmatprep.subr.bf16.mxu1 %v12680_v63 }
 0xa64   : > { %11917 = vmatpush3.bf16.msra.mxu0 %v12663_v12  ;;  %v12688_v12 = vld [vmem:[#allocation23 + $0x104] sm:$0xff]  }
 0xa65   : > { %11918 = vmatprep.subr.bf16.mxu0 %v13385_v21  ;;  %11179 = vmatpush3.bf16.msra.mxu1 %v12681_v3  ;;  %v12700_v3 = vld [vmem:[#allocation23 + $0xe4] sm:$0xff]  }
 0xa66   : > { %11192 = vmatprep.subr.bf16.mxu1 %v12682_v43 }
 0xa68   : > { %11919 = vmatpush3.bf16.msra.mxu0 %v12664_v23 }
 0xa69   : > { %11920 = vmatprep.subr.bf16.mxu0 %v13385_v21 }
 0xa6c   : > { %11921 = vmatpush3.bf16.msra.mxu0 %v12665_v31  ;;  %v12689_v31 = vld [vmem:[#allocation23 + $0xc4] sm:$0xff]  }
 0xa6d   : > { %11926 = vmatprep.subr.bf16.mxu0 %v13385_v21 }
 0xa6f   : > { %11923 = vmatmul.mubr.msk.bf16.vlgmr.msra.gmra.mxu0 %vm6897_vm4, %v6486_v22 }
 0xa70   : > { %11936 = vmatprep.mubr.msk.bf16.mxu0 %vm13386_vm0, %v13385_v21  ;;  %11927 = vmatpush3.bf16.msra.mxu0 %v7303_v13 }
 0xa71   : > { %11928 = vmatprep.subr.bf16.mxu0 %v13385_v21 }
 0xa74   : > { %11929 = vmatpush3.bf16.msra.mxu0 %v12693_v38  ;;  %v7115_v38 = vrot.slane %v15235_v46, %v15176_v37  ;;  %v12705_v46 = vld [vmem:[#allocation23 + $0x1e0] sm:$0xff]  }
 0xa75   : > { %11930 = vmatprep.subr.bf16.mxu0 %v13385_v21 }
 0xa78   : > { %11931 = vmatpush3.bf16.msra.mxu0 %v12696_v11 }
 0xa79   : > { %11932 = vmatprep.subr.bf16.mxu0 %v13385_v21 }
 0xa7c   : > { %11933 = vmatpush3.bf16.msra.mxu0 %v12699_v8  ;;  %v12701_v8 = vld [vmem:[#allocation23 + $0xa4] sm:$0xff]  }
 0xa7d   : > { %11934 = vmatprep.subr.bf16.mxu0 %v13385_v21 }
 0xa80   : > { %11935 = vmatpush3.bf16.msra.mxu0 %v12702_v35 }
 0xa81   : > { %11940 = vmatprep.subr.bf16.mxu0 %v13385_v21 }
 0xafb   : > { %v6987_v47 = vpop.f32.mrf.mxu0 }
 0xafd   : > { %v6989_v49 = vpop.f32.mrf.mxu0 }
 0xaff   : > { %v6991_v17 = vpop.f32.mrf.mxu0 }
 0xb01   : > { %v6993_v51 = vpop.f32.mrf.mxu0 }
 0xb08   : > { %v6944_v41 = vpop.f32.mrf.mxu1 }
 0xb09   : > { %v6988_v2 = vadd.f32 %v6987_v47, %v6944_v41  ;;  %v12703_v47 = vld [vmem:[#allocation23 + $0x1e8] ss:$0 sps:$4 sm:$0x33]  }
 0xb0a   : > { %v6946_v56 = vpop.f32.mrf.mxu1 }
 0xb0b   : > { %v6990_v22 = vadd.f32 %v6989_v49, %v6946_v56  ;;  %v7095_v40 = vmul.f32 %v7083_v39, %v6988_v2  ;;  %v7825_v2 = vsel %vm1807_vm1, %v12703_v47, 0 }
 0xb0c   : > { %v6948_v62 = vpop.f32.mrf.mxu1 }
 0xb0d   : > { %v7096_v45 = vmul.f32 %v7087_v0, %v6990_v22  ;;  %v6992_v30 = vadd.f32 %v6991_v17, %v6948_v62  ;;  %v7119_v42 = vadd.f32 %v7107_v52, %v7095_v40  ;;  %v12710_v40 = vld [vmem:[#allocation23 + $0x12c] sm:$0xff]  }
 0xb0e   : > { %v6950_v20 = vpop.f32.mrf.mxu1 }
 0xb0f   : > { %v7098_v7 = vmul.f32 %v7083_v39, %v6992_v30  ;;  %v6994_v44 = vadd.f32 %v6993_v51, %v6950_v20  ;;  %v7120_v6 = vadd.f32 %v7111_v50, %v7096_v45  ;;  %v7125_v57 = vmax.f32 %v7119_v42, 0.0  ;;  %v12704_v39 = vld [vmem:[#allocation23 + $0x144] ss:$0 sps:$4 sm:$0x33]   ;;  %v12706_v45 = vld [vmem:[#allocation23 + $0x13c] sm:$0xff]   ;;  %v12708_v30 = vld [vmem:[#allocation23 + $0x134] sm:$0xff]  }
 0xb10   : > { %v7565_v62 = vsel %vm1807_vm1, %v12704_v39, 0  ;;  %v12709_v51 = vld [vmem:[#allocation23 + $0x1d0] sm:$0xff]   ;;  %v12713_v20 = vld [vmem:[#allocation23 + $0x264] sm:$0xff]   ;;  %v12751_v39 = vld [vmem:[#allocation23 + $0x318] sm:$0xff]  }
 0xb11   : > { %v7122_v48 = vadd.f32 %v7107_v52, %v7098_v7  ;;  %v7099_v14 = vmul.f32 %v7087_v0, %v6994_v44  ;;  %v7126_v18 = vmax.f32 %v7120_v6, 0.0  ;;  %v12711_v52 = vld [vmem:[#allocation23 + $0x1c8] sm:$0xff]  }
 0xb12   : > { %v12712_v7 = vld [vmem:[#allocation23 + $0x124] sm:$0xff]  }
 0xb13   : > { %v7123_v15 = vadd.f32 %v7111_v50, %v7099_v14  ;;  %v7128_v61 = vmax.f32 %v7122_v48, 0.0  ;;  %v12707_v50 = vld [vmem:[#allocation23 + $0x1d8] sm:$0xff]   ;;  %v12714_v44 = vld [vmem:[#allocation23 + $0x224] sm:$0xff]  }
 0xb14   : > { %v12715_v48 = vld [vmem:[#allocation23 + $0x1c0] sm:$0xff]  }
 0xb15   : > { %v7129_v9 = vmax.f32 %v7123_v15, 0.0  ;;  %v15243_v16 = vpack.c.bf16 %v7128_v61, %v7125_v57  ;;  %v12717_v14 = vld [vmem:[#allocation23 + $0x25c] sm:$0xff]  }
 0xb16   : > { %v12716_v15 = vld [vmem:[#allocation23 + $0x180] sm:$0xff]  }
 0xb17   : > { %v15241_v1 = vpack.c.bf16 %v7129_v9, %v7126_v18  ;;  %v15255_v17 = vshrl.u32 %v15243_v16, 16  ;;  %v12718_v18 = vld [vmem:[#allocation23 + $0x21c] sm:$0xff]   ;;  %v7693_v47 = vrot.slane %v15243_v16, 1 }
 0xb18   : > { %v12719_v9 = vld [vmem:[#allocation23 + $0x1b8] sm:$0xff]  }
 0xb19   : > { %7337 = vmatprep.mubr.bf16.mxu1 %v15241_v1  ;;  %v15247_v24 = vshrl.u32 %v15241_v1, 16  ;;  %v7694_v57 = vrot.slane %v15241_v1, 1 }
 0xb1a   : > { %7338 = vmatmul.mubr.bf16.vlgmr.msra.gmra.mxu1 %v15243_v16 }
 0xb1b   : > { %11193 = vmatpush3.bf16.msra.mxu1 %v12683_v33  ;;  %7599 = vmatprep.mubr.bf16.mxu1 %v15247_v24  ;;  %v11152_v23 = vpop.f32.mrf.mxu0  ;;  %v7951_v42 = vrot.slane %v15247_v24, 1  ;;  %v12721_v33 = vld [vmem:[#allocation23 + $0x254] sm:$0xff]  }
 0xb1c   : > { %11194 = vmatprep.subr.bf16.mxu1 %v12684_v58  ;;  %v12720_v58 = vld [vmem:[#allocation23 + $0x178] sm:$0xff]  }
 0xb1d   : > { %v11153_v10 = vpop.f32.mrf.mxu0 }
 0xb1e   : > { %v11154_v55 = vadd.f32 %v11153_v10, %v11152_v23  ;;  %v12726_v23 = vld [vmem:[#allocation23 + $0x20c] sm:$0xff]  }
 0xb1f   : > { %11195 = vmatpush3.bf16.msra.mxu1 %v12685_v19  ;;  %v11155_v29 = vpop.f32.mrf.mxu0  ;;  %v12722_v19 = vld [vmem:[#allocation23 + $0x214] sm:$0xff]   ;;  %v12728_v10 = vld [vmem:[#allocation23 + $0x168] sm:$0xff]  }
 0xb20   : > { %11196 = vmatprep.subr.bf16.mxu1 %v12686_v32  ;;  %v12723_v32 = vld [vmem:[#allocation23 + $0x1b0] sm:$0xff]  }
 0xb21   : > { %v11156_v26 = vpop.f32.mrf.mxu0 }
 0xb22   : > { %v11157_v25 = vadd.f32 %v11156_v26, %v11155_v29  ;;  %v12733_v29 = vld [vmem:[#allocation23 + $0x23c] sm:$0xff]  }
 0xb23   : > { %11197 = vmatpush3.bf16.msra.mxu1 %v12687_v60  ;;  %v12725_v60 = vld [vmem:[#allocation23 + $0x24c] sm:$0xff]   ;;  %v12735_v26 = vld [vmem:[#allocation23 + $0x198] sm:$0xff]  }
 0xb24   : > { %11198 = vmatprep.subr.bf16.mxu1 %v12688_v12  ;;  %v12724_v12 = vld [vmem:[#allocation23 + $0x170] sm:$0xff]  }
 0xb27   : > { %11199 = vmatpush3.bf16.msra.mxu1 %v12689_v31  ;;  %v12727_v31 = vld [vmem:[#allocation23 + $0x1a8] sm:$0xff]  }
 0xb28   : > { %11200 = vmatprep.subr.bf16.mxu1 %v12691_v59  ;;  %v12729_v59 = vld [vmem:[#allocation23 + $0x244] sm:$0xff]  }
 0xb2b   : > { %11201 = vmatpush3.bf16.msra.mxu1 %v12692_v36  ;;  %v12730_v36 = vld [vmem:[#allocation23 + $0x204] sm:$0xff]  }
 0xb2c   : > { %11202 = vmatprep.subr.bf16.mxu1 %v12694_v5  ;;  %v12731_v5 = vld [vmem:[#allocation23 + $0x1a0] sm:$0xff]  }
 0xb2f   : > { %v7071_v34 = vpop.f32.mrf.mxu0  ;;  %11203 = vmatpush3.bf16.msra.mxu1 %v12695_v54  ;;  %v12732_v54 = vld [vmem:[#allocation23 + $0x160] sm:$0xff]  }
 0xb30   : > { %v7072_v63 = vadd.f32 %v11154_v55, %v7071_v34  ;;  %11204 = vmatprep.subr.bf16.mxu1 %v12697_v53  ;;  %v12734_v53 = vld [vmem:[#allocation23 + $0x1fc] sm:$0xff]   ;;  %v12737_v55 = vld [vmem:[#allocation23 + $0x234] sm:$0xff]  }
 0xb31   : > { %v11924_v43 = vpop.f32.mrf.mxu0  ;;  %v12738_v34 = vld [vmem:[#allocation23 + $0x1f4] sm:$0xff]  }
 0xb32   : > { %v7097_v13 = vmul.f32 %v7091_v28, %v7072_v63  ;;  %v12741_v63 = vld [vmem:[#allocation23 + $0x22c] sm:$0xff]  }
 0xb33   : > { %v7074_v11 = vpop.f32.mrf.mxu0  ;;  %11205 = vmatpush3.bf16.msra.mxu1 %v12698_v4  ;;  %v12739_v4 = vld [vmem:[#allocation23 + $0x190] sm:$0xff]  }
 0xb34   : > { %v7075_v35 = vadd.f32 %v11157_v25, %v7074_v11  ;;  %11206 = vmatprep.subr.bf16.mxu1 %v12700_v3  ;;  %v7121_v27 = vadd.f32 %v7115_v38, %v7097_v13  ;;  %v12740_v3 = vld [vmem:[#allocation23 + $0x150] sm:$0xff]   ;;  %v12743_v25 = vld [vmem:[#allocation23 + $0x188] sm:$0xff]  }
 0xb35   : > { %v11925_v49 = vpop.f32.mrf.mxu0  ;;  %v12742_v43 = vld [vmem:[#allocation23 + $0x1ec] sm:$0xff]  }
 0xb36   : > { %v7100_v41 = vmul.f32 %v7091_v28, %v7075_v35  ;;  %v7127_v37 = vmax.f32 %v7121_v27, 0.0  ;;  %v12736_v28 = vld [vmem:[#allocation23 + $0x158] sm:$0xff]   ;;  %v12745_v13 = vld [vmem:[#allocation23 + $0x330] ss:$0 sps:$4 sm:$0x33]   ;;  %v12747_v27 = vld [vmem:[#allocation23 + $0x328] sm:$0xff]  }
 0xb37   : > { %11207 = vmatpush3.bf16.msra.mxu1 %v12701_v8  ;;  %v12746_v11 = vld [vmem:[#allocation23 + $0x28c] ss:$0 sps:$4 sm:$0x33]   ;;  %v7950_v8 = vrot.slane %v15255_v17, 1  ;;  %v8339_v35 = vsel %vm1807_vm1, %v12745_v13, 0  ;;  %v12789_v13 = vld [vmem:[#allocation23 + $0x470] sm:$0xff]  }
 0xb38   : > { %v7124_v0 = vadd.f32 %v7115_v38, %v7100_v41  ;;  %11954 = vmatprep.subr.bf16.mxu1 %v13385_v21  ;;  %v12744_v38 = vld [vmem:[#allocation23 + $0x148] sm:$0xff]   ;;  %v8082_v49 = vsel %vm1807_vm1, %v12746_v11, 0 }
 0xb39   : > { %v12748_v41 = vld [vmem:[#allocation23 + $0x284] sm:$0xff]  }
 0xb3a   : > { %v7130_v56 = vmax.f32 %v7124_v0, 0.0  ;;  %7600 = vmatmul.mubr.bf16.vlgmr.msra.gmra.mxu1 %v15255_v17  ;;  %v12749_v0 = vld [vmem:[#allocation23 + $0x320] sm:$0xff]   ;;  %v12791_v11 = vld [vmem:[#allocation23 + $0x468] sm:$0xff]  }
 0xb3b   : > { %11955 = vmatpush3.bf16.msra.mxu1 %v7825_v2  ;;  %11964 = vmatprep.mubr.msk.bf16.mxu1 %vm13386_vm0, %v13385_v21  ;;  %v12750_v2 = vld [vmem:[#allocation23 + $0x27c] sm:$0xff]  }
 0xb3c   : > { %v15262_v22 = vpack.c.bf16 %v7130_v56, %v7127_v37  ;;  %11956 = vmatprep.subr.bf16.mxu1 %v13385_v21  ;;  %v12752_v37 = vld [vmem:[#allocation23 + $0x274] sm:$0xff]  }
 0xb3d   : > { %v12753_v56 = vld [vmem:[#allocation23 + $0x310] sm:$0xff]  }
 0xb3e   : > { %11937 = vmatmul.mubr.msk.bf16.vlgmr.msra.gmra.mxu0 %vm6897_vm4, %v15262_v22  ;;  %v7695_v6 = vrot.slane %v15262_v22, 1  ;;  %v15281_v61 = vshrl.u32 %v15262_v22, 16 }
 0xb3f   : > { %11941 = vmatpush3.bf16.msra.mxu0 %v7565_v62  ;;  %11957 = vmatpush3.bf16.msra.mxu1 %v12705_v46  ;;  %v12755_v46 = vld [vmem:[#allocation23 + $0x3ac] sm:$0xff]  }
 0xb40   : > { %11942 = vmatprep.subr.bf16.mxu0 %v13385_v21  ;;  %11958 = vmatprep.subr.bf16.mxu1 %v13385_v21  ;;  %v12754_v62 = vld [vmem:[#allocation23 + $0x26c] sm:$0xff]  }
 0xb41   : > { %11950 = vmatprep.mubr.msk.bf16.mxu0 %vm13386_vm0, %v13385_v21 }
 0xb43   : > { %11943 = vmatpush3.bf16.msra.mxu0 %v12706_v45  ;;  %11959 = vmatpush3.bf16.msra.mxu1 %v12707_v50  ;;  %v12756_v45 = vld [vmem:[#allocation23 + $0x36c] sm:$0xff]   ;;  %v8209_v50 = vrot.slane %v15262_v22, 2 }
 0xb44   : > { %11944 = vmatprep.subr.bf16.mxu0 %v13385_v21  ;;  %11960 = vmatprep.subr.bf16.mxu1 %v13385_v21 }
 0xb47   : > { %11945 = vmatpush3.bf16.msra.mxu0 %v12708_v30  ;;  %11961 = vmatpush3.bf16.msra.mxu1 %v12709_v51  ;;  %v12757_v30 = vld [vmem:[#allocation23 + $0x308] sm:$0xff]  }
 0xb48   : > { %11946 = vmatprep.subr.bf16.mxu0 %v13385_v21  ;;  %11962 = vmatprep.subr.bf16.mxu1 %v13385_v21  ;;  %v12759_v51 = vld [vmem:[#allocation23 + $0x3a4] sm:$0xff]  }
 0xb4b   : > { %11947 = vmatpush3.bf16.msra.mxu0 %v12710_v40  ;;  %11963 = vmatpush3.bf16.msra.mxu1 %v12711_v52  ;;  %v8465_v40 = vrot.slane %v15247_v24, 2  ;;  %v12758_v52 = vld [vmem:[#allocation23 + $0x2c8] sm:$0xff]  }
 0xb4c   : > { %11948 = vmatprep.subr.bf16.mxu0 %v13385_v21  ;;  %11248 = vmatprep.subr.bf16.mxu1 %v12713_v20  ;;  %v7952_v20 = vrot.slane %v15281_v61, 1 }
 0xb4e   : > { %11965 = vmatmul.mubr.msk.bf16.vlgmr.msra.gmra.mxu1 %vm6897_vm4, %v7695_v6  ;;  %v8208_v6 = vrot.slane %v15241_v1, 2 }
 0xb4f   : > { %11949 = vmatpush3.bf16.msra.mxu0 %v12712_v7  ;;  %11249 = vmatpush3.bf16.msra.mxu1 %v12714_v44  ;;  %v12760_v7 = vld [vmem:[#allocation23 + $0x364] sm:$0xff]  }
 0xb50   : > { %8116 = vmatprep.mubr.bf16.mxu1 %v7951_v42  ;;  %11220 = vmatprep.subr.bf16.mxu0 %v12715_v48  ;;  %v12761_v44 = vld [vmem:[#allocation23 + $0x300] sm:$0xff]  }
 0xb51   : > { %11250 = vmatprep.subr.bf16.mxu1 %v12717_v14  ;;  %v12763_v48 = vld [vmem:[#allocation23 + $0x39c] sm:$0xff]  }
 0xb52   : > { %11951 = vmatmul.mubr.msk.bf16.vlgmr.msra.gmra.mxu0 %vm6897_vm4, %v15281_v61  ;;  %v12762_v14 = vld [vmem:[#allocation23 + $0x2c0] sm:$0xff]  }
 0xb53   : > { %11221 = vmatpush3.bf16.msra.mxu0 %v12716_v15  ;;  %7859 = vmatprep.mubr.bf16.mxu0 %v7694_v57  ;;  %v12764_v42 = vld [vmem:[#allocation23 + $0x35c] sm:$0xff]   ;;  %v12768_v57 = vld [vmem:[#allocation23 + $0x354] sm:$0xff]  }
 0xb54   : > { %11251 = vmatpush3.bf16.msra.mxu1 %v12718_v18  ;;  %11222 = vmatprep.subr.bf16.mxu0 %v12719_v9  ;;  %v12765_v15 = vld [vmem:[#allocation23 + $0x2f8] sm:$0xff]  }
 0xb55   : > { %11252 = vmatprep.subr.bf16.mxu1 %v12721_v33  ;;  %v12767_v18 = vld [vmem:[#allocation23 + $0x394] sm:$0xff]  }
 0xb56   : > { %v12766_v9 = vld [vmem:[#allocation23 + $0x2b8] sm:$0xff]   ;;  %v12769_v33 = vld [vmem:[#allocation23 + $0x2f0] sm:$0xff]  }
 0xb57   : > { %11223 = vmatpush3.bf16.msra.mxu0 %v12720_v58  ;;  %v12771_v58 = vld [vmem:[#allocation23 + $0x38c] sm:$0xff]  }
 0xb58   : > { %11253 = vmatpush3.bf16.msra.mxu1 %v12722_v19  ;;  %11224 = vmatprep.subr.bf16.mxu0 %v12723_v32  ;;  %v12770_v19 = vld [vmem:[#allocation23 + $0x2b0] sm:$0xff]  }
 0xb59   : > { %11254 = vmatprep.subr.bf16.mxu1 %v12725_v60  ;;  %v12772_v32 = vld [vmem:[#allocation23 + $0x34c] sm:$0xff]  }
 0xb5a   : > { %v12773_v60 = vld [vmem:[#allocation23 + $0x2e8] sm:$0xff]  }
 0xb5b   : > { %11225 = vmatpush3.bf16.msra.mxu0 %v12724_v12  ;;  %v12775_v12 = vld [vmem:[#allocation23 + $0x384] sm:$0xff]  }
 0xb5c   : > { %11255 = vmatpush3.bf16.msra.mxu1 %v12726_v23  ;;  %11226 = vmatprep.subr.bf16.mxu0 %v12727_v31  ;;  %v12774_v23 = vld [vmem:[#allocation23 + $0x2a8] sm:$0xff]  }
 0xb5d   : > { %11256 = vmatprep.subr.bf16.mxu1 %v12729_v59  ;;  %v12776_v31 = vld [vmem:[#allocation23 + $0x344] sm:$0xff]  }
 0xb5e   : > { %v12777_v59 = vld [vmem:[#allocation23 + $0x2e0] sm:$0xff]  }
 0xb5f   : > { %11227 = vmatpush3.bf16.msra.mxu0 %v12728_v10  ;;  %v12779_v10 = vld [vmem:[#allocation23 + $0x37c] sm:$0xff]  }
 0xb60   : > { %11257 = vmatpush3.bf16.msra.mxu1 %v12730_v36  ;;  %11228 = vmatprep.subr.bf16.mxu0 %v12731_v5  ;;  %v12778_v36 = vld [vmem:[#allocation23 + $0x2a0] sm:$0xff]  }
 0xb61   : > { %11258 = vmatprep.subr.bf16.mxu1 %v12733_v29  ;;  %v12780_v5 = vld [vmem:[#allocation23 + $0x33c] sm:$0xff]  }
 0xb62   : > { %v12781_v29 = vld [vmem:[#allocation23 + $0x2d8] sm:$0xff]  }
 0xb63   : > { %11229 = vmatpush3.bf16.msra.mxu0 %v12732_v54  ;;  %v12783_v54 = vld [vmem:[#allocation23 + $0x374] sm:$0xff]  }
 0xb64   : > { %11259 = vmatpush3.bf16.msra.mxu1 %v12734_v53  ;;  %11230 = vmatprep.subr.bf16.mxu0 %v12735_v26  ;;  %v12782_v53 = vld [vmem:[#allocation23 + $0x298] sm:$0xff]  }
 0xb65   : > { %11260 = vmatprep.subr.bf16.mxu1 %v12737_v55  ;;  %v12784_v26 = vld [vmem:[#allocation23 + $0x334] sm:$0xff]  }
 0xb66   : > { %v12785_v55 = vld [vmem:[#allocation23 + $0x2d0] sm:$0xff]  }
 0xb67   : > { %11231 = vmatpush3.bf16.msra.mxu0 %v12736_v28  ;;  %v12787_v28 = vld [vmem:[#allocation23 + $0x478] ss:$0 sps:$4 sm:$0x33]  }
 0xb68   : > { %11261 = vmatpush3.bf16.msra.mxu1 %v12738_v34  ;;  %11232 = vmatprep.subr.bf16.mxu0 %v12739_v4  ;;  %v12786_v34 = vld [vmem:[#allocation23 + $0x290] sm:$0xff]  }
 0xb69   : > { %11262 = vmatprep.subr.bf16.mxu1 %v12741_v63  ;;  %v12788_v4 = vld [vmem:[#allocation23 + $0x3d4] ss:$0 sps:$4 sm:$0x33]   ;;  %v8464_v63 = vrot.slane %v15255_v17, 2 }
 0xb6b   : > { %11233 = vmatpush3.bf16.msra.mxu0 %v12740_v3  ;;  %v8853_v3 = vsel %vm1807_vm1, %v12787_v28, 0  ;;  %v12831_v28 = vld [vmem:[#allocation23 + $0x5b8] sm:$0xff]  }
 0xb6c   : > { %11263 = vmatpush3.bf16.msra.mxu1 %v12742_v43  ;;  %11234 = vmatprep.subr.bf16.mxu0 %v12743_v25  ;;  %v8207_v43 = vrot.slane %v15243_v16, 2  ;;  %v8596_v25 = vsel %vm1807_vm1, %v12788_v4, 0  ;;  %v12832_v4 = vld [vmem:[#allocation23 + $0x514] sm:$0xff]  }
 0xb6d   : > { %11982 = vmatprep.subr.bf16.mxu1 %v13385_v21 }
 0xb6f   : > { %11235 = vmatpush3.bf16.msra.mxu0 %v12744_v38  ;;  %8117 = vmatmul.mubr.bf16.vlgmr.msra.gmra.mxu1 %v7950_v8  ;;  %v12790_v38 = vld [vmem:[#allocation23 + $0x3cc] sm:$0xff]   ;;  %v12792_v8 = vld [vmem:[#allocation23 + $0x3c4] sm:$0xff]  }
 0xb70   : > { %11983 = vmatpush3.bf16.msra.mxu1 %v8339_v35  ;;  %11968 = vmatprep.subr.bf16.mxu0 %v13385_v21  ;;  %v12793_v35 = vld [vmem:[#allocation23 + $0x460] sm:$0xff]  }
 0xb71   : > { %11984 = vmatprep.subr.bf16.mxu1 %v13385_v21  ;;  %11992 = vmatprep.mubr.msk.bf16.mxu1 %vm13386_vm0, %v13385_v21 }
 0xb72   : > { %7860 = vmatmul.mubr.bf16.vlgmr.msra.gmra.mxu0 %v7693_v47  ;;  %v12794_v47 = vld [vmem:[#allocation23 + $0x3bc] sm:$0xff]  }
 0xb73   : > { %11969 = vmatpush3.bf16.msra.mxu0 %v8082_v49  ;;  %11978 = vmatprep.mubr.msk.bf16.mxu0 %vm13386_vm0, %v13385_v21  ;;  %v12795_v49 = vld [vmem:[#allocation23 + $0x458] sm:$0xff]  }
 0xb74   : > { %11985 = vmatpush3.bf16.msra.mxu1 %v12747_v27  ;;  %11970 = vmatprep.subr.bf16.mxu0 %v13385_v21  ;;  %v12797_v27 = vld [vmem:[#allocation23 + $0x4f4] sm:$0xff]  }
 0xb75   : > { %11986 = vmatprep.subr.bf16.mxu1 %v13385_v21 }
 0xb77   : > { %11971 = vmatpush3.bf16.msra.mxu0 %v12748_v41  ;;  %v12796_v41 = vld [vmem:[#allocation23 + $0x3b4] sm:$0xff]  }
 0xb78   : > { %11987 = vmatpush3.bf16.msra.mxu1 %v12749_v0  ;;  %11972 = vmatprep.subr.bf16.mxu0 %v13385_v21  ;;  %v12798_v0 = vld [vmem:[#allocation23 + $0x4b4] sm:$0xff]  }
 0xb79   : > { %11988 = vmatprep.subr.bf16.mxu1 %v13385_v21 }
 0xb7b   : > { %11973 = vmatpush3.bf16.msra.mxu0 %v12750_v2  ;;  %v8723_v2 = vrot.slane %v15262_v22, 3 }
 0xb7c   : > { %11989 = vmatpush3.bf16.msra.mxu1 %v12751_v39  ;;  %11974 = vmatprep.subr.bf16.mxu0 %v13385_v21  ;;  %v12799_v39 = vld [vmem:[#allocation23 + $0x450] sm:$0xff]  }
 0xb7d   : > { %11990 = vmatprep.subr.bf16.mxu1 %v13385_v21 }
 0xb7f   : > { %11975 = vmatpush3.bf16.msra.mxu0 %v12752_v37  ;;  %v12801_v37 = vld [vmem:[#allocation23 + $0x4ec] sm:$0xff]  }
 0xb80   : > { %11991 = vmatpush3.bf16.msra.mxu1 %v12753_v56  ;;  %11976 = vmatprep.subr.bf16.mxu0 %v13385_v21  ;;  %v8979_v56 = vrot.slane %v15247_v24, 3 }
 0xb81   : > { %11304 = vmatprep.subr.bf16.mxu1 %v12755_v46  ;;  %v12800_v46 = vld [vmem:[#allocation23 + $0x410] sm:$0xff]  }
 0xb83   : > { %11977 = vmatpush3.bf16.msra.mxu0 %v12754_v62  ;;  %11993 = vmatmul.mubr.msk.bf16.vlgmr.msra.gmra.mxu1 %vm6897_vm4, %v8209_v50  ;;  %v8466_v62 = vrot.slane %v15281_v61, 2  ;;  %v12803_v50 = vld [vmem:[#allocation23 + $0x448] sm:$0xff]  }
 0xb84   : > { %11305 = vmatpush3.bf16.msra.mxu1 %v12756_v45  ;;  %8630 = vmatprep.mubr.bf16.mxu1 %v8465_v40  ;;  %v12802_v45 = vld [vmem:[#allocation23 + $0x4ac] sm:$0xff]  }
 0xb85   : > { %11276 = vmatprep.subr.bf16.mxu0 %v12757_v30  ;;  %11306 = vmatprep.subr.bf16.mxu1 %v12759_v51  ;;  %v8722_v30 = vrot.slane %v15241_v1, 3  ;;  %v12805_v51 = vld [vmem:[#allocation23 + $0x4e4] sm:$0xff]  }
 0xb86   : > { %11979 = vmatmul.mubr.msk.bf16.vlgmr.msra.gmra.mxu0 %vm6897_vm4, %v7952_v20  ;;  %v12804_v40 = vld [vmem:[#allocation23 + $0x408] sm:$0xff]   ;;  %v12807_v20 = vld [vmem:[#allocation23 + $0x440] sm:$0xff]  }
 0xb87   : > { %11277 = vmatpush3.bf16.msra.mxu0 %v12758_v52  ;;  %8373 = vmatprep.mubr.bf16.mxu0 %v8208_v6  ;;  %v12806_v52 = vld [vmem:[#allocation23 + $0x4a4] sm:$0xff]   ;;  %v12810_v6 = vld [vmem:[#allocation23 + $0x49c] sm:$0xff]  }
 0xb88   : > { %11307 = vmatpush3.bf16.msra.mxu1 %v12760_v7  ;;  %11278 = vmatprep.subr.bf16.mxu0 %v12761_v44  ;;  %v12809_v7 = vld [vmem:[#allocation23 + $0x4dc] sm:$0xff]  }
 0xb89   : > { %11308 = vmatprep.subr.bf16.mxu1 %v12763_v48  ;;  %v12808_v44 = vld [vmem:[#allocation23 + $0x400] sm:$0xff]   ;;  %v12811_v48 = vld [vmem:[#allocation23 + $0x438] sm:$0xff]  }
 0xb8b   : > { %11279 = vmatpush3.bf16.msra.mxu0 %v12762_v14  ;;  %v12813_v14 = vld [vmem:[#allocation23 + $0x4d4] sm:$0xff]  }
 0xb8c   : > { %11309 = vmatpush3.bf16.msra.mxu1 %v12764_v42  ;;  %11280 = vmatprep.subr.bf16.mxu0 %v12765_v15  ;;  %v12812_v42 = vld [vmem:[#allocation23 + $0x3f8] sm:$0xff]  }
 0xb8d   : > { %11310 = vmatprep.subr.bf16.mxu1 %v12767_v18  ;;  %v12814_v15 = vld [vmem:[#allocation23 + $0x494] sm:$0xff]  }
 0xb8e   : > { %v12815_v18 = vld [vmem:[#allocation23 + $0x430] sm:$0xff]  }
 0xb8f   : > { %11281 = vmatpush3.bf16.msra.mxu0 %v12766_v9  ;;  %v12817_v9 = vld [vmem:[#allocation23 + $0x4cc] sm:$0xff]  }
 0xb90   : > { %11311 = vmatpush3.bf16.msra.mxu1 %v12768_v57  ;;  %11282 = vmatprep.subr.bf16.mxu0 %v12769_v33  ;;  %v12816_v57 = vld [vmem:[#allocation23 + $0x3f0] sm:$0xff]  }
 0xb91   : > { %11312 = vmatprep.subr.bf16.mxu1 %v12771_v58  ;;  %v12818_v33 = vld [vmem:[#allocation23 + $0x48c] sm:$0xff]  }
 0xb92   : > { %v12819_v58 = vld [vmem:[#allocation23 + $0x428] sm:$0xff]  }
 0xb93   : > { %11283 = vmatpush3.bf16.msra.mxu0 %v12770_v19  ;;  %v12821_v19 = vld [vmem:[#allocation23 + $0x4c4] sm:$0xff]  }
 0xb94   : > { %11313 = vmatpush3.bf16.msra.mxu1 %v12772_v32  ;;  %11284 = vmatprep.subr.bf16.mxu0 %v12773_v60  ;;  %v12820_v32 = vld [vmem:[#allocation23 + $0x3e8] sm:$0xff]  }
 0xb95   : > { %11314 = vmatprep.subr.bf16.mxu1 %v12775_v12  ;;  %v12822_v60 = vld [vmem:[#allocation23 + $0x484] sm:$0xff]  }
 0xb96   : > { %v12823_v12 = vld [vmem:[#allocation23 + $0x420] sm:$0xff]  }
 0xb97   : > { %11285 = vmatpush3.bf16.msra.mxu0 %v12774_v23  ;;  %v12825_v23 = vld [vmem:[#allocation23 + $0x4bc] sm:$0xff]  }
 0xb98   : > { %11315 = vmatpush3.bf16.msra.mxu1 %v12776_v31  ;;  %11286 = vmatprep.subr.bf16.mxu0 %v12777_v59  ;;  %v12824_v31 = vld [vmem:[#allocation23 + $0x3e0] sm:$0xff]  }
 0xb99   : > { %11316 = vmatprep.subr.bf16.mxu1 %v12779_v10  ;;  %v12826_v59 = vld [vmem:[#allocation23 + $0x47c] sm:$0xff]  }
 0xb9a   : > { %v12827_v10 = vld [vmem:[#allocation23 + $0x418] sm:$0xff]  }
 0xb9b   : > { %11287 = vmatpush3.bf16.msra.mxu0 %v12778_v36  ;;  %v12829_v36 = vld [vmem:[#allocation23 + $0x5c0] ss:$0 sps:$4 sm:$0x33]  }
 0xb9c   : > { %11317 = vmatpush3.bf16.msra.mxu1 %v12780_v5  ;;  %11288 = vmatprep.subr.bf16.mxu0 %v12781_v29  ;;  %v12828_v5 = vld [vmem:[#allocation23 + $0x3d8] sm:$0xff]  }
 0xb9d   : > { %11318 = vmatprep.subr.bf16.mxu1 %v12783_v54  ;;  %v12830_v29 = vld [vmem:[#allocation23 + $0x51c] ss:$0 sps:$4 sm:$0x33]   ;;  %v8978_v54 = vrot.slane %v15255_v17, 3 }
 0xb9f   : > { %11289 = vmatpush3.bf16.msra.mxu0 %v12782_v53  ;;  %v9367_v53 = vsel %vm1807_vm1, %v12829_v36, 0  ;;  %v12865_v36 = vld [vmem:[#allocation23 + $0x568] sm:$0xff]  }
 0xba0   : > { %11319 = vmatpush3.bf16.msra.mxu1 %v12784_v26  ;;  %11290 = vmatprep.subr.bf16.mxu0 %v12785_v55  ;;  %v8721_v26 = vrot.slane %v15243_v16, 3  ;;  %v9110_v55 = vsel %vm1807_vm1, %v12830_v29, 0 }
 0xba1   : > { %12010 = vmatprep.subr.bf16.mxu1 %v13385_v21 }
 0xba3   : > { %11291 = vmatpush3.bf16.msra.mxu0 %v12786_v34  ;;  %8631 = vmatmul.mubr.bf16.vlgmr.msra.gmra.mxu1 %v8464_v63 }
 0xba4   : > { %12011 = vmatpush3.bf16.msra.mxu1 %v8853_v3  ;;  %11996 = vmatprep.subr.bf16.mxu0 %v13385_v21  ;;  %v12833_v3 = vld [vmem:[#allocation23 + $0x5b0] sm:$0xff]  }
 0xba5   : > { %12012 = vmatprep.subr.bf16.mxu1 %v13385_v21  ;;  %12020 = vmatprep.mubr.msk.bf16.mxu1 %vm13386_vm0, %v13385_v21 }
 0xba6   : > { %8374 = vmatmul.mubr.bf16.vlgmr.msra.gmra.mxu0 %v8207_v43 }
 0xba7   : > { %11997 = vmatpush3.bf16.msra.mxu0 %v8596_v25  ;;  %12006 = vmatprep.mubr.msk.bf16.mxu0 %vm13386_vm0, %v13385_v21 }
 0xba8   : > { %12013 = vmatpush3.bf16.msra.mxu1 %v12789_v13  ;;  %11998 = vmatprep.subr.bf16.mxu0 %v13385_v21  ;;  %v12834_v13 = vld [vmem:[#allocation23 + $0x50c] sm:$0xff]  }
 0xba9   : > { %12014 = vmatprep.subr.bf16.mxu1 %v13385_v21 }
 0xbab   : > { %11999 = vmatpush3.bf16.msra.mxu0 %v12790_v38 }
 0xbac   : > { %12015 = vmatpush3.bf16.msra.mxu1 %v12791_v11  ;;  %12000 = vmatprep.subr.bf16.mxu0 %v13385_v21  ;;  %v12835_v11 = vld [vmem:[#allocation23 + $0x5a8] sm:$0xff]  }
 0xbad   : > { %12016 = vmatprep.subr.bf16.mxu1 %v13385_v21 }
 0xbaf   : > { %12001 = vmatpush3.bf16.msra.mxu0 %v12792_v8  ;;  %v12836_v8 = vld [vmem:[#allocation23 + $0x504] sm:$0xff]  }
 0xbb0   : > { %12017 = vmatpush3.bf16.msra.mxu1 %v12793_v35  ;;  %12002 = vmatprep.subr.bf16.mxu0 %v13385_v21  ;;  %v12837_v35 = vld [vmem:[#allocation23 + $0x5a0] sm:$0xff]  }
 0xbb1   : > { %12018 = vmatprep.subr.bf16.mxu1 %v13385_v21 }
 0xbb3   : > { %12003 = vmatpush3.bf16.msra.mxu0 %v12794_v47  ;;  %v12839_v47 = vld [vmem:[#allocation23 + $0x63c] sm:$0xff]  }
 0xbb4   : > { %12019 = vmatpush3.bf16.msra.mxu1 %v12795_v49  ;;  %12004 = vmatprep.subr.bf16.mxu0 %v13385_v21  ;;  %v12838_v49 = vld [vmem:[#allocation23 + $0x4fc] sm:$0xff]  }
 0xbb5   : > { %11360 = vmatprep.subr.bf16.mxu1 %v12797_v27  ;;  %v12840_v27 = vld [vmem:[#allocation23 + $0x5fc] sm:$0xff]  }
 0xbb7   : > { %12005 = vmatpush3.bf16.msra.mxu0 %v12796_v41  ;;  %12021 = vmatmul.mubr.msk.bf16.vlgmr.msra.gmra.mxu1 %vm6897_vm4, %v8723_v2  ;;  %v9237_v41 = vrot.slane %v15262_v22, 4  ;;  %v12843_v2 = vld [vmem:[#allocation23 + $0x634] sm:$0xff]  }
 0xbb8   : > { %11361 = vmatpush3.bf16.msra.mxu1 %v12798_v0  ;;  %9144 = vmatprep.mubr.bf16.mxu1 %v8979_v56  ;;  %v12841_v0 = vld [vmem:[#allocation23 + $0x598] sm:$0xff]   ;;  %v8980_v56 = vrot.slane %v15281_v61, 3 }
 0xbb9   : > { %11332 = vmatprep.subr.bf16.mxu0 %v12799_v39  ;;  %11362 = vmatprep.subr.bf16.mxu1 %v12801_v37  ;;  %v9493_v39 = vrot.slane %v15247_v24, 4  ;;  %v12842_v37 = vld [vmem:[#allocation23 + $0x558] sm:$0xff]   ;;  %v12846_v24 = vld [vmem:[#allocation23 + $0x550] sm:$0xff]  }
 0xbba   : > { %12007 = vmatmul.mubr.msk.bf16.vlgmr.msra.gmra.mxu0 %vm6897_vm4, %v8466_v62  ;;  %v12845_v62 = vld [vmem:[#allocation23 + $0x590] sm:$0xff]  }
 0xbbb   : > { %11333 = vmatpush3.bf16.msra.mxu0 %v12800_v46  ;;  %8887 = vmatprep.mubr.bf16.mxu0 %v8722_v30  ;;  %v12844_v46 = vld [vmem:[#allocation23 + $0x5f4] sm:$0xff]   ;;  %v12848_v30 = vld [vmem:[#allocation23 + $0x5ec] sm:$0xff]  }
 0xbbc   : > { %11363 = vmatpush3.bf16.msra.mxu1 %v12802_v45  ;;  %11334 = vmatprep.subr.bf16.mxu0 %v12803_v50  ;;  %v9236_v45 = vrot.slane %v15241_v1, 4  ;;  %v12847_v50 = vld [vmem:[#allocation23 + $0x62c] sm:$0xff]  }
 0xbbd   : > { %11364 = vmatprep.subr.bf16.mxu1 %v12805_v51  ;;  %v12849_v51 = vld [vmem:[#allocation23 + $0x588] sm:$0xff]  }
 0xbbf   : > { %11335 = vmatpush3.bf16.msra.mxu0 %v12804_v40  ;;  %v12851_v40 = vld [vmem:[#allocation23 + $0x624] sm:$0xff]  }
 0xbc0   : > { %11365 = vmatpush3.bf16.msra.mxu1 %v12806_v52  ;;  %11336 = vmatprep.subr.bf16.mxu0 %v12807_v20  ;;  %v12850_v52 = vld [vmem:[#allocation23 + $0x548] sm:$0xff]  }
 0xbc1   : > { %11366 = vmatprep.subr.bf16.mxu1 %v12809_v7  ;;  %v12852_v20 = vld [vmem:[#allocation23 + $0x5e4] sm:$0xff]  }
 0xbc2   : > { %v12853_v7 = vld [vmem:[#allocation23 + $0x580] sm:$0xff]  }
 0xbc3   : > { %11337 = vmatpush3.bf16.msra.mxu0 %v12808_v44  ;;  %v12855_v44 = vld [vmem:[#allocation23 + $0x61c] sm:$0xff]  }
 0xbc4   : > { %11367 = vmatpush3.bf16.msra.mxu1 %v12810_v6  ;;  %11338 = vmatprep.subr.bf16.mxu0 %v12811_v48  ;;  %v12854_v6 = vld [vmem:[#allocation23 + $0x540] sm:$0xff]  }
 0xbc5   : > { %11368 = vmatprep.subr.bf16.mxu1 %v12813_v14  ;;  %v12856_v48 = vld [vmem:[#allocation23 + $0x5dc] sm:$0xff]  }
 0xbc6   : > { %v12857_v14 = vld [vmem:[#allocation23 + $0x578] sm:$0xff]  }
 0xbc7   : > { %11339 = vmatpush3.bf16.msra.mxu0 %v12812_v42  ;;  %v12859_v42 = vld [vmem:[#allocation23 + $0x614] sm:$0xff]  }
 0xbc8   : > { %11369 = vmatpush3.bf16.msra.mxu1 %v12814_v15  ;;  %11340 = vmatprep.subr.bf16.mxu0 %v12815_v18  ;;  %v12858_v18 = vld [vmem:[#allocation23 + $0x538] sm:$0xff]  }
 0xbc9   : > { %11370 = vmatprep.subr.bf16.mxu1 %v12817_v9 }
 0xbcb   : > { %11341 = vmatpush3.bf16.msra.mxu0 %v12816_v57  ;;  %v12860_v57 = vld [vmem:[#allocation23 + $0x5d4] sm:$0xff]  }
 0xbcc   : > { %11371 = vmatpush3.bf16.msra.mxu1 %v12818_v33  ;;  %11342 = vmatprep.subr.bf16.mxu0 %v12819_v58  ;;  %v12861_v33 = vld [vmem:[#allocation23 + $0x570] sm:$0xff]  }
 0xbcd   : > { %11372 = vmatprep.subr.bf16.mxu1 %v12821_v19  ;;  %v12863_v19 = vld [vmem:[#allocation23 + $0x60c] sm:$0xff]  }
 0xbcf   : > { %11343 = vmatpush3.bf16.msra.mxu0 %v12820_v32 }
 0xbd0   : > { %11373 = vmatpush3.bf16.msra.mxu1 %v12822_v60  ;;  %11344 = vmatprep.subr.bf16.mxu0 %v12823_v12 }
 0xbd1   : > { %11374 = vmatprep.subr.bf16.mxu1 %v12825_v23  ;;  %v12862_v23 = vld [vmem:[#allocation23 + $0x530] sm:$0xff]  }
 0xbd3   : > { %11345 = vmatpush3.bf16.msra.mxu0 %v12824_v31 }
 0xbd4   : > { %11375 = vmatpush3.bf16.msra.mxu1 %v12826_v59  ;;  %11346 = vmatprep.subr.bf16.mxu0 %v12827_v10  ;;  %v12864_v10 = vld [vmem:[#allocation23 + $0x5cc] sm:$0xff]  }
 0xbd5   : > { %12038 = vmatprep.subr.bf16.mxu1 %v13385_v21 }
 0xbd7   : > { %11347 = vmatpush3.bf16.msra.mxu0 %v12828_v5  ;;  %9145 = vmatmul.mubr.bf16.vlgmr.msra.gmra.mxu1 %v8978_v54  ;;  %v12867_v5 = vld [vmem:[#allocation23 + $0x604] sm:$0xff]  }
 0xbd8   : > { %12039 = vmatpush3.bf16.msra.mxu1 %v9367_v53  ;;  %12024 = vmatprep.subr.bf16.mxu0 %v13385_v21  ;;  %v12866_v54 = vld [vmem:[#allocation23 + $0x528] sm:$0xff]  }
 0xbd9   : > { %12040 = vmatprep.subr.bf16.mxu1 %v13385_v21  ;;  %12048 = vmatprep.mubr.msk.bf16.mxu1 %vm13386_vm0, %v13385_v21 }
 0xbda   : > { %8888 = vmatmul.mubr.bf16.vlgmr.msra.gmra.mxu0 %v8721_v26  ;;  %v11180_v34 = vpop.f32.mrf.mxu1  ;;  %v12868_v26 = vld [vmem:[#allocation23 + $0x5c4] sm:$0xff]  }
 0xbdb   : > { %12025 = vmatpush3.bf16.msra.mxu0 %v9110_v55  ;;  %12034 = vmatprep.mubr.msk.bf16.mxu0 %vm13386_vm0, %v13385_v21  ;;  %v12869_v55 = vld [vmem:[#allocation23 + $0x560] sm:$0xff]  }
 0xbdc   : > { %12041 = vmatpush3.bf16.msra.mxu1 %v12831_v28  ;;  %v11181_v63 = vpop.f32.mrf.mxu1  ;;  %12026 = vmatprep.subr.bf16.mxu0 %v13385_v21  ;;  %v12871_v28 = vld [vmem:[#allocation23 + $0x708] ss:$0 sps:$4 sm:$0x33]  }
 0xbdd   : > { %v15346_v43 = vadd.f32 %v11181_v63, %v11180_v34  ;;  %12042 = vmatprep.subr.bf16.mxu1 %v13385_v21  ;;  %v12870_v34 = vld [vmem:[#allocation23 + $0x520] sm:$0xff]   ;;  %v9492_v63 = vrot.slane %v15255_v17, 4 }
 0xbde   : > { %v11183_v25 = vpop.f32.mrf.mxu1 }
 0xbdf   : > { %12027 = vmatpush3.bf16.msra.mxu0 %v12832_v4  ;;  %v12872_v4 = vld [vmem:[#allocation23 + $0x664] ss:$0 sps:$4 sm:$0x33]  }
 0xbe0   : > { %12043 = vmatpush3.bf16.msra.mxu1 %v12833_v3  ;;  %v11184_v38 = vpop.f32.mrf.mxu1  ;;  %12028 = vmatprep.subr.bf16.mxu0 %v13385_v21  ;;  %v9881_v3 = vsel %vm1807_vm1, %v12871_v28, 0  ;;  %v9624_v25 = vsel %vm1807_vm1, %v12872_v4, 0 }
 0xbe1   : > { %12044 = vmatprep.subr.bf16.mxu1 %v13385_v21  ;;  %v12874_v38 = vld [vmem:[#allocation23 + $0x65c] sm:$0xff]  }
 0xbe3   : > { %12029 = vmatpush3.bf16.msra.mxu0 %v12834_v13  ;;  %v12873_v13 = vld [vmem:[#allocation23 + $0x700] sm:$0xff]  }
 0xbe4   : > { %12045 = vmatpush3.bf16.msra.mxu1 %v12835_v11  ;;  %12030 = vmatprep.subr.bf16.mxu0 %v13385_v21  ;;  %v7134_v11 = vld [vmem:[%s15594_s6] sm:$0x1] }
 0xbe5   : > { %12046 = vmatprep.subr.bf16.mxu1 %v13385_v21 }
 0xbe7   : > { %12031 = vmatpush3.bf16.msra.mxu0 %v12836_v8 }
 0xbe8   : > { %12047 = vmatpush3.bf16.msra.mxu1 %v12837_v35  ;;  %12032 = vmatprep.subr.bf16.mxu0 %v13385_v21  ;;  %v12875_v35 = vld [vmem:[#allocation23 + $0x6f8] sm:$0xff]  }
 0xbe9   : > { %11416 = vmatprep.subr.bf16.mxu1 %v12839_v47 }
 0xbeb   : > { %12033 = vmatpush3.bf16.msra.mxu0 %v12838_v49  ;;  %12049 = vmatmul.mubr.msk.bf16.vlgmr.msra.gmra.mxu1 %vm6897_vm4, %v9237_v41 }
 0xbec   : > { %11417 = vmatpush3.bf16.msra.mxu1 %v12840_v27  ;;  %9658 = vmatprep.mubr.bf16.mxu1 %v9493_v39 }
 0xbed   : > { %11388 = vmatprep.subr.bf16.mxu0 %v12841_v0  ;;  %11418 = vmatprep.subr.bf16.mxu1 %v12843_v2  ;;  %v12876_v0 = vld [vmem:[#allocation23 + $0x654] sm:$0xff]  }
 0xbee   : > { %12035 = vmatmul.mubr.msk.bf16.vlgmr.msra.gmra.mxu0 %vm6897_vm4, %v8980_v56 }
 0xbef   : > { %11389 = vmatpush3.bf16.msra.mxu0 %v12842_v37  ;;  %9401 = vmatprep.mubr.bf16.mxu0 %v9236_v45  ;;  %v12877_v37 = vld [vmem:[#allocation23 + $0x6f0] sm:$0xff]  }
 0xbf0   : > { %11419 = vmatpush3.bf16.msra.mxu1 %v12844_v46  ;;  %11390 = vmatprep.subr.bf16.mxu0 %v12845_v62  ;;  %v12878_v62 = vld [vmem:[#allocation23 + $0x64c] sm:$0xff]  }
 0xbf1   : > { %11420 = vmatprep.subr.bf16.mxu1 %v12847_v50  ;;  %v12879_v50 = vld [vmem:[#allocation23 + $0x6e8] sm:$0xff]  }
 0xbf3   : > { %11391 = vmatpush3.bf16.msra.mxu0 %v12846_v24  ;;  %v12880_v24 = vld [vmem:[#allocation23 + $0x644] sm:$0xff]  }
 0xbf4   : > { %11421 = vmatpush3.bf16.msra.mxu1 %v12848_v30  ;;  %11392 = vmatprep.subr.bf16.mxu0 %v12849_v51  ;;  %v12881_v30 = vld [vmem:[#allocation23 + $0x6e0] sm:$0xff]   ;;  %v9751_v51 = vrot.slane %v15262_v22, 5  ;;  %v12887_v22 = vld [vmem:[#allocation23 + $0x6c8] sm:$0xff]  }
 0xbf5   : > { %11422 = vmatprep.subr.bf16.mxu1 %v12851_v40  ;;  %v12882_v40 = vld [vmem:[#allocation23 + $0x6a0] sm:$0xff]  }
 0xbf7   : > { %11393 = vmatpush3.bf16.msra.mxu0 %v12850_v52  ;;  %v9494_v52 = vrot.slane %v15281_v61, 4 }
 0xbf8   : > { %11423 = vmatpush3.bf16.msra.mxu1 %v12852_v20  ;;  %11394 = vmatprep.subr.bf16.mxu0 %v12853_v7  ;;  %v12883_v20 = vld [vmem:[#allocation23 + $0x6d8] sm:$0xff]   ;;  %v9750_v7 = vrot.slane %v15241_v1, 5 }
 0xbf9   : > { %11424 = vmatprep.subr.bf16.mxu1 %v12855_v44  ;;  %v12884_v44 = vld [vmem:[#allocation23 + $0x698] sm:$0xff]  }
 0xbfa   : > { %v11208_v15 = vpop.f32.mrf.mxu1  ;;  %v12891_v1 = vld [vmem:[#allocation23 + $0x6b8] sm:$0xff]  }
 0xbfb   : > { %11395 = vmatpush3.bf16.msra.mxu0 %v12854_v6  ;;  %v12886_v6 = vld [vmem:[#allocation23 + $0x690] sm:$0xff]  }
 0xbfc   : > { %11425 = vmatpush3.bf16.msra.mxu1 %v12856_v48  ;;  %v11209_v9 = vpop.f32.mrf.mxu1  ;;  %11396 = vmatprep.subr.bf16.mxu0 %v12857_v14  ;;  %v12888_v48 = vld [vmem:[#allocation23 + $0x688] sm:$0xff]   ;;  %v12889_v14 = vld [vmem:[#allocation23 + $0x6c0] sm:$0xff]  }
 0xbfd   : > { %v11210_v58 = vadd.f32 %v11209_v9, %v11208_v15  ;;  %11426 = vmatprep.subr.bf16.mxu1 %v12859_v42  ;;  %v12890_v42 = vld [vmem:[#allocation23 + $0x680] sm:$0xff]  }
 0xbfe   : > { %v7379_v32 = vpop.f32.mrf.mxu0  ;;  %v11211_v60 = vpop.f32.mrf.mxu1 }
 0xbff   : > { %v7380_v12 = vadd.f32 %v15346_v43, %v7379_v32  ;;  %11397 = vmatpush3.bf16.msra.mxu0 %v12858_v18  ;;  %v9235_v43 = vrot.slane %v15243_v16, 4 }
 0xc00   : > { %11427 = vmatpush3.bf16.msra.mxu1 %v12860_v57  ;;  %v11938_v31 = vpop.f32.mrf.mxu0  ;;  %v11212_v59 = vpop.f32.mrf.mxu1  ;;  %11398 = vmatprep.subr.bf16.mxu0 %v12861_v33  ;;  %v12892_v33 = vld [vmem:[#allocation23 + $0x678] sm:$0xff]  }
 0xc01   : > { %11428 = vmatprep.subr.bf16.mxu1 %v12863_v19  ;;  %v7385_v27 = vadd.f32 %v7380_v12, %v7134_v11  ;;  %v12893_v19 = vld [vmem:[#allocation23 + $0x6b0] sm:$0xff]  }
 0xc02   : > { %v7382_v29 = vpop.f32.mrf.mxu0  ;;  %v12894_v31 = vld [vmem:[#allocation23 + $0x670] sm:$0xff]  }
 0xc03   : > { %11399 = vmatpush3.bf16.msra.mxu0 %v12862_v23  ;;  %v9749_v29 = vrot.slane %v15243_v16, 5 }
 0xc04   : > { %11429 = vmatpush3.bf16.msra.mxu1 %v12864_v10  ;;  %v11939_v53 = vpop.f32.mrf.mxu0  ;;  %11400 = vmatprep.subr.bf16.mxu0 %v12865_v36  ;;  %v12895_v10 = vld [vmem:[#allocation23 + $0x6a8] sm:$0xff]  }
 0xc05   : > { %11430 = vmatprep.subr.bf16.mxu1 %v12867_v5  ;;  %v12896_v5 = vld [vmem:[#allocation23 + $0x668] sm:$0xff]  }
 0xc07   : > { %11401 = vmatpush3.bf16.msra.mxu0 %v12866_v54 }
 0xc08   : > { %11431 = vmatpush3.bf16.msra.mxu1 %v12868_v26  ;;  %11402 = vmatprep.subr.bf16.mxu0 %v12869_v55 }
 0xc09   : > { %12066 = vmatprep.subr.bf16.mxu1 %v13385_v21 }
 0xc0b   : > { %11403 = vmatpush3.bf16.msra.mxu0 %v12870_v34  ;;  %9659 = vmatmul.mubr.bf16.vlgmr.msra.gmra.mxu1 %v9492_v63 }
 0xc0c   : > { %12067 = vmatpush3.bf16.msra.mxu1 %v9881_v3  ;;  %12052 = vmatprep.subr.bf16.mxu0 %v13385_v21 }
 0xc0d   : > { %12068 = vmatprep.subr.bf16.mxu1 %v13385_v21  ;;  %12076 = vmatprep.mubr.msk.bf16.mxu1 %vm13386_vm0, %v13385_v21 }
 0xc0e   : > { %9402 = vmatmul.mubr.bf16.vlgmr.msra.gmra.mxu0 %v9235_v43  ;;  %v15370_v17 = vpop.f32.mrf.mxu1 }
 0xc0f   : > { %12053 = vmatpush3.bf16.msra.mxu0 %v9624_v25  ;;  %12062 = vmatprep.mubr.msk.bf16.mxu0 %vm13386_vm0, %v13385_v21 }
 0xc10   : > { %12069 = vmatpush3.bf16.msra.mxu1 %v12873_v13  ;;  %v11966_v8 = vpop.f32.mrf.mxu1  ;;  %12054 = vmatprep.subr.bf16.mxu0 %v13385_v21 }
 0xc11   : > { %12070 = vmatprep.subr.bf16.mxu1 %v13385_v21 }
 0xc12   : > { %v7641_v47 = vpop.f32.mrf.mxu0  ;;  %v7904_v49 = vpop.f32.mrf.mxu1 }
 0xc13   : > { %v7642_v41 = vadd.f32 %v11210_v58, %v7641_v47  ;;  %12055 = vmatpush3.bf16.msra.mxu0 %v12874_v38 }
 0xc14   : > { %v11952_v2 = vpop.f32.mrf.mxu0  ;;  %12071 = vmatpush3.bf16.msra.mxu1 %v12875_v35  ;;  %v11967_v39 = vpop.f32.mrf.mxu1  ;;  %12056 = vmatprep.subr.bf16.mxu0 %v13385_v21 }
 0xc15   : > { %v7647_v56 = vadd.f32 %v7642_v41, %v7385_v27  ;;  %12072 = vmatprep.subr.bf16.mxu1 %v13385_v21 }
 0xc16   : > { %v7644_v46 = vpop.f32.mrf.mxu0 }
 0xc17   : > { %12057 = vmatpush3.bf16.msra.mxu0 %v12876_v0 }
 0xc18   : > { %v11953_v45 = vpop.f32.mrf.mxu0  ;;  %12073 = vmatpush3.bf16.msra.mxu1 %v12877_v37  ;;  %12058 = vmatprep.subr.bf16.mxu0 %v13385_v21 }
 0xc19   : > { %12074 = vmatprep.subr.bf16.mxu1 %v13385_v21 }
 0xc1b   : > { %12059 = vmatpush3.bf16.msra.mxu0 %v12878_v62 }
 0xc1c   : > { %12075 = vmatpush3.bf16.msra.mxu1 %v12879_v50  ;;  %12060 = vmatprep.subr.bf16.mxu0 %v13385_v21  ;;  %v12885_v21 = vld [vmem:[#allocation23 + $0x6d0] sm:$0xff]  }
 0xc1f   : > { %12061 = vmatpush3.bf16.msra.mxu0 %v12880_v24  ;;  %12077 = vmatmul.mubr.msk.bf16.vlgmr.msra.gmra.mxu1 %vm6897_vm4, %v9751_v51 }
 0xc20   : > { %11444 = vmatprep.subr.bf16.mxu0 %v12881_v30 }
 0xc22   : > { %12063 = vmatmul.mubr.msk.bf16.vlgmr.msra.gmra.mxu0 %vm6897_vm4, %v9494_v52 }
 0xc23   : > { %11445 = vmatpush3.bf16.msra.mxu0 %v12882_v40  ;;  %9915 = vmatprep.mubr.bf16.mxu0 %v9750_v7 }
 0xc24   : > { %11446 = vmatprep.subr.bf16.mxu0 %v12883_v20 }
 0xc27   : > { %11447 = vmatpush3.bf16.msra.mxu0 %v12884_v44 }
 0xc28   : > { %11448 = vmatprep.subr.bf16.mxu0 %v12885_v21 }
 0xc2b   : > { %11449 = vmatpush3.bf16.msra.mxu0 %v12886_v6 }
 0xc2c   : > { %11450 = vmatprep.subr.bf16.mxu0 %v12887_v22 }
 0xc2f   : > { %v11264_v61 = vpop.f32.mrf.mxu1  ;;  %11451 = vmatpush3.bf16.msra.mxu0 %v12888_v48 }
 0xc30   : > { %11452 = vmatprep.subr.bf16.mxu0 %v12889_v14 }
 0xc31   : > { %v11265_v15 = vpop.f32.mrf.mxu1 }
 0xc32   : > { %v11266_v18 = vadd.f32 %v11265_v15, %v11264_v61  ;;  %v11236_v9 = vpop.f32.mrf.mxu0 }
 0xc33   : > { %v11267_v57 = vpop.f32.mrf.mxu1  ;;  %11453 = vmatpush3.bf16.msra.mxu0 %v12890_v42 }
 0xc34   : > { %v11237_v58 = vpop.f32.mrf.mxu0  ;;  %11454 = vmatprep.subr.bf16.mxu0 %v12891_v1 }
 0xc35   : > { %v11238_v32 = vadd.f32 %v11237_v58, %v11236_v9  ;;  %v11268_v60 = vpop.f32.mrf.mxu1 }
 0xc36   : > { %v11239_v12 = vpop.f32.mrf.mxu0 }
 0xc37   : > { %v7902_v23 = vadd.f32 %v11238_v32, %v15370_v17  ;;  %11455 = vmatpush3.bf16.msra.mxu0 %v12892_v33 }
 0xc38   : > { %v11240_v59 = vpop.f32.mrf.mxu0  ;;  %11456 = vmatprep.subr.bf16.mxu0 %v12893_v19 }
 0xc39   : > { %v7907_v36 = vadd.f32 %v7902_v23, %v7647_v56 }
 0xc3b   : > { %11457 = vmatpush3.bf16.msra.mxu0 %v12894_v31 }
 0xc3c   : > { %11458 = vmatprep.subr.bf16.mxu0 %v12895_v10 }
 0xc3f   : > { %11459 = vmatpush3.bf16.msra.mxu0 %v12896_v5 }
 0xc42   : > { %9916 = vmatmul.mubr.bf16.vlgmr.msra.gmra.mxu0 %v9749_v29 }
 0xc43   : > { %v8415_v54 = vpop.f32.mrf.mxu1 }
 0xc45   : > { %v11994_v53 = vpop.f32.mrf.mxu1 }
 0xc46   : > { %v8158_v26 = vpop.f32.mrf.mxu0 }
 0xc47   : > { %v8159_v55 = vadd.f32 %v11266_v18, %v8158_v26  ;;  %v8418_v28 = vpop.f32.mrf.mxu1 }
 0xc48   : > { %v11980_v34 = vpop.f32.mrf.mxu0 }
 0xc49   : > { %v8164_v4 = vadd.f32 %v8159_v55, %v7907_v36  ;;  %v11995_v63 = vpop.f32.mrf.mxu1 }
 0xc4a   : > { %v8161_v3 = vpop.f32.mrf.mxu0 }
 0xc4c   : > { %v11981_v43 = vpop.f32.mrf.mxu0 }
 0xc63   : > { %v11320_v25 = vpop.f32.mrf.mxu1 }
 0xc65   : > { %v11321_v13 = vpop.f32.mrf.mxu1 }
 0xc66   : > { %v11322_v17 = vadd.f32 %v11321_v13, %v11320_v25  ;;  %v11292_v38 = vpop.f32.mrf.mxu0 }
 0xc67   : > { %v11323_v11 = vpop.f32.mrf.mxu1 }
 0xc68   : > { %v11293_v8 = vpop.f32.mrf.mxu0 }
 0xc69   : > { %v11294_v35 = vadd.f32 %v11293_v8, %v11292_v38  ;;  %v11324_v47 = vpop.f32.mrf.mxu1 }
 0xc6a   : > { %v11295_v16 = vpop.f32.mrf.mxu0 }
 0xc6b   : > { %v8416_v49 = vadd.f32 %v11294_v35, %v8415_v54 }
 0xc6c   : > { %v11296_v27 = vpop.f32.mrf.mxu0 }
 0xc6d   : > { %v8421_v41 = vadd.f32 %v8416_v49, %v8164_v4 }
 0xc77   : > { %v8929_v0 = vpop.f32.mrf.mxu1 }
 0xc79   : > { %v12022_v2 = vpop.f32.mrf.mxu1 }
 0xc7a   : > { %v8672_v39 = vpop.f32.mrf.mxu0 }
 0xc7b   : > { %v8673_v37 = vadd.f32 %v11322_v17, %v8672_v39  ;;  %v8932_v56 = vpop.f32.mrf.mxu1 }
 0xc7c   : > { %v12008_v46 = vpop.f32.mrf.mxu0 }
 0xc7d   : > { %v8678_v62 = vadd.f32 %v8673_v37, %v8421_v41  ;;  %v12023_v45 = vpop.f32.mrf.mxu1 }
 0xc7e   : > { %v8675_v50 = vpop.f32.mrf.mxu0 }
 0xc80   : > { %v12009_v24 = vpop.f32.mrf.mxu0 }
 0xc97   : > { %v11376_v30 = vpop.f32.mrf.mxu1 }
 0xc99   : > { %v11377_v51 = vpop.f32.mrf.mxu1 }
 0xc9a   : > { %v11378_v40 = vadd.f32 %v11377_v51, %v11376_v30  ;;  %v11348_v52 = vpop.f32.mrf.mxu0 }
 0xc9b   : > { %v11379_v20 = vpop.f32.mrf.mxu1 }
 0xc9c   : > { %v11349_v7 = vpop.f32.mrf.mxu0 }
 0xc9d   : > { %v11350_v44 = vadd.f32 %v11349_v7, %v11348_v52  ;;  %v11380_v21 = vpop.f32.mrf.mxu1 }
 0xc9e   : > { %v11351_v6 = vpop.f32.mrf.mxu0 }
 0xc9f   : > { %v8930_v22 = vadd.f32 %v11350_v44, %v8929_v0 }
 0xca0   : > { %v11352_v48 = vpop.f32.mrf.mxu0 }
 0xca1   : > { %v8935_v14 = vadd.f32 %v8930_v22, %v8678_v62 }
 0xcab   : > { %v9443_v61 = vpop.f32.mrf.mxu1 }
 0xcad   : > { %v12050_v42 = vpop.f32.mrf.mxu1 }
 0xcae   : > { %v9186_v1 = vpop.f32.mrf.mxu0 }
 0xcaf   : > { %v9187_v15 = vadd.f32 %v11378_v40, %v9186_v1  ;;  %v9446_v18 = vpop.f32.mrf.mxu1 }
 0xcb0   : > { %v12036_v9 = vpop.f32.mrf.mxu0 }
 0xcb1   : > { %v9192_v57 = vadd.f32 %v9187_v15, %v8935_v14  ;;  %v12051_v33 = vpop.f32.mrf.mxu1 }
 0xcb2   : > { %v9189_v58 = vpop.f32.mrf.mxu0 }
 0xcb4   : > { %v12037_v19 = vpop.f32.mrf.mxu0 }
 0xccb   : > { %v11432_v32 = vpop.f32.mrf.mxu1 }
 0xccd   : > { %v11433_v60 = vpop.f32.mrf.mxu1 }
 0xcce   : > { %v11404_v12 = vpop.f32.mrf.mxu0  ;;  %v11434_v43 = vadd.f32 %v11433_v60, %v11432_v32 }
 0xccf   : > { %v11435_v23 = vpop.f32.mrf.mxu1 }
 0xcd0   : > { %v11405_v31 = vpop.f32.mrf.mxu0 }
 0xcd1   : > { %v11406_v59 = vadd.f32 %v11405_v31, %v11404_v12  ;;  %v11436_v10 = vpop.f32.mrf.mxu1 }
 0xcd2   : > { %v11407_v36 = vpop.f32.mrf.mxu0 }
 0xcd3   : > { %v9444_v5 = vadd.f32 %v11406_v59, %v9443_v61 }
 0xcd4   : > { %v11408_v29 = vpop.f32.mrf.mxu0 }
 0xcd5   : > { %v9449_v54 = vadd.f32 %v9444_v5, %v9192_v57 }
 0xcdf   : > { %v9957_v53 = vpop.f32.mrf.mxu1 }
 0xce1   : > { %v12078_v26 = vpop.f32.mrf.mxu1 }
 0xce2   : > { %v9700_v55 = vpop.f32.mrf.mxu0 }
 0xce3   : > { %v9960_v28 = vpop.f32.mrf.mxu1  ;;  %v9701_v13 = vadd.f32 %v11434_v43, %v9700_v55 }
 0xce4   : > { %v12064_v34 = vpop.f32.mrf.mxu0 }
 0xce5   : > { %v12079_v4 = vpop.f32.mrf.mxu1  ;;  %v9706_v8 = vadd.f32 %v9701_v13, %v9449_v54 }
 0xce6   : > { %v9703_v63 = vpop.f32.mrf.mxu0 }
 0xce8   : > { %v12065_v3 = vpop.f32.mrf.mxu0 }
 0xd02   : > { %v11460_v25 = vpop.f32.mrf.mxu0 }
 0xd04   : > { %v11461_v17 = vpop.f32.mrf.mxu0 }
 0xd05   : > { %v11462_v38 = vadd.f32 %v11461_v17, %v11460_v25 }
 0xd06   : > { %v11463_v11 = vpop.f32.mrf.mxu0 }
 0xd07   : > { %v9958_v35 = vadd.f32 %v11462_v38, %v9957_v53 }
 0xd08   : > { %v11464_v47 = vpop.f32.mrf.mxu0 }
 0xd09   : > { %v9963_v16 = vadd.f32 %v9958_v35, %v9706_v8 }
 0xd0b   : > { %12897 = vtanh.f32 %v9963_v16 }
 0xd18   : > { %v12898_v49 = vpop.eup %12897 }
 0xd19   : > { %9965 = vst [vmem:[%s744_s8] sm:$0x1] %v12898_v49 }
 0xd1a   : > { %13278 = shalt.err (!%p13275_p13)
}
 0xd1b   : > { %s13279_s1 = scalar_lea.hbm %s15396_s21, 16  ;;  %s13283_s7 = scalar_lea.hbm %s15595_s28, 32 }
 0xd1c   : > { %p13280_p4 = scmp.ne.s32.totalorder %s15396_s21, %s13279_s1  ;;  %p13284_p9 = scmp.lt.s32.totalorder %s15396_s21, %s15595_s28 }
 0xd1d   : > { %p13285_p11 = scmp.lt.s32.totalorder %s13283_s7, %s13279_s1 }
 0xd1e   : > { %p13281_p1 = pnand %p13280_p4, %p15596_p6 }
 0xd1f   : > { %p13286_p7 = por %p13285_p11, %p13284_p9 }
 0xd20   : > { %p13282_p8 = pneg %p13281_p1 }
 0xd22   : > { %p13287_p0 = pnand %p13286_p7, %p13282_p8 }
 0xd24   : > { %13290 = shalt.err (!%p13287_p0)
}
 0xd25   : > { %12157 = dma.vmem_to_hbm [thread:$0]  (%p15596_p6), %s9980_s4, 16, %s15396_s21, %s9967_s2  }
 0xd26 PF: > { %s9991_s9 = sand.u32 1, %s13345_s24   ;;  %p15597_p2 = scmp.ne.s32.totalorder %s15498_s19, 0 }
 0xd27   : > { %p15598_p5 = scmp.ge.s32.totalorder %s13357_s27, 2  ;;  %s9992_s16 = scalar_lea.sflag [#allocation4], %s9991_s9 }
 0xd29   : > { %p12204_p10 = pnand %p15598_p5, %p15597_p2 }
 0xd2b   : > { %p12205_p3 = pneg %p12204_p10 }
 0xd2d   : > { %13340 = dma.done.wait (%p12205_p3), %s9992_s16, 16  }
 0xd2e   : > { %13342 = vsyncadd (%p12205_p3), %s9992_s16, 4294967280  ;;  %p37_p12 = scmp.ge.s32.totalorder %s13641_s22, 4   ;;  %s15599_s24 = smov %s13349_s25 }
 0xd2f   : > { %s15600_s25 = smov %s13353_s26  ;;  %s15601_s26 = smov %s13653_s14 }
 0xd30   : > { %s15602_s27 = smov %s13641_s22  ;;  %39 = sbr.rel (!%p37_p12) target bundleno = 26 (0x1a), region = 213 }
 0xd35   :  { %9996 = vsyncpa [#allocation3], 1 }
 0xd36   :  { %9998 = vsyncpa [#allocation3 + $0x1], 1 }
 0xd37   :  { %9999 = vsyncpa [#allocation6], 1 }
 0xd38   :  { %10000 = vsyncpa [#allocation9], 1 }
 0xd39   :  { %10001 = vsyncpa [#allocation12], 1 }
 0xd3a   :  { %10002 = vsyncpa [#allocation15], 1 }
 0xd3b   :  { %10003 = vsyncpa [#allocation18], 1 }
 0xd3c   :  { %10004 = vsyncpa [#allocation21], 1 }
 0xd3d   :  { %10005 = vsyncpa [#allocation24], 1 }
 0xd3e   :  { %10006 = vsyncpa [#allocation4], 1 }
 0xd3f   :  { %10008 = vsyncpa [#allocation4 + $0x1], 1 }

</bundles_post_ra>
